<compile_context>
chip_gen: v5e
topology: v5e:2x2
jax: 0.10.0
libtpu: 0.0.40
codegen_flags: <defaults>
</compile_context>

<pallas_src>
import functools

import jax
import jax.numpy as jnp
from jax.experimental import pallas as pl
from jax.experimental.pallas import tpu as pltpu


# -----------------------------------------------------------------------------
# Pallas kernel: one MXU pass (taps folded into K) + bias + BN + act + skip-add
# -----------------------------------------------------------------------------
def _conv_kernel(*refs, act, alpha, has_bn, has_skip):
    # refs layout: patches, weight, bias, [bn_scale, bn_shift], [skip], out
    p_ref, w_ref, b_ref = refs[0], refs[1], refs[2]
    i = 3
    if has_bn:
        g_ref, s_ref = refs[i], refs[i + 1]
        i += 2
    if has_skip:
        skip_ref = refs[i]
        i += 1
    o_ref = refs[i]

    # bf16 x bf16 -> f32 accumulate on the MXU; K = KH*KW*Cin fills the array.
    y = jnp.dot(p_ref[...], w_ref[...], preferred_element_type=jnp.float32)
    y = y + b_ref[...]                       # bias                  (tm, Cout)
    if has_bn:                               # folded eval-mode BatchNorm
        y = y * g_ref[...] + s_ref[...]
    if act == "prelu":
        y = jnp.where(y >= 0.0, y, alpha * y)
    elif act == "tanh":
        y = jnp.tanh(y)
    if has_skip:                             # fused residual / skip add
        y = y + skip_ref[...].astype(jnp.float32)
    o_ref[...] = y.astype(o_ref.dtype)


def _im2col_folded(x, kh, kw):
    """x: (N,H,W,Cin) -> (N*H*W, KH*KW*Cin) patches in (ky, kx, cin) order.

    Matches w.reshape(KH*KW*Cin, Cout), so the taps are folded into matmul K.
    Pure data-movement glue (XLA pad / slice / concat).
    """
    n, h, w, c = x.shape
    ph, pw = kh // 2, kw // 2
    xp = jnp.pad(x, ((0, 0), (ph, ph), (pw, pw), (0, 0)))
    cols = [xp[:, ky:ky + h, kx:kx + w, :]
            for ky in range(kh) for kx in range(kw)]
    return jnp.concatenate(cols, axis=-1).reshape(n * h * w, kh * kw * c)


def _choose_tm(m, tm_max=1024):
    """Largest sensible M-tile (multiple of 16 for bf16 sublane packing) while
    keeping >=2 tiles when possible so v7x's two TensorCores both get work."""
    tm = min(tm_max, max(128, pl.cdiv(m, 2)))
    tm = pl.cdiv(tm, 16) * 16
    return min(tm, pl.cdiv(m, 16) * 16)


def conv2d_fused(x, w, b, *, bn_scale=None, bn_shift=None, skip=None,
                 act="none", alpha=0.25, tm_max=1024):
    """Fused 'same' conv + bias [+ folded BN] [+ act] [+ skip add].

    x: (N,H,W,Cin)  w: (KH,KW,Cin,Cout)  b/bn_scale/bn_shift: (Cout,)
    skip: (N,H,W,Cout) or None.  Returns (N,H,W,Cout) in x.dtype.
    """
    n, h, wd, cin = x.shape
    kh, kw, _, cout = w.shape
    m = n * h * wd
    kfold = kh * kw * cin

    # bf16 operands for the MXU (halves patch/weight HBM bytes too).
    patches = _im2col_folded(x.astype(jnp.bfloat16), kh, kw)      # (M, Kfold)
    w2 = w.reshape(kfold, cout).astype(jnp.bfloat16)              # (Kfold, Cout)

    tm = _choose_tm(m, tm_max)
    m_pad = pl.cdiv(m, tm) * tm
    if m_pad != m:                                                # ragged tail
        patches = jnp.pad(patches, ((0, m_pad - m), (0, 0)))

    has_bn = bn_scale is not None
    has_skip = skip is not None

    inputs = [patches, w2, b.reshape(1, cout).astype(jnp.float32)]
    in_specs = [
        pl.BlockSpec((tm, kfold), lambda i: (i, 0)),
        pl.BlockSpec((kfold, cout), lambda i: (0, 0)),   # VMEM-resident weight
        pl.BlockSpec((1, cout), lambda i: (0, 0)),       # VMEM-resident bias
    ]
    if has_bn:
        inputs += [bn_scale.reshape(1, cout).astype(jnp.float32),
                   bn_shift.reshape(1, cout).astype(jnp.float32)]
        in_specs += [pl.BlockSpec((1, cout), lambda i: (0, 0)),
                     pl.BlockSpec((1, cout), lambda i: (0, 0))]
    if has_skip:
        skip2 = skip.reshape(m, cout)
        if m_pad != m:
            skip2 = jnp.pad(skip2, ((0, m_pad - m), (0, 0)))
        inputs.append(skip2)
        in_specs.append(pl.BlockSpec((tm, cout), lambda i: (i, 0)))

    kern = functools.partial(_conv_kernel, act=act, alpha=alpha,
                             has_bn=has_bn, has_skip=has_skip)
    out = pl.pallas_call(
        kern,
        out_shape=jax.ShapeDtypeStruct((m_pad, cout), x.dtype),
        grid_spec=pltpu.PrefetchScalarGridSpec(
            num_scalar_prefetch=0,
            grid=(m_pad // tm,),
            in_specs=in_specs,
            out_specs=pl.BlockSpec((tm, cout), lambda i: (i, 0)),
        ),
        compiler_params=pltpu.CompilerParams(
            dimension_semantics=("parallel",),
            vmem_limit_bytes=64 * 1024 * 1024),
    )(*inputs)

    if m_pad != m:
        out = out[:m]
    return out.reshape(n, h, wd, cout)


# -----------------------------------------------------------------------------
# Plain-JAX glue
# -----------------------------------------------------------------------------
def pixel_shuffle(x, r):
    """NHWC equivalent of torch.nn.PixelShuffle(r)."""
    n, h, w, c = x.shape
    co = c // (r * r)
    x = x.reshape(n, h, w, co, r, r)
    x = jnp.transpose(x, (0, 1, 4, 2, 5, 3))
    return x.reshape(n, h * r, w * r, co)


def _init_conv(key, cin, cout, ksize, bn):
    k1, k2, k3, k4, k5, k6 = jax.random.split(key, 6)
    fan_in = cin * ksize * ksize
    bound = 1.0 / jnp.sqrt(jnp.float32(fan_in))
    p = {
        "w": jax.random.uniform(k1, (ksize, ksize, cin, cout), jnp.float32,
                                -bound, bound),
        "b": jax.random.uniform(k2, (cout,), jnp.float32, -bound, bound),
    }
    if bn:  # eval-mode BatchNorm folded into per-channel scale/shift
        gamma = 1.0 + 0.1 * jax.random.normal(k3, (cout,), jnp.float32)
        beta = 0.1 * jax.random.normal(k4, (cout,), jnp.float32)
        mean = 0.1 * jax.random.normal(k5, (cout,), jnp.float32)
        var = jnp.abs(1.0 + 0.1 * jax.random.normal(k6, (cout,), jnp.float32))
        scale = gamma / jnp.sqrt(var + 1e-5)
        p["bn_scale"] = scale
        p["bn_shift"] = beta - mean * scale
    return p


def init_generator_params(key, img_feat=3, n_feats=64, num_block=16, scale=4):
    def nk():
        nonlocal key
        key, sub = jax.random.split(key)
        return sub

    up_factor = 2 if scale == 4 else scale
    n_up = 2 if scale == 4 else 1
    return {
        "conv01": _init_conv(nk(), img_feat, n_feats, 9, bn=False),
        "body": [
            {"conv1": _init_conv(nk(), n_feats, n_feats, 3, bn=True),
             "conv2": _init_conv(nk(), n_feats, n_feats, 3, bn=True)}
            for _ in range(num_block)
        ],
        "conv02": _init_conv(nk(), n_feats, n_feats, 3, bn=True),
        "tail": [
            _init_conv(nk(), n_feats, n_feats * up_factor * up_factor, 3, bn=False)
            for _ in range(n_up)
        ],
        "last_conv": _init_conv(nk(), n_feats, img_feat, 3, bn=False),
    }


def _apply_conv(x, p, act, skip=None):
    return conv2d_fused(x, p["w"], p["b"],
                        bn_scale=p.get("bn_scale"), bn_shift=p.get("bn_shift"),
                        act=act, skip=skip)


def generator_forward(params, x_nchw, *, up_factor):
    """Returns (x, feat) exactly like Generator.forward (NCHW in / NCHW out)."""
    x = jnp.transpose(x_nchw, (0, 2, 3, 1))                  # NCHW -> NHWC

    x = _apply_conv(x, params["conv01"], act="prelu")         # conv01 (9x9)+PReLU
    skip = x

    for blk in params["body"]:                                # ResBlocks
        r = _apply_conv(x, blk["conv1"], act="prelu")
        x = _apply_conv(r, blk["conv2"], act="none", skip=x)  # residual fused

    feat = _apply_conv(x, params["conv02"], act="none", skip=skip)  # conv02+skip

    x = feat
    for up in params["tail"]:                                 # Upsamplers
        # PReLU has a single shared slope -> commutes with PixelShuffle,
        # so it is fused into the conv kernel epilogue.
        x = _apply_conv(x, up, act="prelu")
        x = pixel_shuffle(x, up_factor)

    x = _apply_conv(x, params["last_conv"], act="tanh")       # last conv + Tanh

    x_out = jnp.transpose(x, (0, 3, 1, 2))                    # NHWC -> NCHW
    feat_out = jnp.transpose(feat, (0, 3, 1, 2))
    return x_out, feat_out


# -----------------------------------------------------------------------------
if __name__ == "__main__":
    key = jax.random.PRNGKey(0)
    pkey, xkey = jax.random.split(key)

    # Small shapes consistent with the module: batch=2, RGB 16x16, n_feats=32,
    # num_block=2 ResBlocks, scale=4 (two x2 upsamplers).
    img_feat, n_feats, num_block, scale = 3, 32, 2, 4
    batch, H, W = 2, 16, 16

    params = init_generator_params(pkey, img_feat, n_feats, num_block, scale)
    x = jax.random.normal(xkey, (batch, img_feat, H, W), dtype=jnp.float32)

    up_factor = 2 if scale == 4 else scale
    fwd = jax.jit(generator_forward, static_argnames=("up_factor",))

    out, feat = fwd(params, x, up_factor=up_factor)
    jax.block_until_ready((out, feat))

    assert out.shape == (batch, img_feat, H * scale, W * scale), out.shape
    assert feat.shape == (batch, n_feats, H, W), feat.shape
    assert bool(jnp.all(jnp.isfinite(out))) and bool(jnp.all(jnp.isfinite(feat)))

    print("KERNEL_OK")
</pallas_src>

<mosaic_0001>
module attributes {stable_mosaic.version = 11 : i64} {
  func.func @_conv_kernel(%arg0: i32, %arg1: memref<256x243xbf16, #tpu.memory_space<vmem>>, %arg2: memref<243x32xbf16, #tpu.memory_space<vmem>>, %arg3: memref<1x32xf32, #tpu.memory_space<vmem>>, %arg4: memref<256x32xf32, #tpu.memory_space<vmem>>) attributes {dimension_semantics = [#tpu.dimension_semantics<parallel>], iteration_bounds = array<i64: 2>, scalar_prefetch = 0 : i64, scratch_operands = 0 : i64, tpu.core_type = #tpu.core_type<tc>, window_params = [{transform_indices = @transform_0, window_bounds = array<i64: 256, 243>}, {pipeline_mode = #tpu.pipeline_mode<synchronous>, transform_indices = @transform_1, window_bounds = array<i64: 243, 32>}, {pipeline_mode = #tpu.pipeline_mode<synchronous>, transform_indices = @transform_2, window_bounds = array<i64: 1, 32>}, {transform_indices = @transform_3, window_bounds = array<i64: 256, 32>}]} {
    %c0 = arith.constant 0 : index
    %c0_0 = arith.constant 0 : index
    %0 = vector.load %arg1[%c0, %c0_0] : memref<256x243xbf16, #tpu.memory_space<vmem>>, vector<256x243xbf16>
    %c0_1 = arith.constant 0 : index
    %c0_2 = arith.constant 0 : index
    %1 = vector.load %arg2[%c0_1, %c0_2] : memref<243x32xbf16, #tpu.memory_space<vmem>>, vector<243x32xbf16>
    %cst = arith.constant dense<0.000000e+00> : vector<256x32xf32>
    %2 = tpu.matmul %0, %1, %cst {dimension_numbers = #tpu.dot_dimension_numbers<[1], [0], [0], [1], [0, 0, 1, 1], [], []>} : vector<256x243xbf16>, vector<243x32xbf16>, vector<256x32xf32> -> vector<256x32xf32>
    %c0_3 = arith.constant 0 : index
    %c0_4 = arith.constant 0 : index
    %3 = vector.load %arg3[%c0_3, %c0_4] : memref<1x32xf32, #tpu.memory_space<vmem>>, vector<1x32xf32>
    %4 = vector.broadcast %3 : vector<1x32xf32> to vector<256x32xf32>
    %5 = arith.addf %2, %4 : vector<256x32xf32>
    %cst_5 = arith.constant 0.000000e+00 : f32
    %6 = vector.broadcast %cst_5 : f32 to vector<256x32xf32>
    %7 = arith.cmpf oge, %5, %6 : vector<256x32xf32>
    %cst_6 = arith.constant 2.500000e-01 : f32
    %8 = vector.broadcast %cst_6 : f32 to vector<256x32xf32>
    %9 = arith.mulf %8, %5 : vector<256x32xf32>
    %10 = arith.select %7, %5, %9 : vector<256x32xi1>, vector<256x32xf32>
    %c0_7 = arith.constant 0 : index
    %c0_8 = arith.constant 0 : index
    %11 = vector.load %arg4[%c0_7, %c0_8] : memref<256x32xf32, #tpu.memory_space<vmem>>, vector<256x32xf32>
    tpu.vector_store %arg4[%c0_7, %c0_8], %10 {strides = array<i32>} : memref<256x32xf32, #tpu.memory_space<vmem>>, vector<256x32xf32>,
    return
  }
  func.func @transform_0(%arg0: i32) -> (i32, i32) {
    %c0_i32 = arith.constant 0 : i32
    %c0_i32_0 = arith.constant 0 : i32
    return %arg0, %c0_i32 : i32, i32
  }
  func.func @transform_1(%arg0: i32) -> (i32, i32) {
    %c0_i32 = arith.constant 0 : i32
    %c0_i32_0 = arith.constant 0 : i32
    %c0_i32_1 = arith.constant 0 : i32
    return %c0_i32, %c0_i32_0 : i32, i32
  }
  func.func @transform_2(%arg0: i32) -> (i32, i32) {
    %c0_i32 = arith.constant 0 : i32
    %c0_i32_0 = arith.constant 0 : i32
    %c0_i32_1 = arith.constant 0 : i32
    return %c0_i32, %c0_i32_0 : i32, i32
  }
  func.func @transform_3(%arg0: i32) -> (i32, i32) {
    %c0_i32 = arith.constant 0 : i32
    %c0_i32_0 = arith.constant 0 : i32
    return %arg0, %c0_i32 : i32, i32
  }
}

module attributes {stable_mosaic.version = 11 : i64} {
  func.func @_conv_kernel(%arg0: i32, %arg1: memref<256x288xbf16, #tpu.memory_space<vmem>>, %arg2: memref<288x32xbf16, #tpu.memory_space<vmem>>, %arg3: memref<1x32xf32, #tpu.memory_space<vmem>>, %arg4: memref<1x32xf32, #tpu.memory_space<vmem>>, %arg5: memref<1x32xf32, #tpu.memory_space<vmem>>, %arg6: memref<256x32xf32, #tpu.memory_space<vmem>>) attributes {dimension_semantics = [#tpu.dimension_semantics<parallel>], iteration_bounds = array<i64: 2>, scalar_prefetch = 0 : i64, scratch_operands = 0 : i64, tpu.core_type = #tpu.core_type<tc>, window_params = [{transform_indices = @transform_0, window_bounds = array<i64: 256, 288>}, {pipeline_mode = #tpu.pipeline_mode<synchronous>, transform_indices = @transform_1, window_bounds = array<i64: 288, 32>}, {pipeline_mode = #tpu.pipeline_mode<synchronous>, transform_indices = @transform_2, window_bounds = array<i64: 1, 32>}, {pipeline_mode = #tpu.pipeline_mode<synchronous>, transform_indices = @transform_3, window_bounds = array<i64: 1, 32>}, {pipeline_mode = #tpu.pipeline_mode<synchronous>, transform_indices = @transform_4, window_bounds = array<i64: 1, 32>}, {transform_indices = @transform_5, window_bounds = array<i64: 256, 32>}]} {
    %c0 = arith.constant 0 : index
    %c0_0 = arith.constant 0 : index
    %0 = vector.load %arg1[%c0, %c0_0] : memref<256x288xbf16, #tpu.memory_space<vmem>>, vector<256x288xbf16>
    %c0_1 = arith.constant 0 : index
    %c0_2 = arith.constant 0 : index
    %1 = vector.load %arg2[%c0_1, %c0_2] : memref<288x32xbf16, #tpu.memory_space<vmem>>, vector<288x32xbf16>
    %cst = arith.constant dense<0.000000e+00> : vector<256x32xf32>
    %2 = tpu.matmul %0, %1, %cst {dimension_numbers = #tpu.dot_dimension_numbers<[1], [0], [0], [1], [0, 0, 1, 1], [], []>} : vector<256x288xbf16>, vector<288x32xbf16>, vector<256x32xf32> -> vector<256x32xf32>
    %c0_3 = arith.constant 0 : index
    %c0_4 = arith.constant 0 : index
    %3 = vector.load %arg3[%c0_3, %c0_4] : memref<1x32xf32, #tpu.memory_space<vmem>>, vector<1x32xf32>
    %4 = vector.broadcast %3 : vector<1x32xf32> to vector<256x32xf32>
    %5 = arith.addf %2, %4 : vector<256x32xf32>
    %c0_5 = arith.constant 0 : index
    %c0_6 = arith.constant 0 : index
    %6 = vector.load %arg4[%c0_5, %c0_6] : memref<1x32xf32, #tpu.memory_space<vmem>>, vector<1x32xf32>
    %7 = vector.broadcast %6 : vector<1x32xf32> to vector<256x32xf32>
    %8 = arith.mulf %5, %7 : vector<256x32xf32>
    %c0_7 = arith.constant 0 : index
    %c0_8 = arith.constant 0 : index
    %9 = vector.load %arg5[%c0_7, %c0_8] : memref<1x32xf32, #tpu.memory_space<vmem>>, vector<1x32xf32>
    %10 = vector.broadcast %9 : vector<1x32xf32> to vector<256x32xf32>
    %11 = arith.addf %8, %10 : vector<256x32xf32>
    %cst_9 = arith.constant 0.000000e+00 : f32
    %12 = vector.broadcast %cst_9 : f32 to vector<256x32xf32>
    %13 = arith.cmpf oge, %11, %12 : vector<256x32xf32>
    %cst_10 = arith.constant 2.500000e-01 : f32
    %14 = vector.broadcast %cst_10 : f32 to vector<256x32xf32>
    %15 = arith.mulf %14, %11 : vector<256x32xf32>
    %16 = arith.select %13, %11, %15 : vector<256x32xi1>, vector<256x32xf32>
    %c0_11 = arith.constant 0 : index
    %c0_12 = arith.constant 0 : index
    %17 = vector.load %arg6[%c0_11, %c0_12] : memref<256x32xf32, #tpu.memory_space<vmem>>, vector<256x32xf32>
    tpu.vector_store %arg6[%c0_11, %c0_12], %16 {strides = array<i32>} : memref<256x32xf32, #tpu.memory_space<vmem>>, vector<256x32xf32>,
    return
  }
  func.func @transform_0(%arg0: i32) -> (i32, i32) {
    %c0_i32 = arith.constant 0 : i32
    %c0_i32_0 = arith.constant 0 : i32
    return %arg0, %c0_i32 : i32, i32
  }
  func.func @transform_1(%arg0: i32) -> (i32, i32) {
    %c0_i32 = arith.constant 0 : i32
    %c0_i32_0 = arith.constant 0 : i32
    %c0_i32_1 = arith.constant 0 : i32
    return %c0_i32, %c0_i32_0 : i32, i32
  }
  func.func @transform_2(%arg0: i32) -> (i32, i32) {
    %c0_i32 = arith.constant 0 : i32
    %c0_i32_0 = arith.constant 0 : i32
    %c0_i32_1 = arith.constant 0 : i32
    return %c0_i32, %c0_i32_0 : i32, i32
  }
  func.func @transform_3(%arg0: i32) -> (i32, i32) {
    %c0_i32 = arith.constant 0 : i32
    %c0_i32_0 = arith.constant 0 : i32
    %c0_i32_1 = arith.constant 0 : i32
    return %c0_i32, %c0_i32_0 : i32, i32
  }
  func.func @transform_4(%arg0: i32) -> (i32, i32) {
    %c0_i32 = arith.constant 0 : i32
    %c0_i32_0 = arith.constant 0 : i32
    %c0_i32_1 = arith.constant 0 : i32
    return %c0_i32, %c0_i32_0 : i32, i32
  }
  func.func @transform_5(%arg0: i32) -> (i32, i32) {
    %c0_i32 = arith.constant 0 : i32
    %c0_i32_0 = arith.constant 0 : i32
    return %arg0, %c0_i32 : i32, i32
  }
}

module attributes {stable_mosaic.version = 11 : i64} {
  func.func @_conv_kernel(%arg0: i32, %arg1: memref<256x288xbf16, #tpu.memory_space<vmem>>, %arg2: memref<288x32xbf16, #tpu.memory_space<vmem>>, %arg3: memref<1x32xf32, #tpu.memory_space<vmem>>, %arg4: memref<1x32xf32, #tpu.memory_space<vmem>>, %arg5: memref<1x32xf32, #tpu.memory_space<vmem>>, %arg6: memref<256x32xf32, #tpu.memory_space<vmem>>, %arg7: memref<256x32xf32, #tpu.memory_space<vmem>>) attributes {dimension_semantics = [#tpu.dimension_semantics<parallel>], iteration_bounds = array<i64: 2>, scalar_prefetch = 0 : i64, scratch_operands = 0 : i64, tpu.core_type = #tpu.core_type<tc>, window_params = [{transform_indices = @transform_0, window_bounds = array<i64: 256, 288>}, {pipeline_mode = #tpu.pipeline_mode<synchronous>, transform_indices = @transform_1, window_bounds = array<i64: 288, 32>}, {pipeline_mode = #tpu.pipeline_mode<synchronous>, transform_indices = @transform_2, window_bounds = array<i64: 1, 32>}, {pipeline_mode = #tpu.pipeline_mode<synchronous>, transform_indices = @transform_3, window_bounds = array<i64: 1, 32>}, {pipeline_mode = #tpu.pipeline_mode<synchronous>, transform_indices = @transform_4, window_bounds = array<i64: 1, 32>}, {transform_indices = @transform_5, window_bounds = array<i64: 256, 32>}, {transform_indices = @transform_6, window_bounds = array<i64: 256, 32>}]} {
    %c0 = arith.constant 0 : index
    %c0_0 = arith.constant 0 : index
    %0 = vector.load %arg1[%c0, %c0_0] : memref<256x288xbf16, #tpu.memory_space<vmem>>, vector<256x288xbf16>
    %c0_1 = arith.constant 0 : index
    %c0_2 = arith.constant 0 : index
    %1 = vector.load %arg2[%c0_1, %c0_2] : memref<288x32xbf16, #tpu.memory_space<vmem>>, vector<288x32xbf16>
    %cst = arith.constant dense<0.000000e+00> : vector<256x32xf32>
    %2 = tpu.matmul %0, %1, %cst {dimension_numbers = #tpu.dot_dimension_numbers<[1], [0], [0], [1], [0, 0, 1, 1], [], []>} : vector<256x288xbf16>, vector<288x32xbf16>, vector<256x32xf32> -> vector<256x32xf32>
    %c0_3 = arith.constant 0 : index
    %c0_4 = arith.constant 0 : index
    %3 = vector.load %arg3[%c0_3, %c0_4] : memref<1x32xf32, #tpu.memory_space<vmem>>, vector<1x32xf32>
    %4 = vector.broadcast %3 : vector<1x32xf32> to vector<256x32xf32>
    %5 = arith.addf %2, %4 : vector<256x32xf32>
    %c0_5 = arith.constant 0 : index
    %c0_6 = arith.constant 0 : index
    %6 = vector.load %arg4[%c0_5, %c0_6] : memref<1x32xf32, #tpu.memory_space<vmem>>, vector<1x32xf32>
    %7 = vector.broadcast %6 : vector<1x32xf32> to vector<256x32xf32>
    %8 = arith.mulf %5, %7 : vector<256x32xf32>
    %c0_7 = arith.constant 0 : index
    %c0_8 = arith.constant 0 : index
    %9 = vector.load %arg5[%c0_7, %c0_8] : memref<1x32xf32, #tpu.memory_space<vmem>>, vector<1x32xf32>
    %10 = vector.broadcast %9 : vector<1x32xf32> to vector<256x32xf32>
    %11 = arith.addf %8, %10 : vector<256x32xf32>
    %c0_9 = arith.constant 0 : index
    %c0_10 = arith.constant 0 : index
    %12 = vector.load %arg6[%c0_9, %c0_10] : memref<256x32xf32, #tpu.memory_space<vmem>>, vector<256x32xf32>
    %13 = arith.addf %11, %12 : vector<256x32xf32>
    %c0_11 = arith.constant 0 : index
    %c0_12 = arith.constant 0 : index
    %14 = vector.load %arg7[%c0_11, %c0_12] : memref<256x32xf32, #tpu.memory_space<vmem>>, vector<256x32xf32>
    tpu.vector_store %arg7[%c0_11, %c0_12], %13 {strides = array<i32>} : memref<256x32xf32, #tpu.memory_space<vmem>>, vector<256x32xf32>,
    return
  }
  func.func @transform_0(%arg0: i32) -> (i32, i32) {
    %c0_i32 = arith.constant 0 : i32
    %c0_i32_0 = arith.constant 0 : i32
    return %arg0, %c0_i32 : i32, i32
  }
  func.func @transform_1(%arg0: i32) -> (i32, i32) {
    %c0_i32 = arith.constant 0 : i32
    %c0_i32_0 = arith.constant 0 : i32
    %c0_i32_1 = arith.constant 0 : i32
    return %c0_i32, %c0_i32_0 : i32, i32
  }
  func.func @transform_2(%arg0: i32) -> (i32, i32) {
    %c0_i32 = arith.constant 0 : i32
    %c0_i32_0 = arith.constant 0 : i32
    %c0_i32_1 = arith.constant 0 : i32
    return %c0_i32, %c0_i32_0 : i32, i32
  }
  func.func @transform_3(%arg0: i32) -> (i32, i32) {
    %c0_i32 = arith.constant 0 : i32
    %c0_i32_0 = arith.constant 0 : i32
    %c0_i32_1 = arith.constant 0 : i32
    return %c0_i32, %c0_i32_0 : i32, i32
  }
  func.func @transform_4(%arg0: i32) -> (i32, i32) {
    %c0_i32 = arith.constant 0 : i32
    %c0_i32_0 = arith.constant 0 : i32
    %c0_i32_1 = arith.constant 0 : i32
    return %c0_i32, %c0_i32_0 : i32, i32
  }
  func.func @transform_5(%arg0: i32) -> (i32, i32) {
    %c0_i32 = arith.constant 0 : i32
    %c0_i32_0 = arith.constant 0 : i32
    return %arg0, %c0_i32 : i32, i32
  }
  func.func @transform_6(%arg0: i32) -> (i32, i32) {
    %c0_i32 = arith.constant 0 : i32
    %c0_i32_0 = arith.constant 0 : i32
    return %arg0, %c0_i32 : i32, i32
  }
}

module attributes {stable_mosaic.version = 11 : i64} {
  func.func @_conv_kernel(%arg0: i32, %arg1: memref<256x288xbf16, #tpu.memory_space<vmem>>, %arg2: memref<288x128xbf16, #tpu.memory_space<vmem>>, %arg3: memref<1x128xf32, #tpu.memory_space<vmem>>, %arg4: memref<256x128xf32, #tpu.memory_space<vmem>>) attributes {dimension_semantics = [#tpu.dimension_semantics<parallel>], iteration_bounds = array<i64: 2>, scalar_prefetch = 0 : i64, scratch_operands = 0 : i64, tpu.core_type = #tpu.core_type<tc>, window_params = [{transform_indices = @transform_0, window_bounds = array<i64: 256, 288>}, {pipeline_mode = #tpu.pipeline_mode<synchronous>, transform_indices = @transform_1, window_bounds = array<i64: 288, 128>}, {pipeline_mode = #tpu.pipeline_mode<synchronous>, transform_indices = @transform_2, window_bounds = array<i64: 1, 128>}, {transform_indices = @transform_3, window_bounds = array<i64: 256, 128>}]} {
    %c0 = arith.constant 0 : index
    %c0_0 = arith.constant 0 : index
    %0 = vector.load %arg1[%c0, %c0_0] : memref<256x288xbf16, #tpu.memory_space<vmem>>, vector<256x288xbf16>
    %c0_1 = arith.constant 0 : index
    %c0_2 = arith.constant 0 : index
    %1 = vector.load %arg2[%c0_1, %c0_2] : memref<288x128xbf16, #tpu.memory_space<vmem>>, vector<288x128xbf16>
    %cst = arith.constant dense<0.000000e+00> : vector<256x128xf32>
    %2 = tpu.matmul %0, %1, %cst {dimension_numbers = #tpu.dot_dimension_numbers<[1], [0], [0], [1], [0, 0, 1, 1], [], []>} : vector<256x288xbf16>, vector<288x128xbf16>, vector<256x128xf32> -> vector<256x128xf32>
    %c0_3 = arith.constant 0 : index
    %c0_4 = arith.constant 0 : index
    %3 = vector.load %arg3[%c0_3, %c0_4] : memref<1x128xf32, #tpu.memory_space<vmem>>, vector<1x128xf32>
    %4 = vector.broadcast %3 : vector<1x128xf32> to vector<256x128xf32>
    %5 = arith.addf %2, %4 : vector<256x128xf32>
    %cst_5 = arith.constant 0.000000e+00 : f32
    %6 = vector.broadcast %cst_5 : f32 to vector<256x128xf32>
    %7 = arith.cmpf oge, %5, %6 : vector<256x128xf32>
    %cst_6 = arith.constant 2.500000e-01 : f32
    %8 = vector.broadcast %cst_6 : f32 to vector<256x128xf32>
    %9 = arith.mulf %8, %5 : vector<256x128xf32>
    %10 = arith.select %7, %5, %9 : vector<256x128xi1>, vector<256x128xf32>
    %c0_7 = arith.constant 0 : index
    %c0_8 = arith.constant 0 : index
    %11 = vector.load %arg4[%c0_7, %c0_8] : memref<256x128xf32, #tpu.memory_space<vmem>>, vector<256x128xf32>
    tpu.vector_store %arg4[%c0_7, %c0_8], %10 {strides = array<i32>} : memref<256x128xf32, #tpu.memory_space<vmem>>, vector<256x128xf32>,
    return
  }
  func.func @transform_0(%arg0: i32) -> (i32, i32) {
    %c0_i32 = arith.constant 0 : i32
    %c0_i32_0 = arith.constant 0 : i32
    return %arg0, %c0_i32 : i32, i32
  }
  func.func @transform_1(%arg0: i32) -> (i32, i32) {
    %c0_i32 = arith.constant 0 : i32
    %c0_i32_0 = arith.constant 0 : i32
    %c0_i32_1 = arith.constant 0 : i32
    return %c0_i32, %c0_i32_0 : i32, i32
  }
  func.func @transform_2(%arg0: i32) -> (i32, i32) {
    %c0_i32 = arith.constant 0 : i32
    %c0_i32_0 = arith.constant 0 : i32
    %c0_i32_1 = arith.constant 0 : i32
    return %c0_i32, %c0_i32_0 : i32, i32
  }
  func.func @transform_3(%arg0: i32) -> (i32, i32) {
    %c0_i32 = arith.constant 0 : i32
    %c0_i32_0 = arith.constant 0 : i32
    return %arg0, %c0_i32 : i32, i32
  }
}

module attributes {stable_mosaic.version = 11 : i64} {
  func.func @_conv_kernel(%arg0: i32, %arg1: memref<1024x288xbf16, #tpu.memory_space<vmem>>, %arg2: memref<288x128xbf16, #tpu.memory_space<vmem>>, %arg3: memref<1x128xf32, #tpu.memory_space<vmem>>, %arg4: memref<1024x128xf32, #tpu.memory_space<vmem>>) attributes {dimension_semantics = [#tpu.dimension_semantics<parallel>], iteration_bounds = array<i64: 2>, scalar_prefetch = 0 : i64, scratch_operands = 0 : i64, tpu.core_type = #tpu.core_type<tc>, window_params = [{transform_indices = @transform_0, window_bounds = array<i64: 1024, 288>}, {pipeline_mode = #tpu.pipeline_mode<synchronous>, transform_indices = @transform_1, window_bounds = array<i64: 288, 128>}, {pipeline_mode = #tpu.pipeline_mode<synchronous>, transform_indices = @transform_2, window_bounds = array<i64: 1, 128>}, {transform_indices = @transform_3, window_bounds = array<i64: 1024, 128>}]} {
    %c0 = arith.constant 0 : index
    %c0_0 = arith.constant 0 : index
    %0 = vector.load %arg1[%c0, %c0_0] : memref<1024x288xbf16, #tpu.memory_space<vmem>>, vector<1024x288xbf16>
    %c0_1 = arith.constant 0 : index
    %c0_2 = arith.constant 0 : index
    %1 = vector.load %arg2[%c0_1, %c0_2] : memref<288x128xbf16, #tpu.memory_space<vmem>>, vector<288x128xbf16>
    %cst = arith.constant dense<0.000000e+00> : vector<1024x128xf32>
    %2 = tpu.matmul %0, %1, %cst {dimension_numbers = #tpu.dot_dimension_numbers<[1], [0], [0], [1], [0, 0, 1, 1], [], []>} : vector<1024x288xbf16>, vector<288x128xbf16>, vector<1024x128xf32> -> vector<1024x128xf32>
    %c0_3 = arith.constant 0 : index
    %c0_4 = arith.constant 0 : index
    %3 = vector.load %arg3[%c0_3, %c0_4] : memref<1x128xf32, #tpu.memory_space<vmem>>, vector<1x128xf32>
    %4 = vector.broadcast %3 : vector<1x128xf32> to vector<1024x128xf32>
    %5 = arith.addf %2, %4 : vector<1024x128xf32>
    %cst_5 = arith.constant 0.000000e+00 : f32
    %6 = vector.broadcast %cst_5 : f32 to vector<1024x128xf32>
    %7 = arith.cmpf oge, %5, %6 : vector<1024x128xf32>
    %cst_6 = arith.constant 2.500000e-01 : f32
    %8 = vector.broadcast %cst_6 : f32 to vector<1024x128xf32>
    %9 = arith.mulf %8, %5 : vector<1024x128xf32>
    %10 = arith.select %7, %5, %9 : vector<1024x128xi1>, vector<1024x128xf32>
    %c0_7 = arith.constant 0 : index
    %c0_8 = arith.constant 0 : index
    %11 = vector.load %arg4[%c0_7, %c0_8] : memref<1024x128xf32, #tpu.memory_space<vmem>>, vector<1024x128xf32>
    tpu.vector_store %arg4[%c0_7, %c0_8], %10 {strides = array<i32>} : memref<1024x128xf32, #tpu.memory_space<vmem>>, vector<1024x128xf32>,
    return
  }
  func.func @transform_0(%arg0: i32) -> (i32, i32) {
    %c0_i32 = arith.constant 0 : i32
    %c0_i32_0 = arith.constant 0 : i32
    return %arg0, %c0_i32 : i32, i32
  }
  func.func @transform_1(%arg0: i32) -> (i32, i32) {
    %c0_i32 = arith.constant 0 : i32
    %c0_i32_0 = arith.constant 0 : i32
    %c0_i32_1 = arith.constant 0 : i32
    return %c0_i32, %c0_i32_0 : i32, i32
  }
  func.func @transform_2(%arg0: i32) -> (i32, i32) {
    %c0_i32 = arith.constant 0 : i32
    %c0_i32_0 = arith.constant 0 : i32
    %c0_i32_1 = arith.constant 0 : i32
    return %c0_i32, %c0_i32_0 : i32, i32
  }
  func.func @transform_3(%arg0: i32) -> (i32, i32) {
    %c0_i32 = arith.constant 0 : i32
    %c0_i32_0 = arith.constant 0 : i32
    return %arg0, %c0_i32 : i32, i32
  }
}

module attributes {stable_mosaic.version = 11 : i64} {
  func.func @_conv_kernel(%arg0: i32, %arg1: memref<1024x288xbf16, #tpu.memory_space<vmem>>, %arg2: memref<288x3xbf16, #tpu.memory_space<vmem>>, %arg3: memref<1x3xf32, #tpu.memory_space<vmem>>, %arg4: memref<1024x3xf32, #tpu.memory_space<vmem>>) attributes {dimension_semantics = [#tpu.dimension_semantics<parallel>], iteration_bounds = array<i64: 8>, scalar_prefetch = 0 : i64, scratch_operands = 0 : i64, tpu.core_type = #tpu.core_type<tc>, window_params = [{transform_indices = @transform_0, window_bounds = array<i64: 1024, 288>}, {pipeline_mode = #tpu.pipeline_mode<synchronous>, transform_indices = @transform_1, window_bounds = array<i64: 288, 3>}, {pipeline_mode = #tpu.pipeline_mode<synchronous>, transform_indices = @transform_2, window_bounds = array<i64: 1, 3>}, {transform_indices = @transform_3, window_bounds = array<i64: 1024, 3>}]} {
    %c0 = arith.constant 0 : index
    %c0_0 = arith.constant 0 : index
    %0 = vector.load %arg1[%c0, %c0_0] : memref<1024x288xbf16, #tpu.memory_space<vmem>>, vector<1024x288xbf16>
    %c0_1 = arith.constant 0 : index
    %c0_2 = arith.constant 0 : index
    %1 = vector.load %arg2[%c0_1, %c0_2] : memref<288x3xbf16, #tpu.memory_space<vmem>>, vector<288x3xbf16>
    %cst = arith.constant dense<0.000000e+00> : vector<1024x3xf32>
    %2 = tpu.matmul %0, %1, %cst {dimension_numbers = #tpu.dot_dimension_numbers<[1], [0], [0], [1], [0, 0, 1, 1], [], []>} : vector<1024x288xbf16>, vector<288x3xbf16>, vector<1024x3xf32> -> vector<1024x3xf32>
    %c0_3 = arith.constant 0 : index
    %c0_4 = arith.constant 0 : index
    %3 = vector.load %arg3[%c0_3, %c0_4] : memref<1x3xf32, #tpu.memory_space<vmem>>, vector<1x3xf32>
    %4 = vector.broadcast %3 : vector<1x3xf32> to vector<1024x3xf32>
    %5 = arith.addf %2, %4 : vector<1024x3xf32>
    %6 = math.tanh %5 : vector<1024x3xf32>
    %c0_5 = arith.constant 0 : index
    %c0_6 = arith.constant 0 : index
    %7 = vector.load %arg4[%c0_5, %c0_6] : memref<1024x3xf32, #tpu.memory_space<vmem>>, vector<1024x3xf32>
    tpu.vector_store %arg4[%c0_5, %c0_6], %6 {strides = array<i32>} : memref<1024x3xf32, #tpu.memory_space<vmem>>, vector<1024x3xf32>,
    return
  }
  func.func @transform_0(%arg0: i32) -> (i32, i32) {
    %c0_i32 = arith.constant 0 : i32
    %c0_i32_0 = arith.constant 0 : i32
    return %arg0, %c0_i32 : i32, i32
  }
  func.func @transform_1(%arg0: i32) -> (i32, i32) {
    %c0_i32 = arith.constant 0 : i32
    %c0_i32_0 = arith.constant 0 : i32
    %c0_i32_1 = arith.constant 0 : i32
    return %c0_i32, %c0_i32_0 : i32, i32
  }
  func.func @transform_2(%arg0: i32) -> (i32, i32) {
    %c0_i32 = arith.constant 0 : i32
    %c0_i32_0 = arith.constant 0 : i32
    %c0_i32_1 = arith.constant 0 : i32
    return %c0_i32, %c0_i32_0 : i32, i32
  }
  func.func @transform_3(%arg0: i32) -> (i32, i32) {
    %c0_i32 = arith.constant 0 : i32
    %c0_i32_0 = arith.constant 0 : i32
    return %arg0, %c0_i32 : i32, i32
  }
}

</mosaic_0001>

<bundles_post_ra>
// kernel: generator_forward.9
= control target key start
LH: loop header
LB: loop body
LE: loop exit
PB: predicated region body
PF: predicated region fallthrough
CT: control target
= control target key end

     0   :  { %s1219_s12 = smov 0   ;;  %s1476_s0 = inlined_call_operand.vmem [shape: bf16[512,243], index: 0, kind: input, shape index: {}]   ;;  %s1477_s1 = inlined_call_operand.vmem [shape: bf16[243,32], index: 1, kind: input, shape index: {}]   ;;  %s1478_s2 = inlined_call_operand.vmem [shape: f32[1,32], index: 2, kind: input, shape index: {}]   ;;  %s1479_s3 = inlined_call_operand.vmem [shape: f32[512,32], index: 3, kind: output, shape index: {}]  }
   0x1 LB: > { %s900_s13 = sadd.s32 4294967295, %s1196_s12   ;;  %p904_p0 = scmp.ge.s32.totalorder %s1196_s12, 1  ;;  %s1196_s12 = sphi %s1219_s12, %s13_s12  }
   0x2   : > { %p139_p1 = scmp.lt.s32.totalorder %s1196_s12, 3 }
   0x4   : > { %p140_p2 = pnand %p904_p0, %p139_p1 }
   0x5   : > { %s905_s24 = sshll.u32 (!%p140_p2), %s900_s13, 5 }
   0x6   : > { %143 = sbr.rel (%p140_p2) target bundleno = 308 (0x134), region = 32  ;;  %p165_p3 = scmp.lt.s32.totalorder (!%p140_p2), %s905_s24, 63 }
   0xb   : > { %v1156_v0 = vld [vmem:[%s1477_s1 + $0x38] sm:$0xff]  ;;  %vm530_vm0 = vcmask 1040384   ;;  %vm531_vm1 = vcmask 1041408   ;;  %v1155_v3 = vld [vmem:[%s1477_s1 + $0x30] sm:$0xff]  ;;  %v1198_v4 = vmov 65535   ;;  %v1154_v9 = vld [vmem:[%s1477_s1 + $0x28] sm:$0xff] }
   0xc   : > { %v239_v1 = vld [vmem:[%s1477_s1 + $0x78] sm:$0x3]  ;;  %537 = vmatpush.bf16.msra.mxu0 %v1156_v0  ;;  %1164 = vmatpush.bf16.msra.mxu2 %v1156_v0  ;;  %v532_v5 = vsel %vm530_vm0, 4294967295, %v1198_v4  ;;  %v1163_v10 = vld [vmem:[%s1477_s1 + $0x70] sm:$0xff]  ;;  %v1153_v11 = vld [vmem:[%s1477_s1 + $0x20] sm:$0xff]  ;;  %s1481_s24 = smov (!%p165_p3, %s905_s24), 63 }
   0xd   : > { %v449_v2 = vunpack.c.l.b16 %v239_v1  ;;  %v533_v7 = vsel %vm531_vm1, %v532_v5, 0  ;;  %v1162_v12 = vld [vmem:[%s1477_s1 + $0x68] sm:$0xff]  ;;  %v1152_v13 = vld [vmem:[%s1477_s1 + $0x18] sm:$0xff]  ;;  %v1161_v14 = vld [vmem:[%s1477_s1 + $0x60] sm:$0xff]  ;;  %s1116_s10 = sshll.u32 %s1481_s24, 3  ;;  %vm481_vm2 = vcmask 941056  }
   0xe   : > { %v1151_v15 = vld [vmem:[%s1477_s1 + $0x10] sm:$0xff]  ;;  %v1160_v16 = vld [vmem:[%s1477_s1 + $0x58] sm:$0xff]  ;;  %v1150_v17 = vld [vmem:[%s1477_s1 + $0x8] sm:$0xff]  ;;  %s1271_s16 = scalar_lea.vmem %s1476_s0, %s1116_s10  ;;  %s1376_s30 = scalar_lea.vmem %s1479_s3, %s1116_s10  ;;  %vm811_vm4 = vcmask 261120  }
   0xf   : > { %v465_v6 = vpack.c.b16 %v449_v2, %v449_v2  ;;  %v1159_v18 = vld [vmem:[%s1477_s1 + $0x50] sm:$0xff]  ;;  %v1149_v19 = vld [vmem:[%s1477_s1] sm:$0xff]  ;;  %v1118_v21 = vld [vmem:[%s1271_s16 + $0x4] sm:$0xf0] }
  0x10   : > { %538 = vmatpush.bf16.msra.mxu0 %v1155_v3  ;;  %1165 = vmatpush.bf16.msra.mxu2 %v1155_v3  ;;  %v912_v20 = vld [vmem:[%s1271_s16] sm:$0xf]  ;;  %v1134_v23 = vld [vmem:[%s1271_s16 + $0x84] sm:$0xf0]  ;;  %v1117_v28 = vld [vmem:[%s1271_s16 + $0x4] sm:$0xf] }
  0x11   : > { %v535_v8 = vand.u32 %v533_v7, %v465_v6  ;;  %v976_v22 = vld [vmem:[%s1271_s16 + $0x80] sm:$0xf]  ;;  %v1158_v24 = vld [vmem:[%s1477_s1 + $0x48] sm:$0xff]  ;;  %v913_v25 = vor.u32 %v1118_v21, %v912_v20  ;;  %v1133_v30 = vld [vmem:[%s1271_s16 + $0x84] sm:$0xf] }
  0x12   : > { %v977_v26 = vor.u32 %v1134_v23, %v976_v22  ;;  %v1157_v27 = vld [vmem:[%s1477_s1 + $0x40] sm:$0xff]  ;;  %v914_v29 = vld [vmem:[%s1271_s16 + $0x8] sm:$0xf0]  ;;  %v920_v34 = vld [vmem:[%s1271_s16 + $0x10] sm:$0xf] }
  0x13   : > { %626 = vmatpush.bf16.msra.mxu1 %v535_v8  ;;  %1172 = vmatpush.bf16.msra.mxu3 %v535_v8  ;;  %v978_v31 = vld [vmem:[%s1271_s16 + $0x88] sm:$0xf0]  ;;  %v917_v32 = vor.u32 %v1117_v28, %v914_v29  ;;  %v1120_v35 = vld [vmem:[%s1271_s16 + $0x14] sm:$0xf0]  ;;  %v984_v36 = vld [vmem:[%s1271_s16 + $0x90] sm:$0xf] }
  0x14   : > { %539 = vmatpush.bf16.msra.mxu0 %v1154_v9  ;;  %1166 = vmatpush.bf16.msra.mxu2 %v1154_v9  ;;  %v981_v33 = vor.u32 %v1133_v30, %v978_v31  ;;  %v1136_v37 = vld [vmem:[%s1271_s16 + $0x94] sm:$0xf0]  ;;  %v921_v38 = vor.u32 %v1120_v35, %v920_v34  ;;  %v1119_v40 = vld [vmem:[%s1271_s16 + $0x14] sm:$0xf]  ;;  %v922_v41 = vld [vmem:[%s1271_s16 + $0x18] sm:$0xf0] }
  0x15   : > { %v985_v39 = vor.u32 %v1136_v37, %v984_v36  ;;  %v1135_v42 = vld [vmem:[%s1271_s16 + $0x94] sm:$0xf]  ;;  %v986_v43 = vld [vmem:[%s1271_s16 + $0x98] sm:$0xf0]  ;;  %v925_v44 = vor.u32 %v1119_v40, %v922_v41  ;;  %v928_v46 = vld [vmem:[%s1271_s16 + $0x20] sm:$0xf] }
  0x16   : > { %v989_v45 = vor.u32 %v1135_v42, %v986_v43  ;;  %v1122_v47 = vld [vmem:[%s1271_s16 + $0x24] sm:$0xf0]  ;;  %v992_v48 = vld [vmem:[%s1271_s16 + $0xa0] sm:$0xf]  ;;  %v1121_v52 = vld [vmem:[%s1271_s16 + $0x24] sm:$0xf] }
  0x17   : > { %627 = vmatpush.bf16.msra.mxu1 %v1163_v10  ;;  %1173 = vmatpush.bf16.msra.mxu3 %v1163_v10  ;;  %v1138_v49 = vld [vmem:[%s1271_s16 + $0xa4] sm:$0xf0]  ;;  %v929_v50 = vor.u32 %v1122_v47, %v928_v46  ;;  %v930_v53 = vld [vmem:[%s1271_s16 + $0x28] sm:$0xf0]  ;;  %v1137_v54 = vld [vmem:[%s1271_s16 + $0xa4] sm:$0xf] }
  0x18   : > { %540 = vmatpush.bf16.msra.mxu0 %v1153_v11  ;;  %1167 = vmatpush.bf16.msra.mxu2 %v1153_v11  ;;  %v993_v51 = vor.u32 %v1138_v49, %v992_v48  ;;  %v994_v55 = vld [vmem:[%s1271_s16 + $0xa8] sm:$0xf0]  ;;  %v933_v56 = vor.u32 %v1121_v52, %v930_v53  ;;  %v936_v58 = vld [vmem:[%s1271_s16 + $0x30] sm:$0xf]  ;;  %v1124_v59 = vld [vmem:[%s1271_s16 + $0x34] sm:$0xf0] }
  0x19   : > { %v997_v57 = vor.u32 %v1137_v54, %v994_v55  ;;  %v1000_v60 = vld [vmem:[%s1271_s16 + $0xb0] sm:$0xf]  ;;  %v1140_v61 = vld [vmem:[%s1271_s16 + $0xb4] sm:$0xf0]  ;;  %v937_v62 = vor.u32 %v1124_v59, %v936_v58  ;;  %v1123_v0 = vld [vmem:[%s1271_s16 + $0x34] sm:$0xf] }
  0x1a   : > { %v1001_v63 = vor.u32 %v1140_v61, %v1000_v60  ;;  %v938_v1 = vld [vmem:[%s1271_s16 + $0x38] sm:$0xf0]  ;;  %v1139_v2 = vld [vmem:[%s1271_s16 + $0xb4] sm:$0xf]  ;;  %v944_v6 = vld [vmem:[%s1271_s16 + $0x40] sm:$0xf] }
  0x1b   : > { %628 = vmatpush.bf16.msra.mxu1 %v1162_v12  ;;  %1174 = vmatpush.bf16.msra.mxu3 %v1162_v12  ;;  %v1002_v3 = vld [vmem:[%s1271_s16 + $0xb8] sm:$0xf0]  ;;  %v941_v4 = vor.u32 %v1123_v0, %v938_v1  ;;  %v1126_v7 = vld [vmem:[%s1271_s16 + $0x44] sm:$0xf0]  ;;  %v1008_v8 = vld [vmem:[%s1271_s16 + $0xc0] sm:$0xf] }
  0x1c   : > { %541 = vmatpush.bf16.msra.mxu0 %v1152_v13  ;;  %1168 = vmatpush.bf16.msra.mxu2 %v1152_v13  ;;  %v1005_v5 = vor.u32 %v1139_v2, %v1002_v3  ;;  %v1142_v9 = vld [vmem:[%s1271_s16 + $0xc4] sm:$0xf0]  ;;  %v945_v10 = vor.u32 %v1126_v7, %v944_v6  ;;  %v1125_v12 = vld [vmem:[%s1271_s16 + $0x44] sm:$0xf]  ;;  %v946_v13 = vld [vmem:[%s1271_s16 + $0x48] sm:$0xf0] }
  0x1d   : > { %v1009_v11 = vor.u32 %v1142_v9, %v1008_v8  ;;  %v1016_v20 = vld [vmem:[%s1271_s16 + $0xd0] sm:$0xf]  ;;  %v1144_v21 = vld [vmem:[%s1271_s16 + $0xd4] sm:$0xf0]  ;;  %v960_v30 = vld [vmem:[%s1271_s16 + $0x60] sm:$0xf] }
  0x1e   : > { %v1017_v23 = vor.u32 %v1144_v21, %v1016_v20  ;;  %v1130_v31 = vld [vmem:[%s1271_s16 + $0x64] sm:$0xf0]  ;;  %v1129_v36 = vld [vmem:[%s1271_s16 + $0x64] sm:$0xf]  ;;  %v962_v37 = vld [vmem:[%s1271_s16 + $0x68] sm:$0xf0] }
  0x1f   : > { %629 = vmatpush.bf16.msra.mxu1 %v1161_v14  ;;  %1175 = vmatpush.bf16.msra.mxu3 %v1161_v14  ;;  %v1141_v14 = vld [vmem:[%s1271_s16 + $0xc4] sm:$0xf]  ;;  %v961_v34 = vor.u32 %v1130_v31, %v960_v30  ;;  %v965_v40 = vor.u32 %v1129_v36, %v962_v37  ;;  %v968_v42 = vld [vmem:[%s1271_s16 + $0x70] sm:$0xf]  ;;  %v1132_v43 = vld [vmem:[%s1271_s16 + $0x74] sm:$0xf0] }
  0x20   : > { %542 = vmatpush.bf16.msra.mxu0 %v1151_v15  ;;  %1169 = vmatpush.bf16.msra.mxu2 %v1151_v15  ;;  %v1010_v15 = vld [vmem:[%s1271_s16 + $0xc8] sm:$0xf0]  ;;  %v969_v46 = vor.u32 %v1132_v43, %v968_v42  ;;  %v1131_v48 = vld [vmem:[%s1271_s16 + $0x74] sm:$0xf]  ;;  %v970_v49 = vld [vmem:[%s1271_s16 + $0x78] sm:$0xf0] }
  0x21   : > { %v973_v52 = vor.u32 %v1131_v48, %v970_v49  ;;  %v1368_v54 = vld [vmem:[%s1478_s2] ss:$0 sm:$0xff] }
  0x23   : > { %630 = vmatpush.bf16.msra.mxu1 %v1160_v16  ;;  %1176 = vmatpush.bf16.msra.mxu3 %v1160_v16  ;;  %v949_v16 = vor.u32 %v1125_v12, %v946_v13 }
  0x24   : > { %543 = vmatpush.bf16.msra.mxu0 %v1150_v17  ;;  %1170 = vmatpush.bf16.msra.mxu2 %v1150_v17  ;;  %v1013_v17 = vor.u32 %v1141_v14, %v1010_v15 }
  0x27   : > { %631 = vmatpush.bf16.msra.mxu1 %v1159_v18  ;;  %1177 = vmatpush.bf16.msra.mxu3 %v1159_v18  ;;  %v952_v18 = vld [vmem:[%s1271_s16 + $0x50] sm:$0xf] }
  0x28   : > { %544 = vmatpush.bf16.msra.mxu0 %v1149_v19  ;;  %1171 = vmatpush.bf16.msra.mxu2 %v1149_v19  ;;  %v1128_v19 = vld [vmem:[%s1271_s16 + $0x54] sm:$0xf0] }
  0x29   : > { %v953_v22 = vor.u32 %v1128_v19, %v952_v18 }
  0x2b   : > { %632 = vmatpush.bf16.msra.mxu1 %v1158_v24  ;;  %1178 = vmatpush.bf16.msra.mxu3 %v1158_v24  ;;  %v1127_v24 = vld [vmem:[%s1271_s16 + $0x54] sm:$0xf] }
  0x2c   : > { %545 = vmatmul.bf16.vlgmr.msra.gmra.mxu0 %v913_v25  ;;  %585 = vmatmul.bf16.vlgmr.msra.gmra.mxu2 %v977_v26  ;;  %v954_v25 = vld [vmem:[%s1271_s16 + $0x58] sm:$0xf0]  ;;  %v1143_v26 = vld [vmem:[%s1271_s16 + $0xd4] sm:$0xf] }
  0x2d   : > { %v957_v28 = vor.u32 %v1127_v24, %v954_v25 }
  0x2f   : > { %633 = vmatpush.bf16.msra.mxu1 %v1157_v27  ;;  %1179 = vmatpush.bf16.msra.mxu3 %v1157_v27  ;;  %v1018_v27 = vld [vmem:[%s1271_s16 + $0xd8] sm:$0xf0] }
  0x30   : > { %v1021_v29 = vor.u32 %v1143_v26, %v1018_v27 }
  0x32   : > { %1098 = vmatmul.msk.bf16.vlgmr.msra.gmra.mxu1 %vm481_vm2, %v917_v32  ;;  %1106 = vmatmul.msk.bf16.vlgmr.msra.gmra.mxu3 %vm481_vm2, %v981_v33  ;;  %v1024_v32 = vld [vmem:[%s1271_s16 + $0xe0] sm:$0xf]  ;;  %v1146_v33 = vld [vmem:[%s1271_s16 + $0xe4] sm:$0xf0] }
  0x33   : > { %v1025_v35 = vor.u32 %v1146_v33, %v1024_v32 }
  0x3c   : > { %550 = vmatmul.bf16.gmra.mxu0 %v921_v38  ;;  %590 = vmatmul.bf16.gmra.mxu2 %v985_v39  ;;  %v1145_v38 = vld [vmem:[%s1271_s16 + $0xe4] sm:$0xf]  ;;  %v1026_v39 = vld [vmem:[%s1271_s16 + $0xe8] sm:$0xf0] }
  0x3d   : > { %v1029_v41 = vor.u32 %v1145_v38, %v1026_v39 }
  0x42   : > { %1099 = vmatmul.msk.bf16.gmra.mxu1 %vm481_vm2, %v925_v44  ;;  %1107 = vmatmul.msk.bf16.gmra.mxu3 %vm481_vm2, %v989_v45  ;;  %v1032_v44 = vld [vmem:[%s1271_s16 + $0xf0] sm:$0xf]  ;;  %v1148_v45 = vld [vmem:[%s1271_s16 + $0xf4] sm:$0xf0] }
  0x43   : > { %v1033_v47 = vor.u32 %v1148_v45, %v1032_v44 }
  0x4c   : > { %555 = vmatmul.bf16.gmra.mxu0 %v929_v50  ;;  %595 = vmatmul.bf16.gmra.mxu2 %v993_v51  ;;  %v1147_v50 = vld [vmem:[%s1271_s16 + $0xf4] sm:$0xf]  ;;  %v1034_v51 = vld [vmem:[%s1271_s16 + $0xf8] sm:$0xf0] }
  0x4d   : > { %v1037_v53 = vor.u32 %v1147_v50, %v1034_v51 }
  0x52   : > { %1100 = vmatmul.msk.bf16.gmra.mxu1 %vm481_vm2, %v933_v56  ;;  %1108 = vmatmul.msk.bf16.gmra.mxu3 %vm481_vm2, %v997_v57 }
  0x5c   : > { %560 = vmatmul.bf16.gmra.mxu0 %v937_v62  ;;  %600 = vmatmul.bf16.gmra.mxu2 %v1001_v63 }
  0x62   : > { %1101 = vmatmul.msk.bf16.gmra.mxu1 %vm481_vm2, %v941_v4  ;;  %1109 = vmatmul.msk.bf16.gmra.mxu3 %vm481_vm2, %v1005_v5 }
  0x6c   : > { %565 = vmatmul.bf16.gmra.mxu0 %v945_v10  ;;  %605 = vmatmul.bf16.gmra.mxu2 %v1009_v11 }
  0x72   : > { %1102 = vmatmul.msk.bf16.gmra.mxu1 %vm481_vm2, %v949_v16  ;;  %1110 = vmatmul.msk.bf16.gmra.mxu3 %vm481_vm2, %v1013_v17 }
  0x7c   : > { %570 = vmatmul.bf16.gmra.mxu0 %v953_v22  ;;  %610 = vmatmul.bf16.gmra.mxu2 %v1017_v23 }
  0x82   : > { %1103 = vmatmul.msk.bf16.gmra.mxu1 %vm481_vm2, %v957_v28  ;;  %1111 = vmatmul.msk.bf16.gmra.mxu3 %vm481_vm2, %v1021_v29 }
  0x8c   : > { %575 = vmatmul.bf16.gmra.mxu0 %v961_v34  ;;  %615 = vmatmul.bf16.gmra.mxu2 %v1025_v35 }
  0x92   : > { %1104 = vmatmul.msk.bf16.gmra.mxu1 %vm481_vm2, %v965_v40  ;;  %1112 = vmatmul.msk.bf16.gmra.mxu3 %vm481_vm2, %v1029_v41 }
  0x9c   : > { %580 = vmatmul.bf16.gmra.mxu0 %v969_v46  ;;  %620 = vmatmul.bf16.gmra.mxu2 %v1033_v47 }
  0xa2   : > { %1105 = vmatmul.msk.bf16.gmra.mxu1 %vm481_vm2, %v973_v52  ;;  %1113 = vmatmul.msk.bf16.gmra.mxu3 %vm481_vm2, %v1037_v53 }
  0xa9   : > { %v546_v55 = vpop.f32.mrf.mxu0 }
  0xaa   : > { %v547_v56 = vadd.f32 %v1368_v54, %v546_v55 }
  0xaf   : > { %v635_v57 = vpop.f32.mrf.mxu1  ;;  %v586_v59 = vpop.f32.mrf.mxu2 }
  0xb0   : > { %v636_v58 = vadd.f32 %v635_v57, %v547_v56  ;;  %v587_v61 = vadd.f32 %v1368_v54, %v586_v59 }
  0xb1   : > { %v548_v62 = vpop.f32.mrf.mxu0 }
  0xb2   : > { %vm715_vm3 = vcmp.ge.f32.partialorder %v636_v58, 0.0  ;;  %v747_v60 = vmul.f32 0.25, %v636_v58  ;;  %v549_v1 = vadd.f32 %v1368_v54, %v548_v62 }
  0xb4   : > { %v779_v63 = vsel %vm715_vm3, %v636_v58, %v747_v60 }
  0xb5   : > { %812 = vst.msk [vmem:[%s1376_s30] sm:$0xff] %vm811_vm4, %v779_v63  ;;  %v675_v0 = vpop.f32.mrf.mxu3 }
  0xb6   : > { %v676_v2 = vadd.f32 %v675_v0, %v587_v61 }
  0xb7   : > { %v637_v3 = vpop.f32.mrf.mxu1  ;;  %v588_v6 = vpop.f32.mrf.mxu2 }
  0xb8   : > { %vm731_vm5 = vcmp.ge.f32.partialorder %v676_v2, 0.0  ;;  %v763_v4 = vmul.f32 0.25, %v676_v2  ;;  %v638_v5 = vadd.f32 %v637_v3, %v549_v1  ;;  %v589_v11 = vadd.f32 %v1368_v54, %v588_v6 }
  0xb9   : > { %v551_v9 = vpop.f32.mrf.mxu0 }
  0xba   : > { %v795_v7 = vsel %vm731_vm5, %v676_v2, %v763_v4  ;;  %vm716_vm6 = vcmp.ge.f32.partialorder %v638_v5, 0.0  ;;  %v748_v8 = vmul.f32 0.25, %v638_v5  ;;  %v552_v12 = vadd.f32 %v1368_v54, %v551_v9 }
  0xbb   : > { %828 = vst.msk [vmem:[%s1376_s30 + $0x80] sm:$0xff] %vm811_vm4, %v795_v7 }
  0xbc   : > { %v780_v10 = vsel %vm716_vm6, %v638_v5, %v748_v8 }
  0xbd   : > { %813 = vst.msk [vmem:[%s1376_s30 + $0x8] sm:$0xff] %vm811_vm4, %v780_v10  ;;  %v677_v13 = vpop.f32.mrf.mxu3 }
  0xbe   : > { %v678_v14 = vadd.f32 %v677_v13, %v589_v11 }
  0xbf   : > { %v640_v15 = vpop.f32.mrf.mxu1  ;;  %v591_v18 = vpop.f32.mrf.mxu2 }
  0xc0   : > { %vm732_vm7 = vcmp.ge.f32.partialorder %v678_v14, 0.0  ;;  %v764_v16 = vmul.f32 0.25, %v678_v14  ;;  %v641_v17 = vadd.f32 %v640_v15, %v552_v12  ;;  %v592_v21 = vadd.f32 %v1368_v54, %v591_v18 }
  0xc1   : > { %v553_v22 = vpop.f32.mrf.mxu0 }
  0xc2   : > { %v796_v19 = vsel %vm732_vm7, %v678_v14, %v764_v16  ;;  %vm717_vm8 = vcmp.ge.f32.partialorder %v641_v17, 0.0  ;;  %v749_v20 = vmul.f32 0.25, %v641_v17  ;;  %v554_v25 = vadd.f32 %v1368_v54, %v553_v22 }
  0xc3   : > { %829 = vst.msk [vmem:[%s1376_s30 + $0x88] sm:$0xff] %vm811_vm4, %v796_v19 }
  0xc4   : > { %v781_v23 = vsel %vm717_vm8, %v641_v17, %v749_v20 }
  0xc5   : > { %814 = vst.msk [vmem:[%s1376_s30 + $0x10] sm:$0xff] %vm811_vm4, %v781_v23  ;;  %v680_v24 = vpop.f32.mrf.mxu3 }
  0xc6   : > { %v681_v26 = vadd.f32 %v680_v24, %v592_v21 }
  0xc7   : > { %v642_v27 = vpop.f32.mrf.mxu1  ;;  %v593_v30 = vpop.f32.mrf.mxu2 }
  0xc8   : > { %vm733_vm9 = vcmp.ge.f32.partialorder %v681_v26, 0.0  ;;  %v765_v28 = vmul.f32 0.25, %v681_v26  ;;  %v643_v29 = vadd.f32 %v642_v27, %v554_v25  ;;  %v594_v35 = vadd.f32 %v1368_v54, %v593_v30 }
  0xc9   : > { %v556_v33 = vpop.f32.mrf.mxu0 }
  0xca   : > { %v797_v31 = vsel %vm733_vm9, %v681_v26, %v765_v28  ;;  %vm718_vm10 = vcmp.ge.f32.partialorder %v643_v29, 0.0  ;;  %v750_v32 = vmul.f32 0.25, %v643_v29  ;;  %v557_v36 = vadd.f32 %v1368_v54, %v556_v33 }
  0xcb   : > { %830 = vst.msk [vmem:[%s1376_s30 + $0x90] sm:$0xff] %vm811_vm4, %v797_v31 }
  0xcc   : > { %v782_v34 = vsel %vm718_vm10, %v643_v29, %v750_v32 }
  0xcd   : > { %815 = vst.msk [vmem:[%s1376_s30 + $0x18] sm:$0xff] %vm811_vm4, %v782_v34  ;;  %v682_v37 = vpop.f32.mrf.mxu3 }
  0xce   : > { %v683_v38 = vadd.f32 %v682_v37, %v594_v35 }
  0xcf   : > { %v645_v39 = vpop.f32.mrf.mxu1  ;;  %v596_v42 = vpop.f32.mrf.mxu2 }
  0xd0   : > { %vm734_vm11 = vcmp.ge.f32.partialorder %v683_v38, 0.0  ;;  %v766_v40 = vmul.f32 0.25, %v683_v38  ;;  %v646_v41 = vadd.f32 %v645_v39, %v557_v36  ;;  %v597_v45 = vadd.f32 %v1368_v54, %v596_v42 }
  0xd1   : > { %v558_v46 = vpop.f32.mrf.mxu0 }
  0xd2   : > { %v798_v43 = vsel %vm734_vm11, %v683_v38, %v766_v40  ;;  %vm719_vm12 = vcmp.ge.f32.partialorder %v646_v41, 0.0  ;;  %v751_v44 = vmul.f32 0.25, %v646_v41  ;;  %v559_v49 = vadd.f32 %v1368_v54, %v558_v46 }
  0xd3   : > { %831 = vst.msk [vmem:[%s1376_s30 + $0x98] sm:$0xff] %vm811_vm4, %v798_v43 }
  0xd4   : > { %v783_v47 = vsel %vm719_vm12, %v646_v41, %v751_v44 }
  0xd5   : > { %816 = vst.msk [vmem:[%s1376_s30 + $0x20] sm:$0xff] %vm811_vm4, %v783_v47  ;;  %v685_v48 = vpop.f32.mrf.mxu3 }
  0xd6   : > { %v686_v50 = vadd.f32 %v685_v48, %v597_v45 }
  0xd7   : > { %v647_v51 = vpop.f32.mrf.mxu1  ;;  %v598_v55 = vpop.f32.mrf.mxu2 }
  0xd8   : > { %vm735_vm13 = vcmp.ge.f32.partialorder %v686_v50, 0.0  ;;  %v767_v52 = vmul.f32 0.25, %v686_v50  ;;  %v648_v53 = vadd.f32 %v647_v51, %v559_v49  ;;  %v599_v60 = vadd.f32 %v1368_v54, %v598_v55 }
  0xd9   : > { %v561_v58 = vpop.f32.mrf.mxu0 }
  0xda   : > { %v799_v56 = vsel %vm735_vm13, %v686_v50, %v767_v52  ;;  %vm720_vm14 = vcmp.ge.f32.partialorder %v648_v53, 0.0  ;;  %v752_v57 = vmul.f32 0.25, %v648_v53  ;;  %v562_v61 = vadd.f32 %v1368_v54, %v561_v58 }
  0xdb   : > { %832 = vst.msk [vmem:[%s1376_s30 + $0xa0] sm:$0xff] %vm811_vm4, %v799_v56 }
  0xdc   : > { %v784_v59 = vsel %vm720_vm14, %v648_v53, %v752_v57 }
  0xdd   : > { %817 = vst.msk [vmem:[%s1376_s30 + $0x28] sm:$0xff] %vm811_vm4, %v784_v59  ;;  %v687_v62 = vpop.f32.mrf.mxu3 }
  0xde   : > { %v688_v63 = vadd.f32 %v687_v62, %v599_v60 }
  0xdf   : > { %v650_v0 = vpop.f32.mrf.mxu1  ;;  %v601_v3 = vpop.f32.mrf.mxu2 }
  0xe0   : > { %vm736_vm15 = vcmp.ge.f32.partialorder %v688_v63, 0.0  ;;  %v768_v1 = vmul.f32 0.25, %v688_v63  ;;  %v651_v2 = vadd.f32 %v650_v0, %v562_v61  ;;  %v602_v6 = vadd.f32 %v1368_v54, %v601_v3 }
  0xe1   : > { %v563_v7 = vpop.f32.mrf.mxu0 }
  0xe2   : > { %v800_v4 = vsel %vm736_vm15, %v688_v63, %v768_v1  ;;  %vm721_vm0 = vcmp.ge.f32.partialorder %v651_v2, 0.0  ;;  %v753_v5 = vmul.f32 0.25, %v651_v2  ;;  %v564_v10 = vadd.f32 %v1368_v54, %v563_v7 }
  0xe3   : > { %833 = vst.msk [vmem:[%s1376_s30 + $0xa8] sm:$0xff] %vm811_vm4, %v800_v4 }
  0xe4   : > { %v785_v8 = vsel %vm721_vm0, %v651_v2, %v753_v5 }
  0xe5   : > { %818 = vst.msk [vmem:[%s1376_s30 + $0x30] sm:$0xff] %vm811_vm4, %v785_v8  ;;  %v690_v9 = vpop.f32.mrf.mxu3 }
  0xe6   : > { %v691_v11 = vadd.f32 %v690_v9, %v602_v6 }
  0xe7   : > { %v652_v12 = vpop.f32.mrf.mxu1  ;;  %v603_v15 = vpop.f32.mrf.mxu2 }
  0xe8   : > { %vm737_vm1 = vcmp.ge.f32.partialorder %v691_v11, 0.0  ;;  %v769_v13 = vmul.f32 0.25, %v691_v11  ;;  %v653_v14 = vadd.f32 %v652_v12, %v564_v10  ;;  %v604_v20 = vadd.f32 %v1368_v54, %v603_v15 }
  0xe9   : > { %v566_v18 = vpop.f32.mrf.mxu0 }
  0xea   : > { %v801_v16 = vsel %vm737_vm1, %v691_v11, %v769_v13  ;;  %vm722_vm2 = vcmp.ge.f32.partialorder %v653_v14, 0.0  ;;  %v754_v17 = vmul.f32 0.25, %v653_v14  ;;  %v567_v21 = vadd.f32 %v1368_v54, %v566_v18 }
  0xeb   : > { %834 = vst.msk [vmem:[%s1376_s30 + $0xb0] sm:$0xff] %vm811_vm4, %v801_v16 }
  0xec   : > { %v786_v19 = vsel %vm722_vm2, %v653_v14, %v754_v17 }
  0xed   : > { %819 = vst.msk [vmem:[%s1376_s30 + $0x38] sm:$0xff] %vm811_vm4, %v786_v19  ;;  %v692_v22 = vpop.f32.mrf.mxu3 }
  0xee   : > { %v693_v23 = vadd.f32 %v692_v22, %v604_v20 }
  0xef   : > { %v655_v24 = vpop.f32.mrf.mxu1  ;;  %v606_v27 = vpop.f32.mrf.mxu2 }
  0xf0   : > { %vm738_vm3 = vcmp.ge.f32.partialorder %v693_v23, 0.0  ;;  %v770_v25 = vmul.f32 0.25, %v693_v23  ;;  %v656_v26 = vadd.f32 %v655_v24, %v567_v21  ;;  %v607_v30 = vadd.f32 %v1368_v54, %v606_v27 }
  0xf1   : > { %v568_v31 = vpop.f32.mrf.mxu0 }
  0xf2   : > { %v802_v28 = vsel %vm738_vm3, %v693_v23, %v770_v25  ;;  %vm723_vm5 = vcmp.ge.f32.partialorder %v656_v26, 0.0  ;;  %v755_v29 = vmul.f32 0.25, %v656_v26  ;;  %v569_v34 = vadd.f32 %v1368_v54, %v568_v31 }
  0xf3   : > { %835 = vst.msk [vmem:[%s1376_s30 + $0xb8] sm:$0xff] %vm811_vm4, %v802_v28 }
  0xf4   : > { %v787_v32 = vsel %vm723_vm5, %v656_v26, %v755_v29 }
  0xf5   : > { %820 = vst.msk [vmem:[%s1376_s30 + $0x40] sm:$0xff] %vm811_vm4, %v787_v32  ;;  %v695_v33 = vpop.f32.mrf.mxu3 }
  0xf6   : > { %v696_v35 = vadd.f32 %v695_v33, %v607_v30 }
  0xf7   : > { %v657_v36 = vpop.f32.mrf.mxu1  ;;  %v608_v39 = vpop.f32.mrf.mxu2 }
  0xf8   : > { %vm739_vm6 = vcmp.ge.f32.partialorder %v696_v35, 0.0  ;;  %v771_v37 = vmul.f32 0.25, %v696_v35  ;;  %v658_v38 = vadd.f32 %v657_v36, %v569_v34  ;;  %v609_v44 = vadd.f32 %v1368_v54, %v608_v39 }
  0xf9   : > { %v571_v42 = vpop.f32.mrf.mxu0 }
  0xfa   : > { %v803_v40 = vsel %vm739_vm6, %v696_v35, %v771_v37  ;;  %vm724_vm7 = vcmp.ge.f32.partialorder %v658_v38, 0.0  ;;  %v756_v41 = vmul.f32 0.25, %v658_v38  ;;  %v572_v45 = vadd.f32 %v1368_v54, %v571_v42 }
  0xfb   : > { %836 = vst.msk [vmem:[%s1376_s30 + $0xc0] sm:$0xff] %vm811_vm4, %v803_v40 }
  0xfc   : > { %v788_v43 = vsel %vm724_vm7, %v658_v38, %v756_v41 }
  0xfd   : > { %821 = vst.msk [vmem:[%s1376_s30 + $0x48] sm:$0xff] %vm811_vm4, %v788_v43  ;;  %v697_v46 = vpop.f32.mrf.mxu3 }
  0xfe   : > { %v698_v47 = vadd.f32 %v697_v46, %v609_v44 }
  0xff   : > { %v660_v48 = vpop.f32.mrf.mxu1  ;;  %v611_v51 = vpop.f32.mrf.mxu2 }
 0x100   : > { %vm740_vm8 = vcmp.ge.f32.partialorder %v698_v47, 0.0  ;;  %v772_v49 = vmul.f32 0.25, %v698_v47  ;;  %v661_v50 = vadd.f32 %v660_v48, %v572_v45  ;;  %v612_v55 = vadd.f32 %v1368_v54, %v611_v51 }
 0x101   : > { %v573_v56 = vpop.f32.mrf.mxu0 }
 0x102   : > { %v804_v52 = vsel %vm740_vm8, %v698_v47, %v772_v49  ;;  %vm725_vm9 = vcmp.ge.f32.partialorder %v661_v50, 0.0  ;;  %v757_v53 = vmul.f32 0.25, %v661_v50  ;;  %v574_v59 = vadd.f32 %v1368_v54, %v573_v56 }
 0x103   : > { %837 = vst.msk [vmem:[%s1376_s30 + $0xc8] sm:$0xff] %vm811_vm4, %v804_v52 }
 0x104   : > { %v789_v57 = vsel %vm725_vm9, %v661_v50, %v757_v53 }
 0x105   : > { %822 = vst.msk [vmem:[%s1376_s30 + $0x50] sm:$0xff] %vm811_vm4, %v789_v57  ;;  %v700_v58 = vpop.f32.mrf.mxu3 }
 0x106   : > { %v701_v60 = vadd.f32 %v700_v58, %v612_v55 }
 0x107   : > { %v662_v61 = vpop.f32.mrf.mxu1  ;;  %v613_v0 = vpop.f32.mrf.mxu2 }
 0x108   : > { %vm741_vm10 = vcmp.ge.f32.partialorder %v701_v60, 0.0  ;;  %v773_v62 = vmul.f32 0.25, %v701_v60  ;;  %v663_v63 = vadd.f32 %v662_v61, %v574_v59  ;;  %v614_v5 = vadd.f32 %v1368_v54, %v613_v0 }
 0x109   : > { %v576_v3 = vpop.f32.mrf.mxu0 }
 0x10a   : > { %v805_v1 = vsel %vm741_vm10, %v701_v60, %v773_v62  ;;  %vm726_vm11 = vcmp.ge.f32.partialorder %v663_v63, 0.0  ;;  %v758_v2 = vmul.f32 0.25, %v663_v63  ;;  %v577_v6 = vadd.f32 %v1368_v54, %v576_v3 }
 0x10b   : > { %838 = vst.msk [vmem:[%s1376_s30 + $0xd0] sm:$0xff] %vm811_vm4, %v805_v1 }
 0x10c   : > { %v790_v4 = vsel %vm726_vm11, %v663_v63, %v758_v2 }
 0x10d   : > { %823 = vst.msk [vmem:[%s1376_s30 + $0x58] sm:$0xff] %vm811_vm4, %v790_v4  ;;  %v702_v7 = vpop.f32.mrf.mxu3 }
 0x10e   : > { %v703_v8 = vadd.f32 %v702_v7, %v614_v5 }
 0x10f   : > { %v665_v9 = vpop.f32.mrf.mxu1  ;;  %v616_v12 = vpop.f32.mrf.mxu2 }
 0x110   : > { %vm742_vm12 = vcmp.ge.f32.partialorder %v703_v8, 0.0  ;;  %v774_v10 = vmul.f32 0.25, %v703_v8  ;;  %v666_v11 = vadd.f32 %v665_v9, %v577_v6  ;;  %v617_v15 = vadd.f32 %v1368_v54, %v616_v12 }
 0x111   : > { %v578_v16 = vpop.f32.mrf.mxu0 }
 0x112   : > { %v806_v13 = vsel %vm742_vm12, %v703_v8, %v774_v10  ;;  %vm727_vm13 = vcmp.ge.f32.partialorder %v666_v11, 0.0  ;;  %v759_v14 = vmul.f32 0.25, %v666_v11  ;;  %v579_v19 = vadd.f32 %v1368_v54, %v578_v16 }
 0x113   : > { %839 = vst.msk [vmem:[%s1376_s30 + $0xd8] sm:$0xff] %vm811_vm4, %v806_v13 }
 0x114   : > { %v791_v17 = vsel %vm727_vm13, %v666_v11, %v759_v14 }
 0x115   : > { %824 = vst.msk [vmem:[%s1376_s30 + $0x60] sm:$0xff] %vm811_vm4, %v791_v17  ;;  %v705_v18 = vpop.f32.mrf.mxu3 }
 0x116   : > { %v706_v20 = vadd.f32 %v705_v18, %v617_v15 }
 0x117   : > { %v667_v21 = vpop.f32.mrf.mxu1  ;;  %v618_v24 = vpop.f32.mrf.mxu2 }
 0x118   : > { %vm743_vm14 = vcmp.ge.f32.partialorder %v706_v20, 0.0  ;;  %v775_v22 = vmul.f32 0.25, %v706_v20  ;;  %v668_v23 = vadd.f32 %v667_v21, %v579_v19  ;;  %v619_v29 = vadd.f32 %v1368_v54, %v618_v24 }
 0x119   : > { %v581_v27 = vpop.f32.mrf.mxu0 }
 0x11a   : > { %v807_v25 = vsel %vm743_vm14, %v706_v20, %v775_v22  ;;  %vm728_vm15 = vcmp.ge.f32.partialorder %v668_v23, 0.0  ;;  %v760_v26 = vmul.f32 0.25, %v668_v23  ;;  %v582_v30 = vadd.f32 %v1368_v54, %v581_v27 }
 0x11b   : > { %840 = vst.msk [vmem:[%s1376_s30 + $0xe0] sm:$0xff] %vm811_vm4, %v807_v25 }
 0x11c   : > { %v792_v28 = vsel %vm728_vm15, %v668_v23, %v760_v26 }
 0x11d   : > { %825 = vst.msk [vmem:[%s1376_s30 + $0x68] sm:$0xff] %vm811_vm4, %v792_v28  ;;  %v707_v31 = vpop.f32.mrf.mxu3 }
 0x11e   : > { %v708_v32 = vadd.f32 %v707_v31, %v619_v29 }
 0x11f   : > { %v670_v33 = vpop.f32.mrf.mxu1  ;;  %v621_v36 = vpop.f32.mrf.mxu2 }
 0x120   : > { %vm744_vm0 = vcmp.ge.f32.partialorder %v708_v32, 0.0  ;;  %v776_v34 = vmul.f32 0.25, %v708_v32  ;;  %v671_v35 = vadd.f32 %v670_v33, %v582_v30  ;;  %v622_v39 = vadd.f32 %v1368_v54, %v621_v36 }
 0x121   : > { %v583_v40 = vpop.f32.mrf.mxu0 }
 0x122   : > { %v808_v37 = vsel %vm744_vm0, %v708_v32, %v776_v34  ;;  %vm729_vm1 = vcmp.ge.f32.partialorder %v671_v35, 0.0  ;;  %v761_v38 = vmul.f32 0.25, %v671_v35  ;;  %v584_v43 = vadd.f32 %v1368_v54, %v583_v40 }
 0x123   : > { %841 = vst.msk [vmem:[%s1376_s30 + $0xe8] sm:$0xff] %vm811_vm4, %v808_v37 }
 0x124   : > { %v793_v41 = vsel %vm729_vm1, %v671_v35, %v761_v38 }
 0x125   : > { %826 = vst.msk [vmem:[%s1376_s30 + $0x70] sm:$0xff] %vm811_vm4, %v793_v41  ;;  %v710_v42 = vpop.f32.mrf.mxu3 }
 0x126   : > { %v711_v44 = vadd.f32 %v710_v42, %v622_v39 }
 0x127   : > { %v672_v45 = vpop.f32.mrf.mxu1  ;;  %v623_v48 = vpop.f32.mrf.mxu2 }
 0x128   : > { %vm745_vm2 = vcmp.ge.f32.partialorder %v711_v44, 0.0  ;;  %v777_v46 = vmul.f32 0.25, %v711_v44  ;;  %v673_v47 = vadd.f32 %v672_v45, %v584_v43  ;;  %v624_v52 = vadd.f32 %v1368_v54, %v623_v48 }
 0x12a   : > { %v809_v49 = vsel %vm745_vm2, %v711_v44, %v777_v46  ;;  %vm730_vm3 = vcmp.ge.f32.partialorder %v673_v47, 0.0  ;;  %v762_v50 = vmul.f32 0.25, %v673_v47 }
 0x12b   : > { %842 = vst.msk [vmem:[%s1376_s30 + $0xf0] sm:$0xff] %vm811_vm4, %v809_v49 }
 0x12c   : > { %v794_v51 = vsel %vm730_vm3, %v673_v47, %v762_v50 }
 0x12d   : > { %827 = vst.msk [vmem:[%s1376_s30 + $0x78] sm:$0xff] %vm811_vm4, %v794_v51  ;;  %v712_v53 = vpop.f32.mrf.mxu3 }
 0x12e   : > { %v713_v55 = vadd.f32 %v712_v53, %v624_v52 }
 0x130   : > { %vm746_vm5 = vcmp.ge.f32.partialorder %v713_v55, 0.0  ;;  %v778_v56 = vmul.f32 0.25, %v713_v55 }
 0x132   : > { %v810_v57 = vsel %vm746_vm5, %v713_v55, %v778_v56 }
 0x133   : > { %843 = vst.msk [vmem:[%s1376_s30 + $0xf8] sm:$0xff] %vm811_vm4, %v810_v57 }
 0x134 PF: > { %s13_s12 = sadd.s32 1, %s1196_s12  }
 0x135   : > { %p10_p4 = scmp.ge.s32.totalorder %s13_s12, 4  }
 0x137   :  { %12 = sbr.rel (!%p10_p4) target bundleno = 1 (0x1), region = 62 }

// kernel: generator_forward.10
= control target key start
LH: loop header
LB: loop body
LE: loop exit
PB: predicated region body
PF: predicated region fallthrough
CT: control target
= control target key end

     0   :  { %s1681_s18 = smov 0   ;;  %s2101_s0 = inlined_call_operand.vmem [shape: bf16[512,288], index: 0, kind: input, shape index: {}]   ;;  %s2102_s1 = inlined_call_operand.vmem [shape: bf16[288,32], index: 1, kind: input, shape index: {}]   ;;  %s2103_s2 = inlined_call_operand.vmem [shape: f32[1,32], index: 2, kind: input, shape index: {}]   ;;  %s2104_s3 = inlined_call_operand.vmem [shape: f32[1,32], index: 3, kind: input, shape index: {}]   ;;  %s2105_s4 = inlined_call_operand.vmem [shape: f32[1,32], index: 4, kind: input, shape index: {}]   ;;  %s2106_s5 = inlined_call_operand.vmem [shape: f32[512,32], index: 5, kind: output, shape index: {}]  }
   0x1 LB: > { %s1256_s19 = sadd.s32 4294967295, %s1649_s18   ;;  %p1260_p0 = scmp.ge.s32.totalorder %s1649_s18, 1  ;;  %s1649_s18 = sphi %s1681_s18, %s15_s18  }
   0x2   : > { %p189_p1 = scmp.lt.s32.totalorder %s1649_s18, 3 }
   0x4   : > { %p190_p2 = pnand %p1260_p0, %p189_p1 }
   0x5   : > { %s1261_s26 = sshll.u32 (!%p190_p2), %s1256_s19, 5 }
   0x6   : > { %193 = sbr.rel (%p190_p2) target bundleno = 379 (0x17b), region = 40  ;;  %p219_p3 = scmp.lt.s32.totalorder (!%p190_p2), %s1261_s26, 63 }
   0xb   : > { %v1602_v0 = vld [vmem:[%s2102_s1 + $0x38] sm:$0xff]  ;;  %v1695_v1 = vld [vmem:[%s2102_s1 + $0x88] sm:$0xff]  ;;  %v1601_v3 = vld [vmem:[%s2102_s1 + $0x30] sm:$0xff]  ;;  %s2108_s26 = smov (!%p219_p3, %s1261_s26), 63  ;;  %vm684_vm0 = vcmask 261120  }
   0xc   : > { %v1700_v2 = vld [vmem:[%s2102_s1 + $0x78] sm:$0xff]  ;;  %733 = vmatpush.bf16.msra.mxu0 %v1602_v0  ;;  %1613 = vmatpush.bf16.msra.mxu3 %v1602_v0  ;;  %v1710_v4 = vld [vmem:[%s2102_s1 + $0x80] sm:$0xff]  ;;  %v1609_v5 = vld [vmem:[%s2102_s1 + $0x70] sm:$0xff]  ;;  %s1631_s10 = smul.u32 12, %s2108_s26  ;;  %s1264_s21 = sshll.u32 %s2108_s26, 3 }
   0xd   : > { %917 = vmatpush.bf16.msra.mxu2 %v1695_v1  ;;  %822 = vmatpush.bf16.msra.mxu1 %v1700_v2  ;;  %v1600_v6 = vld [vmem:[%s2102_s1 + $0x28] sm:$0xff]  ;;  %v1599_v11 = vld [vmem:[%s2102_s1 + $0x20] sm:$0xff]  ;;  %v1598_v13 = vld [vmem:[%s2102_s1 + $0x18] sm:$0xff]  ;;  %s1875_s24 = scalar_lea.vmem %s2106_s5, %s1264_s21 }
   0xe   : > { %s1725_s13 = scalar_lea.vmem %s2101_s0, %s1631_s10  ;;  %v1608_v7 = vld [vmem:[%s2102_s1 + $0x68] sm:$0xff]  ;;  %v1607_v12 = vld [vmem:[%s2102_s1 + $0x60] sm:$0xff]  ;;  %v1606_v14 = vld [vmem:[%s2102_s1 + $0x58] sm:$0xff] }
   0xf   : > { %v1275_v8 = vld [vmem:[%s1725_s13 + $0x8] sm:$0xf]  ;;  %v1549_v9 = vld [vmem:[%s1725_s13 + $0x10] sm:$0xf0]  ;;  %v1287_v17 = vld [vmem:[%s1725_s13 + $0x20] sm:$0xf] }
  0x10   : > { %734 = vmatpush.bf16.msra.mxu0 %v1601_v3  ;;  %1614 = vmatpush.bf16.msra.mxu3 %v1601_v3  ;;  %v1276_v10 = vor.u32 %v1549_v9, %v1275_v8  ;;  %v1597_v15 = vld [vmem:[%s2102_s1 + $0x10] sm:$0xff]  ;;  %v1552_v18 = vld [vmem:[%s1725_s13 + $0x28] sm:$0xf0]  ;;  %v1595_v22 = vld [vmem:[%s2102_s1] sm:$0xff] }
  0x11   : > { %918 = vmatpush.bf16.msra.mxu2 %v1710_v4  ;;  %823 = vmatpush.bf16.msra.mxu1 %v1609_v5  ;;  %v1605_v16 = vld [vmem:[%s2102_s1 + $0x50] sm:$0xff]  ;;  %v1596_v19 = vld [vmem:[%s2102_s1 + $0x8] sm:$0xff]  ;;  %v1288_v20 = vor.u32 %v1552_v18, %v1287_v17  ;;  %v1267_v23 = vld [vmem:[%s1725_s13] sm:$0xf] }
  0x12   : > { %v1604_v21 = vld [vmem:[%s2102_s1 + $0x48] sm:$0xff]  ;;  %v1411_v25 = vld [vmem:[%s1725_s13 + $0x120] sm:$0xf]  ;;  %v1547_v28 = vld [vmem:[%s1725_s13 + $0x4] sm:$0xf] }
  0x13   : > { %v1548_v24 = vld [vmem:[%s1725_s13 + $0x8] sm:$0xf0]  ;;  %v1603_v27 = vld [vmem:[%s2102_s1 + $0x40] sm:$0xff]  ;;  %v1269_v29 = vld [vmem:[%s1725_s13 + $0xc] sm:$0xf0] }
  0x14   : > { %735 = vmatpush.bf16.msra.mxu0 %v1600_v6  ;;  %1615 = vmatpush.bf16.msra.mxu3 %v1600_v6  ;;  %v1584_v26 = vld [vmem:[%s1725_s13 + $0x128] sm:$0xf0]  ;;  %v1268_v30 = vor.u32 %v1548_v24, %v1267_v23  ;;  %v1272_v32 = vor.u32 %v1547_v28, %v1269_v29  ;;  %v1299_v33 = vld [vmem:[%s1725_s13 + $0x38] sm:$0xf]  ;;  %v1555_v34 = vld [vmem:[%s1725_s13 + $0x40] sm:$0xf0] }
  0x15   : > { %1529 = vmatmul.msk.bf16.vlgmr.msra.gmra.mxu2 %vm684_vm0, %v1276_v10  ;;  %824 = vmatpush.bf16.msra.mxu1 %v1608_v7  ;;  %v1412_v31 = vor.u32 %v1584_v26, %v1411_v25  ;;  %v1300_v35 = vor.u32 %v1555_v34, %v1299_v33  ;;  %v1279_v36 = vld [vmem:[%s1725_s13 + $0x18] sm:$0xf]  ;;  %v1551_v37 = vld [vmem:[%s1725_s13 + $0x20] sm:$0xf0]  ;;  %v1550_v40 = vld [vmem:[%s1725_s13 + $0x1c] sm:$0xf] }
  0x16   : > { %v1423_v38 = vld [vmem:[%s1725_s13 + $0x138] sm:$0xf]  ;;  %v1587_v39 = vld [vmem:[%s1725_s13 + $0x140] sm:$0xf0]  ;;  %v1281_v41 = vld [vmem:[%s1725_s13 + $0x24] sm:$0xf0]  ;;  %v1280_v42 = vor.u32 %v1551_v37, %v1279_v36 }
  0x17   : > { %v1424_v43 = vor.u32 %v1587_v39, %v1423_v38  ;;  %v1284_v44 = vor.u32 %v1550_v40, %v1281_v41  ;;  %v1311_v45 = vld [vmem:[%s1725_s13 + $0x50] sm:$0xf]  ;;  %v1558_v46 = vld [vmem:[%s1725_s13 + $0x58] sm:$0xf0]  ;;  %v1553_v52 = vld [vmem:[%s1725_s13 + $0x34] sm:$0xf] }
  0x18   : > { %736 = vmatpush.bf16.msra.mxu0 %v1599_v11  ;;  %1616 = vmatpush.bf16.msra.mxu3 %v1599_v11  ;;  %v1312_v47 = vor.u32 %v1558_v46, %v1311_v45  ;;  %v1291_v48 = vld [vmem:[%s1725_s13 + $0x30] sm:$0xf]  ;;  %v1554_v49 = vld [vmem:[%s1725_s13 + $0x38] sm:$0xf0]  ;;  %v1293_v53 = vld [vmem:[%s1725_s13 + $0x3c] sm:$0xf0] }
  0x19   : > { %825 = vmatpush.bf16.msra.mxu1 %v1607_v12  ;;  %v1435_v50 = vld [vmem:[%s1725_s13 + $0x150] sm:$0xf]  ;;  %v1590_v51 = vld [vmem:[%s1725_s13 + $0x158] sm:$0xf0]  ;;  %v1292_v54 = vor.u32 %v1554_v49, %v1291_v48  ;;  %v1296_v56 = vor.u32 %v1553_v52, %v1293_v53  ;;  %v1323_v57 = vld [vmem:[%s1725_s13 + $0x68] sm:$0xf] }
  0x1a   : > { %v1436_v55 = vor.u32 %v1590_v51, %v1435_v50  ;;  %v1561_v58 = vld [vmem:[%s1725_s13 + $0x70] sm:$0xf0]  ;;  %v1303_v60 = vld [vmem:[%s1725_s13 + $0x48] sm:$0xf]  ;;  %v1556_v0 = vld [vmem:[%s1725_s13 + $0x4c] sm:$0xf] }
  0x1b   : > { %v1324_v59 = vor.u32 %v1561_v58, %v1323_v57  ;;  %v1557_v61 = vld [vmem:[%s1725_s13 + $0x50] sm:$0xf0]  ;;  %v1447_v62 = vld [vmem:[%s1725_s13 + $0x168] sm:$0xf]  ;;  %v1564_v6 = vld [vmem:[%s1725_s13 + $0x88] sm:$0xf0] }
  0x1c   : > { %737 = vmatpush.bf16.msra.mxu0 %v1598_v13  ;;  %1617 = vmatpush.bf16.msra.mxu3 %v1598_v13  ;;  %v1593_v63 = vld [vmem:[%s1725_s13 + $0x170] sm:$0xf0]  ;;  %v1315_v8 = vld [vmem:[%s1725_s13 + $0x60] sm:$0xf]  ;;  %v1560_v9 = vld [vmem:[%s1725_s13 + $0x68] sm:$0xf0] }
  0x1d   : > { %826 = vmatpush.bf16.msra.mxu1 %v1606_v14  ;;  %v1448_v3 = vor.u32 %v1593_v63, %v1447_v62  ;;  %v1583_v10 = vld [vmem:[%s1725_s13 + $0x124] sm:$0xf]  ;;  %v1413_v11 = vld [vmem:[%s1725_s13 + $0x12c] sm:$0xf0]  ;;  %v1347_v17 = vld [vmem:[%s1725_s13 + $0x98] sm:$0xf] }
  0x1e   : > { %v1317_v13 = vld [vmem:[%s1725_s13 + $0x6c] sm:$0xf0]  ;;  %v1567_v18 = vld [vmem:[%s1725_s13 + $0xa0] sm:$0xf0]  ;;  %v1425_v23 = vld [vmem:[%s1725_s13 + $0x144] sm:$0xf0] }
  0x1f   : > { %v1562_v24 = vld [vmem:[%s1725_s13 + $0x7c] sm:$0xf]  ;;  %v1329_v25 = vld [vmem:[%s1725_s13 + $0x84] sm:$0xf0]  ;;  %v1359_v29 = vld [vmem:[%s1725_s13 + $0xb0] sm:$0xf] }
  0x20   : > { %738 = vmatpush.bf16.msra.mxu0 %v1597_v15  ;;  %1618 = vmatpush.bf16.msra.mxu3 %v1597_v15  ;;  %v1416_v15 = vor.u32 %v1583_v10, %v1413_v11  ;;  %v1332_v28 = vor.u32 %v1562_v24, %v1329_v25  ;;  %v1566_v33 = vld [vmem:[%s1725_s13 + $0x98] sm:$0xf0]  ;;  %v1589_v34 = vld [vmem:[%s1725_s13 + $0x154] sm:$0xf]  ;;  %v1341_v37 = vld [vmem:[%s1725_s13 + $0x9c] sm:$0xf0] }
  0x21   : > { %827 = vmatpush.bf16.msra.mxu1 %v1605_v16  ;;  %v1565_v36 = vld [vmem:[%s1725_s13 + $0x94] sm:$0xf]  ;;  %v1371_v41 = vld [vmem:[%s1725_s13 + $0xc8] sm:$0xf]  ;;  %v1592_v46 = vld [vmem:[%s1725_s13 + $0x16c] sm:$0xf] }
  0x22   : > { %v1344_v40 = vor.u32 %v1565_v36, %v1341_v37  ;;  %v1569_v45 = vld [vmem:[%s1725_s13 + $0xb0] sm:$0xf0]  ;;  %v1568_v48 = vld [vmem:[%s1725_s13 + $0xac] sm:$0xf]  ;;  %v1353_v49 = vld [vmem:[%s1725_s13 + $0xb4] sm:$0xf0] }
  0x23   : > { %v1356_v53 = vor.u32 %v1568_v48, %v1353_v49  ;;  %v1363_v58 = vld [vmem:[%s1725_s13 + $0xc0] sm:$0xf]  ;;  %v1571_v63 = vld [vmem:[%s1725_s13 + $0xc4] sm:$0xf]  ;;  %v1375_v24 = vld [vmem:[%s1725_s13 + $0xd8] sm:$0xf] }
  0x24   : > { %739 = vmatpush.bf16.msra.mxu0 %v1596_v19  ;;  %1619 = vmatpush.bf16.msra.mxu3 %v1596_v19  ;;  %v1348_v19 = vor.u32 %v1567_v18, %v1347_v17  ;;  %v1848_v62 = vld [vmem:[%s2103_s2] ss:$0 sm:$0xff]  ;;  %v1575_v25 = vld [vmem:[%s1725_s13 + $0xe0] sm:$0xf0]  ;;  %v1582_v48 = vld [vmem:[%s1725_s13 + $0x118] sm:$0xf0] }
  0x25   : > { %1530 = vmatmul.msk.bf16.gmra.mxu2 %vm684_vm0, %v1288_v20  ;;  %828 = vmatpush.bf16.msra.mxu1 %v1604_v21  ;;  %v1327_v20 = vld [vmem:[%s1725_s13 + $0x78] sm:$0xf]  ;;  %v1862_v11 = vld [vmem:[%s2105_s4] ss:$0 sm:$0xff] }
  0x28   : > { %740 = vmatpush.bf16.msra.mxu0 %v1595_v22  ;;  %1620 = vmatpush.bf16.msra.mxu3 %v1595_v22  ;;  %v1586_v22 = vld [vmem:[%s1725_s13 + $0x13c] sm:$0xf] }
  0x29   : > { %829 = vmatpush.bf16.msra.mxu1 %v1603_v27 }
  0x2b   : > { %741 = vmatmul.bf16.vlgmr.msra.gmra.mxu0 %v1268_v30  ;;  %801 = vmatmul.bf16.vlgmr.msra.gmra.mxu3 %v1412_v31  ;;  %v1570_v30 = vld [vmem:[%s1725_s13 + $0xb8] sm:$0xf0] }
  0x2c   : > { %1621 = vmatpush.bf16.msrb.mxu3 %v1700_v2  ;;  %830 = vmatmul.bf16.vlgmr.msra.gmra.mxu1 %v1272_v32  ;;  %v1304_v2 = vor.u32 %v1557_v61, %v1303_v60  ;;  %v1360_v31 = vor.u32 %v1570_v30, %v1359_v29  ;;  %v1339_v32 = vld [vmem:[%s1725_s13 + $0x90] sm:$0xf]  ;;  %v1443_v60 = vld [vmem:[%s1725_s13 + $0x158] sm:$0xf]  ;;  %v1591_v61 = vld [vmem:[%s1725_s13 + $0x160] sm:$0xf0] }
  0x2d   : > { %v1340_v38 = vor.u32 %v1566_v33, %v1339_v32  ;;  %v1574_v30 = vld [vmem:[%s1725_s13 + $0xdc] sm:$0xf] }
  0x30   : > { %1622 = vmatpush.bf16.msrb.mxu3 %v1609_v5  ;;  %v1335_v5 = vld [vmem:[%s1725_s13 + $0x80] sm:$0xf] }
  0x34   : > { %1623 = vmatpush.bf16.msrb.mxu3 %v1608_v7  ;;  %v1336_v7 = vor.u32 %v1564_v6, %v1335_v5 }
  0x35   : > { %1531 = vmatmul.msk.bf16.gmra.mxu2 %vm684_vm0, %v1300_v35  ;;  %v1437_v35 = vld [vmem:[%s1725_s13 + $0x15c] sm:$0xf0] }
  0x36   : > { %v1440_v39 = vor.u32 %v1589_v34, %v1437_v35  ;;  %v1376_v34 = vor.u32 %v1575_v25, %v1375_v24 }
  0x38   : > { %1624 = vmatpush.bf16.msrb.mxu3 %v1607_v12  ;;  %v1559_v12 = vld [vmem:[%s1725_s13 + $0x64] sm:$0xf] }
  0x3b   : > { %746 = vmatmul.bf16.gmra.mxu0 %v1280_v42  ;;  %806 = vmatmul.bf16.gmra.mxu3 %v1424_v43  ;;  %v1573_v42 = vld [vmem:[%s1725_s13 + $0xd0] sm:$0xf0] }
  0x3c   : > { %1625 = vmatpush.bf16.msrb.mxu3 %v1606_v14  ;;  %835 = vmatmul.bf16.gmra.mxu1 %v1284_v44  ;;  %v1316_v14 = vor.u32 %v1560_v9, %v1315_v8  ;;  %v1372_v43 = vor.u32 %v1573_v42, %v1371_v41  ;;  %v1351_v44 = vld [vmem:[%s1725_s13 + $0xa8] sm:$0xf]  ;;  %v1856_v9 = vld [vmem:[%s2104_s3] ss:$0 sm:$0xff] }
  0x3d   : > { %v1352_v50 = vor.u32 %v1569_v45, %v1351_v44 }
  0x40   : > { %1626 = vmatpush.bf16.msrb.mxu3 %v1605_v16  ;;  %v1320_v16 = vor.u32 %v1559_v12, %v1317_v13  ;;  %v1395_v13 = vld [vmem:[%s1725_s13 + $0xf8] sm:$0xf] }
  0x44   : > { %1627 = vmatpush.bf16.msrb.mxu3 %v1604_v21  ;;  %v1563_v21 = vld [vmem:[%s1725_s13 + $0x80] sm:$0xf0] }
  0x45   : > { %1532 = vmatmul.msk.bf16.gmra.mxu2 %vm684_vm0, %v1312_v47  ;;  %v1328_v26 = vor.u32 %v1563_v21, %v1327_v20  ;;  %v1449_v47 = vld [vmem:[%s1725_s13 + $0x174] sm:$0xf0] }
  0x46   : > { %v1452_v51 = vor.u32 %v1592_v46, %v1449_v47  ;;  %v1407_v47 = vld [vmem:[%s1725_s13 + $0x110] sm:$0xf] }
  0x48   : > { %1628 = vmatpush.bf16.msrb.mxu3 %v1603_v27  ;;  %v1428_v27 = vor.u32 %v1586_v22, %v1425_v23 }
  0x4b   : > { %751 = vmatmul.bf16.gmra.mxu0 %v1292_v54  ;;  %811 = vmatmul.bf16.gmra.mxu3 %v1436_v55  ;;  %v1383_v54 = vld [vmem:[%s1725_s13 + $0xe0] sm:$0xf]  ;;  %v1576_v55 = vld [vmem:[%s1725_s13 + $0xe8] sm:$0xf0] }
  0x4c   : > { %1629 = vmatpush.bf16.msra.mxu3 %v1695_v1  ;;  %840 = vmatmul.bf16.gmra.mxu1 %v1296_v56  ;;  %v1305_v1 = vld [vmem:[%s1725_s13 + $0x54] sm:$0xf0]  ;;  %v1384_v57 = vor.u32 %v1576_v55, %v1383_v54  ;;  %v1408_v55 = vor.u32 %v1582_v48, %v1407_v47 }
  0x50   : > { %1630 = vmatpush.bf16.msra.mxu3 %v1710_v4  ;;  %v1308_v4 = vor.u32 %v1556_v0, %v1305_v1  ;;  %v1365_v0 = vld [vmem:[%s1725_s13 + $0xcc] sm:$0xf0] }
  0x51   : > { %v1368_v5 = vor.u32 %v1571_v63, %v1365_v0  ;;  %v1577_v63 = vld [vmem:[%s1725_s13 + $0xf4] sm:$0xf]  ;;  %v1389_v0 = vld [vmem:[%s1725_s13 + $0xfc] sm:$0xf0] }
  0x55   : > { %1533 = vmatmul.msk.bf16.gmra.mxu2 %vm684_vm0, %v1324_v59  ;;  %v1572_v59 = vld [vmem:[%s1725_s13 + $0xc8] sm:$0xf0] }
  0x56   : > { %v1364_v1 = vor.u32 %v1572_v59, %v1363_v58  ;;  %v1387_v58 = vld [vmem:[%s1725_s13 + $0xf0] sm:$0xf]  ;;  %v1578_v59 = vld [vmem:[%s1725_s13 + $0xf8] sm:$0xf0] }
  0x5b   : > { %756 = vmatmul.bf16.gmra.mxu0 %v1304_v2  ;;  %816 = vmatmul.bf16.gmra.mxu3 %v1448_v3  ;;  %v1444_v2 = vor.u32 %v1591_v61, %v1443_v60 }
  0x5c   : > { %845 = vmatmul.bf16.gmra.mxu1 %v1308_v4 }
  0x65   : > { %1534 = vmatmul.msk.bf16.gmra.mxu2 %vm684_vm0, %v1336_v7 }
  0x6b   : > { %761 = vmatmul.bf16.gmra.mxu0 %v1316_v14  ;;  %890 = vmatmul.bf16.vlgmr.msrb.gmra.mxu3 %v1416_v15  ;;  %v1579_v14 = vld [vmem:[%s1725_s13 + $0x100] sm:$0xf0] }
  0x6c   : > { %850 = vmatmul.bf16.gmra.mxu1 %v1320_v16  ;;  %v1396_v21 = vor.u32 %v1579_v14, %v1395_v13 }
  0x75   : > { %1535 = vmatmul.msk.bf16.gmra.mxu2 %vm684_vm0, %v1348_v19 }
  0x7b   : > { %766 = vmatmul.bf16.gmra.mxu0 %v1328_v26  ;;  %895 = vmatmul.bf16.gmra.mxu3 %v1428_v27  ;;  %v1455_v26 = vld [vmem:[%s1725_s13 + $0x170] sm:$0xf]  ;;  %v1594_v27 = vld [vmem:[%s1725_s13 + $0x178] sm:$0xf0] }
  0x7c   : > { %855 = vmatmul.bf16.gmra.mxu1 %v1332_v28  ;;  %v1456_v35 = vor.u32 %v1594_v27, %v1455_v26 }
  0x85   : > { %1536 = vmatmul.msk.bf16.gmra.mxu2 %vm684_vm0, %v1360_v31  ;;  %v1377_v31 = vld [vmem:[%s1725_s13 + $0xe4] sm:$0xf0] }
  0x8b   : > { %771 = vmatmul.bf16.gmra.mxu0 %v1340_v38  ;;  %900 = vmatmul.bf16.gmra.mxu3 %v1440_v39  ;;  %v1380_v38 = vor.u32 %v1574_v30, %v1377_v31  ;;  %v1581_v30 = vld [vmem:[%s1725_s13 + $0x110] sm:$0xf0] }
  0x8c   : > { %860 = vmatmul.bf16.gmra.mxu1 %v1344_v40 }
  0x95   : > { %1537 = vmatmul.msk.bf16.gmra.mxu2 %vm684_vm0, %v1372_v43 }
  0x98   : > { %v920_v52 = vpop.f32.mrf.mxu2 }
  0x9b   : > { %776 = vmatmul.bf16.gmra.mxu0 %v1352_v50  ;;  %905 = vmatmul.bf16.gmra.mxu3 %v1452_v51 }
  0x9c   : > { %865 = vmatmul.bf16.gmra.mxu1 %v1356_v53 }
  0xa0   : > { %v922_v56 = vpop.f32.mrf.mxu2 }
  0xa5   : > { %1538 = vmatmul.msk.bf16.gmra.mxu2 %vm684_vm0, %v1384_v57 }
  0xa8   : > { %v925_v3 = vpop.f32.mrf.mxu2  ;;  %v742_v4 = vpop.f32.mrf.mxu0 }
  0xa9   : > { %v743_v6 = vadd.f32 %v1848_v62, %v742_v4  ;;  %v831_v7 = vpop.f32.mrf.mxu1 }
  0xab   : > { %v832_v8 = vadd.f32 %v831_v7, %v743_v6  ;;  %781 = vmatmul.bf16.gmra.mxu0 %v1364_v1  ;;  %1543 = vmatmul.msk.bf16.vlgmr.msra.gmra.mxu3 %vm684_vm0, %v1444_v2  ;;  %v1392_v6 = vor.u32 %v1577_v63, %v1389_v0 }
  0xac   : > { %870 = vmatmul.bf16.gmra.mxu1 %v1368_v5 }
  0xad   : > { %v921_v10 = vadd.f32 %v920_v52, %v832_v8 }
  0xae   : > { %v1864_v12 = vpop.f32.mrf.mxu3 }
  0xaf   : > { %v1004_v15 = vmul.f32 %v1856_v9, %v921_v10 }
  0xb0   : > { %v927_v16 = vpop.f32.mrf.mxu2  ;;  %v744_v17 = vpop.f32.mrf.mxu0 }
  0xb1   : > { %v1040_v18 = vadd.f32 %v1862_v11, %v1004_v15  ;;  %v745_v19 = vadd.f32 %v1848_v62, %v744_v17  ;;  %v833_v20 = vpop.f32.mrf.mxu1 }
  0xb3   : > { %vm1072_vm1 = vcmp.ge.f32.partialorder %v1040_v18, 0.0  ;;  %v1104_v22 = vmul.f32 0.25, %v1040_v18  ;;  %v834_v23 = vadd.f32 %v833_v20, %v745_v19  ;;  %v1585_v19 = vld [vmem:[%s1725_s13 + $0x130] sm:$0xf0] }
  0xb5   : > { %v1136_v28 = vsel %vm1072_vm1, %v1040_v18, %v1104_v22  ;;  %v923_v29 = vadd.f32 %v922_v56, %v834_v23  ;;  %1539 = vmatmul.msk.bf16.gmra.mxu2 %vm684_vm0, %v1396_v21  ;;  %v1419_v18 = vld [vmem:[%s1725_s13 + $0x128] sm:$0xf] }
  0xb6   : > { %1168 = vst.msk [vmem:[%s1875_s24] sm:$0xff] %vm684_vm0, %v1136_v28  ;;  %v1886_v32 = vpop.f32.mrf.mxu3  ;;  %v1420_v26 = vor.u32 %v1585_v19, %v1419_v18 }
  0xb7   : > { %v1005_v33 = vmul.f32 %v1856_v9, %v923_v29  ;;  %v1399_v29 = vld [vmem:[%s1725_s13 + $0x108] sm:$0xf] }
  0xb8   : > { %v930_v36 = vpop.f32.mrf.mxu2  ;;  %v747_v37 = vpop.f32.mrf.mxu0 }
  0xb9   : > { %v1041_v39 = vadd.f32 %v1862_v11, %v1005_v33  ;;  %v748_v40 = vadd.f32 %v1848_v62, %v747_v37  ;;  %v836_v41 = vpop.f32.mrf.mxu1 }
  0xbb   : > { %vm1073_vm2 = vcmp.ge.f32.partialorder %v1041_v39, 0.0  ;;  %v1105_v42 = vmul.f32 0.25, %v1041_v39  ;;  %v837_v43 = vadd.f32 %v836_v41, %v748_v40  ;;  %786 = vmatmul.bf16.gmra.mxu0 %v1376_v34  ;;  %1544 = vmatmul.msk.bf16.gmra.mxu3 %vm684_vm0, %v1456_v35  ;;  %v1580_v34 = vld [vmem:[%s1725_s13 + $0x10c] sm:$0xf]  ;;  %v1401_v35 = vld [vmem:[%s1725_s13 + $0x114] sm:$0xf0] }
  0xbc   : > { %875 = vmatmul.bf16.gmra.mxu1 %v1380_v38  ;;  %v1400_v38 = vor.u32 %v1581_v30, %v1399_v29  ;;  %v1404_v41 = vor.u32 %v1580_v34, %v1401_v35 }
  0xbd   : > { %v1137_v44 = vsel %vm1073_vm2, %v1041_v39, %v1105_v42  ;;  %v926_v45 = vadd.f32 %v925_v3, %v837_v43  ;;  %v1388_v3 = vor.u32 %v1578_v59, %v1387_v58 }
  0xbe   : > { %1169 = vst.msk [vmem:[%s1875_s24 + $0x8] sm:$0xff] %vm684_vm0, %v1137_v44  ;;  %v1894_v46 = vpop.f32.mrf.mxu3 }
  0xbf   : > { %v1006_v49 = vmul.f32 %v1856_v9, %v926_v45 }
  0xc0   : > { %v932_v50 = vpop.f32.mrf.mxu2  ;;  %v749_v51 = vpop.f32.mrf.mxu0 }
  0xc1   : > { %v1042_v52 = vadd.f32 %v1862_v11, %v1006_v49  ;;  %v750_v53 = vadd.f32 %v1848_v62, %v749_v51  ;;  %v838_v54 = vpop.f32.mrf.mxu1  ;;  %v1431_v51 = vld [vmem:[%s1725_s13 + $0x140] sm:$0xf] }
  0xc3   : > { %vm1074_vm3 = vcmp.ge.f32.partialorder %v1042_v52, 0.0  ;;  %v1106_v56 = vmul.f32 0.25, %v1042_v52  ;;  %v839_v57 = vadd.f32 %v838_v54, %v750_v53 }
  0xc5   : > { %v1138_v60 = vsel %vm1074_vm3, %v1042_v52, %v1106_v56  ;;  %v928_v61 = vadd.f32 %v927_v16, %v839_v57  ;;  %1540 = vmatmul.msk.bf16.gmra.mxu2 %vm684_vm0, %v1408_v55  ;;  %v1588_v52 = vld [vmem:[%s1725_s13 + $0x148] sm:$0xf0] }
  0xc6   : > { %1170 = vst.msk [vmem:[%s1875_s24 + $0x10] sm:$0xff] %vm684_vm0, %v1138_v60  ;;  %v1908_v1 = vpop.f32.mrf.mxu3  ;;  %v1432_v59 = vor.u32 %v1588_v52, %v1431_v51 }
  0xc7   : > { %v1007_v2 = vmul.f32 %v1856_v9, %v928_v61 }
  0xc8   : > { %v935_v4 = vpop.f32.mrf.mxu2  ;;  %v752_v5 = vpop.f32.mrf.mxu0 }
  0xc9   : > { %v1043_v7 = vadd.f32 %v1862_v11, %v1007_v2  ;;  %v753_v8 = vadd.f32 %v1848_v62, %v752_v5  ;;  %v841_v10 = vpop.f32.mrf.mxu1 }
  0xcb   : > { %vm1075_vm4 = vcmp.ge.f32.partialorder %v1043_v7, 0.0  ;;  %v1107_v13 = vmul.f32 0.25, %v1043_v7  ;;  %v842_v14 = vadd.f32 %v841_v10, %v753_v8  ;;  %791 = vmatmul.bf16.gmra.mxu0 %v1388_v3 }
  0xcc   : > { %880 = vmatmul.bf16.gmra.mxu1 %v1392_v6 }
  0xcd   : > { %v1139_v15 = vsel %vm1075_vm4, %v1043_v7, %v1107_v13  ;;  %v931_v16 = vadd.f32 %v930_v36, %v842_v14  ;;  %v803_v14 = vadd.f32 %v1848_v62, %v1864_v12 }
  0xce   : > { %1171 = vst.msk [vmem:[%s1875_s24 + $0x18] sm:$0xff] %vm684_vm0, %v1139_v15  ;;  %v1915_v17 = vpop.f32.mrf.mxu3 }
  0xcf   : > { %v1008_v20 = vmul.f32 %v1856_v9, %v931_v16 }
  0xd0   : > { %v937_v21 = vpop.f32.mrf.mxu2  ;;  %v754_v22 = vpop.f32.mrf.mxu0 }
  0xd1   : > { %v1044_v23 = vadd.f32 %v1862_v11, %v1008_v20  ;;  %v755_v24 = vadd.f32 %v1848_v62, %v754_v22  ;;  %v843_v25 = vpop.f32.mrf.mxu1 }
  0xd3   : > { %vm1076_vm5 = vcmp.ge.f32.partialorder %v1044_v23, 0.0  ;;  %v1108_v27 = vmul.f32 0.25, %v1044_v23  ;;  %v844_v28 = vadd.f32 %v843_v25, %v755_v24 }
  0xd5   : > { %v1140_v31 = vsel %vm1076_vm5, %v1044_v23, %v1108_v27  ;;  %v933_v33 = vadd.f32 %v932_v50, %v844_v28  ;;  %1541 = vmatmul.msk.bf16.gmra.mxu2 %vm684_vm0, %v1420_v26  ;;  %v805_v27 = vadd.f32 %v1848_v62, %v1886_v32 }
  0xd6   : > { %1172 = vst.msk [vmem:[%s1875_s24 + $0x20] sm:$0xff] %vm684_vm0, %v1140_v31  ;;  %v1929_v36 = vpop.f32.mrf.mxu3 }
  0xd7   : > { %v1009_v37 = vmul.f32 %v1856_v9, %v933_v33 }
  0xd8   : > { %v940_v39 = vpop.f32.mrf.mxu2  ;;  %v757_v40 = vpop.f32.mrf.mxu0 }
  0xd9   : > { %v1045_v42 = vadd.f32 %v1862_v11, %v1009_v37  ;;  %v758_v43 = vadd.f32 %v1848_v62, %v757_v40  ;;  %v846_v44 = vpop.f32.mrf.mxu1 }
  0xdb   : > { %vm1077_vm6 = vcmp.ge.f32.partialorder %v1045_v42, 0.0  ;;  %v1109_v45 = vmul.f32 0.25, %v1045_v42  ;;  %v847_v47 = vadd.f32 %v846_v44, %v758_v43  ;;  %796 = vmatmul.bf16.gmra.mxu0 %v1400_v38 }
  0xdc   : > { %885 = vmatmul.bf16.gmra.mxu1 %v1404_v41  ;;  %v808_v41 = vadd.f32 %v1848_v62, %v1894_v46 }
  0xdd   : > { %v1141_v48 = vsel %vm1077_vm6, %v1045_v42, %v1109_v45  ;;  %v936_v49 = vadd.f32 %v935_v4, %v847_v47 }
  0xde   : > { %1173 = vst.msk [vmem:[%s1875_s24 + $0x28] sm:$0xff] %vm684_vm0, %v1141_v48  ;;  %v1936_v50 = vpop.f32.mrf.mxu3 }
  0xdf   : > { %v1010_v53 = vmul.f32 %v1856_v9, %v936_v49 }
  0xe0   : > { %v942_v54 = vpop.f32.mrf.mxu2  ;;  %v759_v55 = vpop.f32.mrf.mxu0 }
  0xe1   : > { %v1046_v56 = vadd.f32 %v1862_v11, %v1010_v53  ;;  %v760_v57 = vadd.f32 %v1848_v62, %v759_v55  ;;  %v848_v58 = vpop.f32.mrf.mxu1  ;;  %v810_v55 = vadd.f32 %v1848_v62, %v1908_v1 }
  0xe3   : > { %vm1078_vm7 = vcmp.ge.f32.partialorder %v1046_v56, 0.0  ;;  %v1110_v60 = vmul.f32 0.25, %v1046_v56  ;;  %v849_v61 = vadd.f32 %v848_v58, %v760_v57 }
  0xe5   : > { %v1142_v63 = vsel %vm1078_vm7, %v1046_v56, %v1110_v60  ;;  %v938_v0 = vadd.f32 %v937_v21, %v849_v61  ;;  %1542 = vmatmul.msk.bf16.gmra.mxu2 %vm684_vm0, %v1432_v59 }
  0xe6   : > { %1174 = vst.msk [vmem:[%s1875_s24 + $0x30] sm:$0xff] %vm684_vm0, %v1142_v63  ;;  %v1946_v2 = vpop.f32.mrf.mxu3 }
  0xe7   : > { %v1011_v3 = vmul.f32 %v1856_v9, %v938_v0 }
  0xe8   : > { %v945_v4 = vpop.f32.mrf.mxu2  ;;  %v762_v5 = vpop.f32.mrf.mxu0 }
  0xe9   : > { %v1047_v6 = vadd.f32 %v1862_v11, %v1011_v3  ;;  %v763_v7 = vadd.f32 %v1848_v62, %v762_v5  ;;  %v851_v8 = vpop.f32.mrf.mxu1 }
  0xeb   : > { %vm1079_vm8 = vcmp.ge.f32.partialorder %v1047_v6, 0.0  ;;  %v1111_v10 = vmul.f32 0.25, %v1047_v6  ;;  %v852_v13 = vadd.f32 %v851_v8, %v763_v7 }
  0xed   : > { %v1143_v15 = vsel %vm1079_vm8, %v1047_v6, %v1111_v10  ;;  %v941_v16 = vadd.f32 %v940_v39, %v852_v13 }
  0xee   : > { %1175 = vst.msk [vmem:[%s1875_s24 + $0x38] sm:$0xff] %vm684_vm0, %v1143_v15  ;;  %v891_v18 = vpop.f32.mrf.mxu3 }
  0xef   : > { %v1012_v19 = vmul.f32 %v1856_v9, %v941_v16  ;;  %v1956_v20 = vadd.f32 %v891_v18, %v803_v14 }
  0xf0   : > { %v947_v21 = vpop.f32.mrf.mxu2  ;;  %v764_v22 = vpop.f32.mrf.mxu0 }
  0xf1   : > { %v1048_v23 = vadd.f32 %v1862_v11, %v1012_v19  ;;  %v765_v24 = vadd.f32 %v1848_v62, %v764_v22  ;;  %v853_v25 = vpop.f32.mrf.mxu1 }
  0xf3   : > { %vm1080_vm9 = vcmp.ge.f32.partialorder %v1048_v23, 0.0  ;;  %v1112_v26 = vmul.f32 0.25, %v1048_v23  ;;  %v854_v12 = vadd.f32 %v853_v25, %v765_v24 }
  0xf5   : > { %v1144_v28 = vsel %vm1080_vm9, %v1048_v23, %v1112_v26  ;;  %v943_v29 = vadd.f32 %v942_v54, %v854_v12 }
  0xf6   : > { %1176 = vst.msk [vmem:[%s1875_s24 + $0x40] sm:$0xff] %vm684_vm0, %v1144_v28  ;;  %v893_v30 = vpop.f32.mrf.mxu3 }
  0xf7   : > { %v1013_v31 = vmul.f32 %v1856_v9, %v943_v29  ;;  %v1965_v33 = vadd.f32 %v893_v30, %v805_v27 }
  0xf8   : > { %v950_v34 = vpop.f32.mrf.mxu2  ;;  %v767_v35 = vpop.f32.mrf.mxu0 }
  0xf9   : > { %v1049_v37 = vadd.f32 %v1862_v11, %v1013_v31  ;;  %v768_v38 = vadd.f32 %v1848_v62, %v767_v35  ;;  %v856_v39 = vpop.f32.mrf.mxu1 }
  0xfb   : > { %vm1081_vm10 = vcmp.ge.f32.partialorder %v1049_v37, 0.0  ;;  %v1113_v40 = vmul.f32 0.25, %v1049_v37  ;;  %v857_v32 = vadd.f32 %v856_v39, %v768_v38 }
  0xfd   : > { %v1145_v42 = vsel %vm1081_vm10, %v1049_v37, %v1113_v40  ;;  %v946_v43 = vadd.f32 %v945_v4, %v857_v32 }
  0xfe   : > { %1177 = vst.msk [vmem:[%s1875_s24 + $0x48] sm:$0xff] %vm684_vm0, %v1145_v42  ;;  %v896_v44 = vpop.f32.mrf.mxu3 }
  0xff   : > { %v1014_v45 = vmul.f32 %v1856_v9, %v946_v43  ;;  %v1974_v47 = vadd.f32 %v896_v44, %v808_v41 }
 0x100   : > { %v952_v48 = vpop.f32.mrf.mxu2  ;;  %v769_v49 = vpop.f32.mrf.mxu0 }
 0x101   : > { %v1050_v51 = vadd.f32 %v1862_v11, %v1014_v45  ;;  %v770_v52 = vadd.f32 %v1848_v62, %v769_v49  ;;  %v858_v53 = vpop.f32.mrf.mxu1 }
 0x103   : > { %vm1082_vm11 = vcmp.ge.f32.partialorder %v1050_v51, 0.0  ;;  %v1114_v54 = vmul.f32 0.25, %v1050_v51  ;;  %v859_v46 = vadd.f32 %v858_v53, %v770_v52 }
 0x105   : > { %v1146_v56 = vsel %vm1082_vm11, %v1050_v51, %v1114_v54  ;;  %v948_v57 = vadd.f32 %v947_v21, %v859_v46 }
 0x106   : > { %1178 = vst.msk [vmem:[%s1875_s24 + $0x50] sm:$0xff] %vm684_vm0, %v1146_v56  ;;  %v898_v58 = vpop.f32.mrf.mxu3  ;;  %v813_v56 = vadd.f32 %v1848_v62, %v1915_v17 }
 0x107   : > { %v1015_v59 = vmul.f32 %v1856_v9, %v948_v57  ;;  %v1983_v60 = vadd.f32 %v898_v58, %v810_v55 }
 0x108   : > { %v955_v61 = vpop.f32.mrf.mxu2  ;;  %v772_v63 = vpop.f32.mrf.mxu0 }
 0x109   : > { %v1051_v0 = vadd.f32 %v1862_v11, %v1015_v59  ;;  %v773_v3 = vadd.f32 %v1848_v62, %v772_v63  ;;  %v861_v4 = vpop.f32.mrf.mxu1 }
 0x10b   : > { %vm1083_vm12 = vcmp.ge.f32.partialorder %v1051_v0, 0.0  ;;  %v1115_v5 = vmul.f32 0.25, %v1051_v0  ;;  %v862_v1 = vadd.f32 %v861_v4, %v773_v3 }
 0x10d   : > { %v1147_v6 = vsel %vm1083_vm12, %v1051_v0, %v1115_v5  ;;  %v951_v7 = vadd.f32 %v950_v34, %v862_v1 }
 0x10e   : > { %1179 = vst.msk [vmem:[%s1875_s24 + $0x58] sm:$0xff] %vm684_vm0, %v1147_v6  ;;  %v901_v8 = vpop.f32.mrf.mxu3 }
 0x10f   : > { %v1016_v10 = vmul.f32 %v1856_v9, %v951_v7  ;;  %v902_v59 = vadd.f32 %v901_v8, %v813_v56  ;;  %v815_v8 = vadd.f32 %v1848_v62, %v1929_v36 }
 0x110   : > { %v957_v13 = vpop.f32.mrf.mxu2  ;;  %v774_v14 = vpop.f32.mrf.mxu0 }
 0x111   : > { %v1052_v15 = vadd.f32 %v1862_v11, %v1016_v10  ;;  %v775_v16 = vadd.f32 %v1848_v62, %v774_v14  ;;  %v863_v18 = vpop.f32.mrf.mxu1 }
 0x113   : > { %vm1084_vm13 = vcmp.ge.f32.partialorder %v1052_v15, 0.0  ;;  %v1116_v19 = vmul.f32 0.25, %v1052_v15  ;;  %v864_v21 = vadd.f32 %v863_v18, %v775_v16 }
 0x115   : > { %v1148_v22 = vsel %vm1084_vm13, %v1052_v15, %v1116_v19  ;;  %v953_v23 = vadd.f32 %v952_v48, %v864_v21 }
 0x116   : > { %1180 = vst.msk [vmem:[%s1875_s24 + $0x60] sm:$0xff] %vm684_vm0, %v1148_v22  ;;  %v903_v24 = vpop.f32.mrf.mxu3 }
 0x117   : > { %v1017_v25 = vmul.f32 %v1856_v9, %v953_v23  ;;  %v904_v16 = vadd.f32 %v903_v24, %v815_v8 }
 0x118   : > { %v960_v26 = vpop.f32.mrf.mxu2  ;;  %v777_v12 = vpop.f32.mrf.mxu0 }
 0x119   : > { %v1053_v27 = vadd.f32 %v1862_v11, %v1017_v25  ;;  %v778_v28 = vadd.f32 %v1848_v62, %v777_v12  ;;  %v866_v29 = vpop.f32.mrf.mxu1 }
 0x11b   : > { %vm1085_vm14 = vcmp.ge.f32.partialorder %v1053_v27, 0.0  ;;  %v1117_v30 = vmul.f32 0.25, %v1053_v27  ;;  %v867_v31 = vadd.f32 %v866_v29, %v778_v28 }
 0x11d   : > { %v1149_v34 = vsel %vm1085_vm14, %v1053_v27, %v1117_v30  ;;  %v956_v35 = vadd.f32 %v955_v61, %v867_v31  ;;  %v818_v30 = vadd.f32 %v1848_v62, %v1936_v50 }
 0x11e   : > { %1181 = vst.msk [vmem:[%s1875_s24 + $0x68] sm:$0xff] %vm684_vm0, %v1149_v34  ;;  %v1999_v37 = vpop.f32.mrf.mxu3 }
 0x11f   : > { %v1018_v38 = vmul.f32 %v1856_v9, %v956_v35 }
 0x120   : > { %v962_v39 = vpop.f32.mrf.mxu2  ;;  %v779_v40 = vpop.f32.mrf.mxu0 }
 0x121   : > { %v1054_v32 = vadd.f32 %v1862_v11, %v1018_v38  ;;  %v780_v41 = vadd.f32 %v1848_v62, %v779_v40  ;;  %v868_v42 = vpop.f32.mrf.mxu1  ;;  %v907_v38 = vadd.f32 %v1999_v37, %v818_v30 }
 0x123   : > { %vm1086_vm15 = vcmp.ge.f32.partialorder %v1054_v32, 0.0  ;;  %v1118_v43 = vmul.f32 0.25, %v1054_v32  ;;  %v869_v44 = vadd.f32 %v868_v42, %v780_v41 }
 0x125   : > { %v1150_v45 = vsel %vm1086_vm15, %v1054_v32, %v1118_v43  ;;  %v958_v48 = vadd.f32 %v957_v13, %v869_v44 }
 0x126   : > { %1182 = vst.msk [vmem:[%s1875_s24 + $0x70] sm:$0xff] %vm684_vm0, %v1150_v45  ;;  %v2006_v49 = vpop.f32.mrf.mxu3 }
 0x127   : > { %v1019_v51 = vmul.f32 %v1856_v9, %v958_v48 }
 0x128   : > { %v965_v52 = vpop.f32.mrf.mxu2  ;;  %v782_v53 = vpop.f32.mrf.mxu0 }
 0x129   : > { %v1055_v54 = vadd.f32 %v1862_v11, %v1019_v51  ;;  %v783_v46 = vadd.f32 %v1848_v62, %v782_v53  ;;  %v871_v55 = vpop.f32.mrf.mxu1 }
 0x12b   : > { %vm1087_vm1 = vcmp.ge.f32.partialorder %v1055_v54, 0.0  ;;  %v1119_v57 = vmul.f32 0.25, %v1055_v54  ;;  %v872_v58 = vadd.f32 %v871_v55, %v783_v46 }
 0x12d   : > { %v1151_v61 = vsel %vm1087_vm1, %v1055_v54, %v1119_v57  ;;  %v961_v63 = vadd.f32 %v960_v26, %v872_v58 }
 0x12e   : > { %1183 = vst.msk [vmem:[%s1875_s24 + $0x78] sm:$0xff] %vm684_vm0, %v1151_v61  ;;  %v990_v0 = vpop.f32.mrf.mxu3 }
 0x12f   : > { %v1020_v3 = vmul.f32 %v1856_v9, %v961_v63  ;;  %v991_v4 = vadd.f32 %v990_v0, %v902_v59 }
 0x130   : > { %v967_v5 = vpop.f32.mrf.mxu2  ;;  %v784_v1 = vpop.f32.mrf.mxu0 }
 0x131   : > { %v1056_v6 = vadd.f32 %v1862_v11, %v1020_v3  ;;  %v1032_v7 = vmul.f32 %v1856_v9, %v991_v4  ;;  %v785_v17 = vadd.f32 %v1848_v62, %v784_v1  ;;  %v873_v10 = vpop.f32.mrf.mxu1 }
 0x133   : > { %vm1088_vm2 = vcmp.ge.f32.partialorder %v1056_v6, 0.0  ;;  %v1120_v13 = vmul.f32 0.25, %v1056_v6  ;;  %v1068_v14 = vadd.f32 %v1862_v11, %v1032_v7  ;;  %v874_v15 = vadd.f32 %v873_v10, %v785_v17 }
 0x135   : > { %v1152_v18 = vsel %vm1088_vm2, %v1056_v6, %v1120_v13  ;;  %vm1100_vm3 = vcmp.ge.f32.partialorder %v1068_v14, 0.0  ;;  %v1132_v19 = vmul.f32 0.25, %v1068_v14  ;;  %v963_v21 = vadd.f32 %v962_v39, %v874_v15 }
 0x136   : > { %1184 = vst.msk [vmem:[%s1875_s24 + $0x80] sm:$0xff] %vm684_vm0, %v1152_v18  ;;  %v992_v22 = vpop.f32.mrf.mxu3 }
 0x137   : > { %v1164_v23 = vsel %vm1100_vm3, %v1068_v14, %v1132_v19  ;;  %v1021_v25 = vmul.f32 %v1856_v9, %v963_v21  ;;  %v993_v26 = vadd.f32 %v992_v22, %v904_v16 }
 0x138   : > { %1196 = vst.msk [vmem:[%s1875_s24 + $0xe0] sm:$0xff] %vm684_vm0, %v1164_v23  ;;  %v970_v36 = vpop.f32.mrf.mxu2  ;;  %v787_v12 = vpop.f32.mrf.mxu0 }
 0x139   : > { %v1057_v27 = vadd.f32 %v1862_v11, %v1021_v25  ;;  %v1033_v24 = vmul.f32 %v1856_v9, %v993_v26  ;;  %v788_v28 = vadd.f32 %v1848_v62, %v787_v12  ;;  %v876_v29 = vpop.f32.mrf.mxu1 }
 0x13b   : > { %vm1089_vm4 = vcmp.ge.f32.partialorder %v1057_v27, 0.0  ;;  %v1121_v31 = vmul.f32 0.25, %v1057_v27  ;;  %v1069_v34 = vadd.f32 %v1862_v11, %v1033_v24  ;;  %v877_v35 = vadd.f32 %v876_v29, %v788_v28 }
 0x13d   : > { %v1153_v39 = vsel %vm1089_vm4, %v1057_v27, %v1121_v31  ;;  %vm1101_vm5 = vcmp.ge.f32.partialorder %v1069_v34, 0.0  ;;  %v1133_v40 = vmul.f32 0.25, %v1069_v34  ;;  %v966_v32 = vadd.f32 %v965_v52, %v877_v35 }
 0x13e   : > { %1185 = vst.msk [vmem:[%s1875_s24 + $0x88] sm:$0xff] %vm684_vm0, %v1153_v39  ;;  %v995_v41 = vpop.f32.mrf.mxu3  ;;  %v820_v52 = vadd.f32 %v1848_v62, %v1946_v2 }
 0x13f   : > { %v1165_v42 = vsel %vm1101_vm5, %v1069_v34, %v1133_v40  ;;  %v1022_v43 = vmul.f32 %v1856_v9, %v966_v32  ;;  %v996_v44 = vadd.f32 %v995_v41, %v907_v38 }
 0x140   : > { %1197 = vst.msk [vmem:[%s1875_s24 + $0xe8] sm:$0xff] %vm684_vm0, %v1165_v42  ;;  %v972_v50 = vpop.f32.mrf.mxu2  ;;  %v789_v45 = vpop.f32.mrf.mxu0  ;;  %v909_v56 = vadd.f32 %v2006_v49, %v820_v52 }
 0x141   : > { %v1058_v48 = vadd.f32 %v1862_v11, %v1022_v43  ;;  %v1034_v37 = vmul.f32 %v1856_v9, %v996_v44  ;;  %v790_v51 = vadd.f32 %v1848_v62, %v789_v45  ;;  %v878_v53 = vpop.f32.mrf.mxu1 }
 0x143   : > { %vm1090_vm6 = vcmp.ge.f32.partialorder %v1058_v48, 0.0  ;;  %v1122_v54 = vmul.f32 0.25, %v1058_v48  ;;  %v1070_v46 = vadd.f32 %v1862_v11, %v1034_v37  ;;  %v879_v55 = vadd.f32 %v878_v53, %v790_v51 }
 0x145   : > { %v1154_v57 = vsel %vm1090_vm6, %v1058_v48, %v1122_v54  ;;  %vm1102_vm7 = vcmp.ge.f32.partialorder %v1070_v46, 0.0  ;;  %v1134_v58 = vmul.f32 0.25, %v1070_v46  ;;  %v968_v59 = vadd.f32 %v967_v5, %v879_v55 }
 0x146   : > { %1186 = vst.msk [vmem:[%s1875_s24 + $0x90] sm:$0xff] %vm684_vm0, %v1154_v57  ;;  %v997_v61 = vpop.f32.mrf.mxu3 }
 0x147   : > { %v1166_v63 = vsel %vm1102_vm7, %v1070_v46, %v1134_v58  ;;  %v1023_v0 = vmul.f32 %v1856_v9, %v968_v59  ;;  %v998_v3 = vadd.f32 %v997_v61, %v909_v56 }
 0x148   : > { %1198 = vst.msk [vmem:[%s1875_s24 + $0xf0] sm:$0xff] %vm684_vm0, %v1166_v63  ;;  %v975_v2 = vpop.f32.mrf.mxu2  ;;  %v792_v4 = vpop.f32.mrf.mxu0 }
 0x149   : > { %v1059_v1 = vadd.f32 %v1862_v11, %v1023_v0  ;;  %v1035_v49 = vmul.f32 %v1856_v9, %v998_v3  ;;  %v793_v6 = vadd.f32 %v1848_v62, %v792_v4  ;;  %v881_v5 = vpop.f32.mrf.mxu1 }
 0x14b   : > { %vm1091_vm8 = vcmp.ge.f32.partialorder %v1059_v1, 0.0  ;;  %v1123_v7 = vmul.f32 0.25, %v1059_v1  ;;  %v1071_v17 = vadd.f32 %v1862_v11, %v1035_v49  ;;  %v882_v10 = vadd.f32 %v881_v5, %v793_v6 }
 0x14d   : > { %v1155_v8 = vsel %vm1091_vm8, %v1059_v1, %v1123_v7  ;;  %vm1103_vm9 = vcmp.ge.f32.partialorder %v1071_v17, 0.0  ;;  %v1135_v13 = vmul.f32 0.25, %v1071_v17  ;;  %v971_v14 = vadd.f32 %v970_v36, %v882_v10 }
 0x14e   : > { %1187 = vst.msk [vmem:[%s1875_s24 + $0x98] sm:$0xff] %vm684_vm0, %v1155_v8 }
 0x14f   : > { %v1167_v15 = vsel %vm1103_vm9, %v1071_v17, %v1135_v13  ;;  %v1024_v16 = vmul.f32 %v1856_v9, %v971_v14 }
 0x150   : > { %1199 = vst.msk [vmem:[%s1875_s24 + $0xf8] sm:$0xff] %vm684_vm0, %v1167_v15  ;;  %v977_v18 = vpop.f32.mrf.mxu2  ;;  %v794_v19 = vpop.f32.mrf.mxu0 }
 0x151   : > { %v1060_v21 = vadd.f32 %v1862_v11, %v1024_v16  ;;  %v795_v22 = vadd.f32 %v1848_v62, %v794_v19  ;;  %v883_v23 = vpop.f32.mrf.mxu1 }
 0x153   : > { %vm1092_vm10 = vcmp.ge.f32.partialorder %v1060_v21, 0.0  ;;  %v1124_v25 = vmul.f32 0.25, %v1060_v21  ;;  %v884_v26 = vadd.f32 %v883_v23, %v795_v22 }
 0x155   : > { %v1156_v12 = vsel %vm1092_vm10, %v1060_v21, %v1124_v25  ;;  %v973_v27 = vadd.f32 %v972_v50, %v884_v26 }
 0x156   : > { %1188 = vst.msk [vmem:[%s1875_s24 + $0xa0] sm:$0xff] %vm684_vm0, %v1156_v12 }
 0x157   : > { %v1025_v36 = vmul.f32 %v1856_v9, %v973_v27 }
 0x158   : > { %v980_v24 = vpop.f32.mrf.mxu2  ;;  %v797_v28 = vpop.f32.mrf.mxu0 }
 0x159   : > { %v1061_v29 = vadd.f32 %v1862_v11, %v1025_v36  ;;  %v981_v30 = vadd.f32 %v980_v24, %v1956_v20  ;;  %v798_v31 = vadd.f32 %v1848_v62, %v797_v28  ;;  %v886_v34 = vpop.f32.mrf.mxu1 }
 0x15b   : > { %vm1093_vm11 = vcmp.ge.f32.partialorder %v1061_v29, 0.0  ;;  %v1125_v35 = vmul.f32 0.25, %v1061_v29  ;;  %v1028_v38 = vmul.f32 %v1856_v9, %v981_v30  ;;  %v887_v39 = vadd.f32 %v886_v34, %v798_v31 }
 0x15d   : > { %v1157_v40 = vsel %vm1093_vm11, %v1061_v29, %v1125_v35  ;;  %v1064_v32 = vadd.f32 %v1862_v11, %v1028_v38  ;;  %v976_v41 = vadd.f32 %v975_v2, %v887_v39 }
 0x15e   : > { %1189 = vst.msk [vmem:[%s1875_s24 + $0xa8] sm:$0xff] %vm684_vm0, %v1157_v40 }
 0x15f   : > { %vm1096_vm12 = vcmp.ge.f32.partialorder %v1064_v32, 0.0  ;;  %v1128_v42 = vmul.f32 0.25, %v1064_v32  ;;  %v1026_v43 = vmul.f32 %v1856_v9, %v976_v41 }
 0x160   : > { %v982_v20 = vpop.f32.mrf.mxu2  ;;  %v799_v44 = vpop.f32.mrf.mxu0 }
 0x161   : > { %v1160_v50 = vsel %vm1096_vm12, %v1064_v32, %v1128_v42  ;;  %v1062_v45 = vadd.f32 %v1862_v11, %v1026_v43  ;;  %v983_v48 = vadd.f32 %v982_v20, %v1965_v33  ;;  %v800_v37 = vadd.f32 %v1848_v62, %v799_v44  ;;  %v888_v51 = vpop.f32.mrf.mxu1 }
 0x162   : > { %1192 = vst.msk [vmem:[%s1875_s24 + $0xc0] sm:$0xff] %vm684_vm0, %v1160_v50 }
 0x163   : > { %vm1094_vm13 = vcmp.ge.f32.partialorder %v1062_v45, 0.0  ;;  %v1126_v53 = vmul.f32 0.25, %v1062_v45  ;;  %v1029_v52 = vmul.f32 %v1856_v9, %v983_v48  ;;  %v889_v54 = vadd.f32 %v888_v51, %v800_v37 }
 0x165   : > { %v1158_v46 = vsel %vm1094_vm13, %v1062_v45, %v1126_v53  ;;  %v1065_v55 = vadd.f32 %v1862_v11, %v1029_v52  ;;  %v978_v56 = vadd.f32 %v977_v18, %v889_v54 }
 0x166   : > { %1190 = vst.msk [vmem:[%s1875_s24 + $0xb0] sm:$0xff] %vm684_vm0, %v1158_v46 }
 0x167   : > { %vm1097_vm14 = vcmp.ge.f32.partialorder %v1065_v55, 0.0  ;;  %v1129_v33 = vmul.f32 0.25, %v1065_v55  ;;  %v1027_v62 = vmul.f32 %v1856_v9, %v978_v56 }
 0x168   : > { %v985_v57 = vpop.f32.mrf.mxu2 }
 0x169   : > { %v1161_v58 = vsel %vm1097_vm14, %v1065_v55, %v1129_v33  ;;  %v1063_v59 = vadd.f32 %v1862_v11, %v1027_v62  ;;  %v986_v61 = vadd.f32 %v985_v57, %v1974_v47 }
 0x16a   : > { %1193 = vst.msk [vmem:[%s1875_s24 + $0xc8] sm:$0xff] %vm684_vm0, %v1161_v58 }
 0x16b   : > { %vm1095_vm15 = vcmp.ge.f32.partialorder %v1063_v59, 0.0  ;;  %v1127_v63 = vmul.f32 0.25, %v1063_v59  ;;  %v1030_v0 = vmul.f32 %v1856_v9, %v986_v61 }
 0x16d   : > { %v1159_v3 = vsel %vm1095_vm15, %v1063_v59, %v1127_v63  ;;  %v1066_v2 = vadd.f32 %v1862_v11, %v1030_v0 }
 0x16e   : > { %1191 = vst.msk [vmem:[%s1875_s24 + $0xb8] sm:$0xff] %vm684_vm0, %v1159_v3 }
 0x16f   : > { %vm1098_vm1 = vcmp.ge.f32.partialorder %v1066_v2, 0.0  ;;  %v1130_v4 = vmul.f32 0.25, %v1066_v2 }
 0x170   : > { %v987_v1 = vpop.f32.mrf.mxu2 }
 0x171   : > { %v1162_v49 = vsel %vm1098_vm1, %v1066_v2, %v1130_v4  ;;  %v988_v6 = vadd.f32 %v987_v1, %v1983_v60 }
 0x172   : > { %1194 = vst.msk [vmem:[%s1875_s24 + $0xd0] sm:$0xff] %vm684_vm0, %v1162_v49 }
 0x173   : > { %v1031_v47 = vmul.f32 %v1856_v9, %v988_v6 }
 0x175   : > { %v1067_v5 = vadd.f32 %v1862_v11, %v1031_v47 }
 0x177   : > { %vm1099_vm2 = vcmp.ge.f32.partialorder %v1067_v5, 0.0  ;;  %v1131_v7 = vmul.f32 0.25, %v1067_v5 }
 0x179   : > { %v1163_v17 = vsel %vm1099_vm2, %v1067_v5, %v1131_v7 }
 0x17a   : > { %1195 = vst.msk [vmem:[%s1875_s24 + $0xd8] sm:$0xff] %vm684_vm0, %v1163_v17 }
 0x17b PF: > { %s15_s18 = sadd.s32 1, %s1649_s18  }
 0x17c   : > { %p12_p4 = scmp.ge.s32.totalorder %s15_s18, 4  }
 0x17e   :  { %14 = sbr.rel (!%p12_p4) target bundleno = 1 (0x1), region = 70 }

// kernel: generator_forward.11
= control target key start
LH: loop header
LB: loop body
LE: loop exit
PB: predicated region body
PF: predicated region fallthrough
CT: control target
= control target key end

     0   :  { %s1717_s21 = smov 0   ;;  %s2171_s0 = inlined_call_operand.vmem [shape: bf16[512,288], index: 0, kind: input, shape index: {}]   ;;  %s2172_s1 = inlined_call_operand.vmem [shape: bf16[288,32], index: 1, kind: input, shape index: {}]   ;;  %s2173_s2 = inlined_call_operand.vmem [shape: f32[1,32], index: 2, kind: input, shape index: {}]   ;;  %s2174_s3 = inlined_call_operand.vmem [shape: f32[1,32], index: 3, kind: input, shape index: {}]   ;;  %s2175_s4 = inlined_call_operand.vmem [shape: f32[1,32], index: 4, kind: input, shape index: {}]   ;;  %s2176_s5 = inlined_call_operand.vmem [shape: f32[512,32], index: 5, kind: input, shape index: {}]   ;;  %s2177_s6 = inlined_call_operand.vmem [shape: f32[512,32], index: 6, kind: output, shape index: {}]  }
   0x1 LB: > { %s1285_s22 = sadd.s32 4294967295, %s1680_s21   ;;  %p1289_p0 = scmp.ge.s32.totalorder %s1680_s21, 1  ;;  %s1680_s21 = sphi %s1717_s21, %s16_s21  }
   0x2   : > { %p225_p1 = scmp.lt.s32.totalorder %s1680_s21, 3 }
   0x4   : > { %p226_p2 = pnand %p1289_p0, %p225_p1 }
   0x5   : > { %s1290_s29 = sshll.u32 (!%p226_p2), %s1285_s22, 5 }
   0x6   : > { %229 = sbr.rel (%p226_p2) target bundleno = 378 (0x17a), region = 44  ;;  %p262_p3 = scmp.lt.s32.totalorder (!%p226_p2), %s1290_s29, 63 }
   0xb   : > { %v1633_v0 = vld [vmem:[%s2172_s1 + $0x38] sm:$0xff]  ;;  %v1731_v1 = vld [vmem:[%s2172_s1 + $0x88] sm:$0xff]  ;;  %v1632_v3 = vld [vmem:[%s2172_s1 + $0x30] sm:$0xff]  ;;  %s2179_s29 = smov (!%p262_p3, %s1290_s29), 63  ;;  %vm733_vm0 = vcmask 261120  }
   0xc   : > { %v1736_v2 = vld [vmem:[%s2172_s1 + $0x78] sm:$0xff]  ;;  %782 = vmatpush.bf16.msra.mxu0 %v1633_v0  ;;  %1644 = vmatpush.bf16.msra.mxu3 %v1633_v0  ;;  %v1746_v4 = vld [vmem:[%s2172_s1 + $0x80] sm:$0xff]  ;;  %v1640_v5 = vld [vmem:[%s2172_s1 + $0x70] sm:$0xff]  ;;  %s1662_s14 = smul.u32 12, %s2179_s29  ;;  %s1293_s22 = sshll.u32 %s2179_s29, 3 }
   0xd   : > { %966 = vmatpush.bf16.msra.mxu2 %v1731_v1  ;;  %871 = vmatpush.bf16.msra.mxu1 %v1736_v2  ;;  %v1631_v6 = vld [vmem:[%s2172_s1 + $0x28] sm:$0xff]  ;;  %v1630_v11 = vld [vmem:[%s2172_s1 + $0x20] sm:$0xff]  ;;  %v1629_v13 = vld [vmem:[%s2172_s1 + $0x18] sm:$0xff]  ;;  %s1899_s27 = scalar_lea.vmem %s2176_s5, %s1293_s22  ;;  %s1917_s8 = scalar_lea.vmem %s2177_s6, %s1293_s22 }
   0xe   : > { %s1761_s17 = scalar_lea.vmem %s2171_s0, %s1662_s14  ;;  %v1639_v7 = vld [vmem:[%s2172_s1 + $0x68] sm:$0xff]  ;;  %v1638_v12 = vld [vmem:[%s2172_s1 + $0x60] sm:$0xff]  ;;  %v1637_v14 = vld [vmem:[%s2172_s1 + $0x58] sm:$0xff] }
   0xf   : > { %v1306_v8 = vld [vmem:[%s1761_s17 + $0x8] sm:$0xf]  ;;  %v1580_v9 = vld [vmem:[%s1761_s17 + $0x10] sm:$0xf0]  ;;  %v1318_v17 = vld [vmem:[%s1761_s17 + $0x20] sm:$0xf] }
  0x10   : > { %783 = vmatpush.bf16.msra.mxu0 %v1632_v3  ;;  %1645 = vmatpush.bf16.msra.mxu3 %v1632_v3  ;;  %v1307_v10 = vor.u32 %v1580_v9, %v1306_v8  ;;  %v1628_v15 = vld [vmem:[%s2172_s1 + $0x10] sm:$0xff]  ;;  %v1583_v18 = vld [vmem:[%s1761_s17 + $0x28] sm:$0xf0]  ;;  %v1626_v22 = vld [vmem:[%s2172_s1] sm:$0xff] }
  0x11   : > { %967 = vmatpush.bf16.msra.mxu2 %v1746_v4  ;;  %872 = vmatpush.bf16.msra.mxu1 %v1640_v5  ;;  %v1636_v16 = vld [vmem:[%s2172_s1 + $0x50] sm:$0xff]  ;;  %v1627_v19 = vld [vmem:[%s2172_s1 + $0x8] sm:$0xff]  ;;  %v1319_v20 = vor.u32 %v1583_v18, %v1318_v17  ;;  %v1298_v23 = vld [vmem:[%s1761_s17] sm:$0xf] }
  0x12   : > { %v1635_v21 = vld [vmem:[%s2172_s1 + $0x48] sm:$0xff]  ;;  %v1442_v25 = vld [vmem:[%s1761_s17 + $0x120] sm:$0xf]  ;;  %v1578_v28 = vld [vmem:[%s1761_s17 + $0x4] sm:$0xf] }
  0x13   : > { %v1579_v24 = vld [vmem:[%s1761_s17 + $0x8] sm:$0xf0]  ;;  %v1634_v27 = vld [vmem:[%s2172_s1 + $0x40] sm:$0xff]  ;;  %v1300_v29 = vld [vmem:[%s1761_s17 + $0xc] sm:$0xf0] }
  0x14   : > { %784 = vmatpush.bf16.msra.mxu0 %v1631_v6  ;;  %1646 = vmatpush.bf16.msra.mxu3 %v1631_v6  ;;  %v1615_v26 = vld [vmem:[%s1761_s17 + $0x128] sm:$0xf0]  ;;  %v1299_v30 = vor.u32 %v1579_v24, %v1298_v23  ;;  %v1303_v32 = vor.u32 %v1578_v28, %v1300_v29  ;;  %v1330_v33 = vld [vmem:[%s1761_s17 + $0x38] sm:$0xf]  ;;  %v1586_v34 = vld [vmem:[%s1761_s17 + $0x40] sm:$0xf0] }
  0x15   : > { %1560 = vmatmul.msk.bf16.vlgmr.msra.gmra.mxu2 %vm733_vm0, %v1307_v10  ;;  %873 = vmatpush.bf16.msra.mxu1 %v1639_v7  ;;  %v1443_v31 = vor.u32 %v1615_v26, %v1442_v25  ;;  %v1331_v35 = vor.u32 %v1586_v34, %v1330_v33  ;;  %v1310_v36 = vld [vmem:[%s1761_s17 + $0x18] sm:$0xf]  ;;  %v1582_v37 = vld [vmem:[%s1761_s17 + $0x20] sm:$0xf0]  ;;  %v1581_v40 = vld [vmem:[%s1761_s17 + $0x1c] sm:$0xf] }
  0x16   : > { %v1454_v38 = vld [vmem:[%s1761_s17 + $0x138] sm:$0xf]  ;;  %v1618_v39 = vld [vmem:[%s1761_s17 + $0x140] sm:$0xf0]  ;;  %v1312_v41 = vld [vmem:[%s1761_s17 + $0x24] sm:$0xf0]  ;;  %v1311_v42 = vor.u32 %v1582_v37, %v1310_v36 }
  0x17   : > { %v1455_v43 = vor.u32 %v1618_v39, %v1454_v38  ;;  %v1315_v44 = vor.u32 %v1581_v40, %v1312_v41  ;;  %v1342_v45 = vld [vmem:[%s1761_s17 + $0x50] sm:$0xf]  ;;  %v1589_v46 = vld [vmem:[%s1761_s17 + $0x58] sm:$0xf0]  ;;  %v1584_v52 = vld [vmem:[%s1761_s17 + $0x34] sm:$0xf] }
  0x18   : > { %785 = vmatpush.bf16.msra.mxu0 %v1630_v11  ;;  %1647 = vmatpush.bf16.msra.mxu3 %v1630_v11  ;;  %v1343_v47 = vor.u32 %v1589_v46, %v1342_v45  ;;  %v1322_v48 = vld [vmem:[%s1761_s17 + $0x30] sm:$0xf]  ;;  %v1585_v49 = vld [vmem:[%s1761_s17 + $0x38] sm:$0xf0]  ;;  %v1324_v53 = vld [vmem:[%s1761_s17 + $0x3c] sm:$0xf0] }
  0x19   : > { %874 = vmatpush.bf16.msra.mxu1 %v1638_v12  ;;  %v1466_v50 = vld [vmem:[%s1761_s17 + $0x150] sm:$0xf]  ;;  %v1621_v51 = vld [vmem:[%s1761_s17 + $0x158] sm:$0xf0]  ;;  %v1323_v54 = vor.u32 %v1585_v49, %v1322_v48  ;;  %v1327_v56 = vor.u32 %v1584_v52, %v1324_v53  ;;  %v1354_v57 = vld [vmem:[%s1761_s17 + $0x68] sm:$0xf] }
  0x1a   : > { %v1467_v55 = vor.u32 %v1621_v51, %v1466_v50  ;;  %v1592_v58 = vld [vmem:[%s1761_s17 + $0x70] sm:$0xf0]  ;;  %v1334_v60 = vld [vmem:[%s1761_s17 + $0x48] sm:$0xf]  ;;  %v1587_v0 = vld [vmem:[%s1761_s17 + $0x4c] sm:$0xf] }
  0x1b   : > { %v1355_v59 = vor.u32 %v1592_v58, %v1354_v57  ;;  %v1588_v61 = vld [vmem:[%s1761_s17 + $0x50] sm:$0xf0]  ;;  %v1478_v62 = vld [vmem:[%s1761_s17 + $0x168] sm:$0xf]  ;;  %v1595_v6 = vld [vmem:[%s1761_s17 + $0x88] sm:$0xf0] }
  0x1c   : > { %786 = vmatpush.bf16.msra.mxu0 %v1629_v13  ;;  %1648 = vmatpush.bf16.msra.mxu3 %v1629_v13  ;;  %v1624_v63 = vld [vmem:[%s1761_s17 + $0x170] sm:$0xf0]  ;;  %v1346_v8 = vld [vmem:[%s1761_s17 + $0x60] sm:$0xf]  ;;  %v1591_v9 = vld [vmem:[%s1761_s17 + $0x68] sm:$0xf0] }
  0x1d   : > { %875 = vmatpush.bf16.msra.mxu1 %v1637_v14  ;;  %v1479_v3 = vor.u32 %v1624_v63, %v1478_v62  ;;  %v1614_v10 = vld [vmem:[%s1761_s17 + $0x124] sm:$0xf]  ;;  %v1444_v11 = vld [vmem:[%s1761_s17 + $0x12c] sm:$0xf0]  ;;  %v1378_v17 = vld [vmem:[%s1761_s17 + $0x98] sm:$0xf] }
  0x1e   : > { %v1348_v13 = vld [vmem:[%s1761_s17 + $0x6c] sm:$0xf0]  ;;  %v1598_v18 = vld [vmem:[%s1761_s17 + $0xa0] sm:$0xf0]  ;;  %v1456_v23 = vld [vmem:[%s1761_s17 + $0x144] sm:$0xf0] }
  0x1f   : > { %v1593_v24 = vld [vmem:[%s1761_s17 + $0x7c] sm:$0xf]  ;;  %v1360_v25 = vld [vmem:[%s1761_s17 + $0x84] sm:$0xf0]  ;;  %v1390_v29 = vld [vmem:[%s1761_s17 + $0xb0] sm:$0xf] }
  0x20   : > { %787 = vmatpush.bf16.msra.mxu0 %v1628_v15  ;;  %1649 = vmatpush.bf16.msra.mxu3 %v1628_v15  ;;  %v1447_v15 = vor.u32 %v1614_v10, %v1444_v11  ;;  %v1363_v28 = vor.u32 %v1593_v24, %v1360_v25  ;;  %v1597_v33 = vld [vmem:[%s1761_s17 + $0x98] sm:$0xf0]  ;;  %v1620_v34 = vld [vmem:[%s1761_s17 + $0x154] sm:$0xf]  ;;  %v1372_v37 = vld [vmem:[%s1761_s17 + $0x9c] sm:$0xf0] }
  0x21   : > { %876 = vmatpush.bf16.msra.mxu1 %v1636_v16  ;;  %v1596_v36 = vld [vmem:[%s1761_s17 + $0x94] sm:$0xf]  ;;  %v1402_v41 = vld [vmem:[%s1761_s17 + $0xc8] sm:$0xf]  ;;  %v1623_v46 = vld [vmem:[%s1761_s17 + $0x16c] sm:$0xf] }
  0x22   : > { %v1375_v40 = vor.u32 %v1596_v36, %v1372_v37  ;;  %v1600_v45 = vld [vmem:[%s1761_s17 + $0xb0] sm:$0xf0]  ;;  %v1599_v48 = vld [vmem:[%s1761_s17 + $0xac] sm:$0xf]  ;;  %v1384_v49 = vld [vmem:[%s1761_s17 + $0xb4] sm:$0xf0] }
  0x23   : > { %v1387_v53 = vor.u32 %v1599_v48, %v1384_v49  ;;  %v1394_v58 = vld [vmem:[%s1761_s17 + $0xc0] sm:$0xf]  ;;  %v1602_v63 = vld [vmem:[%s1761_s17 + $0xc4] sm:$0xf]  ;;  %v1406_v25 = vld [vmem:[%s1761_s17 + $0xd8] sm:$0xf] }
  0x24   : > { %788 = vmatpush.bf16.msra.mxu0 %v1627_v19  ;;  %1650 = vmatpush.bf16.msra.mxu3 %v1627_v19  ;;  %v1379_v19 = vor.u32 %v1598_v18, %v1378_v17  ;;  %v1884_v62 = vld [vmem:[%s2173_s2] ss:$0 sm:$0xff]  ;;  %v1122_v36 = vld [vmem:[%s1899_s27 + $0x8] sm:$0xff]  ;;  %v1613_v48 = vld [vmem:[%s1761_s17 + $0x118] sm:$0xf0] }
  0x25   : > { %1561 = vmatmul.msk.bf16.gmra.mxu2 %vm733_vm0, %v1319_v20  ;;  %877 = vmatpush.bf16.msra.mxu1 %v1635_v21  ;;  %v1358_v20 = vld [vmem:[%s1761_s17 + $0x78] sm:$0xf]  ;;  %v1904_v11 = vld [vmem:[%s2175_s4] ss:$0 sm:$0xff] }
  0x28   : > { %789 = vmatpush.bf16.msra.mxu0 %v1626_v22  ;;  %1651 = vmatpush.bf16.msra.mxu3 %v1626_v22  ;;  %v1617_v22 = vld [vmem:[%s1761_s17 + $0x13c] sm:$0xf] }
  0x29   : > { %878 = vmatpush.bf16.msra.mxu1 %v1634_v27 }
  0x2b   : > { %790 = vmatmul.bf16.vlgmr.msra.gmra.mxu0 %v1299_v30  ;;  %850 = vmatmul.bf16.vlgmr.msra.gmra.mxu3 %v1443_v31  ;;  %v1601_v30 = vld [vmem:[%s1761_s17 + $0xb8] sm:$0xf0] }
  0x2c   : > { %1652 = vmatpush.bf16.msrb.mxu3 %v1736_v2  ;;  %879 = vmatmul.bf16.vlgmr.msra.gmra.mxu1 %v1303_v32  ;;  %v1335_v2 = vor.u32 %v1588_v61, %v1334_v60  ;;  %v1391_v31 = vor.u32 %v1601_v30, %v1390_v29  ;;  %v1370_v32 = vld [vmem:[%s1761_s17 + $0x90] sm:$0xf]  ;;  %v1474_v60 = vld [vmem:[%s1761_s17 + $0x158] sm:$0xf]  ;;  %v1622_v61 = vld [vmem:[%s1761_s17 + $0x160] sm:$0xf0] }
  0x2d   : > { %v1371_v38 = vor.u32 %v1597_v33, %v1370_v32  ;;  %v1605_v30 = vld [vmem:[%s1761_s17 + $0xdc] sm:$0xf] }
  0x30   : > { %1653 = vmatpush.bf16.msrb.mxu3 %v1640_v5  ;;  %v1366_v5 = vld [vmem:[%s1761_s17 + $0x80] sm:$0xf] }
  0x34   : > { %1654 = vmatpush.bf16.msrb.mxu3 %v1639_v7  ;;  %v1367_v7 = vor.u32 %v1595_v6, %v1366_v5 }
  0x35   : > { %1562 = vmatmul.msk.bf16.gmra.mxu2 %vm733_vm0, %v1331_v35  ;;  %v1468_v35 = vld [vmem:[%s1761_s17 + $0x15c] sm:$0xf0] }
  0x36   : > { %v1471_v39 = vor.u32 %v1620_v34, %v1468_v35 }
  0x38   : > { %1655 = vmatpush.bf16.msrb.mxu3 %v1638_v12  ;;  %v1590_v12 = vld [vmem:[%s1761_s17 + $0x64] sm:$0xf] }
  0x3b   : > { %795 = vmatmul.bf16.gmra.mxu0 %v1311_v42  ;;  %855 = vmatmul.bf16.gmra.mxu3 %v1455_v43  ;;  %v1604_v42 = vld [vmem:[%s1761_s17 + $0xd0] sm:$0xf0] }
  0x3c   : > { %1656 = vmatpush.bf16.msrb.mxu3 %v1637_v14  ;;  %884 = vmatmul.bf16.gmra.mxu1 %v1315_v44  ;;  %v1347_v14 = vor.u32 %v1591_v9, %v1346_v8  ;;  %v1403_v43 = vor.u32 %v1604_v42, %v1402_v41  ;;  %v1382_v44 = vld [vmem:[%s1761_s17 + $0xa8] sm:$0xf]  ;;  %v1893_v9 = vld [vmem:[%s2174_s3] ss:$0 sm:$0xff] }
  0x3d   : > { %v1383_v50 = vor.u32 %v1600_v45, %v1382_v44 }
  0x40   : > { %1657 = vmatpush.bf16.msrb.mxu3 %v1636_v16  ;;  %v1351_v16 = vor.u32 %v1590_v12, %v1348_v13  ;;  %v1426_v13 = vld [vmem:[%s1761_s17 + $0xf8] sm:$0xf] }
  0x44   : > { %1658 = vmatpush.bf16.msrb.mxu3 %v1635_v21  ;;  %v1594_v21 = vld [vmem:[%s1761_s17 + $0x80] sm:$0xf0] }
  0x45   : > { %1563 = vmatmul.msk.bf16.gmra.mxu2 %vm733_vm0, %v1343_v47  ;;  %v1359_v26 = vor.u32 %v1594_v21, %v1358_v20  ;;  %v1480_v47 = vld [vmem:[%s1761_s17 + $0x174] sm:$0xf0] }
  0x46   : > { %v1483_v51 = vor.u32 %v1623_v46, %v1480_v47  ;;  %v1438_v47 = vld [vmem:[%s1761_s17 + $0x110] sm:$0xf] }
  0x48   : > { %1659 = vmatpush.bf16.msrb.mxu3 %v1634_v27  ;;  %v1459_v27 = vor.u32 %v1617_v22, %v1456_v23 }
  0x4b   : > { %800 = vmatmul.bf16.gmra.mxu0 %v1323_v54  ;;  %860 = vmatmul.bf16.gmra.mxu3 %v1467_v55  ;;  %v1414_v54 = vld [vmem:[%s1761_s17 + $0xe0] sm:$0xf]  ;;  %v1607_v55 = vld [vmem:[%s1761_s17 + $0xe8] sm:$0xf0] }
  0x4c   : > { %1660 = vmatpush.bf16.msra.mxu3 %v1731_v1  ;;  %889 = vmatmul.bf16.gmra.mxu1 %v1327_v56  ;;  %v1336_v1 = vld [vmem:[%s1761_s17 + $0x54] sm:$0xf0]  ;;  %v1415_v57 = vor.u32 %v1607_v55, %v1414_v54 }
  0x50   : > { %1661 = vmatpush.bf16.msra.mxu3 %v1746_v4  ;;  %v1339_v4 = vor.u32 %v1587_v0, %v1336_v1  ;;  %v1396_v0 = vld [vmem:[%s1761_s17 + $0xcc] sm:$0xf0] }
  0x51   : > { %v1399_v5 = vor.u32 %v1602_v63, %v1396_v0  ;;  %v1608_v63 = vld [vmem:[%s1761_s17 + $0xf4] sm:$0xf]  ;;  %v1420_v0 = vld [vmem:[%s1761_s17 + $0xfc] sm:$0xf0] }
  0x55   : > { %1564 = vmatmul.msk.bf16.gmra.mxu2 %vm733_vm0, %v1355_v59  ;;  %v1603_v59 = vld [vmem:[%s1761_s17 + $0xc8] sm:$0xf0] }
  0x56   : > { %v1395_v1 = vor.u32 %v1603_v59, %v1394_v58  ;;  %v1418_v59 = vld [vmem:[%s1761_s17 + $0xf0] sm:$0xf] }
  0x5b   : > { %805 = vmatmul.bf16.gmra.mxu0 %v1335_v2  ;;  %865 = vmatmul.bf16.gmra.mxu3 %v1479_v3  ;;  %v1475_v2 = vor.u32 %v1622_v61, %v1474_v60  ;;  %v1609_v60 = vld [vmem:[%s1761_s17 + $0xf8] sm:$0xf0] }
  0x5c   : > { %894 = vmatmul.bf16.gmra.mxu1 %v1339_v4 }
  0x65   : > { %1565 = vmatmul.msk.bf16.gmra.mxu2 %vm733_vm0, %v1367_v7 }
  0x6b   : > { %810 = vmatmul.bf16.gmra.mxu0 %v1347_v14  ;;  %939 = vmatmul.bf16.vlgmr.msrb.gmra.mxu3 %v1447_v15  ;;  %v1610_v14 = vld [vmem:[%s1761_s17 + $0x100] sm:$0xf0] }
  0x6c   : > { %899 = vmatmul.bf16.gmra.mxu1 %v1351_v16  ;;  %v1121_v16 = vld [vmem:[%s1899_s27] sm:$0xff]  ;;  %v1427_v22 = vor.u32 %v1610_v14, %v1426_v13 }
  0x75   : > { %1566 = vmatmul.msk.bf16.gmra.mxu2 %vm733_vm0, %v1379_v19 }
  0x7b   : > { %815 = vmatmul.bf16.gmra.mxu0 %v1359_v26  ;;  %944 = vmatmul.bf16.gmra.mxu3 %v1459_v27  ;;  %v1606_v26 = vld [vmem:[%s1761_s17 + $0xe0] sm:$0xf0]  ;;  %v1486_v27 = vld [vmem:[%s1761_s17 + $0x170] sm:$0xf] }
  0x7c   : > { %904 = vmatmul.bf16.gmra.mxu1 %v1363_v28  ;;  %v1625_v28 = vld [vmem:[%s1761_s17 + $0x178] sm:$0xf0]  ;;  %v1407_v34 = vor.u32 %v1606_v26, %v1406_v25 }
  0x7d   : > { %v1487_v35 = vor.u32 %v1625_v28, %v1486_v27 }
  0x85   : > { %1567 = vmatmul.msk.bf16.gmra.mxu2 %vm733_vm0, %v1391_v31  ;;  %v1408_v31 = vld [vmem:[%s1761_s17 + $0xe4] sm:$0xf0] }
  0x8b   : > { %820 = vmatmul.bf16.gmra.mxu0 %v1371_v38  ;;  %949 = vmatmul.bf16.gmra.mxu3 %v1471_v39  ;;  %v1411_v39 = vor.u32 %v1605_v30, %v1408_v31  ;;  %v1430_v30 = vld [vmem:[%s1761_s17 + $0x108] sm:$0xf]  ;;  %v1612_v31 = vld [vmem:[%s1761_s17 + $0x110] sm:$0xf0] }
  0x8c   : > { %909 = vmatmul.bf16.gmra.mxu1 %v1375_v40 }
  0x95   : > { %1568 = vmatmul.msk.bf16.gmra.mxu2 %vm733_vm0, %v1403_v43 }
  0x98   : > { %v969_v52 = vpop.f32.mrf.mxu2 }
  0x9b   : > { %825 = vmatmul.bf16.gmra.mxu0 %v1383_v50  ;;  %954 = vmatmul.bf16.gmra.mxu3 %v1483_v51  ;;  %v1123_v50 = vld [vmem:[%s1899_s27 + $0x10] sm:$0xff] }
  0x9c   : > { %914 = vmatmul.bf16.gmra.mxu1 %v1387_v53 }
  0xa0   : > { %v971_v56 = vpop.f32.mrf.mxu2 }
  0xa5   : > { %1569 = vmatmul.msk.bf16.gmra.mxu2 %vm733_vm0, %v1415_v57 }
  0xa8   : > { %v974_v3 = vpop.f32.mrf.mxu2  ;;  %v791_v4 = vpop.f32.mrf.mxu0 }
  0xa9   : > { %v792_v6 = vadd.f32 %v1884_v62, %v791_v4  ;;  %v880_v7 = vpop.f32.mrf.mxu1  ;;  %v1124_v4 = vld [vmem:[%s1899_s27 + $0x18] sm:$0xff] }
  0xab   : > { %v881_v8 = vadd.f32 %v880_v7, %v792_v6  ;;  %830 = vmatmul.bf16.gmra.mxu0 %v1395_v1  ;;  %1574 = vmatmul.msk.bf16.vlgmr.msra.gmra.mxu3 %vm733_vm0, %v1475_v2  ;;  %v1423_v7 = vor.u32 %v1608_v63, %v1420_v0 }
  0xac   : > { %919 = vmatmul.bf16.gmra.mxu1 %v1399_v5 }
  0xad   : > { %v970_v10 = vadd.f32 %v969_v52, %v881_v8 }
  0xae   : > { %v1906_v12 = vpop.f32.mrf.mxu3 }
  0xaf   : > { %v1053_v15 = vmul.f32 %v1893_v9, %v970_v10 }
  0xb0   : > { %v976_v17 = vpop.f32.mrf.mxu2  ;;  %v793_v18 = vpop.f32.mrf.mxu0 }
  0xb1   : > { %v1089_v19 = vadd.f32 %v1904_v11, %v1053_v15  ;;  %v794_v20 = vadd.f32 %v1884_v62, %v793_v18  ;;  %v882_v21 = vpop.f32.mrf.mxu1  ;;  %v1450_v18 = vld [vmem:[%s1761_s17 + $0x128] sm:$0xf] }
  0xb3   : > { %v1153_v23 = vadd.f32 %v1121_v16, %v1089_v19  ;;  %v883_v24 = vadd.f32 %v882_v21, %v794_v20  ;;  %v1616_v19 = vld [vmem:[%s1761_s17 + $0x130] sm:$0xf0]  ;;  %v1125_v21 = vld [vmem:[%s1899_s27 + $0x20] sm:$0xff] }
  0xb4   : > { %v1451_v27 = vor.u32 %v1616_v19, %v1450_v18 }
  0xb5   : > { %1185 = vst.msk [vmem:[%s1917_s8] sm:$0xff] %vm733_vm0, %v1153_v23  ;;  %v972_v29 = vadd.f32 %v971_v56, %v883_v24  ;;  %1570 = vmatmul.msk.bf16.gmra.mxu2 %vm733_vm0, %v1427_v22  ;;  %v1439_v56 = vor.u32 %v1613_v48, %v1438_v47 }
  0xb6   : > { %v1928_v32 = vpop.f32.mrf.mxu3 }
  0xb7   : > { %v1054_v33 = vmul.f32 %v1893_v9, %v972_v29 }
  0xb8   : > { %v979_v37 = vpop.f32.mrf.mxu2  ;;  %v796_v38 = vpop.f32.mrf.mxu0 }
  0xb9   : > { %v1090_v40 = vadd.f32 %v1904_v11, %v1054_v33  ;;  %v797_v41 = vadd.f32 %v1884_v62, %v796_v38  ;;  %v885_v42 = vpop.f32.mrf.mxu1  ;;  %v1431_v38 = vor.u32 %v1612_v31, %v1430_v30 }
  0xbb   : > { %v1154_v43 = vadd.f32 %v1122_v36, %v1090_v40  ;;  %v886_v44 = vadd.f32 %v885_v42, %v797_v41  ;;  %835 = vmatmul.bf16.gmra.mxu0 %v1407_v34  ;;  %1575 = vmatmul.msk.bf16.gmra.mxu3 %vm733_vm0, %v1487_v35  ;;  %v1611_v34 = vld [vmem:[%s1761_s17 + $0x10c] sm:$0xf]  ;;  %v1432_v35 = vld [vmem:[%s1761_s17 + $0x114] sm:$0xf0] }
  0xbc   : > { %924 = vmatmul.bf16.gmra.mxu1 %v1411_v39  ;;  %v1126_v39 = vld [vmem:[%s1899_s27 + $0x28] sm:$0xff]  ;;  %v1435_v42 = vor.u32 %v1611_v34, %v1432_v35 }
  0xbd   : > { %1186 = vst.msk [vmem:[%s1917_s8 + $0x8] sm:$0xff] %vm733_vm0, %v1154_v43  ;;  %v975_v45 = vadd.f32 %v974_v3, %v886_v44  ;;  %v1419_v3 = vor.u32 %v1609_v60, %v1418_v59  ;;  %v1130_v34 = vld [vmem:[%s1899_s27 + $0x48] sm:$0xff] }
  0xbe   : > { %v1937_v46 = vpop.f32.mrf.mxu3 }
  0xbf   : > { %v1055_v49 = vmul.f32 %v1893_v9, %v975_v45 }
  0xc0   : > { %v981_v51 = vpop.f32.mrf.mxu2  ;;  %v798_v52 = vpop.f32.mrf.mxu0 }
  0xc1   : > { %v1091_v53 = vadd.f32 %v1904_v11, %v1055_v49  ;;  %v799_v54 = vadd.f32 %v1884_v62, %v798_v52  ;;  %v887_v55 = vpop.f32.mrf.mxu1  ;;  %v1619_v52 = vld [vmem:[%s1761_s17 + $0x148] sm:$0xf0] }
  0xc3   : > { %v1155_v57 = vadd.f32 %v1123_v50, %v1091_v53  ;;  %v888_v58 = vadd.f32 %v887_v55, %v799_v54  ;;  %v1127_v54 = vld [vmem:[%s1899_s27 + $0x30] sm:$0xff] }
  0xc5   : > { %1187 = vst.msk [vmem:[%s1917_s8 + $0x10] sm:$0xff] %vm733_vm0, %v1155_v57  ;;  %v977_v61 = vadd.f32 %v976_v17, %v888_v58  ;;  %1571 = vmatmul.msk.bf16.gmra.mxu2 %vm733_vm0, %v1439_v56 }
  0xc6   : > { %v1952_v1 = vpop.f32.mrf.mxu3 }
  0xc7   : > { %v1056_v2 = vmul.f32 %v1893_v9, %v977_v61 }
  0xc8   : > { %v984_v5 = vpop.f32.mrf.mxu2  ;;  %v801_v6 = vpop.f32.mrf.mxu0 }
  0xc9   : > { %v1092_v8 = vadd.f32 %v1904_v11, %v1056_v2  ;;  %v802_v10 = vadd.f32 %v1884_v62, %v801_v6  ;;  %v890_v13 = vpop.f32.mrf.mxu1 }
  0xcb   : > { %v1156_v14 = vadd.f32 %v1124_v4, %v1092_v8  ;;  %v891_v15 = vadd.f32 %v890_v13, %v802_v10  ;;  %840 = vmatmul.bf16.gmra.mxu0 %v1419_v3  ;;  %v1128_v4 = vld [vmem:[%s1899_s27 + $0x38] sm:$0xff] }
  0xcc   : > { %929 = vmatmul.bf16.gmra.mxu1 %v1423_v7 }
  0xcd   : > { %1188 = vst.msk [vmem:[%s1917_s8 + $0x18] sm:$0xff] %vm733_vm0, %v1156_v14  ;;  %v980_v16 = vadd.f32 %v979_v37, %v891_v15  ;;  %v852_v15 = vadd.f32 %v1884_v62, %v1906_v12  ;;  %v854_v12 = vadd.f32 %v1884_v62, %v1928_v32  ;;  %v857_v32 = vadd.f32 %v1884_v62, %v1937_v46 }
  0xce   : > { %v1960_v17 = vpop.f32.mrf.mxu3 }
  0xcf   : > { %v1057_v20 = vmul.f32 %v1893_v9, %v980_v16 }
  0xd0   : > { %v986_v22 = vpop.f32.mrf.mxu2  ;;  %v803_v23 = vpop.f32.mrf.mxu0 }
  0xd1   : > { %v1093_v24 = vadd.f32 %v1904_v11, %v1057_v20  ;;  %v804_v25 = vadd.f32 %v1884_v62, %v803_v23  ;;  %v892_v26 = vpop.f32.mrf.mxu1 }
  0xd3   : > { %v1157_v28 = vadd.f32 %v1125_v21, %v1093_v24  ;;  %v893_v29 = vadd.f32 %v892_v26, %v804_v25  ;;  %v1129_v21 = vld [vmem:[%s1899_s27 + $0x40] sm:$0xff] }
  0xd5   : > { %1189 = vst.msk [vmem:[%s1917_s8 + $0x20] sm:$0xff] %vm733_vm0, %v1157_v28  ;;  %v982_v33 = vadd.f32 %v981_v51, %v893_v29  ;;  %1572 = vmatmul.msk.bf16.gmra.mxu2 %vm733_vm0, %v1451_v27  ;;  %v1462_v51 = vld [vmem:[%s1761_s17 + $0x140] sm:$0xf] }
  0xd6   : > { %v1975_v36 = vpop.f32.mrf.mxu3  ;;  %v1463_v60 = vor.u32 %v1619_v52, %v1462_v51 }
  0xd7   : > { %v1058_v37 = vmul.f32 %v1893_v9, %v982_v33 }
  0xd8   : > { %v989_v40 = vpop.f32.mrf.mxu2  ;;  %v806_v41 = vpop.f32.mrf.mxu0 }
  0xd9   : > { %v1094_v43 = vadd.f32 %v1904_v11, %v1058_v37  ;;  %v807_v44 = vadd.f32 %v1884_v62, %v806_v41  ;;  %v895_v45 = vpop.f32.mrf.mxu1 }
  0xdb   : > { %v1158_v47 = vadd.f32 %v1126_v39, %v1094_v43  ;;  %v896_v48 = vadd.f32 %v895_v45, %v807_v44  ;;  %845 = vmatmul.bf16.gmra.mxu0 %v1431_v38 }
  0xdc   : > { %934 = vmatmul.bf16.gmra.mxu1 %v1435_v42 }
  0xdd   : > { %1190 = vst.msk [vmem:[%s1917_s8 + $0x28] sm:$0xff] %vm733_vm0, %v1158_v47  ;;  %v985_v49 = vadd.f32 %v984_v5, %v896_v48  ;;  %v1131_v48 = vld [vmem:[%s1899_s27 + $0x50] sm:$0xff] }
  0xde   : > { %v1983_v50 = vpop.f32.mrf.mxu3 }
  0xdf   : > { %v1059_v53 = vmul.f32 %v1893_v9, %v985_v49 }
  0xe0   : > { %v991_v55 = vpop.f32.mrf.mxu2  ;;  %v808_v56 = vpop.f32.mrf.mxu0 }
  0xe1   : > { %v1095_v57 = vadd.f32 %v1904_v11, %v1059_v53  ;;  %v809_v58 = vadd.f32 %v1884_v62, %v808_v56  ;;  %v897_v59 = vpop.f32.mrf.mxu1  ;;  %v859_v56 = vadd.f32 %v1884_v62, %v1952_v1 }
  0xe3   : > { %v1159_v61 = vadd.f32 %v1127_v54, %v1095_v57  ;;  %v898_v63 = vadd.f32 %v897_v59, %v809_v58 }
  0xe5   : > { %1191 = vst.msk [vmem:[%s1917_s8 + $0x30] sm:$0xff] %vm733_vm0, %v1159_v61  ;;  %v987_v0 = vadd.f32 %v986_v22, %v898_v63  ;;  %1573 = vmatmul.msk.bf16.gmra.mxu2 %vm733_vm0, %v1463_v60  ;;  %v1132_v61 = vld [vmem:[%s1899_s27 + $0x58] sm:$0xff] }
  0xe6   : > { %v1994_v2 = vpop.f32.mrf.mxu3 }
  0xe7   : > { %v1060_v3 = vmul.f32 %v1893_v9, %v987_v0 }
  0xe8   : > { %v994_v5 = vpop.f32.mrf.mxu2  ;;  %v811_v6 = vpop.f32.mrf.mxu0 }
  0xe9   : > { %v1096_v7 = vadd.f32 %v1904_v11, %v1060_v3  ;;  %v812_v8 = vadd.f32 %v1884_v62, %v811_v6  ;;  %v900_v10 = vpop.f32.mrf.mxu1 }
  0xeb   : > { %v1160_v13 = vadd.f32 %v1128_v4, %v1096_v7  ;;  %v901_v14 = vadd.f32 %v900_v10, %v812_v8 }
  0xed   : > { %1192 = vst.msk [vmem:[%s1917_s8 + $0x38] sm:$0xff] %vm733_vm0, %v1160_v13  ;;  %v990_v16 = vadd.f32 %v989_v40, %v901_v14  ;;  %v1133_v13 = vld [vmem:[%s1899_s27 + $0x60] sm:$0xff] }
  0xee   : > { %v940_v18 = vpop.f32.mrf.mxu3 }
  0xef   : > { %v1061_v19 = vmul.f32 %v1893_v9, %v990_v16  ;;  %v2005_v20 = vadd.f32 %v940_v18, %v852_v15 }
  0xf0   : > { %v996_v22 = vpop.f32.mrf.mxu2  ;;  %v813_v23 = vpop.f32.mrf.mxu0 }
  0xf1   : > { %v1097_v24 = vadd.f32 %v1904_v11, %v1061_v19  ;;  %v814_v25 = vadd.f32 %v1884_v62, %v813_v23  ;;  %v902_v26 = vpop.f32.mrf.mxu1 }
  0xf3   : > { %v1161_v27 = vadd.f32 %v1129_v21, %v1097_v24  ;;  %v903_v28 = vadd.f32 %v902_v26, %v814_v25  ;;  %v1134_v26 = vld [vmem:[%s1899_s27 + $0x68] sm:$0xff] }
  0xf5   : > { %1193 = vst.msk [vmem:[%s1917_s8 + $0x40] sm:$0xff] %vm733_vm0, %v1161_v27  ;;  %v992_v29 = vadd.f32 %v991_v55, %v903_v28 }
  0xf6   : > { %v942_v30 = vpop.f32.mrf.mxu3 }
  0xf7   : > { %v1062_v31 = vmul.f32 %v1893_v9, %v992_v29  ;;  %v2015_v33 = vadd.f32 %v942_v30, %v854_v12 }
  0xf8   : > { %v999_v35 = vpop.f32.mrf.mxu2  ;;  %v816_v37 = vpop.f32.mrf.mxu0 }
  0xf9   : > { %v1098_v38 = vadd.f32 %v1904_v11, %v1062_v31  ;;  %v817_v39 = vadd.f32 %v1884_v62, %v816_v37  ;;  %v905_v40 = vpop.f32.mrf.mxu1 }
  0xfb   : > { %v1162_v41 = vadd.f32 %v1130_v34, %v1098_v38  ;;  %v906_v42 = vadd.f32 %v905_v40, %v817_v39  ;;  %v1135_v39 = vld [vmem:[%s1899_s27 + $0x70] sm:$0xff] }
  0xfd   : > { %1194 = vst.msk [vmem:[%s1917_s8 + $0x48] sm:$0xff] %vm733_vm0, %v1162_v41  ;;  %v995_v43 = vadd.f32 %v994_v5, %v906_v42 }
  0xfe   : > { %v945_v44 = vpop.f32.mrf.mxu3 }
  0xff   : > { %v1063_v45 = vmul.f32 %v1893_v9, %v995_v43  ;;  %v2025_v47 = vadd.f32 %v945_v44, %v857_v32 }
 0x100   : > { %v1001_v49 = vpop.f32.mrf.mxu2  ;;  %v818_v51 = vpop.f32.mrf.mxu0 }
 0x101   : > { %v1099_v52 = vadd.f32 %v1904_v11, %v1063_v45  ;;  %v819_v53 = vadd.f32 %v1884_v62, %v818_v51  ;;  %v907_v54 = vpop.f32.mrf.mxu1 }
 0x103   : > { %v1163_v55 = vadd.f32 %v1131_v48, %v1099_v52  ;;  %v908_v46 = vadd.f32 %v907_v54, %v819_v53  ;;  %v1136_v52 = vld [vmem:[%s1899_s27 + $0x78] sm:$0xff] }
 0x105   : > { %1195 = vst.msk [vmem:[%s1917_s8 + $0x50] sm:$0xff] %vm733_vm0, %v1163_v55  ;;  %v997_v57 = vadd.f32 %v996_v22, %v908_v46 }
 0x106   : > { %v947_v58 = vpop.f32.mrf.mxu3 }
 0x107   : > { %v1064_v59 = vmul.f32 %v1893_v9, %v997_v57  ;;  %v2035_v60 = vadd.f32 %v947_v58, %v859_v56  ;;  %v862_v57 = vadd.f32 %v1884_v62, %v1960_v17 }
 0x108   : > { %v1004_v63 = vpop.f32.mrf.mxu2  ;;  %v821_v0 = vpop.f32.mrf.mxu0 }
 0x109   : > { %v1100_v3 = vadd.f32 %v1904_v11, %v1064_v59  ;;  %v822_v4 = vadd.f32 %v1884_v62, %v821_v0  ;;  %v910_v5 = vpop.f32.mrf.mxu1 }
 0x10b   : > { %v1164_v6 = vadd.f32 %v1132_v61, %v1100_v3  ;;  %v911_v1 = vadd.f32 %v910_v5, %v822_v4  ;;  %v1137_v5 = vld [vmem:[%s1899_s27 + $0x80] sm:$0xff] }
 0x10d   : > { %1196 = vst.msk [vmem:[%s1917_s8 + $0x58] sm:$0xff] %vm733_vm0, %v1164_v6  ;;  %v1000_v7 = vadd.f32 %v999_v35, %v911_v1 }
 0x10e   : > { %v950_v8 = vpop.f32.mrf.mxu3 }
 0x10f   : > { %v1065_v10 = vmul.f32 %v1893_v9, %v1000_v7  ;;  %v951_v61 = vadd.f32 %v950_v8, %v862_v57 }
 0x110   : > { %v1006_v14 = vpop.f32.mrf.mxu2  ;;  %v823_v15 = vpop.f32.mrf.mxu0 }
 0x111   : > { %v1101_v16 = vadd.f32 %v1904_v11, %v1065_v10  ;;  %v824_v18 = vadd.f32 %v1884_v62, %v823_v15  ;;  %v912_v19 = vpop.f32.mrf.mxu1 }
 0x113   : > { %v1165_v21 = vadd.f32 %v1133_v13, %v1101_v16  ;;  %v913_v22 = vadd.f32 %v912_v19, %v824_v18  ;;  %v1149_v13 = vld [vmem:[%s1899_s27 + $0xe0] sm:$0xff] }
 0x115   : > { %1197 = vst.msk [vmem:[%s1917_s8 + $0x60] sm:$0xff] %vm733_vm0, %v1165_v21  ;;  %v1002_v23 = vadd.f32 %v1001_v49, %v913_v22 }
 0x116   : > { %v952_v24 = vpop.f32.mrf.mxu3 }
 0x117   : > { %v1066_v25 = vmul.f32 %v1893_v9, %v1002_v23 }
 0x118   : > { %v1009_v27 = vpop.f32.mrf.mxu2  ;;  %v826_v28 = vpop.f32.mrf.mxu0 }
 0x119   : > { %v1102_v12 = vadd.f32 %v1904_v11, %v1066_v25  ;;  %v827_v29 = vadd.f32 %v1884_v62, %v826_v28  ;;  %v915_v30 = vpop.f32.mrf.mxu1 }
 0x11b   : > { %v1166_v31 = vadd.f32 %v1134_v26, %v1102_v12  ;;  %v916_v34 = vadd.f32 %v915_v30, %v827_v29 }
 0x11d   : > { %1198 = vst.msk [vmem:[%s1917_s8 + $0x68] sm:$0xff] %vm733_vm0, %v1166_v31  ;;  %v1005_v35 = vadd.f32 %v1004_v63, %v916_v34  ;;  %v1150_v31 = vld [vmem:[%s1899_s27 + $0xe8] sm:$0xff]  ;;  %v867_v34 = vadd.f32 %v1884_v62, %v1983_v50 }
 0x11e   : > { %v955_v37 = vpop.f32.mrf.mxu3 }
 0x11f   : > { %v1067_v38 = vmul.f32 %v1893_v9, %v1005_v35 }
 0x120   : > { %v1011_v40 = vpop.f32.mrf.mxu2  ;;  %v828_v41 = vpop.f32.mrf.mxu0 }
 0x121   : > { %v1103_v42 = vadd.f32 %v1904_v11, %v1067_v38  ;;  %v829_v32 = vadd.f32 %v1884_v62, %v828_v41  ;;  %v917_v43 = vpop.f32.mrf.mxu1 }
 0x123   : > { %v1167_v44 = vadd.f32 %v1135_v39, %v1103_v42  ;;  %v918_v45 = vadd.f32 %v917_v43, %v829_v32 }
 0x125   : > { %1199 = vst.msk [vmem:[%s1917_s8 + $0x70] sm:$0xff] %vm733_vm0, %v1167_v44  ;;  %v1007_v48 = vadd.f32 %v1006_v14, %v918_v45  ;;  %v864_v14 = vadd.f32 %v1884_v62, %v1975_v36  ;;  %v1139_v45 = vld [vmem:[%s1899_s27 + $0x90] sm:$0xff] }
 0x126   : > { %v2060_v49 = vpop.f32.mrf.mxu3 }
 0x127   : > { %v1068_v51 = vmul.f32 %v1893_v9, %v1007_v48  ;;  %v953_v19 = vadd.f32 %v952_v24, %v864_v14 }
 0x128   : > { %v1014_v53 = vpop.f32.mrf.mxu2  ;;  %v831_v54 = vpop.f32.mrf.mxu0 }
 0x129   : > { %v1104_v55 = vadd.f32 %v1904_v11, %v1068_v51  ;;  %v832_v46 = vadd.f32 %v1884_v62, %v831_v54  ;;  %v920_v56 = vpop.f32.mrf.mxu1 }
 0x12b   : > { %v1168_v58 = vadd.f32 %v1136_v52, %v1104_v55  ;;  %v921_v59 = vadd.f32 %v920_v56, %v832_v46  ;;  %v869_v55 = vadd.f32 %v1884_v62, %v1994_v2  ;;  %v1140_v2 = vld [vmem:[%s1899_s27 + $0x98] sm:$0xff] }
 0x12d   : > { %1200 = vst.msk [vmem:[%s1917_s8 + $0x78] sm:$0xff] %vm733_vm0, %v1168_v58  ;;  %v1010_v63 = vadd.f32 %v1009_v27, %v921_v59  ;;  %v1138_v27 = vld [vmem:[%s1899_s27 + $0x88] sm:$0xff]  ;;  %v958_v58 = vadd.f32 %v2060_v49, %v869_v55 }
 0x12e   : > { %v1039_v0 = vpop.f32.mrf.mxu3 }
 0x12f   : > { %v1069_v3 = vmul.f32 %v1893_v9, %v1010_v63  ;;  %v1040_v4 = vadd.f32 %v1039_v0, %v951_v61 }
 0x130   : > { %v1016_v6 = vpop.f32.mrf.mxu2  ;;  %v833_v1 = vpop.f32.mrf.mxu0 }
 0x131   : > { %v1105_v7 = vadd.f32 %v1904_v11, %v1069_v3  ;;  %v1081_v17 = vmul.f32 %v1893_v9, %v1040_v4  ;;  %v834_v10 = vadd.f32 %v1884_v62, %v833_v1  ;;  %v922_v8 = vpop.f32.mrf.mxu1 }
 0x133   : > { %v1169_v15 = vadd.f32 %v1137_v5, %v1105_v7  ;;  %v1117_v16 = vadd.f32 %v1904_v11, %v1081_v17  ;;  %v923_v18 = vadd.f32 %v922_v8, %v834_v10 }
 0x135   : > { %1201 = vst.msk [vmem:[%s1917_s8 + $0x80] sm:$0xff] %vm733_vm0, %v1169_v15  ;;  %v1181_v21 = vadd.f32 %v1149_v13, %v1117_v16  ;;  %v1012_v22 = vadd.f32 %v1011_v40, %v923_v18  ;;  %v956_v40 = vadd.f32 %v955_v37, %v867_v34  ;;  %v1141_v18 = vld [vmem:[%s1899_s27 + $0xa0] sm:$0xff] }
 0x136   : > { %v1041_v23 = vpop.f32.mrf.mxu3 }
 0x137   : > { %1213 = vst.msk [vmem:[%s1917_s8 + $0xe0] sm:$0xff] %vm733_vm0, %v1181_v21  ;;  %v1070_v25 = vmul.f32 %v1893_v9, %v1012_v22  ;;  %v1042_v26 = vadd.f32 %v1041_v23, %v953_v19 }
 0x138   : > { %v1019_v28 = vpop.f32.mrf.mxu2  ;;  %v836_v36 = vpop.f32.mrf.mxu0 }
 0x139   : > { %v1106_v12 = vadd.f32 %v1904_v11, %v1070_v25  ;;  %v1082_v29 = vmul.f32 %v1893_v9, %v1042_v26  ;;  %v837_v24 = vadd.f32 %v1884_v62, %v836_v36  ;;  %v925_v30 = vpop.f32.mrf.mxu1 }
 0x13b   : > { %v1170_v35 = vadd.f32 %v1138_v27, %v1106_v12  ;;  %v1118_v38 = vadd.f32 %v1904_v11, %v1082_v29  ;;  %v926_v39 = vadd.f32 %v925_v30, %v837_v24  ;;  %v1142_v12 = vld [vmem:[%s1899_s27 + $0xa8] sm:$0xff] }
 0x13d   : > { %1202 = vst.msk [vmem:[%s1917_s8 + $0x88] sm:$0xff] %vm733_vm0, %v1170_v35  ;;  %v1182_v41 = vadd.f32 %v1150_v31, %v1118_v38  ;;  %v1015_v42 = vadd.f32 %v1014_v53, %v926_v39  ;;  %v1151_v53 = vld [vmem:[%s1899_s27 + $0xf0] sm:$0xff] }
 0x13e   : > { %v1044_v32 = vpop.f32.mrf.mxu3 }
 0x13f   : > { %1214 = vst.msk [vmem:[%s1917_s8 + $0xe8] sm:$0xff] %vm733_vm0, %v1182_v41  ;;  %v1071_v43 = vmul.f32 %v1893_v9, %v1015_v42  ;;  %v1045_v44 = vadd.f32 %v1044_v32, %v956_v40  ;;  %v1145_v41 = vld [vmem:[%s1899_s27 + $0xc0] sm:$0xff] }
 0x140   : > { %v1021_v48 = vpop.f32.mrf.mxu2  ;;  %v838_v50 = vpop.f32.mrf.mxu0 }
 0x141   : > { %v1107_v51 = vadd.f32 %v1904_v11, %v1071_v43  ;;  %v1083_v52 = vmul.f32 %v1893_v9, %v1045_v44  ;;  %v839_v37 = vadd.f32 %v1884_v62, %v838_v50  ;;  %v927_v54 = vpop.f32.mrf.mxu1 }
 0x143   : > { %v1171_v46 = vadd.f32 %v1139_v45, %v1107_v51  ;;  %v1119_v56 = vadd.f32 %v1904_v11, %v1083_v52  ;;  %v928_v57 = vadd.f32 %v927_v54, %v839_v37  ;;  %v1143_v45 = vld [vmem:[%s1899_s27 + $0xb0] sm:$0xff] }
 0x145   : > { %1203 = vst.msk [vmem:[%s1917_s8 + $0x90] sm:$0xff] %vm733_vm0, %v1171_v46  ;;  %v1183_v59 = vadd.f32 %v1151_v53, %v1119_v56  ;;  %v1017_v61 = vadd.f32 %v1016_v6, %v928_v57  ;;  %v1152_v6 = vld [vmem:[%s1899_s27 + $0xf8] sm:$0xff]  ;;  %v1146_v46 = vld [vmem:[%s1899_s27 + $0xc8] sm:$0xff] }
 0x146   : > { %v1046_v63 = vpop.f32.mrf.mxu3 }
 0x147   : > { %1215 = vst.msk [vmem:[%s1917_s8 + $0xf0] sm:$0xff] %vm733_vm0, %v1183_v59  ;;  %v1072_v0 = vmul.f32 %v1893_v9, %v1017_v61  ;;  %v1047_v3 = vadd.f32 %v1046_v63, %v958_v58 }
 0x148   : > { %v1024_v4 = vpop.f32.mrf.mxu2  ;;  %v841_v5 = vpop.f32.mrf.mxu0 }
 0x149   : > { %v1108_v1 = vadd.f32 %v1904_v11, %v1072_v0  ;;  %v1084_v49 = vmul.f32 %v1893_v9, %v1047_v3  ;;  %v842_v7 = vadd.f32 %v1884_v62, %v841_v5  ;;  %v930_v17 = vpop.f32.mrf.mxu1 }
 0x14b   : > { %v1172_v10 = vadd.f32 %v1140_v2, %v1108_v1  ;;  %v1120_v8 = vadd.f32 %v1904_v11, %v1084_v49  ;;  %v931_v13 = vadd.f32 %v930_v17, %v842_v7  ;;  %v1147_v2 = vld [vmem:[%s1899_s27 + $0xd0] sm:$0xff]  ;;  %v1148_v17 = vld [vmem:[%s1899_s27 + $0xd8] sm:$0xff] }
 0x14d   : > { %1204 = vst.msk [vmem:[%s1917_s8 + $0x98] sm:$0xff] %vm733_vm0, %v1172_v10  ;;  %v1184_v14 = vadd.f32 %v1152_v6, %v1120_v8  ;;  %v1020_v15 = vadd.f32 %v1019_v28, %v931_v13 }
 0x14f   : > { %1216 = vst.msk [vmem:[%s1917_s8 + $0xf8] sm:$0xff] %vm733_vm0, %v1184_v14  ;;  %v1073_v16 = vmul.f32 %v1893_v9, %v1020_v15 }
 0x150   : > { %v1026_v19 = vpop.f32.mrf.mxu2  ;;  %v843_v21 = vpop.f32.mrf.mxu0 }
 0x151   : > { %v1109_v22 = vadd.f32 %v1904_v11, %v1073_v16  ;;  %v844_v23 = vadd.f32 %v1884_v62, %v843_v21  ;;  %v932_v25 = vpop.f32.mrf.mxu1 }
 0x153   : > { %v1173_v26 = vadd.f32 %v1141_v18, %v1109_v22  ;;  %v933_v27 = vadd.f32 %v932_v25, %v844_v23 }
 0x155   : > { %1205 = vst.msk [vmem:[%s1917_s8 + $0xa0] sm:$0xff] %vm733_vm0, %v1173_v26  ;;  %v1022_v36 = vadd.f32 %v1021_v48, %v933_v27 }
 0x157   : > { %v1074_v28 = vmul.f32 %v1893_v9, %v1022_v36 }
 0x158   : > { %v1029_v29 = vpop.f32.mrf.mxu2  ;;  %v846_v24 = vpop.f32.mrf.mxu0 }
 0x159   : > { %v1110_v30 = vadd.f32 %v1904_v11, %v1074_v28  ;;  %v1030_v31 = vadd.f32 %v1029_v29, %v2005_v20  ;;  %v847_v34 = vadd.f32 %v1884_v62, %v846_v24  ;;  %v935_v35 = vpop.f32.mrf.mxu1 }
 0x15b   : > { %v1174_v38 = vadd.f32 %v1142_v12, %v1110_v30  ;;  %v1077_v39 = vmul.f32 %v1893_v9, %v1030_v31  ;;  %v936_v40 = vadd.f32 %v935_v35, %v847_v34 }
 0x15d   : > { %1206 = vst.msk [vmem:[%s1917_s8 + $0xa8] sm:$0xff] %vm733_vm0, %v1174_v38  ;;  %v1113_v42 = vadd.f32 %v1904_v11, %v1077_v39  ;;  %v1025_v32 = vadd.f32 %v1024_v4, %v936_v40 }
 0x15f   : > { %v1177_v43 = vadd.f32 %v1145_v41, %v1113_v42  ;;  %v1075_v44 = vmul.f32 %v1893_v9, %v1025_v32 }
 0x160   : > { %v1031_v20 = vpop.f32.mrf.mxu2  ;;  %v848_v48 = vpop.f32.mrf.mxu0 }
 0x161   : > { %1209 = vst.msk [vmem:[%s1917_s8 + $0xc0] sm:$0xff] %vm733_vm0, %v1177_v43  ;;  %v1111_v50 = vadd.f32 %v1904_v11, %v1075_v44  ;;  %v1032_v51 = vadd.f32 %v1031_v20, %v2015_v33  ;;  %v849_v52 = vadd.f32 %v1884_v62, %v848_v48  ;;  %v937_v37 = vpop.f32.mrf.mxu1  ;;  %v1144_v33 = vld [vmem:[%s1899_s27 + $0xb8] sm:$0xff] }
 0x163   : > { %v1175_v54 = vadd.f32 %v1143_v45, %v1111_v50  ;;  %v1078_v53 = vmul.f32 %v1893_v9, %v1032_v51  ;;  %v938_v55 = vadd.f32 %v937_v37, %v849_v52 }
 0x165   : > { %1207 = vst.msk [vmem:[%s1917_s8 + $0xb0] sm:$0xff] %vm733_vm0, %v1175_v54  ;;  %v1114_v56 = vadd.f32 %v1904_v11, %v1078_v53  ;;  %v1027_v57 = vadd.f32 %v1026_v19, %v938_v55 }
 0x167   : > { %v1178_v58 = vadd.f32 %v1146_v46, %v1114_v56  ;;  %v1076_v59 = vmul.f32 %v1893_v9, %v1027_v57 }
 0x168   : > { %v1034_v62 = vpop.f32.mrf.mxu2 }
 0x169   : > { %1210 = vst.msk [vmem:[%s1917_s8 + $0xc8] sm:$0xff] %vm733_vm0, %v1178_v58  ;;  %v1112_v61 = vadd.f32 %v1904_v11, %v1076_v59  ;;  %v1035_v63 = vadd.f32 %v1034_v62, %v2025_v47 }
 0x16b   : > { %v1176_v0 = vadd.f32 %v1144_v33, %v1112_v61  ;;  %v1079_v3 = vmul.f32 %v1893_v9, %v1035_v63 }
 0x16d   : > { %1208 = vst.msk [vmem:[%s1917_s8 + $0xb8] sm:$0xff] %vm733_vm0, %v1176_v0  ;;  %v1115_v4 = vadd.f32 %v1904_v11, %v1079_v3 }
 0x16f   : > { %v1179_v5 = vadd.f32 %v1147_v2, %v1115_v4 }
 0x170   : > { %v1036_v1 = vpop.f32.mrf.mxu2 }
 0x171   : > { %1211 = vst.msk [vmem:[%s1917_s8 + $0xd0] sm:$0xff] %vm733_vm0, %v1179_v5  ;;  %v1037_v49 = vadd.f32 %v1036_v1, %v2035_v60 }
 0x173   : > { %v1080_v7 = vmul.f32 %v1893_v9, %v1037_v49 }
 0x175   : > { %v1116_v6 = vadd.f32 %v1904_v11, %v1080_v7 }
 0x177   : > { %v1180_v47 = vadd.f32 %v1148_v17, %v1116_v6 }
 0x179   : > { %1212 = vst.msk [vmem:[%s1917_s8 + $0xd8] sm:$0xff] %vm733_vm0, %v1180_v47 }
 0x17a PF: > { %s16_s21 = sadd.s32 1, %s1680_s21  }
 0x17b   : > { %p13_p4 = scmp.ge.s32.totalorder %s16_s21, 4  }
 0x17d   :  { %15 = sbr.rel (!%p13_p4) target bundleno = 1 (0x1), region = 77 }

// kernel: generator_forward.15
= control target key start
LH: loop header
LB: loop body
LE: loop exit
PB: predicated region body
PF: predicated region fallthrough
CT: control target
= control target key end

     0   :  { %s1543_s12 = smov 0   ;;  %s1854_s0 = inlined_call_operand.vmem [shape: bf16[512,288], index: 0, kind: input, shape index: {}]   ;;  %s1855_s1 = inlined_call_operand.vmem [shape: bf16[288,128], index: 1, kind: input, shape index: {}]   ;;  %s1856_s2 = inlined_call_operand.vmem [shape: f32[1,128], index: 2, kind: input, shape index: {}]   ;;  %s1857_s3 = inlined_call_operand.vmem [shape: f32[512,128], index: 3, kind: output, shape index: {}]  }
   0x1 LB: > { %s1130_s13 = sadd.s32 4294967295, %s1521_s12   ;;  %p1134_p0 = scmp.ge.s32.totalorder %s1521_s12, 1  ;;  %s1521_s12 = sphi %s1543_s12, %s13_s12  }
   0x2   : > { %p139_p1 = scmp.lt.s32.totalorder %s1521_s12, 3 }
   0x4   : > { %p140_p2 = pnand %p1134_p0, %p139_p1 }
   0x5   : > { %s1135_s20 = sshll.u32 (!%p140_p2), %s1130_s13, 5 }
   0x6   : > { %143 = sbr.rel (%p140_p2) target bundleno = 375 (0x177), region = 32  ;;  %p165_p3 = scmp.lt.s32.totalorder (!%p140_p2), %s1135_s20, 63 }
   0xb   : > { %v1476_v0 = vld [vmem:[%s1855_s1 + $0x38] sm:$0xff]  ;;  %v1557_v1 = vld [vmem:[%s1855_s1 + $0x88] sm:$0xff]  ;;  %v1475_v3 = vld [vmem:[%s1855_s1 + $0x30] sm:$0xff]  ;;  %s1859_s20 = smov (!%p165_p3, %s1135_s20), 63  ;;  %vm630_vm0 = vcmask 261120  }
   0xc   : > { %v1562_v2 = vld [vmem:[%s1855_s1 + $0x78] sm:$0xff]  ;;  %679 = vmatpush.bf16.msra.mxu0 %v1476_v0  ;;  %1487 = vmatpush.bf16.msra.mxu3 %v1476_v0  ;;  %v1572_v4 = vld [vmem:[%s1855_s1 + $0x80] sm:$0xff]  ;;  %v1483_v5 = vld [vmem:[%s1855_s1 + $0x70] sm:$0xff]  ;;  %s1505_s27 = smul.u32 12, %s1859_s20  ;;  %s1138_s6 = sshll.u32 %s1859_s20, 3 }
   0xd   : > { %863 = vmatpush.bf16.msra.mxu2 %v1557_v1  ;;  %768 = vmatpush.bf16.msra.mxu1 %v1562_v2  ;;  %v1474_v6 = vld [vmem:[%s1855_s1 + $0x28] sm:$0xff]  ;;  %v1473_v11 = vld [vmem:[%s1855_s1 + $0x20] sm:$0xff]  ;;  %v1472_v13 = vld [vmem:[%s1855_s1 + $0x18] sm:$0xff]  ;;  %s1724_s9 = scalar_lea.vmem %s1857_s3, %s1138_s6 }
   0xe   : > { %s1587_s5 = scalar_lea.vmem %s1854_s0, %s1505_s27  ;;  %v1482_v7 = vld [vmem:[%s1855_s1 + $0x68] sm:$0xff]  ;;  %v1481_v12 = vld [vmem:[%s1855_s1 + $0x60] sm:$0xff]  ;;  %v1480_v14 = vld [vmem:[%s1855_s1 + $0x58] sm:$0xff] }
   0xf   : > { %v1149_v8 = vld [vmem:[%s1587_s5 + $0x8] sm:$0xf]  ;;  %v1423_v9 = vld [vmem:[%s1587_s5 + $0x10] sm:$0xf0]  ;;  %v1161_v17 = vld [vmem:[%s1587_s5 + $0x20] sm:$0xf] }
  0x10   : > { %680 = vmatpush.bf16.msra.mxu0 %v1475_v3  ;;  %1488 = vmatpush.bf16.msra.mxu3 %v1475_v3  ;;  %v1150_v10 = vor.u32 %v1423_v9, %v1149_v8  ;;  %v1471_v15 = vld [vmem:[%s1855_s1 + $0x10] sm:$0xff]  ;;  %v1426_v18 = vld [vmem:[%s1587_s5 + $0x28] sm:$0xf0]  ;;  %v1469_v22 = vld [vmem:[%s1855_s1] sm:$0xff] }
  0x11   : > { %864 = vmatpush.bf16.msra.mxu2 %v1572_v4  ;;  %769 = vmatpush.bf16.msra.mxu1 %v1483_v5  ;;  %v1479_v16 = vld [vmem:[%s1855_s1 + $0x50] sm:$0xff]  ;;  %v1470_v19 = vld [vmem:[%s1855_s1 + $0x8] sm:$0xff]  ;;  %v1162_v20 = vor.u32 %v1426_v18, %v1161_v17  ;;  %v1141_v23 = vld [vmem:[%s1587_s5] sm:$0xf] }
  0x12   : > { %v1478_v21 = vld [vmem:[%s1855_s1 + $0x48] sm:$0xff]  ;;  %v1285_v25 = vld [vmem:[%s1587_s5 + $0x120] sm:$0xf]  ;;  %v1421_v28 = vld [vmem:[%s1587_s5 + $0x4] sm:$0xf] }
  0x13   : > { %v1422_v24 = vld [vmem:[%s1587_s5 + $0x8] sm:$0xf0]  ;;  %v1477_v27 = vld [vmem:[%s1855_s1 + $0x40] sm:$0xff]  ;;  %v1143_v29 = vld [vmem:[%s1587_s5 + $0xc] sm:$0xf0] }
  0x14   : > { %681 = vmatpush.bf16.msra.mxu0 %v1474_v6  ;;  %1489 = vmatpush.bf16.msra.mxu3 %v1474_v6  ;;  %v1458_v26 = vld [vmem:[%s1587_s5 + $0x128] sm:$0xf0]  ;;  %v1142_v30 = vor.u32 %v1422_v24, %v1141_v23  ;;  %v1146_v32 = vor.u32 %v1421_v28, %v1143_v29  ;;  %v1173_v33 = vld [vmem:[%s1587_s5 + $0x38] sm:$0xf]  ;;  %v1429_v34 = vld [vmem:[%s1587_s5 + $0x40] sm:$0xf0] }
  0x15   : > { %1403 = vmatmul.msk.bf16.vlgmr.msra.gmra.mxu2 %vm630_vm0, %v1150_v10  ;;  %770 = vmatpush.bf16.msra.mxu1 %v1482_v7  ;;  %v1286_v31 = vor.u32 %v1458_v26, %v1285_v25  ;;  %v1174_v35 = vor.u32 %v1429_v34, %v1173_v33  ;;  %v1153_v36 = vld [vmem:[%s1587_s5 + $0x18] sm:$0xf]  ;;  %v1425_v37 = vld [vmem:[%s1587_s5 + $0x20] sm:$0xf0]  ;;  %v1424_v40 = vld [vmem:[%s1587_s5 + $0x1c] sm:$0xf] }
  0x16   : > { %v1297_v38 = vld [vmem:[%s1587_s5 + $0x138] sm:$0xf]  ;;  %v1461_v39 = vld [vmem:[%s1587_s5 + $0x140] sm:$0xf0]  ;;  %v1155_v41 = vld [vmem:[%s1587_s5 + $0x24] sm:$0xf0]  ;;  %v1154_v42 = vor.u32 %v1425_v37, %v1153_v36 }
  0x17   : > { %v1298_v43 = vor.u32 %v1461_v39, %v1297_v38  ;;  %v1158_v44 = vor.u32 %v1424_v40, %v1155_v41  ;;  %v1185_v45 = vld [vmem:[%s1587_s5 + $0x50] sm:$0xf]  ;;  %v1432_v46 = vld [vmem:[%s1587_s5 + $0x58] sm:$0xf0]  ;;  %v1427_v52 = vld [vmem:[%s1587_s5 + $0x34] sm:$0xf] }
  0x18   : > { %682 = vmatpush.bf16.msra.mxu0 %v1473_v11  ;;  %1490 = vmatpush.bf16.msra.mxu3 %v1473_v11  ;;  %v1186_v47 = vor.u32 %v1432_v46, %v1185_v45  ;;  %v1165_v48 = vld [vmem:[%s1587_s5 + $0x30] sm:$0xf]  ;;  %v1428_v49 = vld [vmem:[%s1587_s5 + $0x38] sm:$0xf0]  ;;  %v1167_v53 = vld [vmem:[%s1587_s5 + $0x3c] sm:$0xf0] }
  0x19   : > { %771 = vmatpush.bf16.msra.mxu1 %v1481_v12  ;;  %v1309_v50 = vld [vmem:[%s1587_s5 + $0x150] sm:$0xf]  ;;  %v1464_v51 = vld [vmem:[%s1587_s5 + $0x158] sm:$0xf0]  ;;  %v1166_v54 = vor.u32 %v1428_v49, %v1165_v48  ;;  %v1170_v56 = vor.u32 %v1427_v52, %v1167_v53  ;;  %v1197_v57 = vld [vmem:[%s1587_s5 + $0x68] sm:$0xf] }
  0x1a   : > { %v1310_v55 = vor.u32 %v1464_v51, %v1309_v50  ;;  %v1435_v58 = vld [vmem:[%s1587_s5 + $0x70] sm:$0xf0]  ;;  %v1177_v60 = vld [vmem:[%s1587_s5 + $0x48] sm:$0xf]  ;;  %v1430_v0 = vld [vmem:[%s1587_s5 + $0x4c] sm:$0xf] }
  0x1b   : > { %v1198_v59 = vor.u32 %v1435_v58, %v1197_v57  ;;  %v1431_v61 = vld [vmem:[%s1587_s5 + $0x50] sm:$0xf0]  ;;  %v1321_v62 = vld [vmem:[%s1587_s5 + $0x168] sm:$0xf]  ;;  %v1438_v6 = vld [vmem:[%s1587_s5 + $0x88] sm:$0xf0] }
  0x1c   : > { %683 = vmatpush.bf16.msra.mxu0 %v1472_v13  ;;  %1491 = vmatpush.bf16.msra.mxu3 %v1472_v13  ;;  %v1467_v63 = vld [vmem:[%s1587_s5 + $0x170] sm:$0xf0]  ;;  %v1189_v8 = vld [vmem:[%s1587_s5 + $0x60] sm:$0xf]  ;;  %v1434_v9 = vld [vmem:[%s1587_s5 + $0x68] sm:$0xf0] }
  0x1d   : > { %772 = vmatpush.bf16.msra.mxu1 %v1480_v14  ;;  %v1322_v3 = vor.u32 %v1467_v63, %v1321_v62  ;;  %v1457_v10 = vld [vmem:[%s1587_s5 + $0x124] sm:$0xf]  ;;  %v1287_v11 = vld [vmem:[%s1587_s5 + $0x12c] sm:$0xf0]  ;;  %v1221_v17 = vld [vmem:[%s1587_s5 + $0x98] sm:$0xf] }
  0x1e   : > { %v1191_v13 = vld [vmem:[%s1587_s5 + $0x6c] sm:$0xf0]  ;;  %v1441_v18 = vld [vmem:[%s1587_s5 + $0xa0] sm:$0xf0]  ;;  %v1299_v23 = vld [vmem:[%s1587_s5 + $0x144] sm:$0xf0] }
  0x1f   : > { %v1436_v24 = vld [vmem:[%s1587_s5 + $0x7c] sm:$0xf]  ;;  %v1203_v25 = vld [vmem:[%s1587_s5 + $0x84] sm:$0xf0]  ;;  %v1233_v29 = vld [vmem:[%s1587_s5 + $0xb0] sm:$0xf] }
  0x20   : > { %684 = vmatpush.bf16.msra.mxu0 %v1471_v15  ;;  %1492 = vmatpush.bf16.msra.mxu3 %v1471_v15  ;;  %v1290_v15 = vor.u32 %v1457_v10, %v1287_v11  ;;  %v1206_v28 = vor.u32 %v1436_v24, %v1203_v25  ;;  %v1440_v33 = vld [vmem:[%s1587_s5 + $0x98] sm:$0xf0]  ;;  %v1463_v34 = vld [vmem:[%s1587_s5 + $0x154] sm:$0xf]  ;;  %v1215_v37 = vld [vmem:[%s1587_s5 + $0x9c] sm:$0xf0] }
  0x21   : > { %773 = vmatpush.bf16.msra.mxu1 %v1479_v16  ;;  %v1439_v36 = vld [vmem:[%s1587_s5 + $0x94] sm:$0xf]  ;;  %v1245_v41 = vld [vmem:[%s1587_s5 + $0xc8] sm:$0xf]  ;;  %v1466_v46 = vld [vmem:[%s1587_s5 + $0x16c] sm:$0xf] }
  0x22   : > { %v1218_v40 = vor.u32 %v1439_v36, %v1215_v37  ;;  %v1443_v45 = vld [vmem:[%s1587_s5 + $0xb0] sm:$0xf0]  ;;  %v1442_v48 = vld [vmem:[%s1587_s5 + $0xac] sm:$0xf]  ;;  %v1227_v49 = vld [vmem:[%s1587_s5 + $0xb4] sm:$0xf0] }
  0x23   : > { %v1230_v53 = vor.u32 %v1442_v48, %v1227_v49  ;;  %v1237_v58 = vld [vmem:[%s1587_s5 + $0xc0] sm:$0xf]  ;;  %v1445_v63 = vld [vmem:[%s1587_s5 + $0xc4] sm:$0xf]  ;;  %v1269_v11 = vld [vmem:[%s1587_s5 + $0xf8] sm:$0xf] }
  0x24   : > { %685 = vmatpush.bf16.msra.mxu0 %v1470_v19  ;;  %1493 = vmatpush.bf16.msra.mxu3 %v1470_v19  ;;  %v1222_v19 = vor.u32 %v1441_v18, %v1221_v17  ;;  %v1710_v62 = vld [vmem:[%s1856_s2] ss:$0 sm:$0xff]  ;;  %v1468_v24 = vld [vmem:[%s1587_s5 + $0x178] sm:$0xf0] }
  0x25   : > { %1404 = vmatmul.msk.bf16.gmra.mxu2 %vm630_vm0, %v1162_v20  ;;  %774 = vmatpush.bf16.msra.mxu1 %v1478_v21  ;;  %v1201_v20 = vld [vmem:[%s1587_s5 + $0x78] sm:$0xf] }
  0x28   : > { %686 = vmatpush.bf16.msra.mxu0 %v1469_v22  ;;  %1494 = vmatpush.bf16.msra.mxu3 %v1469_v22  ;;  %v1460_v22 = vld [vmem:[%s1587_s5 + $0x13c] sm:$0xf] }
  0x29   : > { %775 = vmatpush.bf16.msra.mxu1 %v1477_v27 }
  0x2b   : > { %687 = vmatmul.bf16.vlgmr.msra.gmra.mxu0 %v1142_v30  ;;  %747 = vmatmul.bf16.vlgmr.msra.gmra.mxu3 %v1286_v31  ;;  %v1444_v30 = vld [vmem:[%s1587_s5 + $0xb8] sm:$0xf0] }
  0x2c   : > { %1495 = vmatpush.bf16.msrb.mxu3 %v1562_v2  ;;  %776 = vmatmul.bf16.vlgmr.msra.gmra.mxu1 %v1146_v32  ;;  %v1178_v2 = vor.u32 %v1431_v61, %v1177_v60  ;;  %v1234_v31 = vor.u32 %v1444_v30, %v1233_v29  ;;  %v1213_v32 = vld [vmem:[%s1587_s5 + $0x90] sm:$0xf]  ;;  %v1317_v60 = vld [vmem:[%s1587_s5 + $0x158] sm:$0xf]  ;;  %v1465_v61 = vld [vmem:[%s1587_s5 + $0x160] sm:$0xf0] }
  0x2d   : > { %v1214_v38 = vor.u32 %v1440_v33, %v1213_v32 }
  0x30   : > { %1496 = vmatpush.bf16.msrb.mxu3 %v1483_v5  ;;  %v1209_v5 = vld [vmem:[%s1587_s5 + $0x80] sm:$0xf] }
  0x34   : > { %1497 = vmatpush.bf16.msrb.mxu3 %v1482_v7  ;;  %v1210_v7 = vor.u32 %v1438_v6, %v1209_v5 }
  0x35   : > { %1405 = vmatmul.msk.bf16.gmra.mxu2 %vm630_vm0, %v1174_v35  ;;  %v1311_v35 = vld [vmem:[%s1587_s5 + $0x15c] sm:$0xf0] }
  0x36   : > { %v1314_v39 = vor.u32 %v1463_v34, %v1311_v35 }
  0x38   : > { %1498 = vmatpush.bf16.msrb.mxu3 %v1481_v12  ;;  %v1433_v12 = vld [vmem:[%s1587_s5 + $0x64] sm:$0xf] }
  0x3b   : > { %692 = vmatmul.bf16.gmra.mxu0 %v1154_v42  ;;  %752 = vmatmul.bf16.gmra.mxu3 %v1298_v43  ;;  %v1447_v42 = vld [vmem:[%s1587_s5 + $0xd0] sm:$0xf0] }
  0x3c   : > { %1499 = vmatpush.bf16.msrb.mxu3 %v1480_v14  ;;  %781 = vmatmul.bf16.gmra.mxu1 %v1158_v44  ;;  %v1190_v14 = vor.u32 %v1434_v9, %v1189_v8  ;;  %v1246_v43 = vor.u32 %v1447_v42, %v1245_v41  ;;  %v1225_v44 = vld [vmem:[%s1587_s5 + $0xa8] sm:$0xf]  ;;  %v1281_v41 = vld [vmem:[%s1587_s5 + $0x110] sm:$0xf]  ;;  %v1456_v42 = vld [vmem:[%s1587_s5 + $0x118] sm:$0xf0] }
  0x3d   : > { %v1226_v50 = vor.u32 %v1443_v45, %v1225_v44  ;;  %v1282_v49 = vor.u32 %v1456_v42, %v1281_v41 }
  0x40   : > { %1500 = vmatpush.bf16.msrb.mxu3 %v1479_v16  ;;  %v1194_v16 = vor.u32 %v1433_v12, %v1191_v13  ;;  %v1453_v12 = vld [vmem:[%s1587_s5 + $0x100] sm:$0xf0] }
  0x44   : > { %1501 = vmatpush.bf16.msrb.mxu3 %v1478_v21  ;;  %v1437_v21 = vld [vmem:[%s1587_s5 + $0x80] sm:$0xf0] }
  0x45   : > { %1406 = vmatmul.msk.bf16.gmra.mxu2 %vm630_vm0, %v1186_v47  ;;  %v1202_v26 = vor.u32 %v1437_v21, %v1201_v20  ;;  %v1323_v47 = vld [vmem:[%s1587_s5 + $0x174] sm:$0xf0] }
  0x46   : > { %v1326_v51 = vor.u32 %v1466_v46, %v1323_v47  ;;  %v1249_v21 = vld [vmem:[%s1587_s5 + $0xd8] sm:$0xf] }
  0x48   : > { %1502 = vmatpush.bf16.msrb.mxu3 %v1477_v27  ;;  %v1302_v27 = vor.u32 %v1460_v22, %v1299_v23  ;;  %v1449_v22 = vld [vmem:[%s1587_s5 + $0xe0] sm:$0xf0]  ;;  %v1329_v23 = vld [vmem:[%s1587_s5 + $0x170] sm:$0xf] }
  0x49   : > { %v1250_v30 = vor.u32 %v1449_v22, %v1249_v21 }
  0x4b   : > { %697 = vmatmul.bf16.gmra.mxu0 %v1166_v54  ;;  %757 = vmatmul.bf16.gmra.mxu3 %v1310_v55  ;;  %v1257_v54 = vld [vmem:[%s1587_s5 + $0xe0] sm:$0xf]  ;;  %v1450_v55 = vld [vmem:[%s1587_s5 + $0xe8] sm:$0xf0] }
  0x4c   : > { %1503 = vmatpush.bf16.msra.mxu3 %v1557_v1  ;;  %786 = vmatmul.bf16.gmra.mxu1 %v1170_v56  ;;  %v1179_v1 = vld [vmem:[%s1587_s5 + $0x54] sm:$0xf0]  ;;  %v1258_v57 = vor.u32 %v1450_v55, %v1257_v54  ;;  %v1451_v54 = vld [vmem:[%s1587_s5 + $0xf4] sm:$0xf]  ;;  %v1263_v55 = vld [vmem:[%s1587_s5 + $0xfc] sm:$0xf0] }
  0x50   : > { %1504 = vmatpush.bf16.msra.mxu3 %v1572_v4  ;;  %v1182_v4 = vor.u32 %v1430_v0, %v1179_v1  ;;  %v1239_v0 = vld [vmem:[%s1587_s5 + $0xcc] sm:$0xf0] }
  0x51   : > { %v1242_v5 = vor.u32 %v1445_v63, %v1239_v0 }
  0x55   : > { %1407 = vmatmul.msk.bf16.gmra.mxu2 %vm630_vm0, %v1198_v59  ;;  %v1446_v59 = vld [vmem:[%s1587_s5 + $0xc8] sm:$0xf0] }
  0x56   : > { %v1238_v1 = vor.u32 %v1446_v59, %v1237_v58 }
  0x5b   : > { %702 = vmatmul.bf16.gmra.mxu0 %v1178_v2  ;;  %762 = vmatmul.bf16.gmra.mxu3 %v1322_v3  ;;  %v1318_v2 = vor.u32 %v1465_v61, %v1317_v60  ;;  %v1266_v61 = vor.u32 %v1451_v54, %v1263_v55 }
  0x5c   : > { %791 = vmatmul.bf16.gmra.mxu1 %v1182_v4 }
  0x65   : > { %1408 = vmatmul.msk.bf16.gmra.mxu2 %vm630_vm0, %v1210_v7 }
  0x6b   : > { %707 = vmatmul.bf16.gmra.mxu0 %v1190_v14  ;;  %836 = vmatmul.bf16.vlgmr.msrb.gmra.mxu3 %v1290_v15 }
  0x6c   : > { %796 = vmatmul.bf16.gmra.mxu1 %v1194_v16 }
  0x75   : > { %1409 = vmatmul.msk.bf16.gmra.mxu2 %vm630_vm0, %v1222_v19  ;;  %v1270_v19 = vor.u32 %v1453_v12, %v1269_v11 }
  0x7b   : > { %712 = vmatmul.bf16.gmra.mxu0 %v1202_v26  ;;  %841 = vmatmul.bf16.gmra.mxu3 %v1302_v27  ;;  %v1448_v26 = vld [vmem:[%s1587_s5 + $0xdc] sm:$0xf]  ;;  %v1251_v27 = vld [vmem:[%s1587_s5 + $0xe4] sm:$0xf0] }
  0x7c   : > { %801 = vmatmul.bf16.gmra.mxu1 %v1206_v28  ;;  %v1254_v34 = vor.u32 %v1448_v26, %v1251_v27 }
  0x85   : > { %1410 = vmatmul.msk.bf16.gmra.mxu2 %vm630_vm0, %v1234_v31  ;;  %v1330_v31 = vor.u32 %v1468_v24, %v1329_v23 }
  0x8b   : > { %717 = vmatmul.bf16.gmra.mxu0 %v1214_v38  ;;  %846 = vmatmul.bf16.gmra.mxu3 %v1314_v39 }
  0x8c   : > { %806 = vmatmul.bf16.gmra.mxu1 %v1218_v40 }
  0x95   : > { %1411 = vmatmul.msk.bf16.gmra.mxu2 %vm630_vm0, %v1246_v43 }
  0x98   : > { %v866_v52 = vpop.f32.mrf.mxu2 }
  0x9b   : > { %722 = vmatmul.bf16.gmra.mxu0 %v1226_v50  ;;  %851 = vmatmul.bf16.gmra.mxu3 %v1326_v51  ;;  %v1261_v51 = vld [vmem:[%s1587_s5 + $0xf0] sm:$0xf] }
  0x9c   : > { %811 = vmatmul.bf16.gmra.mxu1 %v1230_v53 }
  0xa0   : > { %v868_v56 = vpop.f32.mrf.mxu2 }
  0xa5   : > { %1412 = vmatmul.msk.bf16.gmra.mxu2 %vm630_vm0, %v1258_v57 }
  0xa8   : > { %v871_v3 = vpop.f32.mrf.mxu2  ;;  %v688_v4 = vpop.f32.mrf.mxu0 }
  0xa9   : > { %v689_v6 = vadd.f32 %v1710_v62, %v688_v4  ;;  %v777_v7 = vpop.f32.mrf.mxu1 }
  0xab   : > { %v778_v8 = vadd.f32 %v777_v7, %v689_v6  ;;  %727 = vmatmul.bf16.gmra.mxu0 %v1238_v1  ;;  %1417 = vmatmul.msk.bf16.vlgmr.msra.gmra.mxu3 %vm630_vm0, %v1318_v2  ;;  %v1459_v6 = vld [vmem:[%s1587_s5 + $0x130] sm:$0xf0] }
  0xac   : > { %816 = vmatmul.bf16.gmra.mxu1 %v1242_v5  ;;  %v1293_v5 = vld [vmem:[%s1587_s5 + $0x128] sm:$0xf] }
  0xad   : > { %v867_v9 = vadd.f32 %v866_v52, %v778_v8  ;;  %v1452_v52 = vld [vmem:[%s1587_s5 + $0xf8] sm:$0xf0] }
  0xae   : > { %v1717_v10 = vpop.f32.mrf.mxu3  ;;  %v1262_v58 = vor.u32 %v1452_v52, %v1261_v51 }
  0xaf   : > { %vm946_vm1 = vcmp.ge.f32.partialorder %v867_v9, 0.0  ;;  %v978_v13 = vmul.f32 0.25, %v867_v9  ;;  %v749_v54 = vadd.f32 %v1710_v62, %v1717_v10 }
  0xb0   : > { %v873_v14 = vpop.f32.mrf.mxu2  ;;  %v690_v15 = vpop.f32.mrf.mxu0 }
  0xb1   : > { %v1010_v16 = vsel %vm946_vm1, %v867_v9, %v978_v13  ;;  %v691_v17 = vadd.f32 %v1710_v62, %v690_v15  ;;  %v779_v18 = vpop.f32.mrf.mxu1 }
  0xb2   : > { %1042 = vst [vmem:[%s1724_s9] sm:$0xff] %v1010_v16  ;;  %v1273_v16 = vld [vmem:[%s1587_s5 + $0x108] sm:$0xf] }
  0xb3   : > { %v780_v20 = vadd.f32 %v779_v18, %v691_v17  ;;  %v1455_v17 = vld [vmem:[%s1587_s5 + $0x110] sm:$0xf0] }
  0xb4   : > { %v1274_v23 = vor.u32 %v1455_v17, %v1273_v16 }
  0xb5   : > { %v869_v25 = vadd.f32 %v868_v56, %v780_v20  ;;  %1413 = vmatmul.msk.bf16.gmra.mxu2 %vm630_vm0, %v1270_v19  ;;  %v1454_v19 = vld [vmem:[%s1587_s5 + $0x10c] sm:$0xf]  ;;  %v1275_v20 = vld [vmem:[%s1587_s5 + $0x114] sm:$0xf0] }
  0xb6   : > { %v1735_v28 = vpop.f32.mrf.mxu3  ;;  %v1278_v26 = vor.u32 %v1454_v19, %v1275_v20 }
  0xb7   : > { %vm947_vm2 = vcmp.ge.f32.partialorder %v869_v25, 0.0  ;;  %v979_v29 = vmul.f32 0.25, %v869_v25 }
  0xb8   : > { %v876_v32 = vpop.f32.mrf.mxu2  ;;  %v693_v33 = vpop.f32.mrf.mxu0 }
  0xb9   : > { %v1011_v35 = vsel %vm947_vm2, %v869_v25, %v979_v29  ;;  %v694_v36 = vadd.f32 %v1710_v62, %v693_v33  ;;  %v782_v37 = vpop.f32.mrf.mxu1 }
  0xba   : > { %1043 = vst [vmem:[%s1724_s9 + $0x8] sm:$0xff] %v1011_v35  ;;  %v1462_v35 = vld [vmem:[%s1587_s5 + $0x148] sm:$0xf0] }
  0xbb   : > { %v783_v38 = vadd.f32 %v782_v37, %v694_v36  ;;  %732 = vmatmul.bf16.gmra.mxu0 %v1250_v30  ;;  %1418 = vmatmul.msk.bf16.gmra.mxu3 %vm630_vm0, %v1330_v31 }
  0xbc   : > { %821 = vmatmul.bf16.gmra.mxu1 %v1254_v34  ;;  %v1305_v34 = vld [vmem:[%s1587_s5 + $0x140] sm:$0xf] }
  0xbd   : > { %v872_v39 = vadd.f32 %v871_v3, %v783_v38 }
  0xbe   : > { %v1740_v40 = vpop.f32.mrf.mxu3 }
  0xbf   : > { %vm948_vm3 = vcmp.ge.f32.partialorder %v872_v39, 0.0  ;;  %v980_v43 = vmul.f32 0.25, %v872_v39 }
  0xc0   : > { %v878_v44 = vpop.f32.mrf.mxu2  ;;  %v695_v45 = vpop.f32.mrf.mxu0 }
  0xc1   : > { %v1012_v46 = vsel %vm948_vm3, %v872_v39, %v980_v43  ;;  %v696_v47 = vadd.f32 %v1710_v62, %v695_v45  ;;  %v784_v48 = vpop.f32.mrf.mxu1  ;;  %v1306_v43 = vor.u32 %v1462_v35, %v1305_v34 }
  0xc2   : > { %1044 = vst [vmem:[%s1724_s9 + $0x10] sm:$0xff] %v1012_v46 }
  0xc3   : > { %v785_v50 = vadd.f32 %v784_v48, %v696_v47 }
  0xc5   : > { %v874_v53 = vadd.f32 %v873_v14, %v785_v50  ;;  %1414 = vmatmul.msk.bf16.gmra.mxu2 %vm630_vm0, %v1282_v49  ;;  %v1294_v14 = vor.u32 %v1459_v6, %v1293_v5 }
  0xc6   : > { %v1751_v56 = vpop.f32.mrf.mxu3 }
  0xc7   : > { %vm949_vm4 = vcmp.ge.f32.partialorder %v874_v53, 0.0  ;;  %v981_v57 = vmul.f32 0.25, %v874_v53 }
  0xc8   : > { %v881_v59 = vpop.f32.mrf.mxu2  ;;  %v698_v60 = vpop.f32.mrf.mxu0 }
  0xc9   : > { %v1013_v63 = vsel %vm949_vm4, %v874_v53, %v981_v57  ;;  %v699_v0 = vadd.f32 %v1710_v62, %v698_v60  ;;  %v787_v1 = vpop.f32.mrf.mxu1 }
  0xca   : > { %1045 = vst [vmem:[%s1724_s9 + $0x18] sm:$0xff] %v1013_v63 }
  0xcb   : > { %v788_v2 = vadd.f32 %v787_v1, %v699_v0  ;;  %737 = vmatmul.bf16.gmra.mxu0 %v1262_v58 }
  0xcc   : > { %826 = vmatmul.bf16.gmra.mxu1 %v1266_v61 }
  0xcd   : > { %v877_v3 = vadd.f32 %v876_v32, %v788_v2 }
  0xce   : > { %v1755_v4 = vpop.f32.mrf.mxu3 }
  0xcf   : > { %vm950_vm5 = vcmp.ge.f32.partialorder %v877_v3, 0.0  ;;  %v982_v7 = vmul.f32 0.25, %v877_v3 }
  0xd0   : > { %v883_v8 = vpop.f32.mrf.mxu2  ;;  %v700_v9 = vpop.f32.mrf.mxu0 }
  0xd1   : > { %v1014_v11 = vsel %vm950_vm5, %v877_v3, %v982_v7  ;;  %v701_v12 = vadd.f32 %v1710_v62, %v700_v9  ;;  %v789_v13 = vpop.f32.mrf.mxu1  ;;  %v751_v3 = vadd.f32 %v1710_v62, %v1735_v28 }
  0xd2   : > { %1046 = vst [vmem:[%s1724_s9 + $0x20] sm:$0xff] %v1014_v11 }
  0xd3   : > { %v790_v15 = vadd.f32 %v789_v13, %v701_v12 }
  0xd5   : > { %v879_v18 = vadd.f32 %v878_v44, %v790_v15  ;;  %1415 = vmatmul.msk.bf16.gmra.mxu2 %vm630_vm0, %v1294_v14  ;;  %v754_v15 = vadd.f32 %v1710_v62, %v1740_v40 }
  0xd6   : > { %v1766_v21 = vpop.f32.mrf.mxu3 }
  0xd7   : > { %vm951_vm6 = vcmp.ge.f32.partialorder %v879_v18, 0.0  ;;  %v983_v22 = vmul.f32 0.25, %v879_v18 }
  0xd8   : > { %v886_v24 = vpop.f32.mrf.mxu2  ;;  %v703_v25 = vpop.f32.mrf.mxu0 }
  0xd9   : > { %v1015_v27 = vsel %vm951_vm6, %v879_v18, %v983_v22  ;;  %v704_v29 = vadd.f32 %v1710_v62, %v703_v25  ;;  %v792_v30 = vpop.f32.mrf.mxu1 }
  0xda   : > { %1047 = vst [vmem:[%s1724_s9 + $0x28] sm:$0xff] %v1015_v27 }
  0xdb   : > { %v793_v31 = vadd.f32 %v792_v30, %v704_v29  ;;  %742 = vmatmul.bf16.gmra.mxu0 %v1274_v23 }
  0xdc   : > { %831 = vmatmul.bf16.gmra.mxu1 %v1278_v26  ;;  %v756_v26 = vadd.f32 %v1710_v62, %v1751_v56 }
  0xdd   : > { %v882_v32 = vadd.f32 %v881_v59, %v793_v31 }
  0xde   : > { %v1770_v33 = vpop.f32.mrf.mxu3 }
  0xdf   : > { %vm952_vm7 = vcmp.ge.f32.partialorder %v882_v32, 0.0  ;;  %v984_v36 = vmul.f32 0.25, %v882_v32 }
  0xe0   : > { %v888_v37 = vpop.f32.mrf.mxu2  ;;  %v705_v38 = vpop.f32.mrf.mxu0 }
  0xe1   : > { %v1016_v39 = vsel %vm952_vm7, %v882_v32, %v984_v36  ;;  %v706_v41 = vadd.f32 %v1710_v62, %v705_v38  ;;  %v794_v42 = vpop.f32.mrf.mxu1 }
  0xe2   : > { %1048 = vst [vmem:[%s1724_s9 + $0x30] sm:$0xff] %v1016_v39 }
  0xe3   : > { %v795_v44 = vadd.f32 %v794_v42, %v706_v41 }
  0xe5   : > { %v884_v45 = vadd.f32 %v883_v8, %v795_v44  ;;  %1416 = vmatmul.msk.bf16.gmra.mxu2 %vm630_vm0, %v1306_v43 }
  0xe6   : > { %v1777_v46 = vpop.f32.mrf.mxu3 }
  0xe7   : > { %vm953_vm8 = vcmp.ge.f32.partialorder %v884_v45, 0.0  ;;  %v985_v47 = vmul.f32 0.25, %v884_v45 }
  0xe8   : > { %v891_v48 = vpop.f32.mrf.mxu2  ;;  %v708_v49 = vpop.f32.mrf.mxu0 }
  0xe9   : > { %v1017_v50 = vsel %vm953_vm8, %v884_v45, %v985_v47  ;;  %v709_v51 = vadd.f32 %v1710_v62, %v708_v49  ;;  %v797_v52 = vpop.f32.mrf.mxu1 }
  0xea   : > { %1049 = vst [vmem:[%s1724_s9 + $0x38] sm:$0xff] %v1017_v50 }
  0xeb   : > { %v798_v53 = vadd.f32 %v797_v52, %v709_v51 }
  0xed   : > { %v887_v55 = vadd.f32 %v886_v24, %v798_v53 }
  0xee   : > { %v837_v57 = vpop.f32.mrf.mxu3 }
  0xef   : > { %vm954_vm9 = vcmp.ge.f32.partialorder %v887_v55, 0.0  ;;  %v986_v58 = vmul.f32 0.25, %v887_v55  ;;  %v1783_v59 = vadd.f32 %v837_v57, %v749_v54 }
  0xf0   : > { %v893_v60 = vpop.f32.mrf.mxu2  ;;  %v710_v61 = vpop.f32.mrf.mxu0 }
  0xf1   : > { %v1018_v63 = vsel %vm954_vm9, %v887_v55, %v986_v58  ;;  %v711_v0 = vadd.f32 %v1710_v62, %v710_v61  ;;  %v799_v1 = vpop.f32.mrf.mxu1 }
  0xf2   : > { %1050 = vst [vmem:[%s1724_s9 + $0x40] sm:$0xff] %v1018_v63 }
  0xf3   : > { %v800_v2 = vadd.f32 %v799_v1, %v711_v0 }
  0xf5   : > { %v889_v5 = vadd.f32 %v888_v37, %v800_v2 }
  0xf6   : > { %v839_v10 = vpop.f32.mrf.mxu3 }
  0xf7   : > { %vm955_vm10 = vcmp.ge.f32.partialorder %v889_v5, 0.0  ;;  %v987_v6 = vmul.f32 0.25, %v889_v5  ;;  %v1789_v7 = vadd.f32 %v839_v10, %v751_v3 }
  0xf8   : > { %v896_v8 = vpop.f32.mrf.mxu2  ;;  %v713_v9 = vpop.f32.mrf.mxu0 }
  0xf9   : > { %v1019_v11 = vsel %vm955_vm10, %v889_v5, %v987_v6  ;;  %v714_v12 = vadd.f32 %v1710_v62, %v713_v9  ;;  %v802_v13 = vpop.f32.mrf.mxu1 }
  0xfa   : > { %1051 = vst [vmem:[%s1724_s9 + $0x48] sm:$0xff] %v1019_v11 }
  0xfb   : > { %v803_v14 = vadd.f32 %v802_v13, %v714_v12 }
  0xfd   : > { %v892_v16 = vadd.f32 %v891_v48, %v803_v14 }
  0xfe   : > { %v842_v28 = vpop.f32.mrf.mxu3 }
  0xff   : > { %vm956_vm11 = vcmp.ge.f32.partialorder %v892_v16, 0.0  ;;  %v988_v17 = vmul.f32 0.25, %v892_v16  ;;  %v1795_v18 = vadd.f32 %v842_v28, %v754_v15  ;;  %v759_v15 = vadd.f32 %v1710_v62, %v1755_v4 }
 0x100   : > { %v898_v19 = vpop.f32.mrf.mxu2  ;;  %v715_v20 = vpop.f32.mrf.mxu0  ;;  %v761_v4 = vadd.f32 %v1710_v62, %v1766_v21  ;;  %v764_v21 = vadd.f32 %v1710_v62, %v1770_v33  ;;  %v766_v33 = vadd.f32 %v1710_v62, %v1777_v46 }
 0x101   : > { %v1020_v22 = vsel %vm956_vm11, %v892_v16, %v988_v17  ;;  %v716_v23 = vadd.f32 %v1710_v62, %v715_v20  ;;  %v804_v24 = vpop.f32.mrf.mxu1 }
 0x102   : > { %1052 = vst [vmem:[%s1724_s9 + $0x50] sm:$0xff] %v1020_v22 }
 0x103   : > { %v805_v25 = vadd.f32 %v804_v24, %v716_v23 }
 0x105   : > { %v894_v27 = vadd.f32 %v893_v60, %v805_v25 }
 0x106   : > { %v844_v40 = vpop.f32.mrf.mxu3 }
 0x107   : > { %vm957_vm12 = vcmp.ge.f32.partialorder %v894_v27, 0.0  ;;  %v989_v29 = vmul.f32 0.25, %v894_v27  ;;  %v1801_v30 = vadd.f32 %v844_v40, %v756_v26 }
 0x108   : > { %v901_v31 = vpop.f32.mrf.mxu2  ;;  %v718_v32 = vpop.f32.mrf.mxu0 }
 0x109   : > { %v1021_v34 = vsel %vm957_vm12, %v894_v27, %v989_v29  ;;  %v719_v35 = vadd.f32 %v1710_v62, %v718_v32  ;;  %v807_v36 = vpop.f32.mrf.mxu1 }
 0x10a   : > { %1053 = vst [vmem:[%s1724_s9 + $0x58] sm:$0xff] %v1021_v34 }
 0x10b   : > { %v808_v37 = vadd.f32 %v807_v36, %v719_v35 }
 0x10d   : > { %v897_v38 = vadd.f32 %v896_v8, %v808_v37 }
 0x10e   : > { %v847_v39 = vpop.f32.mrf.mxu3 }
 0x10f   : > { %vm958_vm13 = vcmp.ge.f32.partialorder %v897_v38, 0.0  ;;  %v990_v41 = vmul.f32 0.25, %v897_v38  ;;  %v848_v28 = vadd.f32 %v847_v39, %v759_v15 }
 0x110   : > { %v903_v56 = vpop.f32.mrf.mxu2  ;;  %v720_v42 = vpop.f32.mrf.mxu0 }
 0x111   : > { %v1022_v43 = vsel %vm958_vm13, %v897_v38, %v990_v41  ;;  %v721_v44 = vadd.f32 %v1710_v62, %v720_v42  ;;  %v809_v45 = vpop.f32.mrf.mxu1 }
 0x112   : > { %1054 = vst [vmem:[%s1724_s9 + $0x60] sm:$0xff] %v1022_v43 }
 0x113   : > { %v810_v47 = vadd.f32 %v809_v45, %v721_v44 }
 0x115   : > { %v899_v48 = vadd.f32 %v898_v19, %v810_v47 }
 0x116   : > { %v849_v49 = vpop.f32.mrf.mxu3 }
 0x117   : > { %vm959_vm14 = vcmp.ge.f32.partialorder %v899_v48, 0.0  ;;  %v991_v50 = vmul.f32 0.25, %v899_v48  ;;  %v850_v32 = vadd.f32 %v849_v49, %v761_v4 }
 0x118   : > { %v906_v51 = vpop.f32.mrf.mxu2  ;;  %v723_v52 = vpop.f32.mrf.mxu0 }
 0x119   : > { %v1023_v53 = vsel %vm959_vm14, %v899_v48, %v991_v50  ;;  %v724_v54 = vadd.f32 %v1710_v62, %v723_v52  ;;  %v812_v55 = vpop.f32.mrf.mxu1 }
 0x11a   : > { %1055 = vst [vmem:[%s1724_s9 + $0x68] sm:$0xff] %v1023_v53 }
 0x11b   : > { %v813_v57 = vadd.f32 %v812_v55, %v724_v54 }
 0x11d   : > { %v902_v58 = vadd.f32 %v901_v31, %v813_v57 }
 0x11e   : > { %v852_v60 = vpop.f32.mrf.mxu3 }
 0x11f   : > { %vm960_vm15 = vcmp.ge.f32.partialorder %v902_v58, 0.0  ;;  %v992_v61 = vmul.f32 0.25, %v902_v58  ;;  %v853_v47 = vadd.f32 %v852_v60, %v764_v21 }
 0x120   : > { %v908_v63 = vpop.f32.mrf.mxu2  ;;  %v725_v0 = vpop.f32.mrf.mxu0 }
 0x121   : > { %v1024_v1 = vsel %vm960_vm15, %v902_v58, %v992_v61  ;;  %v726_v2 = vadd.f32 %v1710_v62, %v725_v0  ;;  %v814_v3 = vpop.f32.mrf.mxu1 }
 0x122   : > { %1056 = vst [vmem:[%s1724_s9 + $0x70] sm:$0xff] %v1024_v1 }
 0x123   : > { %v815_v5 = vadd.f32 %v814_v3, %v726_v2 }
 0x125   : > { %v904_v10 = vadd.f32 %v903_v56, %v815_v5 }
 0x126   : > { %v1811_v6 = vpop.f32.mrf.mxu3 }
 0x127   : > { %vm961_vm0 = vcmp.ge.f32.partialorder %v904_v10, 0.0  ;;  %v993_v8 = vmul.f32 0.25, %v904_v10 }
 0x128   : > { %v911_v9 = vpop.f32.mrf.mxu2  ;;  %v728_v11 = vpop.f32.mrf.mxu0 }
 0x129   : > { %v1025_v12 = vsel %vm961_vm0, %v904_v10, %v993_v8  ;;  %v729_v13 = vadd.f32 %v1710_v62, %v728_v11  ;;  %v817_v14 = vpop.f32.mrf.mxu1 }
 0x12a   : > { %1057 = vst [vmem:[%s1724_s9 + $0x78] sm:$0xff] %v1025_v12 }
 0x12b   : > { %v818_v16 = vadd.f32 %v817_v14, %v729_v13 }
 0x12d   : > { %v907_v17 = vadd.f32 %v906_v51, %v818_v16 }
 0x12e   : > { %v936_v19 = vpop.f32.mrf.mxu3 }
 0x12f   : > { %vm962_vm1 = vcmp.ge.f32.partialorder %v907_v17, 0.0  ;;  %v994_v20 = vmul.f32 0.25, %v907_v17  ;;  %v937_v22 = vadd.f32 %v936_v19, %v848_v28 }
 0x130   : > { %v913_v23 = vpop.f32.mrf.mxu2  ;;  %v730_v24 = vpop.f32.mrf.mxu0 }
 0x131   : > { %v1026_v25 = vsel %vm962_vm1, %v907_v17, %v994_v20  ;;  %vm974_vm2 = vcmp.ge.f32.partialorder %v937_v22, 0.0  ;;  %v1006_v26 = vmul.f32 0.25, %v937_v22  ;;  %v731_v27 = vadd.f32 %v1710_v62, %v730_v24  ;;  %v819_v40 = vpop.f32.mrf.mxu1 }
 0x132   : > { %1058 = vst [vmem:[%s1724_s9 + $0x80] sm:$0xff] %v1026_v25 }
 0x133   : > { %v1038_v29 = vsel %vm974_vm2, %v937_v22, %v1006_v26  ;;  %v820_v31 = vadd.f32 %v819_v40, %v731_v27 }
 0x134   : > { %1070 = vst [vmem:[%s1724_s9 + $0xe0] sm:$0xff] %v1038_v29 }
 0x135   : > { %v909_v34 = vadd.f32 %v908_v63, %v820_v31  ;;  %v855_v63 = vadd.f32 %v1811_v6, %v766_v33 }
 0x136   : > { %v938_v35 = vpop.f32.mrf.mxu3 }
 0x137   : > { %vm963_vm3 = vcmp.ge.f32.partialorder %v909_v34, 0.0  ;;  %v995_v36 = vmul.f32 0.25, %v909_v34  ;;  %v939_v37 = vadd.f32 %v938_v35, %v850_v32 }
 0x138   : > { %v916_v38 = vpop.f32.mrf.mxu2  ;;  %v733_v39 = vpop.f32.mrf.mxu0 }
 0x139   : > { %v1027_v41 = vsel %vm963_vm3, %v909_v34, %v995_v36  ;;  %vm975_vm4 = vcmp.ge.f32.partialorder %v939_v37, 0.0  ;;  %v1007_v56 = vmul.f32 0.25, %v939_v37  ;;  %v734_v42 = vadd.f32 %v1710_v62, %v733_v39  ;;  %v822_v43 = vpop.f32.mrf.mxu1 }
 0x13a   : > { %1059 = vst [vmem:[%s1724_s9 + $0x88] sm:$0xff] %v1027_v41 }
 0x13b   : > { %v1039_v44 = vsel %vm975_vm4, %v939_v37, %v1007_v56  ;;  %v823_v45 = vadd.f32 %v822_v43, %v734_v42 }
 0x13c   : > { %1071 = vst [vmem:[%s1724_s9 + $0xe8] sm:$0xff] %v1039_v44 }
 0x13d   : > { %v912_v48 = vadd.f32 %v911_v9, %v823_v45 }
 0x13e   : > { %v941_v49 = vpop.f32.mrf.mxu3 }
 0x13f   : > { %vm964_vm5 = vcmp.ge.f32.partialorder %v912_v48, 0.0  ;;  %v996_v50 = vmul.f32 0.25, %v912_v48  ;;  %v942_v51 = vadd.f32 %v941_v49, %v853_v47 }
 0x140   : > { %v918_v52 = vpop.f32.mrf.mxu2  ;;  %v735_v53 = vpop.f32.mrf.mxu0 }
 0x141   : > { %v1028_v54 = vsel %vm964_vm5, %v912_v48, %v996_v50  ;;  %vm976_vm6 = vcmp.ge.f32.partialorder %v942_v51, 0.0  ;;  %v1008_v55 = vmul.f32 0.25, %v942_v51  ;;  %v736_v57 = vadd.f32 %v1710_v62, %v735_v53  ;;  %v824_v58 = vpop.f32.mrf.mxu1 }
 0x142   : > { %1060 = vst [vmem:[%s1724_s9 + $0x90] sm:$0xff] %v1028_v54 }
 0x143   : > { %v1040_v61 = vsel %vm976_vm6, %v942_v51, %v1008_v55  ;;  %v825_v60 = vadd.f32 %v824_v58, %v736_v57 }
 0x144   : > { %1072 = vst [vmem:[%s1724_s9 + $0xf0] sm:$0xff] %v1040_v61 }
 0x145   : > { %v914_v0 = vadd.f32 %v913_v23, %v825_v60 }
 0x146   : > { %v943_v1 = vpop.f32.mrf.mxu3 }
 0x147   : > { %vm965_vm7 = vcmp.ge.f32.partialorder %v914_v0, 0.0  ;;  %v997_v2 = vmul.f32 0.25, %v914_v0  ;;  %v944_v3 = vadd.f32 %v943_v1, %v855_v63 }
 0x148   : > { %v921_v5 = vpop.f32.mrf.mxu2  ;;  %v738_v10 = vpop.f32.mrf.mxu0 }
 0x149   : > { %v1029_v8 = vsel %vm965_vm7, %v914_v0, %v997_v2  ;;  %vm977_vm8 = vcmp.ge.f32.partialorder %v944_v3, 0.0  ;;  %v1009_v9 = vmul.f32 0.25, %v944_v3  ;;  %v739_v46 = vadd.f32 %v1710_v62, %v738_v10  ;;  %v827_v11 = vpop.f32.mrf.mxu1 }
 0x14a   : > { %1061 = vst [vmem:[%s1724_s9 + $0x98] sm:$0xff] %v1029_v8 }
 0x14b   : > { %v1041_v12 = vsel %vm977_vm8, %v944_v3, %v1009_v9  ;;  %v828_v13 = vadd.f32 %v827_v11, %v739_v46 }
 0x14c   : > { %1073 = vst [vmem:[%s1724_s9 + $0xf8] sm:$0xff] %v1041_v12 }
 0x14d   : > { %v917_v6 = vadd.f32 %v916_v38, %v828_v13 }
 0x14f   : > { %vm966_vm9 = vcmp.ge.f32.partialorder %v917_v6, 0.0  ;;  %v998_v14 = vmul.f32 0.25, %v917_v6 }
 0x150   : > { %v923_v15 = vpop.f32.mrf.mxu2  ;;  %v740_v16 = vpop.f32.mrf.mxu0 }
 0x151   : > { %v1030_v28 = vsel %vm966_vm9, %v917_v6, %v998_v14  ;;  %v741_v17 = vadd.f32 %v1710_v62, %v740_v16  ;;  %v829_v19 = vpop.f32.mrf.mxu1 }
 0x152   : > { %1062 = vst [vmem:[%s1724_s9 + $0xa0] sm:$0xff] %v1030_v28 }
 0x153   : > { %v830_v20 = vadd.f32 %v829_v19, %v741_v17 }
 0x155   : > { %v919_v22 = vadd.f32 %v918_v52, %v830_v20 }
 0x157   : > { %vm967_vm10 = vcmp.ge.f32.partialorder %v919_v22, 0.0  ;;  %v999_v23 = vmul.f32 0.25, %v919_v22 }
 0x158   : > { %v926_v24 = vpop.f32.mrf.mxu2  ;;  %v743_v25 = vpop.f32.mrf.mxu0 }
 0x159   : > { %v1031_v26 = vsel %vm967_vm10, %v919_v22, %v999_v23  ;;  %v927_v27 = vadd.f32 %v926_v24, %v1783_v59  ;;  %v744_v40 = vadd.f32 %v1710_v62, %v743_v25  ;;  %v832_v4 = vpop.f32.mrf.mxu1 }
 0x15a   : > { %1063 = vst [vmem:[%s1724_s9 + $0xa8] sm:$0xff] %v1031_v26 }
 0x15b   : > { %vm970_vm11 = vcmp.ge.f32.partialorder %v927_v27, 0.0  ;;  %v1002_v29 = vmul.f32 0.25, %v927_v27  ;;  %v833_v31 = vadd.f32 %v832_v4, %v744_v40 }
 0x15d   : > { %v1034_v32 = vsel %vm970_vm11, %v927_v27, %v1002_v29  ;;  %v922_v34 = vadd.f32 %v921_v5, %v833_v31 }
 0x15e   : > { %1066 = vst [vmem:[%s1724_s9 + $0xc0] sm:$0xff] %v1034_v32 }
 0x15f   : > { %vm968_vm12 = vcmp.ge.f32.partialorder %v922_v34, 0.0  ;;  %v1000_v35 = vmul.f32 0.25, %v922_v34 }
 0x160   : > { %v928_v36 = vpop.f32.mrf.mxu2  ;;  %v745_v37 = vpop.f32.mrf.mxu0 }
 0x161   : > { %v1032_v38 = vsel %vm968_vm12, %v922_v34, %v1000_v35  ;;  %v929_v59 = vadd.f32 %v928_v36, %v1789_v7  ;;  %v746_v39 = vadd.f32 %v1710_v62, %v745_v37  ;;  %v834_v41 = vpop.f32.mrf.mxu1 }
 0x162   : > { %1064 = vst [vmem:[%s1724_s9 + $0xb0] sm:$0xff] %v1032_v38 }
 0x163   : > { %vm971_vm13 = vcmp.ge.f32.partialorder %v929_v59, 0.0  ;;  %v1003_v56 = vmul.f32 0.25, %v929_v59  ;;  %v835_v42 = vadd.f32 %v834_v41, %v746_v39 }
 0x165   : > { %v1035_v43 = vsel %vm971_vm13, %v929_v59, %v1003_v56  ;;  %v924_v21 = vadd.f32 %v923_v15, %v835_v42 }
 0x166   : > { %1067 = vst [vmem:[%s1724_s9 + $0xc8] sm:$0xff] %v1035_v43 }
 0x167   : > { %vm969_vm14 = vcmp.ge.f32.partialorder %v924_v21, 0.0  ;;  %v1001_v44 = vmul.f32 0.25, %v924_v21 }
 0x168   : > { %v931_v45 = vpop.f32.mrf.mxu2 }
 0x169   : > { %v1033_v47 = vsel %vm969_vm14, %v924_v21, %v1001_v44  ;;  %v932_v48 = vadd.f32 %v931_v45, %v1795_v18 }
 0x16a   : > { %1065 = vst [vmem:[%s1724_s9 + $0xb8] sm:$0xff] %v1033_v47 }
 0x16b   : > { %vm972_vm15 = vcmp.ge.f32.partialorder %v932_v48, 0.0  ;;  %v1004_v7 = vmul.f32 0.25, %v932_v48 }
 0x16d   : > { %v1036_v62 = vsel %vm972_vm15, %v932_v48, %v1004_v7 }
 0x16e   : > { %1068 = vst [vmem:[%s1724_s9 + $0xd0] sm:$0xff] %v1036_v62 }
 0x170   : > { %v933_v49 = vpop.f32.mrf.mxu2 }
 0x171   : > { %v934_v50 = vadd.f32 %v933_v49, %v1801_v30 }
 0x173   : > { %vm973_vm0 = vcmp.ge.f32.partialorder %v934_v50, 0.0  ;;  %v1005_v51 = vmul.f32 0.25, %v934_v50 }
 0x175   : > { %v1037_v52 = vsel %vm973_vm0, %v934_v50, %v1005_v51 }
 0x176   : > { %1069 = vst [vmem:[%s1724_s9 + $0xd8] sm:$0xff] %v1037_v52 }
 0x177 PF: > { %s13_s12 = sadd.s32 1, %s1521_s12  }
 0x178   : > { %p10_p4 = scmp.ge.s32.totalorder %s13_s12, 4  }
 0x17a   :  { %12 = sbr.rel (!%p10_p4) target bundleno = 1 (0x1), region = 62 }

// kernel: generator_forward.16
= control target key start
LH: loop header
LB: loop body
LE: loop exit
PB: predicated region body
PF: predicated region fallthrough
CT: control target
= control target key end

     0   :  { %s4474_s12 = smov 0   ;;  %s5508_s0 = inlined_call_operand.vmem [shape: bf16[2048,288], index: 0, kind: input, shape index: {}]   ;;  %s5509_s1 = inlined_call_operand.vmem [shape: bf16[288,128], index: 1, kind: input, shape index: {}]   ;;  %s5510_s2 = inlined_call_operand.vmem [shape: f32[1,128], index: 2, kind: input, shape index: {}]   ;;  %s5511_s3 = inlined_call_operand.vmem [shape: f32[2048,128], index: 3, kind: output, shape index: {}]  }
   0x1 LB: > { %s3290_s13 = sadd.s32 4294967295, %s4452_s12   ;;  %p3294_p0 = scmp.ge.s32.totalorder %s4452_s12, 1  ;;  %s4452_s12 = sphi %s4474_s12, %s13_s12  }
   0x2   : > { %p139_p1 = scmp.lt.s32.totalorder %s4452_s12, 3 }
   0x4   : > { %p140_p2 = pnand %p3294_p0, %p139_p1 }
   0x5   : > { %s3295_s20 = sshll.u32 (!%p140_p2), %s3290_s13, 7 }
   0x6   : > { %143 = sbr.rel (%p140_p2) target bundleno = 951 (0x3b7), region = 32  ;;  %p165_p3 = scmp.lt.s32.totalorder (!%p140_p2), %s3295_s20, 255 }
   0xb   : > { %v4404_v0 = vld [vmem:[%s5509_s1 + $0x38] sm:$0xff]  ;;  %v4488_v1 = vld [vmem:[%s5509_s1 + $0x88] sm:$0xff]  ;;  %v4403_v3 = vld [vmem:[%s5509_s1 + $0x30] sm:$0xff]  ;;  %s5513_s20 = smov (!%p165_p3, %s3295_s20), 255  ;;  %vm1542_vm0 = vcmask 261120  }
   0xc   : > { %v4493_v2 = vld [vmem:[%s5509_s1 + $0x78] sm:$0xff]  ;;  %1735 = vmatpush.bf16.msra.mxu0 %v4404_v0  ;;  %4415 = vmatpush.bf16.msra.mxu3 %v4404_v0  ;;  %v4503_v4 = vld [vmem:[%s5509_s1 + $0x80] sm:$0xff]  ;;  %v4411_v5 = vld [vmem:[%s5509_s1 + $0x70] sm:$0xff]  ;;  %s4433_s27 = smul.u32 12, %s5513_s20  ;;  %s3298_s6 = sshll.u32 %s5513_s20, 3 }
   0xd   : > { %2399 = vmatpush.bf16.msra.mxu2 %v4488_v1  ;;  %2064 = vmatpush.bf16.msra.mxu1 %v4493_v2  ;;  %v4402_v6 = vld [vmem:[%s5509_s1 + $0x28] sm:$0xff]  ;;  %v4401_v11 = vld [vmem:[%s5509_s1 + $0x20] sm:$0xff]  ;;  %v4400_v13 = vld [vmem:[%s5509_s1 + $0x18] sm:$0xff]  ;;  %s4654_s9 = scalar_lea.vmem %s5511_s3, %s3298_s6 }
   0xe   : > { %s4518_s5 = scalar_lea.vmem %s5508_s0, %s4433_s27  ;;  %v4410_v7 = vld [vmem:[%s5509_s1 + $0x68] sm:$0xff]  ;;  %v4409_v12 = vld [vmem:[%s5509_s1 + $0x60] sm:$0xff]  ;;  %v4408_v14 = vld [vmem:[%s5509_s1 + $0x58] sm:$0xff] }
   0xf   : > { %v3309_v8 = vld [vmem:[%s4518_s5 + $0x8] sm:$0xf]  ;;  %v4207_v9 = vld [vmem:[%s4518_s5 + $0x10] sm:$0xf0]  ;;  %v3321_v17 = vld [vmem:[%s4518_s5 + $0x20] sm:$0xf] }
  0x10   : > { %1736 = vmatpush.bf16.msra.mxu0 %v4403_v3  ;;  %4416 = vmatpush.bf16.msra.mxu3 %v4403_v3  ;;  %v3310_v10 = vor.u32 %v4207_v9, %v3309_v8  ;;  %v4399_v15 = vld [vmem:[%s5509_s1 + $0x10] sm:$0xff]  ;;  %v4210_v18 = vld [vmem:[%s4518_s5 + $0x28] sm:$0xf0]  ;;  %v4397_v22 = vld [vmem:[%s5509_s1] sm:$0xff] }
  0x11   : > { %2400 = vmatpush.bf16.msra.mxu2 %v4503_v4  ;;  %2065 = vmatpush.bf16.msra.mxu1 %v4411_v5  ;;  %v4407_v16 = vld [vmem:[%s5509_s1 + $0x50] sm:$0xff]  ;;  %v4398_v19 = vld [vmem:[%s5509_s1 + $0x8] sm:$0xff]  ;;  %v3322_v20 = vor.u32 %v4210_v18, %v3321_v17  ;;  %v3301_v23 = vld [vmem:[%s4518_s5] sm:$0xf] }
  0x12   : > { %v4406_v21 = vld [vmem:[%s5509_s1 + $0x48] sm:$0xff]  ;;  %v3877_v25 = vld [vmem:[%s4518_s5 + $0x480] sm:$0xf]  ;;  %v4205_v28 = vld [vmem:[%s4518_s5 + $0x4] sm:$0xf] }
  0x13   : > { %v4206_v24 = vld [vmem:[%s4518_s5 + $0x8] sm:$0xf0]  ;;  %v4405_v27 = vld [vmem:[%s5509_s1 + $0x40] sm:$0xff]  ;;  %v3303_v29 = vld [vmem:[%s4518_s5 + $0xc] sm:$0xf0] }
  0x14   : > { %1737 = vmatpush.bf16.msra.mxu0 %v4402_v6  ;;  %4417 = vmatpush.bf16.msra.mxu3 %v4402_v6  ;;  %v4350_v26 = vld [vmem:[%s4518_s5 + $0x488] sm:$0xf0]  ;;  %v3302_v30 = vor.u32 %v4206_v24, %v3301_v23  ;;  %v3306_v32 = vor.u32 %v4205_v28, %v3303_v29  ;;  %v3333_v33 = vld [vmem:[%s4518_s5 + $0x38] sm:$0xf]  ;;  %v4213_v34 = vld [vmem:[%s4518_s5 + $0x40] sm:$0xf0] }
  0x15   : > { %4139 = vmatmul.msk.bf16.vlgmr.msra.gmra.mxu2 %vm1542_vm0, %v3310_v10  ;;  %2066 = vmatpush.bf16.msra.mxu1 %v4410_v7  ;;  %v3878_v31 = vor.u32 %v4350_v26, %v3877_v25  ;;  %v3334_v35 = vor.u32 %v4213_v34, %v3333_v33  ;;  %v3313_v36 = vld [vmem:[%s4518_s5 + $0x18] sm:$0xf]  ;;  %v4209_v37 = vld [vmem:[%s4518_s5 + $0x20] sm:$0xf0]  ;;  %v4208_v40 = vld [vmem:[%s4518_s5 + $0x1c] sm:$0xf] }
  0x16   : > { %v3889_v38 = vld [vmem:[%s4518_s5 + $0x498] sm:$0xf]  ;;  %v4353_v39 = vld [vmem:[%s4518_s5 + $0x4a0] sm:$0xf0]  ;;  %v3315_v41 = vld [vmem:[%s4518_s5 + $0x24] sm:$0xf0]  ;;  %v3314_v42 = vor.u32 %v4209_v37, %v3313_v36 }
  0x17   : > { %v3890_v43 = vor.u32 %v4353_v39, %v3889_v38  ;;  %v3318_v44 = vor.u32 %v4208_v40, %v3315_v41  ;;  %v3345_v45 = vld [vmem:[%s4518_s5 + $0x50] sm:$0xf]  ;;  %v4216_v46 = vld [vmem:[%s4518_s5 + $0x58] sm:$0xf0]  ;;  %v4211_v52 = vld [vmem:[%s4518_s5 + $0x34] sm:$0xf] }
  0x18   : > { %1738 = vmatpush.bf16.msra.mxu0 %v4401_v11  ;;  %4418 = vmatpush.bf16.msra.mxu3 %v4401_v11  ;;  %v3346_v47 = vor.u32 %v4216_v46, %v3345_v45  ;;  %v3325_v48 = vld [vmem:[%s4518_s5 + $0x30] sm:$0xf]  ;;  %v4212_v49 = vld [vmem:[%s4518_s5 + $0x38] sm:$0xf0]  ;;  %v3327_v53 = vld [vmem:[%s4518_s5 + $0x3c] sm:$0xf0] }
  0x19   : > { %2067 = vmatpush.bf16.msra.mxu1 %v4409_v12  ;;  %v3901_v50 = vld [vmem:[%s4518_s5 + $0x4b0] sm:$0xf]  ;;  %v4356_v51 = vld [vmem:[%s4518_s5 + $0x4b8] sm:$0xf0]  ;;  %v3326_v54 = vor.u32 %v4212_v49, %v3325_v48  ;;  %v3330_v56 = vor.u32 %v4211_v52, %v3327_v53  ;;  %v3357_v57 = vld [vmem:[%s4518_s5 + $0x68] sm:$0xf] }
  0x1a   : > { %v3902_v55 = vor.u32 %v4356_v51, %v3901_v50  ;;  %v4219_v58 = vld [vmem:[%s4518_s5 + $0x70] sm:$0xf0]  ;;  %v3337_v60 = vld [vmem:[%s4518_s5 + $0x48] sm:$0xf]  ;;  %v4214_v0 = vld [vmem:[%s4518_s5 + $0x4c] sm:$0xf] }
  0x1b   : > { %v3358_v59 = vor.u32 %v4219_v58, %v3357_v57  ;;  %v4215_v61 = vld [vmem:[%s4518_s5 + $0x50] sm:$0xf0]  ;;  %v3913_v62 = vld [vmem:[%s4518_s5 + $0x4c8] sm:$0xf]  ;;  %v4222_v6 = vld [vmem:[%s4518_s5 + $0x88] sm:$0xf0] }
  0x1c   : > { %1739 = vmatpush.bf16.msra.mxu0 %v4400_v13  ;;  %4419 = vmatpush.bf16.msra.mxu3 %v4400_v13  ;;  %v4359_v63 = vld [vmem:[%s4518_s5 + $0x4d0] sm:$0xf0]  ;;  %v3349_v8 = vld [vmem:[%s4518_s5 + $0x60] sm:$0xf]  ;;  %v4218_v9 = vld [vmem:[%s4518_s5 + $0x68] sm:$0xf0] }
  0x1d   : > { %2068 = vmatpush.bf16.msra.mxu1 %v4408_v14  ;;  %v3914_v3 = vor.u32 %v4359_v63, %v3913_v62  ;;  %v3925_v10 = vld [vmem:[%s4518_s5 + $0x4e0] sm:$0xf]  ;;  %v4362_v11 = vld [vmem:[%s4518_s5 + $0x4e8] sm:$0xf0]  ;;  %v3351_v13 = vld [vmem:[%s4518_s5 + $0x6c] sm:$0xf0] }
  0x1e   : > { %v3381_v17 = vld [vmem:[%s4518_s5 + $0x98] sm:$0xf]  ;;  %v4225_v18 = vld [vmem:[%s4518_s5 + $0xa0] sm:$0xf0]  ;;  %v4220_v24 = vld [vmem:[%s4518_s5 + $0x7c] sm:$0xf] }
  0x1f   : > { %v4365_v23 = vld [vmem:[%s4518_s5 + $0x500] sm:$0xf0]  ;;  %v3363_v25 = vld [vmem:[%s4518_s5 + $0x84] sm:$0xf0]  ;;  %v3393_v29 = vld [vmem:[%s4518_s5 + $0xb0] sm:$0xf] }
  0x20   : > { %1740 = vmatpush.bf16.msra.mxu0 %v4399_v15  ;;  %4420 = vmatpush.bf16.msra.mxu3 %v4399_v15  ;;  %v3926_v15 = vor.u32 %v4362_v11, %v3925_v10  ;;  %v3366_v28 = vor.u32 %v4220_v24, %v3363_v25  ;;  %v4224_v33 = vld [vmem:[%s4518_s5 + $0x98] sm:$0xf0]  ;;  %v3949_v34 = vld [vmem:[%s4518_s5 + $0x510] sm:$0xf]  ;;  %v4223_v36 = vld [vmem:[%s4518_s5 + $0x94] sm:$0xf] }
  0x21   : > { %2069 = vmatpush.bf16.msra.mxu1 %v4407_v16  ;;  %v3375_v37 = vld [vmem:[%s4518_s5 + $0x9c] sm:$0xf0]  ;;  %v3405_v41 = vld [vmem:[%s4518_s5 + $0xc8] sm:$0xf]  ;;  %v4227_v45 = vld [vmem:[%s4518_s5 + $0xb0] sm:$0xf0] }
  0x22   : > { %v3378_v40 = vor.u32 %v4223_v36, %v3375_v37  ;;  %v3961_v46 = vld [vmem:[%s4518_s5 + $0x528] sm:$0xf]  ;;  %v4226_v48 = vld [vmem:[%s4518_s5 + $0xac] sm:$0xf]  ;;  %v3387_v49 = vld [vmem:[%s4518_s5 + $0xb4] sm:$0xf0] }
  0x23   : > { %v3390_v53 = vor.u32 %v4226_v48, %v3387_v49  ;;  %v3397_v58 = vld [vmem:[%s4518_s5 + $0xc0] sm:$0xf]  ;;  %v4229_v63 = vld [vmem:[%s4518_s5 + $0xc4] sm:$0xf]  ;;  %v3429_v11 = vld [vmem:[%s4518_s5 + $0xf8] sm:$0xf] }
  0x24   : > { %1741 = vmatpush.bf16.msra.mxu0 %v4398_v19  ;;  %4421 = vmatpush.bf16.msra.mxu3 %v4398_v19  ;;  %v3382_v19 = vor.u32 %v4225_v18, %v3381_v17  ;;  %v4641_v62 = vld [vmem:[%s5510_s2] ss:$0 sm:$0xff]  ;;  %v4377_v24 = vld [vmem:[%s4518_s5 + $0x560] sm:$0xf0] }
  0x25   : > { %4140 = vmatmul.msk.bf16.gmra.mxu2 %vm1542_vm0, %v3322_v20  ;;  %2070 = vmatpush.bf16.msra.mxu1 %v4406_v21  ;;  %v3361_v20 = vld [vmem:[%s4518_s5 + $0x78] sm:$0xf] }
  0x28   : > { %1742 = vmatpush.bf16.msra.mxu0 %v4397_v22  ;;  %4422 = vmatpush.bf16.msra.mxu3 %v4397_v22  ;;  %v3937_v22 = vld [vmem:[%s4518_s5 + $0x4f8] sm:$0xf] }
  0x29   : > { %2071 = vmatpush.bf16.msra.mxu1 %v4405_v27 }
  0x2b   : > { %1743 = vmatmul.bf16.vlgmr.msra.gmra.mxu0 %v3302_v30  ;;  %1983 = vmatmul.bf16.vlgmr.msra.gmra.mxu3 %v3878_v31  ;;  %v4228_v30 = vld [vmem:[%s4518_s5 + $0xb8] sm:$0xf0] }
  0x2c   : > { %4423 = vmatpush.bf16.msrb.mxu3 %v4493_v2  ;;  %2072 = vmatmul.bf16.vlgmr.msra.gmra.mxu1 %v3306_v32  ;;  %v3338_v2 = vor.u32 %v4215_v61, %v3337_v60  ;;  %v3394_v31 = vor.u32 %v4228_v30, %v3393_v29  ;;  %v3373_v32 = vld [vmem:[%s4518_s5 + $0x90] sm:$0xf]  ;;  %v3973_v60 = vld [vmem:[%s4518_s5 + $0x540] sm:$0xf]  ;;  %v4374_v61 = vld [vmem:[%s4518_s5 + $0x548] sm:$0xf0] }
  0x2d   : > { %v3374_v38 = vor.u32 %v4224_v33, %v3373_v32 }
  0x30   : > { %4424 = vmatpush.bf16.msrb.mxu3 %v4411_v5  ;;  %v3369_v5 = vld [vmem:[%s4518_s5 + $0x80] sm:$0xf] }
  0x34   : > { %4425 = vmatpush.bf16.msrb.mxu3 %v4410_v7  ;;  %v3370_v7 = vor.u32 %v4222_v6, %v3369_v5 }
  0x35   : > { %4141 = vmatmul.msk.bf16.gmra.mxu2 %vm1542_vm0, %v3334_v35  ;;  %v4368_v35 = vld [vmem:[%s4518_s5 + $0x518] sm:$0xf0] }
  0x36   : > { %v3950_v39 = vor.u32 %v4368_v35, %v3949_v34 }
  0x38   : > { %4426 = vmatpush.bf16.msrb.mxu3 %v4409_v12  ;;  %v4217_v12 = vld [vmem:[%s4518_s5 + $0x64] sm:$0xf] }
  0x3b   : > { %1748 = vmatmul.bf16.gmra.mxu0 %v3314_v42  ;;  %1988 = vmatmul.bf16.gmra.mxu3 %v3890_v43  ;;  %v4231_v42 = vld [vmem:[%s4518_s5 + $0xd0] sm:$0xf0] }
  0x3c   : > { %4427 = vmatpush.bf16.msrb.mxu3 %v4408_v14  ;;  %2077 = vmatmul.bf16.gmra.mxu1 %v3318_v44  ;;  %v3350_v14 = vor.u32 %v4218_v9, %v3349_v8  ;;  %v3406_v43 = vor.u32 %v4231_v42, %v3405_v41  ;;  %v3385_v44 = vld [vmem:[%s4518_s5 + $0xa8] sm:$0xf]  ;;  %v3441_v41 = vld [vmem:[%s4518_s5 + $0x110] sm:$0xf]  ;;  %v4240_v42 = vld [vmem:[%s4518_s5 + $0x118] sm:$0xf0] }
  0x3d   : > { %v3386_v50 = vor.u32 %v4227_v45, %v3385_v44  ;;  %v3442_v49 = vor.u32 %v4240_v42, %v3441_v41  ;;  %v3465_v41 = vld [vmem:[%s4518_s5 + $0x140] sm:$0xf]  ;;  %v4246_v42 = vld [vmem:[%s4518_s5 + $0x148] sm:$0xf0] }
  0x40   : > { %4428 = vmatpush.bf16.msrb.mxu3 %v4407_v16  ;;  %v3354_v16 = vor.u32 %v4217_v12, %v3351_v13  ;;  %v4237_v12 = vld [vmem:[%s4518_s5 + $0x100] sm:$0xf0] }
  0x44   : > { %4429 = vmatpush.bf16.msrb.mxu3 %v4406_v21  ;;  %v4221_v21 = vld [vmem:[%s4518_s5 + $0x80] sm:$0xf0] }
  0x45   : > { %4142 = vmatmul.msk.bf16.gmra.mxu2 %vm1542_vm0, %v3346_v47  ;;  %v3362_v26 = vor.u32 %v4221_v21, %v3361_v20  ;;  %v4371_v47 = vld [vmem:[%s4518_s5 + $0x530] sm:$0xf0]  ;;  %v3409_v21 = vld [vmem:[%s4518_s5 + $0xd8] sm:$0xf] }
  0x46   : > { %v3962_v51 = vor.u32 %v4371_v47, %v3961_v46 }
  0x48   : > { %4430 = vmatpush.bf16.msrb.mxu3 %v4405_v27  ;;  %v3938_v27 = vor.u32 %v4365_v23, %v3937_v22  ;;  %v4233_v22 = vld [vmem:[%s4518_s5 + $0xe0] sm:$0xf0]  ;;  %v3985_v23 = vld [vmem:[%s4518_s5 + $0x558] sm:$0xf] }
  0x49   : > { %v3410_v30 = vor.u32 %v4233_v22, %v3409_v21  ;;  %v4009_v21 = vld [vmem:[%s4518_s5 + $0x588] sm:$0xf]  ;;  %v4383_v22 = vld [vmem:[%s4518_s5 + $0x590] sm:$0xf0] }
  0x4b   : > { %1753 = vmatmul.bf16.gmra.mxu0 %v3326_v54  ;;  %1993 = vmatmul.bf16.gmra.mxu3 %v3902_v55  ;;  %v3417_v54 = vld [vmem:[%s4518_s5 + $0xe0] sm:$0xf]  ;;  %v4234_v55 = vld [vmem:[%s4518_s5 + $0xe8] sm:$0xf0] }
  0x4c   : > { %4431 = vmatpush.bf16.msra.mxu3 %v4488_v1  ;;  %2082 = vmatmul.bf16.gmra.mxu1 %v3330_v56  ;;  %v3339_v1 = vld [vmem:[%s4518_s5 + $0x54] sm:$0xf0]  ;;  %v3418_v57 = vor.u32 %v4234_v55, %v3417_v54  ;;  %v4380_v54 = vld [vmem:[%s4518_s5 + $0x578] sm:$0xf0] }
  0x50   : > { %4432 = vmatpush.bf16.msra.mxu3 %v4503_v4  ;;  %v3342_v4 = vor.u32 %v4214_v0, %v3339_v1  ;;  %v3399_v0 = vld [vmem:[%s4518_s5 + $0xcc] sm:$0xf0] }
  0x51   : > { %v3402_v5 = vor.u32 %v4229_v63, %v3399_v0 }
  0x55   : > { %4143 = vmatmul.msk.bf16.gmra.mxu2 %vm1542_vm0, %v3358_v59  ;;  %v4230_v59 = vld [vmem:[%s4518_s5 + $0xc8] sm:$0xf0] }
  0x56   : > { %v3398_v1 = vor.u32 %v4230_v59, %v3397_v58 }
  0x5b   : > { %1758 = vmatmul.bf16.gmra.mxu0 %v3338_v2  ;;  %1998 = vmatmul.bf16.gmra.mxu3 %v3914_v3  ;;  %v3974_v2 = vor.u32 %v4374_v61, %v3973_v60 }
  0x5c   : > { %2087 = vmatmul.bf16.gmra.mxu1 %v3342_v4 }
  0x65   : > { %4144 = vmatmul.msk.bf16.gmra.mxu2 %vm1542_vm0, %v3370_v7 }
  0x6b   : > { %1763 = vmatmul.bf16.gmra.mxu0 %v3350_v14  ;;  %2003 = vmatmul.bf16.gmra.mxu3 %v3926_v15 }
  0x6c   : > { %2092 = vmatmul.bf16.gmra.mxu1 %v3354_v16 }
  0x75   : > { %4145 = vmatmul.msk.bf16.gmra.mxu2 %vm1542_vm0, %v3382_v19  ;;  %v3430_v19 = vor.u32 %v4237_v12, %v3429_v11 }
  0x7b   : > { %1768 = vmatmul.bf16.gmra.mxu0 %v3362_v26  ;;  %2008 = vmatmul.bf16.gmra.mxu3 %v3938_v27  ;;  %v4232_v26 = vld [vmem:[%s4518_s5 + $0xdc] sm:$0xf]  ;;  %v3411_v27 = vld [vmem:[%s4518_s5 + $0xe4] sm:$0xf0] }
  0x7c   : > { %2097 = vmatmul.bf16.gmra.mxu1 %v3366_v28  ;;  %v3414_v34 = vor.u32 %v4232_v26, %v3411_v27 }
  0x85   : > { %4146 = vmatmul.msk.bf16.gmra.mxu2 %vm1542_vm0, %v3394_v31  ;;  %v3986_v31 = vor.u32 %v4377_v24, %v3985_v23  ;;  %v4238_v24 = vld [vmem:[%s4518_s5 + $0x10c] sm:$0xf] }
  0x8b   : > { %1773 = vmatmul.bf16.gmra.mxu0 %v3374_v38  ;;  %2013 = vmatmul.bf16.gmra.mxu3 %v3950_v39 }
  0x8c   : > { %2102 = vmatmul.bf16.gmra.mxu1 %v3378_v40 }
  0x95   : > { %4147 = vmatmul.msk.bf16.gmra.mxu2 %vm1542_vm0, %v3406_v43 }
  0x98   : > { %v2402_v52 = vpop.f32.mrf.mxu2 }
  0x9b   : > { %1778 = vmatmul.bf16.gmra.mxu0 %v3386_v50  ;;  %2018 = vmatmul.bf16.gmra.mxu3 %v3962_v51  ;;  %v3421_v51 = vld [vmem:[%s4518_s5 + $0xf0] sm:$0xf] }
  0x9c   : > { %2107 = vmatmul.bf16.gmra.mxu1 %v3390_v53  ;;  %v3997_v53 = vld [vmem:[%s4518_s5 + $0x570] sm:$0xf] }
  0x9d   : > { %v3998_v61 = vor.u32 %v4380_v54, %v3997_v53  ;;  %v4021_v53 = vld [vmem:[%s4518_s5 + $0x5a0] sm:$0xf]  ;;  %v4386_v54 = vld [vmem:[%s4518_s5 + $0x5a8] sm:$0xf0] }
  0xa0   : > { %v2404_v56 = vpop.f32.mrf.mxu2 }
  0xa5   : > { %4148 = vmatmul.msk.bf16.gmra.mxu2 %vm1542_vm0, %v3418_v57  ;;  %v3423_v57 = vld [vmem:[%s4518_s5 + $0xfc] sm:$0xf0] }
  0xa8   : > { %v2407_v3 = vpop.f32.mrf.mxu2  ;;  %v1744_v4 = vpop.f32.mrf.mxu0 }
  0xa9   : > { %v1745_v6 = vadd.f32 %v4641_v62, %v1744_v4  ;;  %v2073_v7 = vpop.f32.mrf.mxu1 }
  0xab   : > { %v2074_v8 = vadd.f32 %v2073_v7, %v1745_v6  ;;  %1783 = vmatmul.bf16.gmra.mxu0 %v3398_v1  ;;  %2023 = vmatmul.bf16.gmra.mxu3 %v3974_v2 }
  0xac   : > { %2112 = vmatmul.bf16.gmra.mxu1 %v3402_v5 }
  0xad   : > { %v2403_v9 = vadd.f32 %v2402_v52, %v2074_v8  ;;  %v4236_v52 = vld [vmem:[%s4518_s5 + $0xf8] sm:$0xf0]  ;;  %v3453_v8 = vld [vmem:[%s4518_s5 + $0x128] sm:$0xf] }
  0xae   : > { %v4647_v10 = vpop.f32.mrf.mxu3  ;;  %v3422_v60 = vor.u32 %v4236_v52, %v3421_v51  ;;  %v3445_v51 = vld [vmem:[%s4518_s5 + $0x120] sm:$0xf]  ;;  %v4242_v52 = vld [vmem:[%s4518_s5 + $0x128] sm:$0xf0] }
  0xaf   : > { %vm2722_vm1 = vcmp.ge.f32.partialorder %v2403_v9, 0.0  ;;  %v2850_v13 = vmul.f32 0.25, %v2403_v9 }
  0xb0   : > { %v2409_v14 = vpop.f32.mrf.mxu2  ;;  %v1746_v15 = vpop.f32.mrf.mxu0 }
  0xb1   : > { %v2978_v16 = vsel %vm2722_vm1, %v2403_v9, %v2850_v13  ;;  %v1747_v17 = vadd.f32 %v4641_v62, %v1746_v15  ;;  %v2075_v18 = vpop.f32.mrf.mxu1  ;;  %v4243_v9 = vld [vmem:[%s4518_s5 + $0x130] sm:$0xf0] }
  0xb2   : > { %3106 = vst [vmem:[%s4654_s9] sm:$0xff] %v2978_v16 }
  0xb3   : > { %v2076_v20 = vadd.f32 %v2075_v18, %v1747_v17  ;;  %v3454_v17 = vor.u32 %v4243_v9, %v3453_v8 }
  0xb5   : > { %v2405_v25 = vadd.f32 %v2404_v56, %v2076_v20  ;;  %4149 = vmatmul.msk.bf16.gmra.mxu2 %vm1542_vm0, %v3430_v19  ;;  %v4235_v56 = vld [vmem:[%s4518_s5 + $0xf4] sm:$0xf]  ;;  %v3433_v19 = vld [vmem:[%s4518_s5 + $0x108] sm:$0xf] }
  0xb6   : > { %v4665_v28 = vpop.f32.mrf.mxu3  ;;  %v3426_v1 = vor.u32 %v4235_v56, %v3423_v57  ;;  %v4239_v20 = vld [vmem:[%s4518_s5 + $0x110] sm:$0xf0]  ;;  %v4241_v56 = vld [vmem:[%s4518_s5 + $0x124] sm:$0xf]  ;;  %v3447_v57 = vld [vmem:[%s4518_s5 + $0x12c] sm:$0xf0] }
  0xb7   : > { %vm2723_vm2 = vcmp.ge.f32.partialorder %v2405_v25, 0.0  ;;  %v2851_v29 = vmul.f32 0.25, %v2405_v25 }
  0xb8   : > { %v2412_v32 = vpop.f32.mrf.mxu2  ;;  %v1749_v33 = vpop.f32.mrf.mxu0 }
  0xb9   : > { %v2979_v35 = vsel %vm2723_vm2, %v2405_v25, %v2851_v29  ;;  %v1750_v36 = vadd.f32 %v4641_v62, %v1749_v33  ;;  %v2078_v37 = vpop.f32.mrf.mxu1  ;;  %v3435_v25 = vld [vmem:[%s4518_s5 + $0x114] sm:$0xf0]  ;;  %v3434_v29 = vor.u32 %v4239_v20, %v3433_v19 }
  0xba   : > { %3107 = vst [vmem:[%s4654_s9 + $0x8] sm:$0xff] %v2979_v35  ;;  %v3438_v33 = vor.u32 %v4238_v24, %v3435_v25  ;;  %v4389_v24 = vld [vmem:[%s4518_s5 + $0x5c0] sm:$0xf0] }
  0xbb   : > { %v2079_v38 = vadd.f32 %v2078_v37, %v1750_v36  ;;  %1788 = vmatmul.bf16.gmra.mxu0 %v3410_v30  ;;  %2028 = vmatmul.bf16.gmra.mxu3 %v3986_v31  ;;  %v4010_v30 = vor.u32 %v4383_v22, %v4009_v21  ;;  %v3457_v21 = vld [vmem:[%s4518_s5 + $0x138] sm:$0xf]  ;;  %v4245_v22 = vld [vmem:[%s4518_s5 + $0x140] sm:$0xf0] }
  0xbc   : > { %2117 = vmatmul.bf16.gmra.mxu1 %v3414_v34 }
  0xbd   : > { %v2408_v39 = vadd.f32 %v2407_v3, %v2079_v38 }
  0xbe   : > { %v4669_v40 = vpop.f32.mrf.mxu3 }
  0xbf   : > { %vm2724_vm3 = vcmp.ge.f32.partialorder %v2408_v39, 0.0  ;;  %v2852_v43 = vmul.f32 0.25, %v2408_v39 }
  0xc0   : > { %v2414_v44 = vpop.f32.mrf.mxu2  ;;  %v1751_v45 = vpop.f32.mrf.mxu0 }
  0xc1   : > { %v2980_v46 = vsel %vm2724_vm3, %v2408_v39, %v2852_v43  ;;  %v1752_v47 = vadd.f32 %v4641_v62, %v1751_v45  ;;  %v2080_v48 = vpop.f32.mrf.mxu1 }
  0xc2   : > { %3108 = vst [vmem:[%s4654_s9 + $0x10] sm:$0xff] %v2980_v46 }
  0xc3   : > { %v2081_v50 = vadd.f32 %v2080_v48, %v1752_v47 }
  0xc5   : > { %v2410_v55 = vadd.f32 %v2409_v14, %v2081_v50  ;;  %4150 = vmatmul.msk.bf16.gmra.mxu2 %vm1542_vm0, %v3442_v49  ;;  %v3466_v49 = vor.u32 %v4246_v42, %v3465_v41 }
  0xc6   : > { %v4682_v58 = vpop.f32.mrf.mxu3 }
  0xc7   : > { %vm2725_vm4 = vcmp.ge.f32.partialorder %v2410_v55, 0.0  ;;  %v2853_v59 = vmul.f32 0.25, %v2410_v55 }
  0xc8   : > { %v2417_v63 = vpop.f32.mrf.mxu2  ;;  %v1754_v0 = vpop.f32.mrf.mxu0 }
  0xc9   : > { %v2981_v2 = vsel %vm2725_vm4, %v2410_v55, %v2853_v59  ;;  %v1755_v3 = vadd.f32 %v4641_v62, %v1754_v0  ;;  %v2083_v4 = vpop.f32.mrf.mxu1 }
  0xca   : > { %3109 = vst [vmem:[%s4654_s9 + $0x18] sm:$0xff] %v2981_v2  ;;  %v3450_v2 = vor.u32 %v4241_v56, %v3447_v57  ;;  %v4248_v56 = vld [vmem:[%s4518_s5 + $0x158] sm:$0xf0]  ;;  %v4045_v57 = vld [vmem:[%s4518_s5 + $0x5d0] sm:$0xf] }
  0xcb   : > { %v2084_v5 = vadd.f32 %v2083_v4, %v1755_v3  ;;  %1793 = vmatmul.bf16.gmra.mxu0 %v3422_v60  ;;  %2033 = vmatmul.bf16.gmra.mxu3 %v3998_v61  ;;  %v3446_v61 = vor.u32 %v4242_v52, %v3445_v51 }
  0xcc   : > { %2122 = vmatmul.bf16.gmra.mxu1 %v3426_v1 }
  0xcd   : > { %v2413_v6 = vadd.f32 %v2412_v32, %v2084_v5 }
  0xce   : > { %v4686_v7 = vpop.f32.mrf.mxu3 }
  0xcf   : > { %vm2726_vm5 = vcmp.ge.f32.partialorder %v2413_v6, 0.0  ;;  %v2854_v11 = vmul.f32 0.25, %v2413_v6 }
  0xd0   : > { %v2419_v12 = vpop.f32.mrf.mxu2  ;;  %v1756_v13 = vpop.f32.mrf.mxu0 }
  0xd1   : > { %v2982_v14 = vsel %vm2726_vm5, %v2413_v6, %v2854_v11  ;;  %v1757_v15 = vadd.f32 %v4641_v62, %v1756_v13  ;;  %v2085_v16 = vpop.f32.mrf.mxu1  ;;  %v3477_v11 = vld [vmem:[%s4518_s5 + $0x158] sm:$0xf] }
  0xd2   : > { %3110 = vst [vmem:[%s4654_s9 + $0x20] sm:$0xff] %v2982_v14 }
  0xd3   : > { %v2086_v18 = vadd.f32 %v2085_v16, %v1757_v15 }
  0xd5   : > { %v2415_v23 = vadd.f32 %v2414_v44, %v2086_v18  ;;  %4151 = vmatmul.msk.bf16.gmra.mxu2 %vm1542_vm0, %v3454_v17 }
  0xd6   : > { %v4699_v26 = vpop.f32.mrf.mxu3 }
  0xd7   : > { %vm2727_vm6 = vcmp.ge.f32.partialorder %v2415_v23, 0.0  ;;  %v2855_v27 = vmul.f32 0.25, %v2415_v23 }
  0xd8   : > { %v2422_v31 = vpop.f32.mrf.mxu2  ;;  %v1759_v32 = vpop.f32.mrf.mxu0 }
  0xd9   : > { %v2983_v34 = vsel %vm2727_vm6, %v2415_v23, %v2855_v27  ;;  %v1760_v35 = vadd.f32 %v4641_v62, %v1759_v32  ;;  %v2088_v36 = vpop.f32.mrf.mxu1  ;;  %v4033_v23 = vld [vmem:[%s4518_s5 + $0x5b8] sm:$0xf]  ;;  %v4244_v27 = vld [vmem:[%s4518_s5 + $0x13c] sm:$0xf]  ;;  %v3458_v32 = vor.u32 %v4245_v22, %v3457_v21 }
  0xda   : > { %3111 = vst [vmem:[%s4654_s9 + $0x28] sm:$0xff] %v2983_v34 }
  0xdb   : > { %v2089_v37 = vadd.f32 %v2088_v36, %v1760_v35  ;;  %1798 = vmatmul.bf16.gmra.mxu0 %v3434_v29  ;;  %2038 = vmatmul.bf16.gmra.mxu3 %v4010_v30  ;;  %v3459_v29 = vld [vmem:[%s4518_s5 + $0x144] sm:$0xf0] }
  0xdc   : > { %2127 = vmatmul.bf16.gmra.mxu1 %v3438_v33  ;;  %v4034_v33 = vor.u32 %v4389_v24, %v4033_v23  ;;  %v3462_v36 = vor.u32 %v4244_v27, %v3459_v29  ;;  %v3481_v29 = vld [vmem:[%s4518_s5 + $0x168] sm:$0xf] }
  0xdd   : > { %v2418_v38 = vadd.f32 %v2417_v63, %v2089_v37  ;;  %v4022_v63 = vor.u32 %v4386_v54, %v4021_v53 }
  0xde   : > { %v4703_v39 = vpop.f32.mrf.mxu3 }
  0xdf   : > { %vm2728_vm7 = vcmp.ge.f32.partialorder %v2418_v38, 0.0  ;;  %v2856_v43 = vmul.f32 0.25, %v2418_v38 }
  0xe0   : > { %v2424_v44 = vpop.f32.mrf.mxu2  ;;  %v1761_v45 = vpop.f32.mrf.mxu0 }
  0xe1   : > { %v2984_v46 = vsel %vm2728_vm7, %v2418_v38, %v2856_v43  ;;  %v1762_v47 = vadd.f32 %v4641_v62, %v1761_v45  ;;  %v2090_v48 = vpop.f32.mrf.mxu1  ;;  %v3489_v45 = vld [vmem:[%s4518_s5 + $0x170] sm:$0xf] }
  0xe2   : > { %3112 = vst [vmem:[%s4654_s9 + $0x30] sm:$0xff] %v2984_v46  ;;  %v4252_v46 = vld [vmem:[%s4518_s5 + $0x178] sm:$0xf0] }
  0xe3   : > { %v2091_v50 = vadd.f32 %v2090_v48, %v1762_v47  ;;  %v3490_v53 = vor.u32 %v4252_v46, %v3489_v45 }
  0xe5   : > { %v2420_v55 = vadd.f32 %v2419_v12, %v2091_v50  ;;  %4152 = vmatmul.msk.bf16.gmra.mxu2 %vm1542_vm0, %v3466_v49  ;;  %v4249_v12 = vld [vmem:[%s4518_s5 + $0x160] sm:$0xf0] }
  0xe6   : > { %v4716_v59 = vpop.f32.mrf.mxu3  ;;  %v3478_v19 = vor.u32 %v4249_v12, %v3477_v11 }
  0xe7   : > { %vm2729_vm8 = vcmp.ge.f32.partialorder %v2420_v55, 0.0  ;;  %v2857_v60 = vmul.f32 0.25, %v2420_v55 }
  0xe8   : > { %v2427_v0 = vpop.f32.mrf.mxu2  ;;  %v1764_v1 = vpop.f32.mrf.mxu0 }
  0xe9   : > { %v2985_v3 = vsel %vm2729_vm8, %v2420_v55, %v2857_v60  ;;  %v1765_v4 = vadd.f32 %v4641_v62, %v1764_v1  ;;  %v2093_v5 = vpop.f32.mrf.mxu1  ;;  %v3469_v55 = vld [vmem:[%s4518_s5 + $0x150] sm:$0xf]  ;;  %v4392_v60 = vld [vmem:[%s4518_s5 + $0x5d8] sm:$0xf0] }
  0xea   : > { %3113 = vst [vmem:[%s4654_s9 + $0x38] sm:$0xff] %v2985_v3  ;;  %v3470_v3 = vor.u32 %v4248_v56, %v3469_v55 }
  0xeb   : > { %v2094_v6 = vadd.f32 %v2093_v5, %v1765_v4  ;;  %1803 = vmatmul.bf16.gmra.mxu0 %v3446_v61  ;;  %2043 = vmatmul.bf16.gmra.mxu3 %v4022_v63  ;;  %v4247_v63 = vld [vmem:[%s4518_s5 + $0x154] sm:$0xf]  ;;  %v4046_v4 = vor.u32 %v4392_v60, %v4045_v57 }
  0xec   : > { %2132 = vmatmul.bf16.gmra.mxu1 %v3450_v2 }
  0xed   : > { %v2423_v8 = vadd.f32 %v2422_v31, %v2094_v6 }
  0xee   : > { %v4720_v9 = vpop.f32.mrf.mxu3 }
  0xef   : > { %vm2730_vm9 = vcmp.ge.f32.partialorder %v2423_v8, 0.0  ;;  %v2858_v13 = vmul.f32 0.25, %v2423_v8 }
  0xf0   : > { %v2429_v14 = vpop.f32.mrf.mxu2  ;;  %v1766_v15 = vpop.f32.mrf.mxu0 }
  0xf1   : > { %v2986_v16 = vsel %vm2730_vm9, %v2423_v8, %v2858_v13  ;;  %v1767_v17 = vadd.f32 %v4641_v62, %v1766_v15  ;;  %v2095_v18 = vpop.f32.mrf.mxu1 }
  0xf2   : > { %3114 = vst [vmem:[%s4654_s9 + $0x40] sm:$0xff] %v2986_v16 }
  0xf3   : > { %v2096_v20 = vadd.f32 %v2095_v18, %v1767_v17  ;;  %v3501_v17 = vld [vmem:[%s4518_s5 + $0x188] sm:$0xf]  ;;  %v4255_v18 = vld [vmem:[%s4518_s5 + $0x190] sm:$0xf0] }
  0xf5   : > { %v2425_v25 = vadd.f32 %v2424_v44, %v2096_v20  ;;  %4153 = vmatmul.msk.bf16.gmra.mxu2 %vm1542_vm0, %v3478_v19 }
  0xf6   : > { %v4733_v30 = vpop.f32.mrf.mxu3 }
  0xf7   : > { %vm2731_vm10 = vcmp.ge.f32.partialorder %v2425_v25, 0.0  ;;  %v2859_v31 = vmul.f32 0.25, %v2425_v25 }
  0xf8   : > { %v2432_v34 = vpop.f32.mrf.mxu2  ;;  %v1769_v35 = vpop.f32.mrf.mxu0 }
  0xf9   : > { %v2987_v37 = vsel %vm2731_vm10, %v2425_v25, %v2859_v31  ;;  %v1770_v38 = vadd.f32 %v4641_v62, %v1769_v35  ;;  %v2098_v41 = vpop.f32.mrf.mxu1  ;;  %v3502_v25 = vor.u32 %v4255_v18, %v3501_v17  ;;  %v4251_v31 = vld [vmem:[%s4518_s5 + $0x170] sm:$0xf0]  ;;  %v4250_v35 = vld [vmem:[%s4518_s5 + $0x16c] sm:$0xf] }
  0xfa   : > { %3115 = vst [vmem:[%s4654_s9 + $0x48] sm:$0xff] %v2987_v37 }
  0xfb   : > { %v2099_v42 = vadd.f32 %v2098_v41, %v1770_v38  ;;  %1808 = vmatmul.bf16.gmra.mxu0 %v3458_v32  ;;  %2048 = vmatmul.bf16.gmra.mxu3 %v4034_v33  ;;  %v4057_v32 = vld [vmem:[%s4518_s5 + $0x5e8] sm:$0xf]  ;;  %v4395_v33 = vld [vmem:[%s4518_s5 + $0x5f0] sm:$0xf0]  ;;  %v3482_v41 = vor.u32 %v4251_v31, %v3481_v29  ;;  %v3525_v29 = vld [vmem:[%s4518_s5 + $0x1b8] sm:$0xf] }
  0xfc   : > { %2137 = vmatmul.bf16.gmra.mxu1 %v3462_v36  ;;  %v3483_v36 = vld [vmem:[%s4518_s5 + $0x174] sm:$0xf0]  ;;  %v4261_v31 = vld [vmem:[%s4518_s5 + $0x1c0] sm:$0xf0] }
  0xfd   : > { %v2428_v43 = vadd.f32 %v2427_v0, %v2099_v42  ;;  %v3471_v0 = vld [vmem:[%s4518_s5 + $0x15c] sm:$0xf0]  ;;  %v4058_v42 = vor.u32 %v4395_v33, %v4057_v32  ;;  %v3486_v46 = vor.u32 %v4250_v35, %v3483_v36 }
  0xfe   : > { %v4737_v44 = vpop.f32.mrf.mxu3  ;;  %v3474_v8 = vor.u32 %v4247_v63, %v3471_v0 }
  0xff   : > { %vm2732_vm11 = vcmp.ge.f32.partialorder %v2428_v43, 0.0  ;;  %v2860_v47 = vmul.f32 0.25, %v2428_v43 }
 0x100   : > { %v2434_v48 = vpop.f32.mrf.mxu2  ;;  %v1771_v49 = vpop.f32.mrf.mxu0 }
 0x101   : > { %v2988_v50 = vsel %vm2732_vm11, %v2428_v43, %v2860_v47  ;;  %v1772_v51 = vadd.f32 %v4641_v62, %v1771_v49  ;;  %v2100_v52 = vpop.f32.mrf.mxu1 }
 0x102   : > { %3116 = vst [vmem:[%s4654_s9 + $0x50] sm:$0xff] %v2988_v50 }
 0x103   : > { %v2101_v54 = vadd.f32 %v2100_v52, %v1772_v51 }
 0x105   : > { %v2430_v61 = vadd.f32 %v2429_v14, %v2101_v54  ;;  %4154 = vmatmul.msk.bf16.gmra.mxu2 %vm1542_vm0, %v3490_v53  ;;  %v3513_v53 = vld [vmem:[%s4518_s5 + $0x1a0] sm:$0xf]  ;;  %v4258_v54 = vld [vmem:[%s4518_s5 + $0x1a8] sm:$0xf0] }
 0x106   : > { %v4750_v1 = vpop.f32.mrf.mxu3  ;;  %v3514_v0 = vor.u32 %v4258_v54, %v3513_v53 }
 0x107   : > { %vm2733_vm12 = vcmp.ge.f32.partialorder %v2430_v61, 0.0  ;;  %v2861_v2 = vmul.f32 0.25, %v2430_v61 }
 0x108   : > { %v2437_v5 = vpop.f32.mrf.mxu2  ;;  %v1774_v6 = vpop.f32.mrf.mxu0 }
 0x109   : > { %v2989_v11 = vsel %vm2733_vm12, %v2430_v61, %v2861_v2  ;;  %v1775_v12 = vadd.f32 %v4641_v62, %v1774_v6  ;;  %v2103_v13 = vpop.f32.mrf.mxu1  ;;  %v3879_v6 = vld [vmem:[%s4518_s5 + $0x48c] sm:$0xf0] }
 0x10a   : > { %3117 = vst [vmem:[%s4654_s9 + $0x58] sm:$0xff] %v2989_v11  ;;  %v4253_v11 = vld [vmem:[%s4518_s5 + $0x184] sm:$0xf] }
 0x10b   : > { %v2104_v14 = vadd.f32 %v2103_v13, %v1775_v12  ;;  %1813 = vmatmul.bf16.gmra.mxu0 %v3470_v3  ;;  %2053 = vmatmul.bf16.gmra.mxu3 %v4046_v4  ;;  %v3493_v3 = vld [vmem:[%s4518_s5 + $0x180] sm:$0xf]  ;;  %v4254_v4 = vld [vmem:[%s4518_s5 + $0x188] sm:$0xf0]  ;;  %v3495_v12 = vld [vmem:[%s4518_s5 + $0x18c] sm:$0xf0] }
 0x10c   : > { %2142 = vmatmul.bf16.gmra.mxu1 %v3474_v8 }
 0x10d   : > { %v2433_v15 = vadd.f32 %v2432_v34, %v2104_v14 }
 0x10e   : > { %v4754_v16 = vpop.f32.mrf.mxu3 }
 0x10f   : > { %vm2734_vm13 = vcmp.ge.f32.partialorder %v2433_v15, 0.0  ;;  %v2862_v19 = vmul.f32 0.25, %v2433_v15 }
 0x110   : > { %v2439_v20 = vpop.f32.mrf.mxu2  ;;  %v1776_v21 = vpop.f32.mrf.mxu0 }
 0x111   : > { %v2990_v22 = vsel %vm2734_vm13, %v2433_v15, %v2862_v19  ;;  %v1777_v23 = vadd.f32 %v4641_v62, %v1776_v21  ;;  %v2105_v24 = vpop.f32.mrf.mxu1  ;;  %v3494_v15 = vor.u32 %v4254_v4, %v3493_v3  ;;  %v3498_v21 = vor.u32 %v4253_v11, %v3495_v12 }
 0x112   : > { %3118 = vst [vmem:[%s4654_s9 + $0x60] sm:$0xff] %v2990_v22 }
 0x113   : > { %v2106_v27 = vadd.f32 %v2105_v24, %v1777_v23 }
 0x115   : > { %v2435_v34 = vadd.f32 %v2434_v48, %v2106_v27  ;;  %4155 = vmatmul.msk.bf16.gmra.mxu2 %vm1542_vm0, %v3502_v25 }
 0x116   : > { %v4767_v37 = vpop.f32.mrf.mxu3 }
 0x117   : > { %vm2735_vm14 = vcmp.ge.f32.partialorder %v2435_v34, 0.0  ;;  %v2863_v38 = vmul.f32 0.25, %v2435_v34 }
 0x118   : > { %v2442_v43 = vpop.f32.mrf.mxu2  ;;  %v1779_v45 = vpop.f32.mrf.mxu0 }
 0x119   : > { %v2991_v47 = vsel %vm2735_vm14, %v2435_v34, %v2863_v38  ;;  %v1780_v49 = vadd.f32 %v4641_v62, %v1779_v45  ;;  %v2108_v50 = vpop.f32.mrf.mxu1  ;;  %v4257_v45 = vld [vmem:[%s4518_s5 + $0x1a0] sm:$0xf0] }
 0x11a   : > { %3119 = vst [vmem:[%s4654_s9 + $0x68] sm:$0xff] %v2991_v47  ;;  %v3891_v47 = vld [vmem:[%s4518_s5 + $0x4a4] sm:$0xf0] }
 0x11b   : > { %v2109_v48 = vadd.f32 %v2108_v50, %v1780_v49  ;;  %1818 = vmatmul.bf16.gmra.mxu0 %v3482_v41  ;;  %2058 = vmatmul.bf16.gmra.mxu3 %v4058_v42  ;;  %v3526_v41 = vor.u32 %v4261_v31, %v3525_v29  ;;  %v4256_v50 = vld [vmem:[%s4518_s5 + $0x19c] sm:$0xf]  ;;  %v3519_v29 = vld [vmem:[%s4518_s5 + $0x1bc] sm:$0xf0] }
 0x11c   : > { %2147 = vmatmul.bf16.gmra.mxu1 %v3486_v46  ;;  %v4352_v46 = vld [vmem:[%s4518_s5 + $0x49c] sm:$0xf] }
 0x11d   : > { %v2438_v51 = vadd.f32 %v2437_v5, %v2109_v48  ;;  %v4349_v5 = vld [vmem:[%s4518_s5 + $0x484] sm:$0xf]  ;;  %v3507_v48 = vld [vmem:[%s4518_s5 + $0x1a4] sm:$0xf0] }
 0x11e   : > { %v4771_v52 = vpop.f32.mrf.mxu3  ;;  %v3882_v17 = vor.u32 %v4349_v5, %v3879_v6  ;;  %v3537_v5 = vld [vmem:[%s4518_s5 + $0x1d0] sm:$0xf]  ;;  %v4264_v6 = vld [vmem:[%s4518_s5 + $0x1d8] sm:$0xf0] }
 0x11f   : > { %vm2736_vm15 = vcmp.ge.f32.partialorder %v2438_v51, 0.0  ;;  %v2864_v55 = vmul.f32 0.25, %v2438_v51 }
 0x120   : > { %v2444_v56 = vpop.f32.mrf.mxu2  ;;  %v1781_v57 = vpop.f32.mrf.mxu0 }
 0x121   : > { %v2992_v60 = vsel %vm2736_vm15, %v2438_v51, %v2864_v55  ;;  %v1782_v61 = vadd.f32 %v4641_v62, %v1781_v57  ;;  %v2110_v63 = vpop.f32.mrf.mxu1  ;;  %v3894_v55 = vor.u32 %v4352_v46, %v3891_v47 }
 0x122   : > { %3120 = vst [vmem:[%s4654_s9 + $0x70] sm:$0xff] %v2992_v60 }
 0x123   : > { %v2111_v2 = vadd.f32 %v2110_v63, %v1782_v61  ;;  %v3510_v61 = vor.u32 %v4256_v50, %v3507_v48  ;;  %v4267_v50 = vld [vmem:[%s4518_s5 + $0x1f0] sm:$0xf0] }
 0x125   : > { %v2440_v8 = vadd.f32 %v2439_v20, %v2111_v2  ;;  %4156 = vmatmul.msk.bf16.gmra.mxu2 %vm1542_vm0, %v3514_v0 }
 0x126   : > { %v4784_v13 = vpop.f32.mrf.mxu3 }
 0x127   : > { %vm2737_vm1 = vcmp.ge.f32.partialorder %v2440_v8, 0.0  ;;  %v2865_v14 = vmul.f32 0.25, %v2440_v8 }
 0x128   : > { %v2447_v18 = vpop.f32.mrf.mxu2  ;;  %v1784_v19 = vpop.f32.mrf.mxu0 }
 0x129   : > { %v2993_v22 = vsel %vm2737_vm1, %v2440_v8, %v2865_v14  ;;  %v1785_v23 = vadd.f32 %v4641_v62, %v1784_v19  ;;  %v2113_v24 = vpop.f32.mrf.mxu1  ;;  %v3538_v19 = vor.u32 %v4264_v6, %v3537_v5  ;;  %v4262_v6 = vld [vmem:[%s4518_s5 + $0x1cc] sm:$0xf] }
 0x12a   : > { %3121 = vst [vmem:[%s4654_s9 + $0x78] sm:$0xff] %v2993_v22  ;;  %v4260_v22 = vld [vmem:[%s4518_s5 + $0x1b8] sm:$0xf0] }
 0x12b   : > { %v2114_v20 = vadd.f32 %v2113_v24, %v1785_v23  ;;  %1823 = vmatmul.bf16.gmra.mxu0 %v3494_v15  ;;  %2312 = vmatmul.bf16.vlgmr.msrb.gmra.mxu3 %v3882_v17  ;;  %v4355_v23 = vld [vmem:[%s4518_s5 + $0x4b4] sm:$0xf]  ;;  %v3903_v24 = vld [vmem:[%s4518_s5 + $0x4bc] sm:$0xf0] }
 0x12c   : > { %2152 = vmatmul.bf16.gmra.mxu1 %v3498_v21 }
 0x12d   : > { %v2443_v25 = vadd.f32 %v2442_v43, %v2114_v20  ;;  %v3505_v43 = vld [vmem:[%s4518_s5 + $0x198] sm:$0xf] }
 0x12e   : > { %v4788_v27 = vpop.f32.mrf.mxu3  ;;  %v3506_v54 = vor.u32 %v4257_v45, %v3505_v43 }
 0x12f   : > { %vm2738_vm2 = vcmp.ge.f32.partialorder %v2443_v25, 0.0  ;;  %v2866_v32 = vmul.f32 0.25, %v2443_v25 }
 0x130   : > { %v2449_v33 = vpop.f32.mrf.mxu2  ;;  %v1786_v34 = vpop.f32.mrf.mxu0 }
 0x131   : > { %v2994_v35 = vsel %vm2738_vm2, %v2443_v25, %v2866_v32  ;;  %v1787_v36 = vadd.f32 %v4641_v62, %v1786_v34  ;;  %v2115_v38 = vpop.f32.mrf.mxu1  ;;  %v4259_v25 = vld [vmem:[%s4518_s5 + $0x1b4] sm:$0xf] }
 0x132   : > { %3122 = vst [vmem:[%s4654_s9 + $0x80] sm:$0xff] %v2994_v35  ;;  %v3906_v35 = vor.u32 %v4355_v23, %v3903_v24 }
 0x133   : > { %v2116_v42 = vadd.f32 %v2115_v38, %v1787_v36 }
 0x135   : > { %v2445_v49 = vadd.f32 %v2444_v56, %v2116_v42  ;;  %4157 = vmatmul.msk.bf16.gmra.mxu2 %vm1542_vm0, %v3526_v41  ;;  %v3522_v41 = vor.u32 %v4259_v25, %v3519_v29  ;;  %v3561_v29 = vld [vmem:[%s4518_s5 + $0x200] sm:$0xf] }
 0x136   : > { %v4801_v51 = vpop.f32.mrf.mxu3 }
 0x137   : > { %vm2739_vm3 = vcmp.ge.f32.partialorder %v2445_v49, 0.0  ;;  %v2867_v53 = vmul.f32 0.25, %v2445_v49 }
 0x138   : > { %v2452_v57 = vpop.f32.mrf.mxu2  ;;  %v1789_v60 = vpop.f32.mrf.mxu0 }
 0x139   : > { %v2995_v63 = vsel %vm2739_vm3, %v2445_v49, %v2867_v53  ;;  %v1790_v0 = vadd.f32 %v4641_v62, %v1789_v60  ;;  %v2118_v2 = vpop.f32.mrf.mxu1  ;;  %v3549_v49 = vld [vmem:[%s4518_s5 + $0x1e8] sm:$0xf] }
 0x13a   : > { %3123 = vst [vmem:[%s4654_s9 + $0x88] sm:$0xff] %v2995_v63  ;;  %v3550_v63 = vor.u32 %v4267_v50, %v3549_v49  ;;  %v4361_v49 = vld [vmem:[%s4518_s5 + $0x4e4] sm:$0xf]  ;;  %v3927_v50 = vld [vmem:[%s4518_s5 + $0x4ec] sm:$0xf0] }
 0x13b   : > { %v2119_v56 = vadd.f32 %v2118_v2, %v1790_v0  ;;  %1828 = vmatmul.bf16.gmra.mxu0 %v3506_v54  ;;  %2317 = vmatmul.bf16.gmra.mxu3 %v3894_v55  ;;  %v4263_v2 = vld [vmem:[%s4518_s5 + $0x1d0] sm:$0xf0] }
 0x13c   : > { %2157 = vmatmul.bf16.gmra.mxu1 %v3510_v61 }
 0x13d   : > { %v2448_v3 = vadd.f32 %v2447_v18, %v2119_v56  ;;  %v3517_v18 = vld [vmem:[%s4518_s5 + $0x1b0] sm:$0xf]  ;;  %v4358_v56 = vld [vmem:[%s4518_s5 + $0x4cc] sm:$0xf] }
 0x13e   : > { %v4805_v4 = vpop.f32.mrf.mxu3  ;;  %v3518_v34 = vor.u32 %v4260_v22, %v3517_v18 }
 0x13f   : > { %vm2740_vm4 = vcmp.ge.f32.partialorder %v2448_v3, 0.0  ;;  %v2868_v8 = vmul.f32 0.25, %v2448_v3 }
 0x140   : > { %v2454_v11 = vpop.f32.mrf.mxu2  ;;  %v1791_v12 = vpop.f32.mrf.mxu0 }
 0x141   : > { %v2996_v14 = vsel %vm2740_vm4, %v2448_v3, %v2868_v8  ;;  %v1792_v15 = vadd.f32 %v4641_v62, %v1791_v12  ;;  %v2120_v17 = vpop.f32.mrf.mxu1  ;;  %v3915_v3 = vld [vmem:[%s4518_s5 + $0x4d4] sm:$0xf0] }
 0x142   : > { %3124 = vst [vmem:[%s4654_s9 + $0x90] sm:$0xff] %v2996_v14  ;;  %v3531_v8 = vld [vmem:[%s4518_s5 + $0x1d4] sm:$0xf0] }
 0x143   : > { %v2121_v21 = vadd.f32 %v2120_v17, %v1792_v15  ;;  %v3918_v17 = vor.u32 %v4358_v56, %v3915_v3  ;;  %v3534_v18 = vor.u32 %v4262_v6, %v3531_v8 }
 0x145   : > { %v2450_v20 = vadd.f32 %v2449_v33, %v2121_v21  ;;  %4158 = vmatmul.msk.bf16.gmra.mxu2 %vm1542_vm0, %v3538_v19 }
 0x146   : > { %v4818_v31 = vpop.f32.mrf.mxu3 }
 0x147   : > { %vm2741_vm5 = vcmp.ge.f32.partialorder %v2450_v20, 0.0  ;;  %v2869_v32 = vmul.f32 0.25, %v2450_v20 }
 0x148   : > { %v2457_v36 = vpop.f32.mrf.mxu2  ;;  %v1794_v38 = vpop.f32.mrf.mxu0 }
 0x149   : > { %v2997_v42 = vsel %vm2741_vm5, %v2450_v20, %v2869_v32  ;;  %v1795_v43 = vadd.f32 %v4641_v62, %v1794_v38  ;;  %v2123_v45 = vpop.f32.mrf.mxu1  ;;  %v4270_v32 = vld [vmem:[%s4518_s5 + $0x208] sm:$0xf0] }
 0x14a   : > { %3125 = vst [vmem:[%s4654_s9 + $0x98] sm:$0xff] %v2997_v42 }
 0x14b   : > { %v2124_v33 = vadd.f32 %v2123_v45, %v1795_v43  ;;  %1833 = vmatmul.bf16.gmra.mxu0 %v3518_v34  ;;  %2322 = vmatmul.bf16.gmra.mxu3 %v3906_v35  ;;  %v3562_v45 = vor.u32 %v4270_v32, %v3561_v29  ;;  %v4269_v32 = vld [vmem:[%s4518_s5 + $0x200] sm:$0xf0] }
 0x14c   : > { %2162 = vmatmul.bf16.gmra.mxu1 %v3522_v41 }
 0x14d   : > { %v2453_v46 = vadd.f32 %v2452_v57, %v2124_v33  ;;  %v3529_v57 = vld [vmem:[%s4518_s5 + $0x1c8] sm:$0xf] }
 0x14e   : > { %v4822_v47 = vpop.f32.mrf.mxu3  ;;  %v3530_v15 = vor.u32 %v4263_v2, %v3529_v57 }
 0x14f   : > { %vm2742_vm6 = vcmp.ge.f32.partialorder %v2453_v46, 0.0  ;;  %v2870_v48 = vmul.f32 0.25, %v2453_v46 }
 0x150   : > { %v2459_v53 = vpop.f32.mrf.mxu2  ;;  %v1796_v54 = vpop.f32.mrf.mxu0 }
 0x151   : > { %v2998_v55 = vsel %vm2742_vm6, %v2453_v46, %v2870_v48  ;;  %v1797_v60 = vadd.f32 %v4641_v62, %v1796_v54  ;;  %v2125_v61 = vpop.f32.mrf.mxu1  ;;  %v4266_v46 = vld [vmem:[%s4518_s5 + $0x1e8] sm:$0xf0]  ;;  %v4265_v54 = vld [vmem:[%s4518_s5 + $0x1e4] sm:$0xf] }
 0x152   : > { %3126 = vst [vmem:[%s4654_s9 + $0xa0] sm:$0xff] %v2998_v55  ;;  %v3543_v55 = vld [vmem:[%s4518_s5 + $0x1ec] sm:$0xf0] }
 0x153   : > { %v2126_v0 = vadd.f32 %v2125_v61, %v1797_v60  ;;  %v3546_v56 = vor.u32 %v4265_v54, %v3543_v55 }
 0x155   : > { %v2455_v5 = vadd.f32 %v2454_v11, %v2126_v0  ;;  %4159 = vmatmul.msk.bf16.gmra.mxu2 %vm1542_vm0, %v3550_v63  ;;  %v3930_v0 = vor.u32 %v4361_v49, %v3927_v50 }
 0x156   : > { %v4835_v12 = vpop.f32.mrf.mxu3 }
 0x157   : > { %vm2743_vm7 = vcmp.ge.f32.partialorder %v2455_v5, 0.0  ;;  %v2871_v14 = vmul.f32 0.25, %v2455_v5 }
 0x158   : > { %v2462_v19 = vpop.f32.mrf.mxu2  ;;  %v1799_v21 = vpop.f32.mrf.mxu0 }
 0x159   : > { %v2999_v22 = vsel %vm2743_vm7, %v2455_v5, %v2871_v14  ;;  %v1800_v23 = vadd.f32 %v4641_v62, %v1799_v21  ;;  %v2128_v24 = vpop.f32.mrf.mxu1 }
 0x15a   : > { %3127 = vst [vmem:[%s4654_s9 + $0xa8] sm:$0xff] %v2999_v22 }
 0x15b   : > { %v2129_v11 = vadd.f32 %v2128_v24, %v1800_v23  ;;  %1838 = vmatmul.bf16.gmra.mxu0 %v3530_v15  ;;  %2327 = vmatmul.bf16.gmra.mxu3 %v3918_v17  ;;  %v3573_v15 = vld [vmem:[%s4518_s5 + $0x218] sm:$0xf]  ;;  %v4273_v17 = vld [vmem:[%s4518_s5 + $0x220] sm:$0xf0] }
 0x15c   : > { %2167 = vmatmul.bf16.gmra.mxu1 %v3534_v18 }
 0x15d   : > { %v2458_v20 = vadd.f32 %v2457_v36, %v2129_v11  ;;  %v3541_v36 = vld [vmem:[%s4518_s5 + $0x1e0] sm:$0xf] }
 0x15e   : > { %v4839_v25 = vpop.f32.mrf.mxu3  ;;  %v3542_v63 = vor.u32 %v4266_v46, %v3541_v36 }
 0x15f   : > { %vm2744_vm8 = vcmp.ge.f32.partialorder %v2458_v20, 0.0  ;;  %v2872_v34 = vmul.f32 0.25, %v2458_v20 }
 0x160   : > { %v2464_v35 = vpop.f32.mrf.mxu2  ;;  %v1801_v38 = vpop.f32.mrf.mxu0 }
 0x161   : > { %v3000_v41 = vsel %vm2744_vm8, %v2458_v20, %v2872_v34  ;;  %v1802_v42 = vadd.f32 %v4641_v62, %v1801_v38  ;;  %v2130_v43 = vpop.f32.mrf.mxu1  ;;  %v3574_v20 = vor.u32 %v4273_v17, %v3573_v15  ;;  %v4364_v34 = vld [vmem:[%s4518_s5 + $0x4fc] sm:$0xf]  ;;  %v3939_v38 = vld [vmem:[%s4518_s5 + $0x504] sm:$0xf0] }
 0x162   : > { %3128 = vst [vmem:[%s4654_s9 + $0xb0] sm:$0xff] %v3000_v41  ;;  %v3942_v46 = vor.u32 %v4364_v34, %v3939_v38 }
 0x163   : > { %v2131_v33 = vadd.f32 %v2130_v43, %v1802_v42  ;;  %v4268_v42 = vld [vmem:[%s4518_s5 + $0x1fc] sm:$0xf]  ;;  %v3555_v43 = vld [vmem:[%s4518_s5 + $0x204] sm:$0xf0] }
 0x165   : > { %v2460_v48 = vadd.f32 %v2459_v53, %v2131_v33  ;;  %4160 = vmatmul.msk.bf16.gmra.mxu2 %vm1542_vm0, %v3562_v45 }
 0x166   : > { %v4852_v60 = vpop.f32.mrf.mxu3 }
 0x167   : > { %vm2745_vm9 = vcmp.ge.f32.partialorder %v2460_v48, 0.0  ;;  %v2873_v61 = vmul.f32 0.25, %v2460_v48 }
 0x168   : > { %v2467_v57 = vpop.f32.mrf.mxu2  ;;  %v1804_v2 = vpop.f32.mrf.mxu0 }
 0x169   : > { %v3001_v3 = vsel %vm2745_vm9, %v2460_v48, %v2873_v61  ;;  %v1805_v5 = vadd.f32 %v4641_v62, %v1804_v2  ;;  %v2133_v6 = vpop.f32.mrf.mxu1  ;;  %v3558_v48 = vor.u32 %v4268_v42, %v3555_v43  ;;  %v3585_v2 = vld [vmem:[%s4518_s5 + $0x230] sm:$0xf] }
 0x16a   : > { %3129 = vst [vmem:[%s4654_s9 + $0xb8] sm:$0xff] %v3001_v3 }
 0x16b   : > { %v2134_v53 = vadd.f32 %v2133_v6, %v1805_v5  ;;  %1843 = vmatmul.bf16.gmra.mxu0 %v3542_v63  ;;  %2332 = vmatmul.bf16.gmra.mxu3 %v3930_v0 }
 0x16c   : > { %2172 = vmatmul.bf16.gmra.mxu1 %v3546_v56  ;;  %v4276_v56 = vld [vmem:[%s4518_s5 + $0x238] sm:$0xf0] }
 0x16d   : > { %v2463_v8 = vadd.f32 %v2462_v19, %v2134_v53  ;;  %v3553_v19 = vld [vmem:[%s4518_s5 + $0x1f8] sm:$0xf]  ;;  %v4880_v53 = vld [vmem:[%s5510_s2] ss:$0 sm:$0xff]  ;;  %v3586_v15 = vor.u32 %v4276_v56, %v3585_v2 }
 0x16e   : > { %v4856_v14 = vpop.f32.mrf.mxu3  ;;  %v3554_v36 = vor.u32 %v4269_v32, %v3553_v19 }
 0x16f   : > { %vm2746_vm10 = vcmp.ge.f32.partialorder %v2463_v8, 0.0  ;;  %v2874_v21 = vmul.f32 0.25, %v2463_v8 }
 0x170   : > { %v2469_v18 = vpop.f32.mrf.mxu2  ;;  %v1806_v22 = vpop.f32.mrf.mxu0 }
 0x171   : > { %v3002_v23 = vsel %vm2746_vm10, %v2463_v8, %v2874_v21  ;;  %v1807_v24 = vadd.f32 %v4641_v62, %v1806_v22  ;;  %v2135_v11 = vpop.f32.mrf.mxu1  ;;  %v3565_v21 = vld [vmem:[%s4518_s5 + $0x210] sm:$0xf]  ;;  %v4272_v22 = vld [vmem:[%s4518_s5 + $0x218] sm:$0xf0] }
 0x172   : > { %3130 = vst [vmem:[%s4654_s9 + $0xc0] sm:$0xff] %v3002_v23  ;;  %v4367_v23 = vld [vmem:[%s4518_s5 + $0x514] sm:$0xf]  ;;  %v3566_v34 = vor.u32 %v4272_v22, %v3565_v21  ;;  %v4274_v21 = vld [vmem:[%s4518_s5 + $0x22c] sm:$0xf] }
 0x173   : > { %v2136_v29 = vadd.f32 %v2135_v11, %v1807_v24  ;;  %v3951_v24 = vld [vmem:[%s4518_s5 + $0x51c] sm:$0xf0]  ;;  %v3579_v22 = vld [vmem:[%s4518_s5 + $0x234] sm:$0xf0] }
 0x174   : > { %v3954_v38 = vor.u32 %v4367_v23, %v3951_v24 }
 0x175   : > { %v2465_v41 = vadd.f32 %v2464_v35, %v2136_v29  ;;  %4161 = vmatmul.msk.bf16.gmra.mxu2 %vm1542_vm0, %v3574_v20  ;;  %v4271_v20 = vld [vmem:[%s4518_s5 + $0x214] sm:$0xf]  ;;  %v3567_v29 = vld [vmem:[%s4518_s5 + $0x21c] sm:$0xf0] }
 0x176   : > { %v4869_v45 = vpop.f32.mrf.mxu3  ;;  %v3570_v43 = vor.u32 %v4271_v20, %v3567_v29 }
 0x177   : > { %vm2747_vm11 = vcmp.ge.f32.partialorder %v2465_v41, 0.0  ;;  %v2875_v33 = vmul.f32 0.25, %v2465_v41 }
 0x178   : > { %v2472_v49 = vpop.f32.mrf.mxu2  ;;  %v1809_v50 = vpop.f32.mrf.mxu0 }
 0x179   : > { %v3003_v54 = vsel %vm2747_vm11, %v2465_v41, %v2875_v33  ;;  %v1810_v55 = vadd.f32 %v4641_v62, %v1809_v50  ;;  %v2138_v61 = vpop.f32.mrf.mxu1 }
 0x17a   : > { %3131 = vst [vmem:[%s4654_s9 + $0xc8] sm:$0xff] %v3003_v54  ;;  %v3597_v54 = vld [vmem:[%s4518_s5 + $0x248] sm:$0xf] }
 0x17b   : > { %v2139_v35 = vadd.f32 %v2138_v61, %v1810_v55  ;;  %1848 = vmatmul.bf16.gmra.mxu0 %v3554_v36  ;;  %2337 = vmatmul.bf16.gmra.mxu3 %v3942_v46  ;;  %v4279_v55 = vld [vmem:[%s4518_s5 + $0x250] sm:$0xf0] }
 0x17c   : > { %2177 = vmatmul.bf16.gmra.mxu1 %v3558_v48 }
 0x17d   : > { %v2468_v63 = vadd.f32 %v2467_v57, %v2139_v35 }
 0x17e   : > { %v4873_v0 = vpop.f32.mrf.mxu3 }
 0x17f   : > { %vm2748_vm12 = vcmp.ge.f32.partialorder %v2468_v63, 0.0  ;;  %v2876_v3 = vmul.f32 0.25, %v2468_v63 }
 0x180   : > { %v2474_v62 = vpop.f32.mrf.mxu2  ;;  %v1811_v5 = vpop.f32.mrf.mxu0 }
 0x181   : > { %v3004_v6 = vsel %vm2748_vm12, %v2468_v63, %v2876_v3  ;;  %v1812_v57 = vadd.f32 %v4880_v53, %v1811_v5  ;;  %v2140_v8 = vpop.f32.mrf.mxu1  ;;  %v3598_v5 = vor.u32 %v4279_v55, %v3597_v54 }
 0x182   : > { %3132 = vst [vmem:[%s4654_s9 + $0xd0] sm:$0xff] %v3004_v6 }
 0x183   : > { %v2141_v17 = vadd.f32 %v2140_v8, %v1812_v57  ;;  %v4275_v57 = vld [vmem:[%s4518_s5 + $0x230] sm:$0xf0]  ;;  %v4370_v8 = vld [vmem:[%s4518_s5 + $0x52c] sm:$0xf] }
 0x185   : > { %v2470_v11 = vadd.f32 %v2469_v18, %v2141_v17  ;;  %4162 = vmatmul.msk.bf16.gmra.mxu2 %vm1542_vm0, %v3586_v15  ;;  %v3963_v15 = vld [vmem:[%s4518_s5 + $0x534] sm:$0xf0] }
 0x186   : > { %v4891_v19 = vpop.f32.mrf.mxu3  ;;  %v3966_v20 = vor.u32 %v4370_v8, %v3963_v15  ;;  %v4277_v8 = vld [vmem:[%s4518_s5 + $0x244] sm:$0xf]  ;;  %v3591_v15 = vld [vmem:[%s4518_s5 + $0x24c] sm:$0xf0] }
 0x187   : > { %vm2749_vm13 = vcmp.ge.f32.partialorder %v2470_v11, 0.0  ;;  %v2877_v32 = vmul.f32 0.25, %v2470_v11 }
 0x188   : > { %v2477_v41 = vpop.f32.mrf.mxu2  ;;  %v1814_v42 = vpop.f32.mrf.mxu0 }
 0x189   : > { %v3005_v33 = vsel %vm2749_vm13, %v2470_v11, %v2877_v32  ;;  %v1815_v36 = vadd.f32 %v4880_v53, %v1814_v42  ;;  %v2143_v46 = vpop.f32.mrf.mxu1 }
 0x18a   : > { %3133 = vst [vmem:[%s4654_s9 + $0xd8] sm:$0xff] %v3005_v33 }
 0x18b   : > { %v2144_v18 = vadd.f32 %v2143_v46, %v1815_v36  ;;  %1853 = vmatmul.bf16.gmra.mxu0 %v3566_v34  ;;  %2342 = vmatmul.bf16.gmra.mxu3 %v3954_v38  ;;  %v3582_v34 = vor.u32 %v4274_v21, %v3579_v22  ;;  %v3609_v46 = vld [vmem:[%s4518_s5 + $0x260] sm:$0xf] }
 0x18c   : > { %2182 = vmatmul.bf16.gmra.mxu1 %v3570_v43 }
 0x18d   : > { %v2473_v50 = vadd.f32 %v2472_v49, %v2144_v18  ;;  %v3577_v49 = vld [vmem:[%s4518_s5 + $0x228] sm:$0xf]  ;;  %v4282_v18 = vld [vmem:[%s4518_s5 + $0x268] sm:$0xf0] }
 0x18e   : > { %v4895_v48 = vpop.f32.mrf.mxu3  ;;  %v3578_v11 = vor.u32 %v4275_v57, %v3577_v49  ;;  %v3975_v49 = vld [vmem:[%s4518_s5 + $0x54c] sm:$0xf0] }
 0x18f   : > { %vm2750_vm14 = vcmp.ge.f32.partialorder %v2473_v50, 0.0  ;;  %v2878_v61 = vmul.f32 0.25, %v2473_v50 }
 0x190   : > { %v2479_v35 = vpop.f32.mrf.mxu2  ;;  %v1816_v63 = vpop.f32.mrf.mxu0 }
 0x191   : > { %v3006_v2 = vsel %vm2750_vm14, %v2473_v50, %v2878_v61  ;;  %v1817_v56 = vadd.f32 %v4880_v53, %v1816_v63  ;;  %v2145_v3 = vpop.f32.mrf.mxu1 }
 0x192   : > { %3134 = vst [vmem:[%s4654_s9 + $0xe0] sm:$0xff] %v3006_v2 }
 0x193   : > { %v2146_v6 = vadd.f32 %v2145_v3, %v1817_v56  ;;  %v3610_v56 = vor.u32 %v4282_v18, %v3609_v46  ;;  %v3621_v46 = vld [vmem:[%s4518_s5 + $0x278] sm:$0xf]  ;;  %v4285_v18 = vld [vmem:[%s4518_s5 + $0x280] sm:$0xf0] }
 0x195   : > { %v2475_v17 = vadd.f32 %v2474_v62, %v2146_v6  ;;  %4163 = vmatmul.msk.bf16.gmra.mxu2 %vm1542_vm0, %v3598_v5  ;;  %v4278_v5 = vld [vmem:[%s4518_s5 + $0x248] sm:$0xf0]  ;;  %v4373_v6 = vld [vmem:[%s4518_s5 + $0x544] sm:$0xf] }
 0x196   : > { %v4908_v23 = vpop.f32.mrf.mxu3 }
 0x197   : > { %vm2751_vm15 = vcmp.ge.f32.partialorder %v2475_v17, 0.0  ;;  %v2879_v24 = vmul.f32 0.25, %v2475_v17 }
 0x198   : > { %v2482_v29 = vpop.f32.mrf.mxu2  ;;  %v1819_v32 = vpop.f32.mrf.mxu0 }
 0x199   : > { %v3007_v38 = vsel %vm2751_vm15, %v2475_v17, %v2879_v24  ;;  %v1820_v42 = vadd.f32 %v4880_v53, %v1819_v32  ;;  %v2148_v43 = vpop.f32.mrf.mxu1  ;;  %v3978_v24 = vor.u32 %v4373_v6, %v3975_v49  ;;  %v3594_v32 = vor.u32 %v4277_v8, %v3591_v15  ;;  %v4376_v6 = vld [vmem:[%s4518_s5 + $0x55c] sm:$0xf]  ;;  %v3987_v49 = vld [vmem:[%s4518_s5 + $0x564] sm:$0xf0] }
 0x19a   : > { %3135 = vst [vmem:[%s4654_s9 + $0xe8] sm:$0xff] %v3007_v38  ;;  %v4280_v15 = vld [vmem:[%s4518_s5 + $0x25c] sm:$0xf] }
 0x19b   : > { %v2149_v62 = vadd.f32 %v2148_v43, %v1820_v42  ;;  %1858 = vmatmul.bf16.gmra.mxu0 %v3578_v11  ;;  %2347 = vmatmul.bf16.gmra.mxu3 %v3966_v20  ;;  %v1985_v43 = vadd.f32 %v4880_v53, %v4647_v10 }
 0x19c   : > { %2187 = vmatmul.bf16.gmra.mxu1 %v3582_v34 }
 0x19d   : > { %v2478_v33 = vadd.f32 %v2477_v41, %v2149_v62  ;;  %v3589_v41 = vld [vmem:[%s4518_s5 + $0x240] sm:$0xf] }
 0x19e   : > { %v4912_v36 = vpop.f32.mrf.mxu3  ;;  %v3590_v22 = vor.u32 %v4278_v5, %v3589_v41  ;;  %v3601_v41 = vld [vmem:[%s4518_s5 + $0x258] sm:$0xf]  ;;  %v4281_v5 = vld [vmem:[%s4518_s5 + $0x260] sm:$0xf0] }
 0x19f   : > { %vm2752_vm1 = vcmp.ge.f32.partialorder %v2478_v33, 0.0  ;;  %v2880_v50 = vmul.f32 0.25, %v2478_v33 }
 0x1a0   : > { %v2484_v54 = vpop.f32.mrf.mxu2  ;;  %v1821_v55 = vpop.f32.mrf.mxu0 }
 0x1a1   : > { %v3008_v61 = vsel %vm2752_vm1, %v2478_v33, %v2880_v50  ;;  %v1822_v63 = vadd.f32 %v4880_v53, %v1821_v55  ;;  %v2150_v2 = vpop.f32.mrf.mxu1 }
 0x1a2   : > { %3136 = vst [vmem:[%s4654_s9 + $0xf0] sm:$0xff] %v3008_v61 }
 0x1a3   : > { %v2151_v3 = vadd.f32 %v2150_v2, %v1822_v63 }
 0x1a5   : > { %v2480_v57 = vadd.f32 %v2479_v35, %v2151_v3  ;;  %4164 = vmatmul.msk.bf16.gmra.mxu2 %vm1542_vm0, %v3610_v56  ;;  %v3622_v3 = vor.u32 %v4285_v18, %v3621_v46 }
 0x1a6   : > { %v4925_v17 = vpop.f32.mrf.mxu3 }
 0x1a7   : > { %vm2753_vm2 = vcmp.ge.f32.partialorder %v2480_v57, 0.0  ;;  %v2881_v21 = vmul.f32 0.25, %v2480_v57 }
 0x1a8   : > { %v2487_v11 = vpop.f32.mrf.mxu2  ;;  %v1824_v20 = vpop.f32.mrf.mxu0 }
 0x1a9   : > { %v3009_v34 = vsel %vm2753_vm2, %v2480_v57, %v2881_v21  ;;  %v1825_v38 = vadd.f32 %v4880_v53, %v1824_v20  ;;  %v2153_v42 = vpop.f32.mrf.mxu1  ;;  %v1987_v57 = vadd.f32 %v4880_v53, %v4665_v28  ;;  %v3603_v21 = vld [vmem:[%s4518_s5 + $0x264] sm:$0xf0] }
 0x1aa   : > { %3137 = vst [vmem:[%s4654_s9 + $0xf8] sm:$0xff] %v3009_v34  ;;  %v3990_v34 = vor.u32 %v4376_v6, %v3987_v49  ;;  %v3613_v6 = vld [vmem:[%s4518_s5 + $0x270] sm:$0xf]  ;;  %v4284_v49 = vld [vmem:[%s4518_s5 + $0x278] sm:$0xf0] }
 0x1ab   : > { %v2154_v35 = vadd.f32 %v2153_v42, %v1825_v38  ;;  %1863 = vmatmul.bf16.gmra.mxu0 %v3590_v22  ;;  %2352 = vmatmul.bf16.gmra.mxu3 %v3978_v24  ;;  %v3602_v24 = vor.u32 %v4281_v5, %v3601_v41 }
 0x1ac   : > { %2192 = vmatmul.bf16.gmra.mxu1 %v3594_v32 }
 0x1ad   : > { %v2483_v62 = vadd.f32 %v2482_v29, %v2154_v35  ;;  %v3606_v35 = vor.u32 %v4280_v15, %v3603_v21  ;;  %v1992_v15 = vadd.f32 %v4880_v53, %v4682_v58 }
 0x1ae   : > { %v2313_v33 = vpop.f32.mrf.mxu3 }
 0x1af   : > { %vm2754_vm3 = vcmp.ge.f32.partialorder %v2483_v62, 0.0  ;;  %v2882_v50 = vmul.f32 0.25, %v2483_v62  ;;  %v4933_v55 = vadd.f32 %v2313_v33, %v1985_v43  ;;  %v1990_v33 = vadd.f32 %v4880_v53, %v4669_v40 }
 0x1b0   : > { %v2489_v61 = vpop.f32.mrf.mxu2  ;;  %v1826_v63 = vpop.f32.mrf.mxu0 }
 0x1b1   : > { %v3010_v2 = vsel %vm2754_vm3, %v2483_v62, %v2882_v50  ;;  %v1827_v56 = vadd.f32 %v4880_v53, %v1826_v63  ;;  %v2155_v10 = vpop.f32.mrf.mxu1  ;;  %v3633_v50 = vld [vmem:[%s4518_s5 + $0x290] sm:$0xf]  ;;  %v4288_v63 = vld [vmem:[%s4518_s5 + $0x298] sm:$0xf0] }
 0x1b2   : > { %3138 = vst [vmem:[%s4654_s9 + $0x100] sm:$0xff] %v3010_v2  ;;  %v3634_v5 = vor.u32 %v4288_v63, %v3633_v50 }
 0x1b3   : > { %v2156_v29 = vadd.f32 %v2155_v10, %v1827_v56 }
 0x1b5   : > { %v2485_v8 = vadd.f32 %v2484_v54, %v2156_v29  ;;  %4165 = vmatmul.msk.bf16.gmra.mxu2 %vm1542_vm0, %v3622_v3 }
 0x1b6   : > { %v2315_v22 = vpop.f32.mrf.mxu3 }
 0x1b7   : > { %vm2755_vm4 = vcmp.ge.f32.partialorder %v2485_v8, 0.0  ;;  %v2883_v20 = vmul.f32 0.25, %v2485_v8  ;;  %v4946_v32 = vadd.f32 %v2315_v22, %v1987_v57  ;;  %v4379_v57 = vld [vmem:[%s4518_s5 + $0x574] sm:$0xf] }
 0x1b8   : > { %v2492_v38 = vpop.f32.mrf.mxu2  ;;  %v1829_v42 = vpop.f32.mrf.mxu0  ;;  %v4283_v22 = vld [vmem:[%s4518_s5 + $0x274] sm:$0xf] }
 0x1b9   : > { %v3011_v43 = vsel %vm2755_vm4, %v2485_v8, %v2883_v20  ;;  %v1830_v28 = vadd.f32 %v4880_v53, %v1829_v42  ;;  %v2158_v54 = vpop.f32.mrf.mxu1  ;;  %v3999_v8 = vld [vmem:[%s4518_s5 + $0x57c] sm:$0xf0] }
 0x1ba   : > { %3139 = vst [vmem:[%s4654_s9 + $0x108] sm:$0xff] %v3011_v43  ;;  %v4002_v43 = vor.u32 %v4379_v57, %v3999_v8  ;;  %v3625_v57 = vld [vmem:[%s4518_s5 + $0x288] sm:$0xf]  ;;  %v4287_v8 = vld [vmem:[%s4518_s5 + $0x290] sm:$0xf0] }
 0x1bb   : > { %v2159_v62 = vadd.f32 %v2158_v54, %v1830_v28  ;;  %1868 = vmatmul.bf16.gmra.mxu0 %v3602_v24  ;;  %2357 = vmatmul.bf16.gmra.mxu3 %v3990_v34  ;;  %v3615_v24 = vld [vmem:[%s4518_s5 + $0x27c] sm:$0xf0]  ;;  %v3614_v34 = vor.u32 %v4284_v49, %v3613_v6 }
 0x1bc   : > { %2197 = vmatmul.bf16.gmra.mxu1 %v3606_v35 }
 0x1bd   : > { %v2488_v46 = vadd.f32 %v2487_v11, %v2159_v62  ;;  %v3618_v62 = vor.u32 %v4283_v22, %v3615_v24  ;;  %v1997_v22 = vadd.f32 %v4880_v53, %v4699_v26 }
 0x1be   : > { %v2318_v18 = vpop.f32.mrf.mxu3 }
 0x1bf   : > { %vm2756_vm5 = vcmp.ge.f32.partialorder %v2488_v46, 0.0  ;;  %v2884_v2 = vmul.f32 0.25, %v2488_v46  ;;  %v4954_v56 = vadd.f32 %v2318_v18, %v1990_v33  ;;  %v1995_v18 = vadd.f32 %v4880_v53, %v4686_v7 }
 0x1c0   : > { %v2494_v10 = vpop.f32.mrf.mxu2  ;;  %v1831_v3 = vpop.f32.mrf.mxu0 }
 0x1c1   : > { %v3012_v29 = vsel %vm2756_vm5, %v2488_v46, %v2884_v2  ;;  %v1832_v41 = vadd.f32 %v4880_v53, %v1831_v3  ;;  %v2160_v40 = vpop.f32.mrf.mxu1  ;;  %v3645_v2 = vld [vmem:[%s4518_s5 + $0x2a8] sm:$0xf]  ;;  %v4291_v3 = vld [vmem:[%s4518_s5 + $0x2b0] sm:$0xf0] }
 0x1c2   : > { %3140 = vst [vmem:[%s4654_s9 + $0x110] sm:$0xff] %v3012_v29  ;;  %v3646_v49 = vor.u32 %v4291_v3, %v3645_v2 }
 0x1c3   : > { %v2161_v11 = vadd.f32 %v2160_v40, %v1832_v41 }
 0x1c5   : > { %v2490_v21 = vadd.f32 %v2489_v61, %v2161_v11  ;;  %4166 = vmatmul.msk.bf16.gmra.mxu2 %vm1542_vm0, %v3634_v5 }
 0x1c6   : > { %v2320_v20 = vpop.f32.mrf.mxu3 }
 0x1c7   : > { %vm2757_vm6 = vcmp.ge.f32.partialorder %v2490_v21, 0.0  ;;  %v2885_v42 = vmul.f32 0.25, %v2490_v21  ;;  %v4967_v35 = vadd.f32 %v2320_v20, %v1992_v15  ;;  %v4382_v15 = vld [vmem:[%s4518_s5 + $0x58c] sm:$0xf] }
 0x1c8   : > { %v2497_v28 = vpop.f32.mrf.mxu2  ;;  %v1834_v54 = vpop.f32.mrf.mxu0  ;;  %v4286_v20 = vld [vmem:[%s4518_s5 + $0x28c] sm:$0xf] }
 0x1c9   : > { %v3013_v33 = vsel %vm2757_vm6, %v2490_v21, %v2885_v42  ;;  %v1835_v58 = vadd.f32 %v4880_v53, %v1834_v54  ;;  %v2163_v61 = vpop.f32.mrf.mxu1  ;;  %v4011_v21 = vld [vmem:[%s4518_s5 + $0x594] sm:$0xf0] }
 0x1ca   : > { %3141 = vst [vmem:[%s4654_s9 + $0x118] sm:$0xff] %v3013_v33  ;;  %v4014_v33 = vor.u32 %v4382_v15, %v4011_v21  ;;  %v3637_v15 = vld [vmem:[%s4518_s5 + $0x2a0] sm:$0xf]  ;;  %v4290_v21 = vld [vmem:[%s4518_s5 + $0x2a8] sm:$0xf0] }
 0x1cb   : > { %v2164_v46 = vadd.f32 %v2163_v61, %v1835_v58  ;;  %1873 = vmatmul.bf16.gmra.mxu0 %v3614_v34  ;;  %2362 = vmatmul.bf16.gmra.mxu3 %v4002_v43  ;;  %v3627_v34 = vld [vmem:[%s4518_s5 + $0x294] sm:$0xf0]  ;;  %v3626_v43 = vor.u32 %v4287_v8, %v3625_v57 }
 0x1cc   : > { %2202 = vmatmul.bf16.gmra.mxu1 %v3618_v62 }
 0x1cd   : > { %v2493_v50 = vadd.f32 %v2492_v38, %v2164_v46  ;;  %v3630_v46 = vor.u32 %v4286_v20, %v3627_v34  ;;  %v2002_v20 = vadd.f32 %v4880_v53, %v4716_v59 }
 0x1ce   : > { %v2323_v63 = vpop.f32.mrf.mxu3 }
 0x1cf   : > { %vm2758_vm7 = vcmp.ge.f32.partialorder %v2493_v50, 0.0  ;;  %v2886_v29 = vmul.f32 0.25, %v2493_v50  ;;  %v4975_v41 = vadd.f32 %v2323_v63, %v1995_v18  ;;  %v2000_v63 = vadd.f32 %v4880_v53, %v4703_v39 }
 0x1d0   : > { %v2499_v40 = vpop.f32.mrf.mxu2  ;;  %v1836_v5 = vpop.f32.mrf.mxu0 }
 0x1d1   : > { %v3014_v11 = vsel %vm2758_vm7, %v2493_v50, %v2886_v29  ;;  %v1837_v6 = vadd.f32 %v4880_v53, %v1836_v5  ;;  %v2165_v7 = vpop.f32.mrf.mxu1  ;;  %v3657_v29 = vld [vmem:[%s4518_s5 + $0x2c0] sm:$0xf]  ;;  %v4294_v5 = vld [vmem:[%s4518_s5 + $0x2c8] sm:$0xf0] }
 0x1d2   : > { %3142 = vst [vmem:[%s4654_s9 + $0x120] sm:$0xff] %v3014_v11  ;;  %v3658_v8 = vor.u32 %v4294_v5, %v3657_v29 }
 0x1d3   : > { %v2166_v38 = vadd.f32 %v2165_v7, %v1837_v6 }
 0x1d5   : > { %v2495_v24 = vadd.f32 %v2494_v10, %v2166_v38  ;;  %4167 = vmatmul.msk.bf16.gmra.mxu2 %vm1542_vm0, %v3646_v49 }
 0x1d6   : > { %v2325_v42 = vpop.f32.mrf.mxu3 }
 0x1d7   : > { %vm2759_vm8 = vcmp.ge.f32.partialorder %v2495_v24, 0.0  ;;  %v2887_v54 = vmul.f32 0.25, %v2495_v24  ;;  %v4988_v62 = vadd.f32 %v2325_v42, %v1997_v22  ;;  %v4385_v22 = vld [vmem:[%s4518_s5 + $0x5a4] sm:$0xf] }
 0x1d8   : > { %v2502_v58 = vpop.f32.mrf.mxu2  ;;  %v1839_v61 = vpop.f32.mrf.mxu0  ;;  %v4289_v42 = vld [vmem:[%s4518_s5 + $0x2a4] sm:$0xf] }
 0x1d9   : > { %v3015_v18 = vsel %vm2759_vm8, %v2495_v24, %v2887_v54  ;;  %v1840_v26 = vadd.f32 %v4880_v53, %v1839_v61  ;;  %v2168_v10 = vpop.f32.mrf.mxu1  ;;  %v4023_v24 = vld [vmem:[%s4518_s5 + $0x5ac] sm:$0xf0] }
 0x1da   : > { %3143 = vst [vmem:[%s4654_s9 + $0x128] sm:$0xff] %v3015_v18  ;;  %v4026_v18 = vor.u32 %v4385_v22, %v4023_v24  ;;  %v3649_v22 = vld [vmem:[%s4518_s5 + $0x2b8] sm:$0xf]  ;;  %v4293_v24 = vld [vmem:[%s4518_s5 + $0x2c0] sm:$0xf0] }
 0x1db   : > { %v2169_v50 = vadd.f32 %v2168_v10, %v1840_v26  ;;  %1878 = vmatmul.bf16.gmra.mxu0 %v3626_v43  ;;  %2367 = vmatmul.bf16.gmra.mxu3 %v4014_v33  ;;  %v3639_v43 = vld [vmem:[%s4518_s5 + $0x2ac] sm:$0xf0]  ;;  %v3638_v33 = vor.u32 %v4290_v21, %v3637_v15 }
 0x1dc   : > { %2207 = vmatmul.bf16.gmra.mxu1 %v3630_v46 }
 0x1dd   : > { %v2498_v2 = vadd.f32 %v2497_v28, %v2169_v50  ;;  %v3642_v50 = vor.u32 %v4289_v42, %v3639_v43  ;;  %v2007_v42 = vadd.f32 %v4880_v53, %v4733_v30 }
 0x1de   : > { %v2328_v3 = vpop.f32.mrf.mxu3 }
 0x1df   : > { %vm2760_vm9 = vcmp.ge.f32.partialorder %v2498_v2, 0.0  ;;  %v2888_v11 = vmul.f32 0.25, %v2498_v2  ;;  %v4996_v6 = vadd.f32 %v2328_v3, %v2000_v63  ;;  %v2005_v3 = vadd.f32 %v4880_v53, %v4720_v9 }
 0x1e0   : > { %v2504_v7 = vpop.f32.mrf.mxu2  ;;  %v1841_v49 = vpop.f32.mrf.mxu0 }
 0x1e1   : > { %v3016_v38 = vsel %vm2760_vm9, %v2498_v2, %v2888_v11  ;;  %v1842_v57 = vadd.f32 %v4880_v53, %v1841_v49  ;;  %v2170_v39 = vpop.f32.mrf.mxu1  ;;  %v3669_v11 = vld [vmem:[%s4518_s5 + $0x2d8] sm:$0xf]  ;;  %v4297_v49 = vld [vmem:[%s4518_s5 + $0x2e0] sm:$0xf0] }
 0x1e2   : > { %3144 = vst [vmem:[%s4654_s9 + $0x130] sm:$0xff] %v3016_v38  ;;  %v3670_v21 = vor.u32 %v4297_v49, %v3669_v11 }
 0x1e3   : > { %v2171_v28 = vadd.f32 %v2170_v39, %v1842_v57 }
 0x1e5   : > { %v2500_v34 = vadd.f32 %v2499_v40, %v2171_v28  ;;  %4168 = vmatmul.msk.bf16.gmra.mxu2 %vm1542_vm0, %v3658_v8 }
 0x1e6   : > { %v2330_v54 = vpop.f32.mrf.mxu3 }
 0x1e7   : > { %vm2761_vm10 = vcmp.ge.f32.partialorder %v2500_v34, 0.0  ;;  %v2889_v61 = vmul.f32 0.25, %v2500_v34  ;;  %v5009_v46 = vadd.f32 %v2330_v54, %v2002_v20  ;;  %v4388_v20 = vld [vmem:[%s4518_s5 + $0x5bc] sm:$0xf] }
 0x1e8   : > { %v2507_v26 = vpop.f32.mrf.mxu2  ;;  %v1844_v10 = vpop.f32.mrf.mxu0  ;;  %v4292_v54 = vld [vmem:[%s4518_s5 + $0x2bc] sm:$0xf] }
 0x1e9   : > { %v3017_v63 = vsel %vm2761_vm10, %v2500_v34, %v2889_v61  ;;  %v1845_v59 = vadd.f32 %v4880_v53, %v1844_v10  ;;  %v2173_v40 = vpop.f32.mrf.mxu1  ;;  %v4035_v34 = vld [vmem:[%s4518_s5 + $0x5c4] sm:$0xf0] }
 0x1ea   : > { %3145 = vst [vmem:[%s4654_s9 + $0x138] sm:$0xff] %v3017_v63  ;;  %v4038_v63 = vor.u32 %v4388_v20, %v4035_v34  ;;  %v3661_v20 = vld [vmem:[%s4518_s5 + $0x2d0] sm:$0xf]  ;;  %v4296_v34 = vld [vmem:[%s4518_s5 + $0x2d8] sm:$0xf0] }
 0x1eb   : > { %v2174_v2 = vadd.f32 %v2173_v40, %v1845_v59  ;;  %1883 = vmatmul.bf16.gmra.mxu0 %v3638_v33  ;;  %2372 = vmatmul.bf16.gmra.mxu3 %v4026_v18  ;;  %v3651_v33 = vld [vmem:[%s4518_s5 + $0x2c4] sm:$0xf0]  ;;  %v3650_v18 = vor.u32 %v4293_v24, %v3649_v22 }
 0x1ec   : > { %2212 = vmatmul.bf16.gmra.mxu1 %v3642_v50 }
 0x1ed   : > { %v2503_v29 = vadd.f32 %v2502_v58, %v2174_v2  ;;  %v3654_v2 = vor.u32 %v4292_v54, %v3651_v33  ;;  %v2012_v54 = vadd.f32 %v4880_v53, %v4750_v1 }
 0x1ee   : > { %v2333_v5 = vpop.f32.mrf.mxu3 }
 0x1ef   : > { %vm2762_vm11 = vcmp.ge.f32.partialorder %v2503_v29, 0.0  ;;  %v2890_v38 = vmul.f32 0.25, %v2503_v29  ;;  %v5017_v57 = vadd.f32 %v2333_v5, %v2005_v3  ;;  %v2010_v5 = vadd.f32 %v4880_v53, %v4737_v44 }
 0x1f0   : > { %v2509_v39 = vpop.f32.mrf.mxu2  ;;  %v1846_v8 = vpop.f32.mrf.mxu0 }
 0x1f1   : > { %v3018_v28 = vsel %vm2762_vm11, %v2503_v29, %v2890_v38  ;;  %v1847_v15 = vadd.f32 %v4880_v53, %v1846_v8  ;;  %v2175_v9 = vpop.f32.mrf.mxu1  ;;  %v3681_v38 = vld [vmem:[%s4518_s5 + $0x2f0] sm:$0xf]  ;;  %v4300_v8 = vld [vmem:[%s4518_s5 + $0x2f8] sm:$0xf0] }
 0x1f2   : > { %3146 = vst [vmem:[%s4654_s9 + $0x140] sm:$0xff] %v3018_v28  ;;  %v3682_v24 = vor.u32 %v4300_v8, %v3681_v38 }
 0x1f3   : > { %v2176_v58 = vadd.f32 %v2175_v9, %v1847_v15 }
 0x1f5   : > { %v2505_v43 = vadd.f32 %v2504_v7, %v2176_v58  ;;  %4169 = vmatmul.msk.bf16.gmra.mxu2 %vm1542_vm0, %v3670_v21 }
 0x1f6   : > { %v2335_v61 = vpop.f32.mrf.mxu3 }
 0x1f7   : > { %vm2763_vm12 = vcmp.ge.f32.partialorder %v2505_v43, 0.0  ;;  %v2891_v10 = vmul.f32 0.25, %v2505_v43  ;;  %v5030_v50 = vadd.f32 %v2335_v61, %v2007_v42  ;;  %v4391_v42 = vld [vmem:[%s4518_s5 + $0x5d4] sm:$0xf] }
 0x1f8   : > { %v2512_v59 = vpop.f32.mrf.mxu2  ;;  %v1849_v40 = vpop.f32.mrf.mxu0  ;;  %v4295_v61 = vld [vmem:[%s4518_s5 + $0x2d4] sm:$0xf] }
 0x1f9   : > { %v3019_v3 = vsel %vm2763_vm12, %v2505_v43, %v2891_v10  ;;  %v1850_v30 = vadd.f32 %v4880_v53, %v1849_v40  ;;  %v2178_v7 = vpop.f32.mrf.mxu1  ;;  %v4047_v43 = vld [vmem:[%s4518_s5 + $0x5dc] sm:$0xf0] }
 0x1fa   : > { %3147 = vst [vmem:[%s4654_s9 + $0x148] sm:$0xff] %v3019_v3  ;;  %v4050_v3 = vor.u32 %v4391_v42, %v4047_v43  ;;  %v3673_v42 = vld [vmem:[%s4518_s5 + $0x2e8] sm:$0xf]  ;;  %v4299_v43 = vld [vmem:[%s4518_s5 + $0x2f0] sm:$0xf0] }
 0x1fb   : > { %v2179_v29 = vadd.f32 %v2178_v7, %v1850_v30  ;;  %1888 = vmatmul.bf16.gmra.mxu0 %v3650_v18  ;;  %2377 = vmatmul.bf16.gmra.mxu3 %v4038_v63  ;;  %v3663_v18 = vld [vmem:[%s4518_s5 + $0x2dc] sm:$0xf0]  ;;  %v3662_v63 = vor.u32 %v4296_v34, %v3661_v20 }
 0x1fc   : > { %2217 = vmatmul.bf16.gmra.mxu1 %v3654_v2 }
 0x1fd   : > { %v2508_v11 = vadd.f32 %v2507_v26, %v2179_v29  ;;  %v3666_v29 = vor.u32 %v4295_v61, %v3663_v18  ;;  %v2017_v61 = vadd.f32 %v4880_v53, %v4767_v37 }
 0x1fe   : > { %v2338_v49 = vpop.f32.mrf.mxu3 }
 0x1ff   : > { %vm2764_vm13 = vcmp.ge.f32.partialorder %v2508_v11, 0.0  ;;  %v2892_v28 = vmul.f32 0.25, %v2508_v11  ;;  %v5038_v15 = vadd.f32 %v2338_v49, %v2010_v5  ;;  %v2015_v49 = vadd.f32 %v4880_v53, %v4754_v16 }
 0x200   : > { %v2514_v9 = vpop.f32.mrf.mxu2  ;;  %v1851_v21 = vpop.f32.mrf.mxu0 }
 0x201   : > { %v3020_v58 = vsel %vm2764_vm13, %v2508_v11, %v2892_v28  ;;  %v1852_v22 = vadd.f32 %v4880_v53, %v1851_v21  ;;  %v2180_v44 = vpop.f32.mrf.mxu1  ;;  %v3693_v28 = vld [vmem:[%s4518_s5 + $0x308] sm:$0xf]  ;;  %v4303_v21 = vld [vmem:[%s4518_s5 + $0x310] sm:$0xf0] }
 0x202   : > { %3148 = vst [vmem:[%s4654_s9 + $0x150] sm:$0xff] %v3020_v58  ;;  %v3694_v34 = vor.u32 %v4303_v21, %v3693_v28 }
 0x203   : > { %v2181_v26 = vadd.f32 %v2180_v44, %v1852_v22 }
 0x205   : > { %v2510_v33 = vadd.f32 %v2509_v39, %v2181_v26  ;;  %4170 = vmatmul.msk.bf16.gmra.mxu2 %vm1542_vm0, %v3682_v24 }
 0x206   : > { %v2340_v10 = vpop.f32.mrf.mxu3 }
 0x207   : > { %vm2765_vm14 = vcmp.ge.f32.partialorder %v2510_v33, 0.0  ;;  %v2893_v40 = vmul.f32 0.25, %v2510_v33  ;;  %v5051_v2 = vadd.f32 %v2340_v10, %v2012_v54  ;;  %v4394_v54 = vld [vmem:[%s4518_s5 + $0x5ec] sm:$0xf] }
 0x208   : > { %v2517_v30 = vpop.f32.mrf.mxu2  ;;  %v1854_v7 = vpop.f32.mrf.mxu0  ;;  %v4298_v10 = vld [vmem:[%s4518_s5 + $0x2ec] sm:$0xf] }
 0x209   : > { %v3021_v5 = vsel %vm2765_vm14, %v2510_v33, %v2893_v40  ;;  %v1855_v1 = vadd.f32 %v4880_v53, %v1854_v7  ;;  %v2183_v39 = vpop.f32.mrf.mxu1  ;;  %v4059_v33 = vld [vmem:[%s4518_s5 + $0x5f4] sm:$0xf0] }
 0x20a   : > { %3149 = vst [vmem:[%s4654_s9 + $0x158] sm:$0xff] %v3021_v5  ;;  %v4062_v5 = vor.u32 %v4394_v54, %v4059_v33  ;;  %v3685_v54 = vld [vmem:[%s4518_s5 + $0x300] sm:$0xf]  ;;  %v4302_v33 = vld [vmem:[%s4518_s5 + $0x308] sm:$0xf0] }
 0x20b   : > { %v2184_v11 = vadd.f32 %v2183_v39, %v1855_v1  ;;  %1893 = vmatmul.bf16.gmra.mxu0 %v3662_v63  ;;  %2382 = vmatmul.bf16.gmra.mxu3 %v4050_v3  ;;  %v3675_v63 = vld [vmem:[%s4518_s5 + $0x2f4] sm:$0xf0]  ;;  %v3674_v3 = vor.u32 %v4299_v43, %v3673_v42 }
 0x20c   : > { %2222 = vmatmul.bf16.gmra.mxu1 %v3666_v29 }
 0x20d   : > { %v2513_v38 = vadd.f32 %v2512_v59, %v2184_v11  ;;  %v3678_v11 = vor.u32 %v4298_v10, %v3675_v63  ;;  %v2022_v10 = vadd.f32 %v4880_v53, %v4784_v13 }
 0x20e   : > { %v2343_v8 = vpop.f32.mrf.mxu3 }
 0x20f   : > { %vm2766_vm15 = vcmp.ge.f32.partialorder %v2513_v38, 0.0  ;;  %v2894_v58 = vmul.f32 0.25, %v2513_v38  ;;  %v5059_v22 = vadd.f32 %v2343_v8, %v2015_v49  ;;  %v2020_v8 = vadd.f32 %v4880_v53, %v4771_v52 }
 0x210   : > { %v2519_v44 = vpop.f32.mrf.mxu2  ;;  %v1856_v24 = vpop.f32.mrf.mxu0 }
 0x211   : > { %v3022_v26 = vsel %vm2766_vm15, %v2513_v38, %v2894_v58  ;;  %v1857_v20 = vadd.f32 %v4880_v53, %v1856_v24  ;;  %v2185_v16 = vpop.f32.mrf.mxu1  ;;  %v3705_v58 = vld [vmem:[%s4518_s5 + $0x320] sm:$0xf]  ;;  %v4306_v24 = vld [vmem:[%s4518_s5 + $0x328] sm:$0xf0] }
 0x212   : > { %3150 = vst [vmem:[%s4654_s9 + $0x160] sm:$0xff] %v3022_v26  ;;  %v3706_v43 = vor.u32 %v4306_v24, %v3705_v58 }
 0x213   : > { %v2186_v59 = vadd.f32 %v2185_v16, %v1857_v20 }
 0x215   : > { %v2515_v18 = vadd.f32 %v2514_v9, %v2186_v59  ;;  %4171 = vmatmul.msk.bf16.gmra.mxu2 %vm1542_vm0, %v3694_v34 }
 0x216   : > { %v2345_v40 = vpop.f32.mrf.mxu3 }
 0x217   : > { %vm2767_vm1 = vcmp.ge.f32.partialorder %v2515_v18, 0.0  ;;  %v2895_v7 = vmul.f32 0.25, %v2515_v18  ;;  %v5072_v29 = vadd.f32 %v2345_v40, %v2017_v61  ;;  %v3909_v61 = vld [vmem:[%s4518_s5 + $0x4b8] sm:$0xf]  ;;  %v4301_v40 = vld [vmem:[%s4518_s5 + $0x304] sm:$0xf] }
 0x218   : > { %v2522_v1 = vpop.f32.mrf.mxu2  ;;  %v1859_v39 = vpop.f32.mrf.mxu0 }
 0x219   : > { %v3023_v49 = vsel %vm2767_vm1, %v2515_v18, %v2895_v7  ;;  %v1860_v37 = vadd.f32 %v4880_v53, %v1859_v39  ;;  %v2188_v9 = vpop.f32.mrf.mxu1  ;;  %v4357_v18 = vld [vmem:[%s4518_s5 + $0x4c0] sm:$0xf0] }
 0x21a   : > { %3151 = vst [vmem:[%s4654_s9 + $0x168] sm:$0xff] %v3023_v49  ;;  %v3910_v49 = vor.u32 %v4357_v18, %v3909_v61  ;;  %v3697_v61 = vld [vmem:[%s4518_s5 + $0x318] sm:$0xf]  ;;  %v4305_v18 = vld [vmem:[%s4518_s5 + $0x320] sm:$0xf0] }
 0x21b   : > { %v2189_v38 = vadd.f32 %v2188_v9, %v1860_v37  ;;  %1898 = vmatmul.bf16.gmra.mxu0 %v3674_v3  ;;  %2387 = vmatmul.bf16.gmra.mxu3 %v4062_v5  ;;  %v3687_v3 = vld [vmem:[%s4518_s5 + $0x30c] sm:$0xf0]  ;;  %v3686_v5 = vor.u32 %v4302_v33, %v3685_v54 }
 0x21c   : > { %2227 = vmatmul.bf16.gmra.mxu1 %v3678_v11 }
 0x21d   : > { %v2518_v28 = vadd.f32 %v2517_v30, %v2189_v38  ;;  %v3690_v38 = vor.u32 %v4301_v40, %v3687_v3  ;;  %v2027_v40 = vadd.f32 %v4880_v53, %v4801_v51 }
 0x21e   : > { %v2348_v21 = vpop.f32.mrf.mxu3 }
 0x21f   : > { %vm2768_vm2 = vcmp.ge.f32.partialorder %v2518_v28, 0.0  ;;  %v2896_v26 = vmul.f32 0.25, %v2518_v28  ;;  %v5080_v20 = vadd.f32 %v2348_v21, %v2020_v8  ;;  %v2025_v21 = vadd.f32 %v4880_v53, %v4788_v27 }
 0x220   : > { %v2524_v16 = vpop.f32.mrf.mxu2  ;;  %v1861_v34 = vpop.f32.mrf.mxu0 }
 0x221   : > { %v3024_v59 = vsel %vm2768_vm2, %v2518_v28, %v2896_v26  ;;  %v1862_v42 = vadd.f32 %v4880_v53, %v1861_v34  ;;  %v2190_v52 = vpop.f32.mrf.mxu1  ;;  %v3717_v26 = vld [vmem:[%s4518_s5 + $0x338] sm:$0xf]  ;;  %v4309_v34 = vld [vmem:[%s4518_s5 + $0x340] sm:$0xf0] }
 0x222   : > { %3152 = vst [vmem:[%s4654_s9 + $0x170] sm:$0xff] %v3024_v59  ;;  %v3718_v33 = vor.u32 %v4309_v34, %v3717_v26 }
 0x223   : > { %v2191_v30 = vadd.f32 %v2190_v52, %v1862_v42 }
 0x225   : > { %v2520_v63 = vadd.f32 %v2519_v44, %v2191_v30  ;;  %4172 = vmatmul.msk.bf16.gmra.mxu2 %vm1542_vm0, %v3706_v43 }
 0x226   : > { %v2350_v7 = vpop.f32.mrf.mxu3 }
 0x227   : > { %vm2769_vm3 = vcmp.ge.f32.partialorder %v2520_v63, 0.0  ;;  %v2897_v39 = vmul.f32 0.25, %v2520_v63  ;;  %v5093_v11 = vadd.f32 %v2350_v7, %v2022_v10  ;;  %v3921_v10 = vld [vmem:[%s4518_s5 + $0x4d0] sm:$0xf]  ;;  %v4304_v7 = vld [vmem:[%s4518_s5 + $0x31c] sm:$0xf] }
 0x228   : > { %v2527_v37 = vpop.f32.mrf.mxu2  ;;  %v1864_v9 = vpop.f32.mrf.mxu0 }
 0x229   : > { %v3025_v8 = vsel %vm2769_vm3, %v2520_v63, %v2897_v39  ;;  %v1865_v13 = vadd.f32 %v4880_v53, %v1864_v9  ;;  %v2193_v44 = vpop.f32.mrf.mxu1  ;;  %v4360_v63 = vld [vmem:[%s4518_s5 + $0x4d8] sm:$0xf0] }
 0x22a   : > { %3153 = vst [vmem:[%s4654_s9 + $0x178] sm:$0xff] %v3025_v8  ;;  %v3922_v8 = vor.u32 %v4360_v63, %v3921_v10  ;;  %v3709_v10 = vld [vmem:[%s4518_s5 + $0x330] sm:$0xf]  ;;  %v4308_v63 = vld [vmem:[%s4518_s5 + $0x338] sm:$0xf0] }
 0x22b   : > { %v2194_v28 = vadd.f32 %v2193_v44, %v1865_v13  ;;  %1903 = vmatmul.bf16.gmra.mxu0 %v3686_v5  ;;  %4189 = vmatmul.msk.bf16.vlgmr.msra.gmra.mxu3 %vm1542_vm0, %v3910_v49  ;;  %v3699_v5 = vld [vmem:[%s4518_s5 + $0x324] sm:$0xf0]  ;;  %v3698_v49 = vor.u32 %v4305_v18, %v3697_v61 }
 0x22c   : > { %2232 = vmatmul.bf16.gmra.mxu1 %v3690_v38 }
 0x22d   : > { %v2523_v58 = vadd.f32 %v2522_v1, %v2194_v28  ;;  %v3702_v28 = vor.u32 %v4304_v7, %v3699_v5  ;;  %v2032_v7 = vadd.f32 %v4880_v53, %v4818_v31  ;;  %v5142_v31 = vld [vmem:[%s5510_s2] ss:$0 sm:$0xff] }
 0x22e   : > { %v2353_v24 = vpop.f32.mrf.mxu3 }
 0x22f   : > { %vm2770_vm4 = vcmp.ge.f32.partialorder %v2523_v58, 0.0  ;;  %v2898_v59 = vmul.f32 0.25, %v2523_v58  ;;  %v5102_v42 = vadd.f32 %v2353_v24, %v2025_v21  ;;  %v2030_v24 = vadd.f32 %v4880_v53, %v4805_v4 }
 0x230   : > { %v2529_v52 = vpop.f32.mrf.mxu2  ;;  %v1866_v43 = vpop.f32.mrf.mxu0 }
 0x231   : > { %v3026_v30 = vsel %vm2770_vm4, %v2523_v58, %v2898_v59  ;;  %v1867_v54 = vadd.f32 %v4880_v53, %v1866_v43  ;;  %v2195_v27 = vpop.f32.mrf.mxu1  ;;  %v3729_v59 = vld [vmem:[%s4518_s5 + $0x350] sm:$0xf]  ;;  %v4312_v43 = vld [vmem:[%s4518_s5 + $0x358] sm:$0xf0] }
 0x232   : > { %3154 = vst [vmem:[%s4654_s9 + $0x180] sm:$0xff] %v3026_v30  ;;  %v3730_v18 = vor.u32 %v4312_v43, %v3729_v59 }
 0x233   : > { %v2196_v1 = vadd.f32 %v2195_v27, %v1867_v54 }
 0x235   : > { %v2525_v3 = vadd.f32 %v2524_v16, %v2196_v1  ;;  %4173 = vmatmul.msk.bf16.gmra.mxu2 %vm1542_vm0, %v3718_v33 }
 0x236   : > { %v2355_v39 = vpop.f32.mrf.mxu3 }
 0x237   : > { %vm2771_vm5 = vcmp.ge.f32.partialorder %v2525_v3, 0.0  ;;  %v2899_v9 = vmul.f32 0.25, %v2525_v3  ;;  %v5115_v38 = vadd.f32 %v2355_v39, %v2027_v40  ;;  %v3933_v40 = vld [vmem:[%s4518_s5 + $0x4e8] sm:$0xf]  ;;  %v4307_v39 = vld [vmem:[%s4518_s5 + $0x334] sm:$0xf] }
 0x238   : > { %v2532_v13 = vpop.f32.mrf.mxu2  ;;  %v1869_v44 = vpop.f32.mrf.mxu0 }
 0x239   : > { %v3027_v21 = vsel %vm2771_vm5, %v2525_v3, %v2899_v9  ;;  %v1870_v51 = vadd.f32 %v4880_v53, %v1869_v44  ;;  %v2198_v16 = vpop.f32.mrf.mxu1  ;;  %v4363_v3 = vld [vmem:[%s4518_s5 + $0x4f0] sm:$0xf0] }
 0x23a   : > { %3155 = vst [vmem:[%s4654_s9 + $0x188] sm:$0xff] %v3027_v21  ;;  %v3934_v21 = vor.u32 %v4363_v3, %v3933_v40  ;;  %v3721_v40 = vld [vmem:[%s4518_s5 + $0x348] sm:$0xf]  ;;  %v4311_v3 = vld [vmem:[%s4518_s5 + $0x350] sm:$0xf0] }
 0x23b   : > { %v2199_v58 = vadd.f32 %v2198_v16, %v1870_v51  ;;  %1908 = vmatmul.bf16.gmra.mxu0 %v3698_v49  ;;  %4190 = vmatmul.msk.bf16.gmra.mxu3 %vm1542_vm0, %v3922_v8  ;;  %v3711_v49 = vld [vmem:[%s4518_s5 + $0x33c] sm:$0xf0]  ;;  %v3710_v8 = vor.u32 %v4308_v63, %v3709_v10 }
 0x23c   : > { %2237 = vmatmul.bf16.gmra.mxu1 %v3702_v28 }
 0x23d   : > { %v2528_v26 = vadd.f32 %v2527_v37, %v2199_v58  ;;  %v3714_v58 = vor.u32 %v4307_v39, %v3711_v49  ;;  %v2037_v39 = vadd.f32 %v5142_v31, %v4835_v12 }
 0x23e   : > { %v2358_v34 = vpop.f32.mrf.mxu3 }
 0x23f   : > { %vm2772_vm6 = vcmp.ge.f32.partialorder %v2528_v26, 0.0  ;;  %v2900_v30 = vmul.f32 0.25, %v2528_v26  ;;  %v5124_v54 = vadd.f32 %v2358_v34, %v2030_v24  ;;  %v2035_v34 = vadd.f32 %v5142_v31, %v4822_v47 }
 0x240   : > { %v2534_v27 = vpop.f32.mrf.mxu2  ;;  %v1871_v33 = vpop.f32.mrf.mxu0 }
 0x241   : > { %v3028_v1 = vsel %vm2772_vm6, %v2528_v26, %v2900_v30  ;;  %v1872_v61 = vadd.f32 %v4880_v53, %v1871_v33  ;;  %v2200_v4 = vpop.f32.mrf.mxu1  ;;  %v3741_v30 = vld [vmem:[%s4518_s5 + $0x368] sm:$0xf]  ;;  %v4315_v33 = vld [vmem:[%s4518_s5 + $0x370] sm:$0xf0] }
 0x242   : > { %3156 = vst [vmem:[%s4654_s9 + $0x190] sm:$0xff] %v3028_v1  ;;  %v3742_v63 = vor.u32 %v4315_v33, %v3741_v30 }
 0x243   : > { %v2201_v37 = vadd.f32 %v2200_v4, %v1872_v61 }
 0x245   : > { %v2530_v5 = vadd.f32 %v2529_v52, %v2201_v37  ;;  %4174 = vmatmul.msk.bf16.gmra.mxu2 %vm1542_vm0, %v3730_v18 }
 0x246   : > { %v2360_v9 = vpop.f32.mrf.mxu3 }
 0x247   : > { %vm2773_vm7 = vcmp.ge.f32.partialorder %v2530_v5, 0.0  ;;  %v2901_v44 = vmul.f32 0.25, %v2530_v5  ;;  %v5137_v28 = vadd.f32 %v2360_v9, %v2032_v7  ;;  %v3945_v7 = vld [vmem:[%s4518_s5 + $0x500] sm:$0xf]  ;;  %v4310_v9 = vld [vmem:[%s4518_s5 + $0x34c] sm:$0xf] }
 0x248   : > { %v2537_v51 = vpop.f32.mrf.mxu2  ;;  %v1874_v16 = vpop.f32.mrf.mxu0 }
 0x249   : > { %v3029_v24 = vsel %vm2773_vm7, %v2530_v5, %v2901_v44  ;;  %v1875_v53 = vadd.f32 %v5142_v31, %v1874_v16  ;;  %v2203_v52 = vpop.f32.mrf.mxu1  ;;  %v4366_v5 = vld [vmem:[%s4518_s5 + $0x508] sm:$0xf0] }
 0x24a   : > { %3157 = vst [vmem:[%s4654_s9 + $0x198] sm:$0xff] %v3029_v24  ;;  %v3946_v24 = vor.u32 %v4366_v5, %v3945_v7  ;;  %v3733_v7 = vld [vmem:[%s4518_s5 + $0x360] sm:$0xf]  ;;  %v4314_v5 = vld [vmem:[%s4518_s5 + $0x368] sm:$0xf0] }
 0x24b   : > { %v2204_v26 = vadd.f32 %v2203_v52, %v1875_v53  ;;  %1913 = vmatmul.bf16.gmra.mxu0 %v3710_v8  ;;  %4191 = vmatmul.msk.bf16.gmra.mxu3 %vm1542_vm0, %v3934_v21  ;;  %v3723_v8 = vld [vmem:[%s4518_s5 + $0x354] sm:$0xf0]  ;;  %v3722_v21 = vor.u32 %v4311_v3, %v3721_v40 }
 0x24c   : > { %2242 = vmatmul.bf16.gmra.mxu1 %v3714_v58 }
 0x24d   : > { %v2533_v59 = vadd.f32 %v2532_v13, %v2204_v26  ;;  %v3726_v26 = vor.u32 %v4310_v9, %v3723_v8  ;;  %v2042_v9 = vadd.f32 %v5142_v31, %v4852_v60 }
 0x24e   : > { %v2363_v43 = vpop.f32.mrf.mxu3 }
 0x24f   : > { %vm2774_vm8 = vcmp.ge.f32.partialorder %v2533_v59, 0.0  ;;  %v2902_v1 = vmul.f32 0.25, %v2533_v59  ;;  %v5151_v61 = vadd.f32 %v2363_v43, %v2035_v34  ;;  %v2040_v43 = vadd.f32 %v5142_v31, %v4839_v25 }
 0x250   : > { %v2539_v4 = vpop.f32.mrf.mxu2  ;;  %v1876_v18 = vpop.f32.mrf.mxu0 }
 0x251   : > { %v3030_v37 = vsel %vm2774_vm8, %v2533_v59, %v2902_v1  ;;  %v1877_v10 = vadd.f32 %v5142_v31, %v1876_v18  ;;  %v2205_v47 = vpop.f32.mrf.mxu1  ;;  %v3753_v1 = vld [vmem:[%s4518_s5 + $0x380] sm:$0xf]  ;;  %v4318_v18 = vld [vmem:[%s4518_s5 + $0x388] sm:$0xf0] }
 0x252   : > { %3158 = vst [vmem:[%s4654_s9 + $0x1a0] sm:$0xff] %v3030_v37  ;;  %v3754_v3 = vor.u32 %v4318_v18, %v3753_v1 }
 0x253   : > { %v2206_v13 = vadd.f32 %v2205_v47, %v1877_v10 }
 0x255   : > { %v2535_v49 = vadd.f32 %v2534_v27, %v2206_v13  ;;  %4175 = vmatmul.msk.bf16.gmra.mxu2 %vm1542_vm0, %v3742_v63 }
 0x256   : > { %v2365_v44 = vpop.f32.mrf.mxu3 }
 0x257   : > { %vm2775_vm9 = vcmp.ge.f32.partialorder %v2535_v49, 0.0  ;;  %v2903_v16 = vmul.f32 0.25, %v2535_v49  ;;  %v5164_v58 = vadd.f32 %v2365_v44, %v2037_v39  ;;  %v3957_v39 = vld [vmem:[%s4518_s5 + $0x518] sm:$0xf]  ;;  %v4313_v44 = vld [vmem:[%s4518_s5 + $0x364] sm:$0xf] }
 0x258   : > { %v2542_v53 = vpop.f32.mrf.mxu2  ;;  %v1879_v52 = vpop.f32.mrf.mxu0 }
 0x259   : > { %v3031_v34 = vsel %vm2775_vm9, %v2535_v49, %v2903_v16  ;;  %v1880_v12 = vadd.f32 %v5142_v31, %v1879_v52  ;;  %v2208_v27 = vpop.f32.mrf.mxu1  ;;  %v4369_v49 = vld [vmem:[%s4518_s5 + $0x520] sm:$0xf0] }
 0x25a   : > { %3159 = vst [vmem:[%s4654_s9 + $0x1a8] sm:$0xff] %v3031_v34  ;;  %v3958_v34 = vor.u32 %v4369_v49, %v3957_v39  ;;  %v3745_v39 = vld [vmem:[%s4518_s5 + $0x378] sm:$0xf]  ;;  %v4317_v49 = vld [vmem:[%s4518_s5 + $0x380] sm:$0xf0] }
 0x25b   : > { %v2209_v59 = vadd.f32 %v2208_v27, %v1880_v12  ;;  %1918 = vmatmul.bf16.gmra.mxu0 %v3722_v21  ;;  %4192 = vmatmul.msk.bf16.gmra.mxu3 %vm1542_vm0, %v3946_v24  ;;  %v3735_v21 = vld [vmem:[%s4518_s5 + $0x36c] sm:$0xf0]  ;;  %v3734_v24 = vor.u32 %v4314_v5, %v3733_v7 }
 0x25c   : > { %2247 = vmatmul.bf16.gmra.mxu1 %v3726_v26 }
 0x25d   : > { %v2538_v30 = vadd.f32 %v2537_v51, %v2209_v59  ;;  %v3738_v59 = vor.u32 %v4313_v44, %v3735_v21  ;;  %v2047_v44 = vadd.f32 %v5142_v31, %v4869_v45 }
 0x25e   : > { %v2368_v33 = vpop.f32.mrf.mxu3 }
 0x25f   : > { %vm2776_vm10 = vcmp.ge.f32.partialorder %v2538_v30, 0.0  ;;  %v2904_v37 = vmul.f32 0.25, %v2538_v30  ;;  %v5173_v10 = vadd.f32 %v2368_v33, %v2040_v43  ;;  %v2045_v33 = vadd.f32 %v5142_v31, %v4856_v14 }
 0x260   : > { %v2544_v47 = vpop.f32.mrf.mxu2  ;;  %v1881_v63 = vpop.f32.mrf.mxu0 }
 0x261   : > { %v3032_v13 = vsel %vm2776_vm10, %v2538_v30, %v2904_v37  ;;  %v1882_v40 = vadd.f32 %v5142_v31, %v1881_v63  ;;  %v2210_v25 = vpop.f32.mrf.mxu1  ;;  %v3765_v37 = vld [vmem:[%s4518_s5 + $0x398] sm:$0xf]  ;;  %v4321_v63 = vld [vmem:[%s4518_s5 + $0x3a0] sm:$0xf0] }
 0x262   : > { %3160 = vst [vmem:[%s4654_s9 + $0x1b0] sm:$0xff] %v3032_v13  ;;  %v3766_v5 = vor.u32 %v4321_v63, %v3765_v37 }
 0x263   : > { %v2211_v51 = vadd.f32 %v2210_v25, %v1882_v40 }
 0x265   : > { %v2540_v8 = vadd.f32 %v2539_v4, %v2211_v51  ;;  %4176 = vmatmul.msk.bf16.gmra.mxu2 %vm1542_vm0, %v3754_v3 }
 0x266   : > { %v2370_v16 = vpop.f32.mrf.mxu3 }
 0x267   : > { %vm2777_vm11 = vcmp.ge.f32.partialorder %v2540_v8, 0.0  ;;  %v2905_v52 = vmul.f32 0.25, %v2540_v8  ;;  %v5186_v26 = vadd.f32 %v2370_v16, %v2042_v9  ;;  %v3969_v9 = vld [vmem:[%s4518_s5 + $0x530] sm:$0xf]  ;;  %v4316_v16 = vld [vmem:[%s4518_s5 + $0x37c] sm:$0xf] }
 0x268   : > { %v2547_v12 = vpop.f32.mrf.mxu2  ;;  %v1884_v27 = vpop.f32.mrf.mxu0 }
 0x269   : > { %v3033_v43 = vsel %vm2777_vm11, %v2540_v8, %v2905_v52  ;;  %v1885_v60 = vadd.f32 %v5142_v31, %v1884_v27  ;;  %v2213_v4 = vpop.f32.mrf.mxu1  ;;  %v4372_v8 = vld [vmem:[%s4518_s5 + $0x538] sm:$0xf0] }
 0x26a   : > { %3161 = vst [vmem:[%s4654_s9 + $0x1b8] sm:$0xff] %v3033_v43  ;;  %v3970_v43 = vor.u32 %v4372_v8, %v3969_v9  ;;  %v3757_v9 = vld [vmem:[%s4518_s5 + $0x390] sm:$0xf]  ;;  %v4320_v8 = vld [vmem:[%s4518_s5 + $0x398] sm:$0xf0] }
 0x26b   : > { %v2214_v30 = vadd.f32 %v2213_v4, %v1885_v60  ;;  %1923 = vmatmul.bf16.gmra.mxu0 %v3734_v24  ;;  %4193 = vmatmul.msk.bf16.gmra.mxu3 %vm1542_vm0, %v3958_v34  ;;  %v3747_v24 = vld [vmem:[%s4518_s5 + $0x384] sm:$0xf0]  ;;  %v3746_v34 = vor.u32 %v4317_v49, %v3745_v39 }
 0x26c   : > { %2252 = vmatmul.bf16.gmra.mxu1 %v3738_v59 }
 0x26d   : > { %v2543_v1 = vadd.f32 %v2542_v53, %v2214_v30  ;;  %v3750_v30 = vor.u32 %v4316_v16, %v3747_v24  ;;  %v2052_v16 = vadd.f32 %v5142_v31, %v4891_v19 }
 0x26e   : > { %v2373_v18 = vpop.f32.mrf.mxu3 }
 0x26f   : > { %vm2778_vm12 = vcmp.ge.f32.partialorder %v2543_v1, 0.0  ;;  %v2906_v13 = vmul.f32 0.25, %v2543_v1  ;;  %v5195_v40 = vadd.f32 %v2373_v18, %v2045_v33  ;;  %v2050_v18 = vadd.f32 %v5142_v31, %v4873_v0 }
 0x270   : > { %v2549_v25 = vpop.f32.mrf.mxu2  ;;  %v1886_v3 = vpop.f32.mrf.mxu0 }
 0x271   : > { %v3034_v51 = vsel %vm2778_vm12, %v2543_v1, %v2906_v13  ;;  %v1887_v7 = vadd.f32 %v5142_v31, %v1886_v3  ;;  %v2215_v14 = vpop.f32.mrf.mxu1  ;;  %v3777_v13 = vld [vmem:[%s4518_s5 + $0x3b0] sm:$0xf]  ;;  %v4324_v3 = vld [vmem:[%s4518_s5 + $0x3b8] sm:$0xf0] }
 0x272   : > { %3162 = vst [vmem:[%s4654_s9 + $0x1c0] sm:$0xff] %v3034_v51  ;;  %v3778_v49 = vor.u32 %v4324_v3, %v3777_v13 }
 0x273   : > { %v2216_v53 = vadd.f32 %v2215_v14, %v1887_v7 }
 0x275   : > { %v2545_v21 = vadd.f32 %v2544_v47, %v2216_v53  ;;  %4177 = vmatmul.msk.bf16.gmra.mxu2 %vm1542_vm0, %v3766_v5 }
 0x276   : > { %v2375_v52 = vpop.f32.mrf.mxu3 }
 0x277   : > { %vm2779_vm13 = vcmp.ge.f32.partialorder %v2545_v21, 0.0  ;;  %v2907_v27 = vmul.f32 0.25, %v2545_v21  ;;  %v5208_v59 = vadd.f32 %v2375_v52, %v2047_v44  ;;  %v3981_v44 = vld [vmem:[%s4518_s5 + $0x548] sm:$0xf]  ;;  %v4319_v52 = vld [vmem:[%s4518_s5 + $0x394] sm:$0xf] }
 0x278   : > { %v2552_v60 = vpop.f32.mrf.mxu2  ;;  %v1889_v4 = vpop.f32.mrf.mxu0 }
 0x279   : > { %v3035_v33 = vsel %vm2779_vm13, %v2545_v21, %v2907_v27  ;;  %v1890_v45 = vadd.f32 %v5142_v31, %v1889_v4  ;;  %v2218_v47 = vpop.f32.mrf.mxu1  ;;  %v4375_v21 = vld [vmem:[%s4518_s5 + $0x550] sm:$0xf0] }
 0x27a   : > { %3163 = vst [vmem:[%s4654_s9 + $0x1c8] sm:$0xff] %v3035_v33  ;;  %v3982_v33 = vor.u32 %v4375_v21, %v3981_v44  ;;  %v3769_v44 = vld [vmem:[%s4518_s5 + $0x3a8] sm:$0xf]  ;;  %v4323_v21 = vld [vmem:[%s4518_s5 + $0x3b0] sm:$0xf0] }
 0x27b   : > { %v2219_v1 = vadd.f32 %v2218_v47, %v1890_v45  ;;  %1928 = vmatmul.bf16.gmra.mxu0 %v3746_v34  ;;  %4194 = vmatmul.msk.bf16.gmra.mxu3 %vm1542_vm0, %v3970_v43  ;;  %v3759_v34 = vld [vmem:[%s4518_s5 + $0x39c] sm:$0xf0]  ;;  %v3758_v43 = vor.u32 %v4320_v8, %v3757_v9 }
 0x27c   : > { %2257 = vmatmul.bf16.gmra.mxu1 %v3750_v30 }
 0x27d   : > { %v2548_v37 = vadd.f32 %v2547_v12, %v2219_v1  ;;  %v3762_v1 = vor.u32 %v4319_v52, %v3759_v34  ;;  %v2057_v52 = vadd.f32 %v5142_v31, %v4908_v23 }
 0x27e   : > { %v2378_v63 = vpop.f32.mrf.mxu3 }
 0x27f   : > { %vm2780_vm14 = vcmp.ge.f32.partialorder %v2548_v37, 0.0  ;;  %v2908_v51 = vmul.f32 0.25, %v2548_v37  ;;  %v5217_v7 = vadd.f32 %v2378_v63, %v2050_v18  ;;  %v2055_v63 = vadd.f32 %v5142_v31, %v4895_v48 }
 0x280   : > { %v2554_v14 = vpop.f32.mrf.mxu2  ;;  %v1891_v5 = vpop.f32.mrf.mxu0 }
 0x281   : > { %v3036_v53 = vsel %vm2780_vm14, %v2548_v37, %v2908_v51  ;;  %v1892_v39 = vadd.f32 %v5142_v31, %v1891_v5  ;;  %v2220_v0 = vpop.f32.mrf.mxu1  ;;  %v3789_v51 = vld [vmem:[%s4518_s5 + $0x3c8] sm:$0xf]  ;;  %v4327_v5 = vld [vmem:[%s4518_s5 + $0x3d0] sm:$0xf0] }
 0x282   : > { %3164 = vst [vmem:[%s4654_s9 + $0x1d0] sm:$0xff] %v3036_v53  ;;  %v3790_v8 = vor.u32 %v4327_v5, %v3789_v51 }
 0x283   : > { %v2221_v12 = vadd.f32 %v2220_v0, %v1892_v39 }
 0x285   : > { %v2550_v24 = vadd.f32 %v2549_v25, %v2221_v12  ;;  %4178 = vmatmul.msk.bf16.gmra.mxu2 %vm1542_vm0, %v3778_v49 }
 0x286   : > { %v2380_v27 = vpop.f32.mrf.mxu3 }
 0x287   : > { %vm2781_vm15 = vcmp.ge.f32.partialorder %v2550_v24, 0.0  ;;  %v2909_v4 = vmul.f32 0.25, %v2550_v24  ;;  %v5230_v30 = vadd.f32 %v2380_v27, %v2052_v16  ;;  %v3993_v16 = vld [vmem:[%s4518_s5 + $0x560] sm:$0xf]  ;;  %v4322_v27 = vld [vmem:[%s4518_s5 + $0x3ac] sm:$0xf] }
 0x288   : > { %v2557_v45 = vpop.f32.mrf.mxu2  ;;  %v1894_v47 = vpop.f32.mrf.mxu0 }
 0x289   : > { %v3037_v18 = vsel %vm2781_vm15, %v2550_v24, %v2909_v4  ;;  %v1895_v19 = vadd.f32 %v5142_v31, %v1894_v47  ;;  %v2223_v25 = vpop.f32.mrf.mxu1  ;;  %v4378_v24 = vld [vmem:[%s4518_s5 + $0x568] sm:$0xf0] }
 0x28a   : > { %3165 = vst [vmem:[%s4654_s9 + $0x1d8] sm:$0xff] %v3037_v18  ;;  %v3994_v18 = vor.u32 %v4378_v24, %v3993_v16  ;;  %v3781_v16 = vld [vmem:[%s4518_s5 + $0x3c0] sm:$0xf]  ;;  %v4326_v24 = vld [vmem:[%s4518_s5 + $0x3c8] sm:$0xf0] }
 0x28b   : > { %v2224_v37 = vadd.f32 %v2223_v25, %v1895_v19  ;;  %1933 = vmatmul.bf16.gmra.mxu0 %v3758_v43  ;;  %4195 = vmatmul.msk.bf16.gmra.mxu3 %vm1542_vm0, %v3982_v33  ;;  %v3771_v43 = vld [vmem:[%s4518_s5 + $0x3b4] sm:$0xf0]  ;;  %v3770_v33 = vor.u32 %v4323_v21, %v3769_v44 }
 0x28c   : > { %2262 = vmatmul.bf16.gmra.mxu1 %v3762_v1 }
 0x28d   : > { %v2553_v13 = vadd.f32 %v2552_v60, %v2224_v37  ;;  %v3774_v37 = vor.u32 %v4322_v27, %v3771_v43  ;;  %v2062_v27 = vadd.f32 %v5142_v31, %v4925_v17 }
 0x28e   : > { %v2383_v3 = vpop.f32.mrf.mxu3 }
 0x28f   : > { %vm2782_vm1 = vcmp.ge.f32.partialorder %v2553_v13, 0.0  ;;  %v2910_v53 = vmul.f32 0.25, %v2553_v13  ;;  %v5239_v39 = vadd.f32 %v2383_v3, %v2055_v63  ;;  %v2060_v3 = vadd.f32 %v5142_v31, %v4912_v36 }
 0x290   : > { %v2559_v0 = vpop.f32.mrf.mxu2  ;;  %v1896_v49 = vpop.f32.mrf.mxu0 }
 0x291   : > { %v3038_v12 = vsel %vm2782_vm1, %v2553_v13, %v2910_v53  ;;  %v1897_v9 = vadd.f32 %v5142_v31, %v1896_v49  ;;  %v2225_v48 = vpop.f32.mrf.mxu1  ;;  %v3801_v53 = vld [vmem:[%s4518_s5 + $0x3e0] sm:$0xf]  ;;  %v4330_v49 = vld [vmem:[%s4518_s5 + $0x3e8] sm:$0xf0] }
 0x292   : > { %3166 = vst [vmem:[%s4654_s9 + $0x1e0] sm:$0xff] %v3038_v12  ;;  %v3802_v21 = vor.u32 %v4330_v49, %v3801_v53  ;;  %v3813_v53 = vld [vmem:[%s4518_s5 + $0x3f8] sm:$0xf]  ;;  %v4333_v49 = vld [vmem:[%s4518_s5 + $0x400] sm:$0xf0] }
 0x293   : > { %v2226_v60 = vadd.f32 %v2225_v48, %v1897_v9 }
 0x295   : > { %v2555_v34 = vadd.f32 %v2554_v14, %v2226_v60  ;;  %4179 = vmatmul.msk.bf16.gmra.mxu2 %vm1542_vm0, %v3790_v8 }
 0x296   : > { %v2385_v4 = vpop.f32.mrf.mxu3 }
 0x297   : > { %vm2783_vm2 = vcmp.ge.f32.partialorder %v2555_v34, 0.0  ;;  %v2911_v47 = vmul.f32 0.25, %v2555_v34  ;;  %v5252_v1 = vadd.f32 %v2385_v4, %v2057_v52  ;;  %v4005_v52 = vld [vmem:[%s4518_s5 + $0x578] sm:$0xf]  ;;  %v4325_v4 = vld [vmem:[%s4518_s5 + $0x3c4] sm:$0xf] }
 0x298   : > { %v2562_v19 = vpop.f32.mrf.mxu2  ;;  %v1899_v25 = vpop.f32.mrf.mxu0 }
 0x299   : > { %v3039_v63 = vsel %vm2783_vm2, %v2555_v34, %v2911_v47  ;;  %v1900_v23 = vadd.f32 %v5142_v31, %v1899_v25  ;;  %v2228_v14 = vpop.f32.mrf.mxu1  ;;  %v4381_v34 = vld [vmem:[%s4518_s5 + $0x580] sm:$0xf0] }
 0x29a   : > { %3167 = vst [vmem:[%s4654_s9 + $0x1e8] sm:$0xff] %v3039_v63  ;;  %v4006_v63 = vor.u32 %v4381_v34, %v4005_v52 }
 0x29b   : > { %v2229_v13 = vadd.f32 %v2228_v14, %v1900_v23  ;;  %1938 = vmatmul.bf16.gmra.mxu0 %v3770_v33  ;;  %4196 = vmatmul.msk.bf16.gmra.mxu3 %vm1542_vm0, %v3994_v18  ;;  %v3783_v33 = vld [vmem:[%s4518_s5 + $0x3cc] sm:$0xf0]  ;;  %v3782_v18 = vor.u32 %v4326_v24, %v3781_v16 }
 0x29c   : > { %2267 = vmatmul.bf16.gmra.mxu1 %v3774_v37 }
 0x29d   : > { %v2558_v51 = vadd.f32 %v2557_v45, %v2229_v13  ;;  %v3786_v13 = vor.u32 %v4325_v4, %v3783_v33  ;;  %v4384_v4 = vld [vmem:[%s4518_s5 + $0x598] sm:$0xf0] }
 0x29e   : > { %v2388_v5 = vpop.f32.mrf.mxu3 }
 0x29f   : > { %vm2784_vm3 = vcmp.ge.f32.partialorder %v2558_v51, 0.0  ;;  %v2912_v12 = vmul.f32 0.25, %v2558_v51  ;;  %v5261_v9 = vadd.f32 %v2388_v5, %v2060_v3 }
 0x2a0   : > { %v2564_v48 = vpop.f32.mrf.mxu2  ;;  %v1901_v8 = vpop.f32.mrf.mxu0 }
 0x2a1   : > { %v3040_v60 = vsel %vm2784_vm3, %v2558_v51, %v2912_v12  ;;  %v1902_v44 = vadd.f32 %v5142_v31, %v1901_v8  ;;  %v2230_v36 = vpop.f32.mrf.mxu1 }
 0x2a2   : > { %3168 = vst [vmem:[%s4654_s9 + $0x1f0] sm:$0xff] %v3040_v60 }
 0x2a3   : > { %v2231_v45 = vadd.f32 %v2230_v36, %v1902_v44 }
 0x2a5   : > { %v2560_v43 = vadd.f32 %v2559_v0, %v2231_v45  ;;  %4180 = vmatmul.msk.bf16.gmra.mxu2 %vm1542_vm0, %v3802_v21  ;;  %v3814_v21 = vor.u32 %v4333_v49, %v3813_v53 }
 0x2a6   : > { %v2390_v47 = vpop.f32.mrf.mxu3 }
 0x2a7   : > { %vm2785_vm4 = vcmp.ge.f32.partialorder %v2560_v43, 0.0  ;;  %v2913_v25 = vmul.f32 0.25, %v2560_v43  ;;  %v5274_v37 = vadd.f32 %v2390_v47, %v2062_v27  ;;  %v3793_v27 = vld [vmem:[%s4518_s5 + $0x3d8] sm:$0xf]  ;;  %v4328_v47 = vld [vmem:[%s4518_s5 + $0x3dc] sm:$0xf] }
 0x2a8   : > { %v2567_v23 = vpop.f32.mrf.mxu2  ;;  %v1904_v14 = vpop.f32.mrf.mxu0 }
 0x2a9   : > { %v3041_v3 = vsel %vm2785_vm4, %v2560_v43, %v2913_v25  ;;  %v1905_v17 = vadd.f32 %v5142_v31, %v1904_v14  ;;  %v2233_v0 = vpop.f32.mrf.mxu1  ;;  %v4329_v43 = vld [vmem:[%s4518_s5 + $0x3e0] sm:$0xf0] }
 0x2aa   : > { %3169 = vst [vmem:[%s4654_s9 + $0x1f8] sm:$0xff] %v3041_v3 }
 0x2ab   : > { %v2234_v51 = vadd.f32 %v2233_v0, %v1905_v17  ;;  %1943 = vmatmul.bf16.gmra.mxu0 %v3782_v18  ;;  %4197 = vmatmul.msk.bf16.gmra.mxu3 %vm1542_vm0, %v4006_v63  ;;  %v3795_v18 = vld [vmem:[%s4518_s5 + $0x3e4] sm:$0xf0]  ;;  %v3794_v63 = vor.u32 %v4329_v43, %v3793_v27 }
 0x2ac   : > { %2272 = vmatmul.bf16.gmra.mxu1 %v3786_v13 }
 0x2ad   : > { %v2563_v5 = vadd.f32 %v2562_v19, %v2234_v51  ;;  %v3798_v51 = vor.u32 %v4328_v47, %v3795_v18  ;;  %v4332_v47 = vld [vmem:[%s4518_s5 + $0x3f8] sm:$0xf0]  ;;  %v4387_v18 = vld [vmem:[%s4518_s5 + $0x5b0] sm:$0xf0] }
 0x2ae   : > { %v2652_v12 = vpop.f32.mrf.mxu3 }
 0x2af   : > { %vm2786_vm5 = vcmp.ge.f32.partialorder %v2563_v5, 0.0  ;;  %v2914_v8 = vmul.f32 0.25, %v2563_v5  ;;  %v2653_v60 = vadd.f32 %v2652_v12, %v4975_v41  ;;  %v4017_v41 = vld [vmem:[%s4518_s5 + $0x590] sm:$0xf] }
 0x2b0   : > { %v5282_v44 = vpop.f32.mrf.mxu2  ;;  %v1906_v36 = vpop.f32.mrf.mxu0  ;;  %v4018_v3 = vor.u32 %v4384_v4, %v4017_v41 }
 0x2b1   : > { %v3042_v45 = vsel %vm2786_vm5, %v2563_v5, %v2914_v8  ;;  %vm2822_vm6 = vcmp.ge.f32.partialorder %v2653_v60, 0.0  ;;  %v2950_v19 = vmul.f32 0.25, %v2653_v60  ;;  %v1907_v16 = vadd.f32 %v5142_v31, %v1906_v36  ;;  %v2235_v24 = vpop.f32.mrf.mxu1  ;;  %v4336_v36 = vld [vmem:[%s4518_s5 + $0x418] sm:$0xf0] }
 0x2b2   : > { %3170 = vst [vmem:[%s4654_s9 + $0x200] sm:$0xff] %v3042_v45 }
 0x2b3   : > { %v3078_v52 = vsel %vm2822_vm6, %v2653_v60, %v2950_v19  ;;  %v2236_v34 = vadd.f32 %v2235_v24, %v1907_v16  ;;  %v3825_v60 = vld [vmem:[%s4518_s5 + $0x410] sm:$0xf] }
 0x2b4   : > { %3206 = vst [vmem:[%s4654_s9 + $0x320] sm:$0xff] %v3078_v52  ;;  %v3826_v52 = vor.u32 %v4336_v36, %v3825_v60 }
 0x2b5   : > { %v2565_v33 = vadd.f32 %v2564_v48, %v2236_v34  ;;  %4181 = vmatmul.msk.bf16.gmra.mxu2 %vm1542_vm0, %v3814_v21 }
 0x2b6   : > { %v2654_v25 = vpop.f32.mrf.mxu3 }
 0x2b7   : > { %vm2787_vm7 = vcmp.ge.f32.partialorder %v2565_v33, 0.0  ;;  %v2915_v14 = vmul.f32 0.25, %v2565_v33  ;;  %v2655_v13 = vadd.f32 %v2654_v25, %v4988_v62 }
 0x2b8   : > { %v5295_v17 = vpop.f32.mrf.mxu2  ;;  %v1909_v0 = vpop.f32.mrf.mxu0 }
 0x2b9   : > { %v3043_v48 = vsel %vm2787_vm7, %v2565_v33, %v2915_v14  ;;  %vm2823_vm8 = vcmp.ge.f32.partialorder %v2655_v13, 0.0  ;;  %v2951_v5 = vmul.f32 0.25, %v2655_v13  ;;  %v1910_v53 = vadd.f32 %v5142_v31, %v1909_v0  ;;  %v2238_v49 = vpop.f32.mrf.mxu1  ;;  %v3805_v33 = vld [vmem:[%s4518_s5 + $0x3f0] sm:$0xf]  ;;  %v3807_v14 = vld [vmem:[%s4518_s5 + $0x3fc] sm:$0xf0] }
 0x2ba   : > { %3171 = vst [vmem:[%s4654_s9 + $0x208] sm:$0xff] %v3043_v48 }
 0x2bb   : > { %v3079_v12 = vsel %vm2823_vm8, %v2655_v13, %v2951_v5  ;;  %v2239_v8 = vadd.f32 %v2238_v49, %v1910_v53  ;;  %1948 = vmatmul.bf16.gmra.mxu0 %v3794_v63  ;;  %4198 = vmatmul.msk.bf16.gmra.mxu3 %vm1542_vm0, %v4018_v3  ;;  %v4331_v63 = vld [vmem:[%s4518_s5 + $0x3f4] sm:$0xf]  ;;  %v3806_v3 = vor.u32 %v4332_v47, %v3805_v33 }
 0x2bc   : > { %3207 = vst [vmem:[%s4654_s9 + $0x328] sm:$0xff] %v3079_v12  ;;  %2277 = vmatmul.bf16.gmra.mxu1 %v3798_v51  ;;  %v3810_v49 = vor.u32 %v4331_v63, %v3807_v14  ;;  %v4334_v14 = vld [vmem:[%s4518_s5 + $0x40c] sm:$0xf] }
 0x2bd   : > { %v2568_v62 = vadd.f32 %v2567_v23, %v2239_v8 }
 0x2be   : > { %v2657_v21 = vpop.f32.mrf.mxu3 }
 0x2bf   : > { %vm2788_vm9 = vcmp.ge.f32.partialorder %v2568_v62, 0.0  ;;  %v2916_v45 = vmul.f32 0.25, %v2568_v62  ;;  %v2658_v19 = vadd.f32 %v2657_v21, %v4996_v6  ;;  %v4029_v6 = vld [vmem:[%s4518_s5 + $0x5a8] sm:$0xf] }
 0x2c0   : > { %v5304_v16 = vpop.f32.mrf.mxu2  ;;  %v1911_v24 = vpop.f32.mrf.mxu0  ;;  %v4030_v48 = vor.u32 %v4387_v18, %v4029_v6  ;;  %v3837_v21 = vld [vmem:[%s4518_s5 + $0x428] sm:$0xf]  ;;  %v4335_v18 = vld [vmem:[%s4518_s5 + $0x410] sm:$0xf0] }
 0x2c1   : > { %v3044_v34 = vsel %vm2788_vm9, %v2568_v62, %v2916_v45  ;;  %vm2824_vm10 = vcmp.ge.f32.partialorder %v2658_v19, 0.0  ;;  %v2952_v23 = vmul.f32 0.25, %v2658_v19  ;;  %v1912_v27 = vadd.f32 %v5142_v31, %v1911_v24  ;;  %v2240_v43 = vpop.f32.mrf.mxu1  ;;  %v4339_v45 = vld [vmem:[%s4518_s5 + $0x430] sm:$0xf0]  ;;  %v3817_v6 = vld [vmem:[%s4518_s5 + $0x408] sm:$0xf] }
 0x2c2   : > { %3172 = vst [vmem:[%s4654_s9 + $0x210] sm:$0xff] %v3044_v34 }
 0x2c3   : > { %v3080_v41 = vsel %vm2824_vm10, %v2658_v19, %v2952_v23  ;;  %v2241_v4 = vadd.f32 %v2240_v43, %v1912_v27  ;;  %v3838_v27 = vor.u32 %v4339_v45, %v3837_v21  ;;  %v3849_v21 = vld [vmem:[%s4518_s5 + $0x440] sm:$0xf]  ;;  %v4342_v45 = vld [vmem:[%s4518_s5 + $0x448] sm:$0xf0] }
 0x2c4   : > { %3208 = vst [vmem:[%s4654_s9 + $0x330] sm:$0xff] %v3080_v41 }
 0x2c5   : > { %v2570_v25 = vadd.f32 %v5282_v44, %v2241_v4  ;;  %4182 = vmatmul.msk.bf16.gmra.mxu2 %vm1542_vm0, %v3826_v52 }
 0x2c6   : > { %v2659_v13 = vpop.f32.mrf.mxu3 }
 0x2c7   : > { %vm2789_vm11 = vcmp.ge.f32.partialorder %v2570_v25, 0.0  ;;  %v2917_v0 = vmul.f32 0.25, %v2570_v25  ;;  %v2660_v51 = vadd.f32 %v2659_v13, %v5009_v46  ;;  %v3819_v13 = vld [vmem:[%s4518_s5 + $0x414] sm:$0xf0] }
 0x2c8   : > { %v5318_v5 = vpop.f32.mrf.mxu2  ;;  %v1914_v53 = vpop.f32.mrf.mxu0 }
 0x2c9   : > { %v3045_v44 = vsel %vm2789_vm11, %v2570_v25, %v2917_v0  ;;  %vm2825_vm12 = vcmp.ge.f32.partialorder %v2660_v51, 0.0  ;;  %v2953_v12 = vmul.f32 0.25, %v2660_v51  ;;  %v1915_v8 = vadd.f32 %v5142_v31, %v1914_v53  ;;  %v2243_v62 = vpop.f32.mrf.mxu1  ;;  %v4390_v25 = vld [vmem:[%s4518_s5 + $0x5c8] sm:$0xf0] }
 0x2ca   : > { %3173 = vst [vmem:[%s4654_s9 + $0x218] sm:$0xff] %v3045_v44  ;;  %v3818_v0 = vor.u32 %v4335_v18, %v3817_v6  ;;  %v3829_v6 = vld [vmem:[%s4518_s5 + $0x420] sm:$0xf]  ;;  %v4338_v18 = vld [vmem:[%s4518_s5 + $0x428] sm:$0xf0] }
 0x2cb   : > { %v3081_v60 = vsel %vm2825_vm12, %v2660_v51, %v2953_v12  ;;  %v2244_v36 = vadd.f32 %v2243_v62, %v1915_v8  ;;  %1953 = vmatmul.bf16.gmra.mxu0 %v3806_v3  ;;  %4199 = vmatmul.msk.bf16.gmra.mxu3 %vm1542_vm0, %v4030_v48  ;;  %v3822_v12 = vor.u32 %v4334_v14, %v3819_v13  ;;  %v3831_v14 = vld [vmem:[%s4518_s5 + $0x42c] sm:$0xf0] }
 0x2cc   : > { %3209 = vst [vmem:[%s4654_s9 + $0x338] sm:$0xff] %v3081_v60  ;;  %2282 = vmatmul.bf16.gmra.mxu1 %v3810_v49 }
 0x2cd   : > { %v2573_v46 = vadd.f32 %v5295_v17, %v2244_v36 }
 0x2ce   : > { %v2662_v19 = vpop.f32.mrf.mxu3 }
 0x2cf   : > { %vm2790_vm13 = vcmp.ge.f32.partialorder %v2573_v46, 0.0  ;;  %v2918_v24 = vmul.f32 0.25, %v2573_v46  ;;  %v2663_v52 = vadd.f32 %v2662_v19, %v5017_v57  ;;  %v4041_v57 = vld [vmem:[%s4518_s5 + $0x5c0] sm:$0xf] }
 0x2d0   : > { %v5328_v34 = vpop.f32.mrf.mxu2  ;;  %v1916_v23 = vpop.f32.mrf.mxu0  ;;  %v4042_v53 = vor.u32 %v4390_v25, %v4041_v57  ;;  %v4393_v57 = vld [vmem:[%s4518_s5 + $0x5e0] sm:$0xf0] }
 0x2d1   : > { %v3046_v43 = vsel %vm2790_vm13, %v2573_v46, %v2918_v24  ;;  %vm2826_vm14 = vcmp.ge.f32.partialorder %v2663_v52, 0.0  ;;  %v2954_v17 = vmul.f32 0.25, %v2663_v52  ;;  %v1917_v41 = vadd.f32 %v5142_v31, %v1916_v23  ;;  %v2245_v4 = vpop.f32.mrf.mxu1 }
 0x2d2   : > { %3174 = vst [vmem:[%s4654_s9 + $0x220] sm:$0xff] %v3046_v43  ;;  %v3850_v43 = vor.u32 %v4342_v45, %v3849_v21 }
 0x2d3   : > { %v3082_v33 = vsel %vm2826_vm14, %v2663_v52, %v2954_v17  ;;  %v2246_v47 = vadd.f32 %v2245_v4, %v1917_v41 }
 0x2d4   : > { %3210 = vst [vmem:[%s4654_s9 + $0x340] sm:$0xff] %v3082_v33 }
 0x2d5   : > { %v2575_v63 = vadd.f32 %v5304_v16, %v2246_v47  ;;  %4183 = vmatmul.msk.bf16.gmra.mxu2 %vm1542_vm0, %v3838_v27 }
 0x2d6   : > { %v2664_v3 = vpop.f32.mrf.mxu3 }
 0x2d7   : > { %vm2791_vm15 = vcmp.ge.f32.partialorder %v2575_v63, 0.0  ;;  %v2919_v51 = vmul.f32 0.25, %v2575_v63  ;;  %v2665_v48 = vadd.f32 %v2664_v3, %v5030_v50  ;;  %v3830_v3 = vor.u32 %v4338_v18, %v3829_v6  ;;  %v4396_v6 = vld [vmem:[%s4518_s5 + $0x5f8] sm:$0xf0] }
 0x2d8   : > { %v5342_v49 = vpop.f32.mrf.mxu2  ;;  %v1919_v44 = vpop.f32.mrf.mxu0 }
 0x2d9   : > { %v3047_v16 = vsel %vm2791_vm15, %v2575_v63, %v2919_v51  ;;  %vm2827_vm1 = vcmp.ge.f32.partialorder %v2665_v48, 0.0  ;;  %v2955_v8 = vmul.f32 0.25, %v2665_v48  ;;  %v1920_v62 = vadd.f32 %v5142_v31, %v1919_v44  ;;  %v2248_v60 = vpop.f32.mrf.mxu1  ;;  %v4337_v63 = vld [vmem:[%s4518_s5 + $0x424] sm:$0xf] }
 0x2da   : > { %3175 = vst [vmem:[%s4654_s9 + $0x228] sm:$0xff] %v3047_v16 }
 0x2db   : > { %v3083_v36 = vsel %vm2827_vm1, %v2665_v48, %v2955_v8  ;;  %v2249_v46 = vadd.f32 %v2248_v60, %v1920_v62  ;;  %1958 = vmatmul.bf16.gmra.mxu0 %v3818_v0  ;;  %4200 = vmatmul.msk.bf16.gmra.mxu3 %vm1542_vm0, %v4042_v53 }
 0x2dc   : > { %3211 = vst [vmem:[%s4654_s9 + $0x348] sm:$0xff] %v3083_v36  ;;  %2287 = vmatmul.bf16.gmra.mxu1 %v3822_v12  ;;  %v3834_v12 = vor.u32 %v4337_v63, %v3831_v14 }
 0x2dd   : > { %v2578_v50 = vadd.f32 %v5318_v5, %v2249_v46  ;;  %v3861_v46 = vld [vmem:[%s4518_s5 + $0x458] sm:$0xf] }
 0x2de   : > { %v2667_v19 = vpop.f32.mrf.mxu3 }
 0x2df   : > { %vm2792_vm2 = vcmp.ge.f32.partialorder %v2578_v50, 0.0  ;;  %v2920_v24 = vmul.f32 0.25, %v2578_v50  ;;  %v2668_v52 = vadd.f32 %v2667_v19, %v5038_v15  ;;  %v4053_v15 = vld [vmem:[%s4518_s5 + $0x5d8] sm:$0xf] }
 0x2e0   : > { %v5352_v23 = vpop.f32.mrf.mxu2  ;;  %v1921_v27 = vpop.f32.mrf.mxu0  ;;  %v4054_v48 = vor.u32 %v4393_v57, %v4053_v15  ;;  %v4340_v15 = vld [vmem:[%s4518_s5 + $0x43c] sm:$0xf]  ;;  %v3843_v57 = vld [vmem:[%s4518_s5 + $0x444] sm:$0xf0] }
 0x2e1   : > { %v3048_v17 = vsel %vm2792_vm2, %v2578_v50, %v2920_v24  ;;  %vm2828_vm3 = vcmp.ge.f32.partialorder %v2668_v52, 0.0  ;;  %v2956_v5 = vmul.f32 0.25, %v2668_v52  ;;  %v1922_v41 = vadd.f32 %v5142_v31, %v1921_v27  ;;  %v2250_v4 = vpop.f32.mrf.mxu1  ;;  %v4345_v50 = vld [vmem:[%s4518_s5 + $0x460] sm:$0xf0] }
 0x2e2   : > { %3176 = vst [vmem:[%s4654_s9 + $0x230] sm:$0xff] %v3048_v17  ;;  %v3862_v27 = vor.u32 %v4345_v50, %v3861_v46 }
 0x2e3   : > { %v3084_v33 = vsel %vm2828_vm3, %v2668_v52, %v2956_v5  ;;  %v2251_v47 = vadd.f32 %v2250_v4, %v1922_v41 }
 0x2e4   : > { %3212 = vst [vmem:[%s4654_s9 + $0x350] sm:$0xff] %v3084_v33  ;;  %v3841_v33 = vld [vmem:[%s4518_s5 + $0x438] sm:$0xf] }
 0x2e5   : > { %v2580_v25 = vadd.f32 %v5328_v34, %v2251_v47  ;;  %4184 = vmatmul.msk.bf16.gmra.mxu2 %vm1542_vm0, %v3850_v43  ;;  %v4341_v47 = vld [vmem:[%s4518_s5 + $0x440] sm:$0xf0] }
 0x2e6   : > { %v2669_v13 = vpop.f32.mrf.mxu3  ;;  %v3842_v63 = vor.u32 %v4341_v47, %v3841_v33 }
 0x2e7   : > { %vm2793_vm4 = vcmp.ge.f32.partialorder %v2580_v25, 0.0  ;;  %v2921_v0 = vmul.f32 0.25, %v2580_v25  ;;  %v2670_v51 = vadd.f32 %v2669_v13, %v5051_v2 }
 0x2e8   : > { %v5366_v53 = vpop.f32.mrf.mxu2  ;;  %v1924_v44 = vpop.f32.mrf.mxu0 }
 0x2e9   : > { %v3049_v34 = vsel %vm2793_vm4, %v2580_v25, %v2921_v0  ;;  %vm2829_vm5 = vcmp.ge.f32.partialorder %v2670_v51, 0.0  ;;  %v2957_v16 = vmul.f32 0.25, %v2670_v51  ;;  %v1925_v8 = vadd.f32 %v5142_v31, %v1924_v44  ;;  %v2253_v62 = vpop.f32.mrf.mxu1 }
 0x2ea   : > { %3177 = vst [vmem:[%s4654_s9 + $0x238] sm:$0xff] %v3049_v34 }
 0x2eb   : > { %v3085_v60 = vsel %vm2829_vm5, %v2670_v51, %v2957_v16  ;;  %v2254_v36 = vadd.f32 %v2253_v62, %v1925_v8  ;;  %1963 = vmatmul.bf16.gmra.mxu0 %v3830_v3  ;;  %4201 = vmatmul.msk.bf16.gmra.mxu3 %vm1542_vm0, %v4054_v48  ;;  %v3846_v48 = vor.u32 %v4340_v15, %v3843_v57  ;;  %v3873_v62 = vld [vmem:[%s4518_s5 + $0x470] sm:$0xf] }
 0x2ec   : > { %3213 = vst [vmem:[%s4654_s9 + $0x358] sm:$0xff] %v3085_v60  ;;  %2292 = vmatmul.bf16.gmra.mxu1 %v3834_v12  ;;  %v4348_v60 = vld [vmem:[%s4518_s5 + $0x478] sm:$0xf0] }
 0x2ed   : > { %v2583_v2 = vadd.f32 %v5342_v49, %v2254_v36 }
 0x2ee   : > { %v2672_v21 = vpop.f32.mrf.mxu3 }
 0x2ef   : > { %vm2794_vm6 = vcmp.ge.f32.partialorder %v2583_v2, 0.0  ;;  %v2922_v45 = vmul.f32 0.25, %v2583_v2  ;;  %v2673_v19 = vadd.f32 %v2672_v21, %v5059_v22  ;;  %v4065_v22 = vld [vmem:[%s4518_s5 + $0x5f0] sm:$0xf]  ;;  %v3874_v21 = vor.u32 %v4348_v60, %v3873_v62 }
 0x2f0   : > { %v5376_v24 = vpop.f32.mrf.mxu2  ;;  %v1926_v52 = vpop.f32.mrf.mxu0  ;;  %v4066_v3 = vor.u32 %v4396_v6, %v4065_v22 }
 0x2f1   : > { %v3050_v43 = vsel %vm2794_vm6, %v2583_v2, %v2922_v45  ;;  %vm2830_vm7 = vcmp.ge.f32.partialorder %v2673_v19, 0.0  ;;  %v2958_v49 = vmul.f32 0.25, %v2673_v19  ;;  %v1927_v17 = vadd.f32 %v5142_v31, %v1926_v52  ;;  %v2255_v5 = vpop.f32.mrf.mxu1 }
 0x2f2   : > { %3178 = vst [vmem:[%s4654_s9 + $0x240] sm:$0xff] %v3050_v43 }
 0x2f3   : > { %v3086_v41 = vsel %vm2830_vm7, %v2673_v19, %v2958_v49  ;;  %v2256_v4 = vadd.f32 %v2255_v5, %v1927_v17  ;;  %v4344_v17 = vld [vmem:[%s4518_s5 + $0x458] sm:$0xf0] }
 0x2f4   : > { %3214 = vst [vmem:[%s4654_s9 + $0x360] sm:$0xff] %v3086_v41  ;;  %v4343_v41 = vld [vmem:[%s4518_s5 + $0x454] sm:$0xf] }
 0x2f5   : > { %v2585_v18 = vadd.f32 %v5352_v23, %v2256_v4  ;;  %4185 = vmatmul.msk.bf16.gmra.mxu2 %vm1542_vm0, %v3862_v27  ;;  %v3855_v4 = vld [vmem:[%s4518_s5 + $0x45c] sm:$0xf0] }
 0x2f6   : > { %v2674_v25 = vpop.f32.mrf.mxu3  ;;  %v3858_v57 = vor.u32 %v4343_v41, %v3855_v4 }
 0x2f7   : > { %vm2795_vm8 = vcmp.ge.f32.partialorder %v2585_v18, 0.0  ;;  %v2923_v14 = vmul.f32 0.25, %v2585_v18  ;;  %v2675_v13 = vadd.f32 %v2674_v25, %v5072_v29 }
 0x2f8   : > { %v2592_v0 = vpop.f32.mrf.mxu2  ;;  %v1929_v51 = vpop.f32.mrf.mxu0 }
 0x2f9   : > { %v3051_v44 = vsel %vm2795_vm8, %v2585_v18, %v2923_v14  ;;  %vm2831_vm9 = vcmp.ge.f32.partialorder %v2675_v13, 0.0  ;;  %v2959_v23 = vmul.f32 0.25, %v2675_v13  ;;  %v1930_v12 = vadd.f32 %v5142_v31, %v1929_v51  ;;  %v2258_v34 = vpop.f32.mrf.mxu1  ;;  %v3885_v51 = vld [vmem:[%s4518_s5 + $0x488] sm:$0xf] }
 0x2fa   : > { %3179 = vst [vmem:[%s4654_s9 + $0x248] sm:$0xff] %v3051_v44 }
 0x2fb   : > { %v3087_v16 = vsel %vm2831_vm9, %v2675_v13, %v2959_v23  ;;  %v2259_v8 = vadd.f32 %v2258_v34, %v1930_v12  ;;  %1968 = vmatmul.bf16.gmra.mxu0 %v3842_v63  ;;  %4202 = vmatmul.msk.bf16.gmra.mxu3 %vm1542_vm0, %v4066_v3 }
 0x2fc   : > { %3215 = vst [vmem:[%s4654_s9 + $0x368] sm:$0xff] %v3087_v16  ;;  %2297 = vmatmul.bf16.gmra.mxu1 %v3846_v48  ;;  %v4351_v48 = vld [vmem:[%s4518_s5 + $0x490] sm:$0xf0] }
 0x2fd   : > { %v2588_v29 = vadd.f32 %v5366_v53, %v2259_v8  ;;  %v5401_v53 = vld [vmem:[%s5510_s2] ss:$0 sm:$0xff]  ;;  %v3886_v8 = vor.u32 %v4351_v48, %v3885_v51 }
 0x2fe   : > { %v2677_v36 = vpop.f32.mrf.mxu3 }
 0x2ff   : > { %vm2796_vm10 = vcmp.ge.f32.partialorder %v2588_v29, 0.0  ;;  %v2924_v2 = vmul.f32 0.25, %v2588_v29  ;;  %v2678_v31 = vadd.f32 %v2677_v36, %v5080_v20  ;;  %v3853_v20 = vld [vmem:[%s4518_s5 + $0x450] sm:$0xf] }
 0x300   : > { %v2594_v46 = vpop.f32.mrf.mxu2  ;;  %v1931_v50 = vpop.f32.mrf.mxu0  ;;  %v3854_v6 = vor.u32 %v4344_v17, %v3853_v20 }
 0x301   : > { %v3052_v45 = vsel %vm2796_vm10, %v2588_v29, %v2924_v2  ;;  %vm2832_vm11 = vcmp.ge.f32.partialorder %v2678_v31, 0.0  ;;  %v2960_v19 = vmul.f32 0.25, %v2678_v31  ;;  %v1932_v52 = vadd.f32 %v5401_v53, %v1931_v50  ;;  %v2260_v27 = vpop.f32.mrf.mxu1  ;;  %v4347_v50 = vld [vmem:[%s4518_s5 + $0x470] sm:$0xf0] }
 0x302   : > { %3180 = vst [vmem:[%s4654_s9 + $0x250] sm:$0xff] %v3052_v45  ;;  %v3867_v45 = vld [vmem:[%s4518_s5 + $0x474] sm:$0xf0] }
 0x303   : > { %v3088_v43 = vsel %vm2832_vm11, %v2678_v31, %v2960_v19  ;;  %v2261_v49 = vadd.f32 %v2260_v27, %v1932_v52  ;;  %v3865_v31 = vld [vmem:[%s4518_s5 + $0x468] sm:$0xf] }
 0x304   : > { %3216 = vst [vmem:[%s4654_s9 + $0x370] sm:$0xff] %v3088_v43  ;;  %v3866_v43 = vor.u32 %v4347_v50, %v3865_v31 }
 0x305   : > { %v2590_v5 = vadd.f32 %v5376_v24, %v2261_v49  ;;  %4186 = vmatmul.msk.bf16.gmra.mxu2 %vm1542_vm0, %v3874_v21 }
 0x306   : > { %v2679_v33 = vpop.f32.mrf.mxu3 }
 0x307   : > { %vm2797_vm12 = vcmp.ge.f32.partialorder %v2590_v5, 0.0  ;;  %v2925_v47 = vmul.f32 0.25, %v2590_v5  ;;  %v2680_v22 = vadd.f32 %v2679_v33, %v5093_v11 }
 0x308   : > { %v2597_v18 = vpop.f32.mrf.mxu2  ;;  %v1934_v15 = vpop.f32.mrf.mxu0 }
 0x309   : > { %v3053_v25 = vsel %vm2797_vm12, %v2590_v5, %v2925_v47  ;;  %vm2833_vm13 = vcmp.ge.f32.partialorder %v2680_v22, 0.0  ;;  %v2961_v24 = vmul.f32 0.25, %v2680_v22  ;;  %v1935_v63 = vadd.f32 %v5401_v53, %v1934_v15  ;;  %v2263_v14 = vpop.f32.mrf.mxu1 }
 0x30a   : > { %3181 = vst [vmem:[%s4654_s9 + $0x258] sm:$0xff] %v3053_v25 }
 0x30b   : > { %v3089_v13 = vsel %vm2833_vm13, %v2680_v22, %v2961_v24  ;;  %v2264_v3 = vadd.f32 %v2263_v14, %v1935_v63  ;;  %1973 = vmatmul.bf16.gmra.mxu0 %v3854_v6  ;;  %v3897_v22 = vld [vmem:[%s4518_s5 + $0x4a0] sm:$0xf]  ;;  %v4354_v6 = vld [vmem:[%s4518_s5 + $0x4a8] sm:$0xf0] }
 0x30c   : > { %3217 = vst [vmem:[%s4654_s9 + $0x378] sm:$0xff] %v3089_v13  ;;  %2302 = vmatmul.bf16.gmra.mxu1 %v3858_v57  ;;  %v3898_v14 = vor.u32 %v4354_v6, %v3897_v22 }
 0x30d   : > { %v2593_v11 = vadd.f32 %v2592_v0, %v2264_v3 }
 0x30e   : > { %v2682_v44 = vpop.f32.mrf.mxu3 }
 0x30f   : > { %vm2798_vm14 = vcmp.ge.f32.partialorder %v2593_v11, 0.0  ;;  %v2926_v23 = vmul.f32 0.25, %v2593_v11  ;;  %v2683_v12 = vadd.f32 %v2682_v44, %v5102_v42  ;;  %v4346_v42 = vld [vmem:[%s4518_s5 + $0x46c] sm:$0xf] }
 0x310   : > { %v2599_v34 = vpop.f32.mrf.mxu2  ;;  %v1936_v16 = vpop.f32.mrf.mxu0  ;;  %v3870_v17 = vor.u32 %v4346_v42, %v3867_v45 }
 0x311   : > { %v3054_v29 = vsel %vm2798_vm14, %v2593_v11, %v2926_v23  ;;  %vm2834_vm15 = vcmp.ge.f32.partialorder %v2683_v12, 0.0  ;;  %v2962_v62 = vmul.f32 0.25, %v2683_v12  ;;  %v1937_v0 = vadd.f32 %v5401_v53, %v1936_v16  ;;  %v2265_v60 = vpop.f32.mrf.mxu1 }
 0x312   : > { %3182 = vst [vmem:[%s4654_s9 + $0x260] sm:$0xff] %v3054_v29 }
 0x313   : > { %v3090_v36 = vsel %vm2834_vm15, %v2683_v12, %v2962_v62  ;;  %v2266_v2 = vadd.f32 %v2265_v60, %v1937_v0 }
 0x314   : > { %3218 = vst [vmem:[%s4654_s9 + $0x380] sm:$0xff] %v3090_v36 }
 0x315   : > { %v2595_v21 = vadd.f32 %v2594_v46, %v2266_v2  ;;  %4187 = vmatmul.msk.bf16.gmra.mxu2 %vm1542_vm0, %v3886_v8 }
 0x316   : > { %v2684_v19 = vpop.f32.mrf.mxu3 }
 0x317   : > { %vm2799_vm1 = vcmp.ge.f32.partialorder %v2595_v21, 0.0  ;;  %v2927_v52 = vmul.f32 0.25, %v2595_v21  ;;  %v2685_v27 = vadd.f32 %v2684_v19, %v5115_v38 }
 0x318   : > { %v2602_v49 = vpop.f32.mrf.mxu2  ;;  %v1939_v20 = vpop.f32.mrf.mxu0 }
 0x319   : > { %v3055_v5 = vsel %vm2799_vm1, %v2595_v21, %v2927_v52  ;;  %vm2835_vm2 = vcmp.ge.f32.partialorder %v2685_v27, 0.0  ;;  %v2963_v46 = vmul.f32 0.25, %v2685_v27  ;;  %v1940_v41 = vadd.f32 %v5401_v53, %v1939_v20  ;;  %v2268_v4 = vpop.f32.mrf.mxu1 }
 0x31a   : > { %3183 = vst [vmem:[%s4654_s9 + $0x268] sm:$0xff] %v3055_v5 }
 0x31b   : > { %v3091_v33 = vsel %vm2835_vm2, %v2685_v27, %v2963_v46  ;;  %v2269_v47 = vadd.f32 %v2268_v4, %v1940_v41  ;;  %1978 = vmatmul.bf16.gmra.mxu0 %v3866_v43 }
 0x31c   : > { %3219 = vst [vmem:[%s4654_s9 + $0x388] sm:$0xff] %v3091_v33  ;;  %2307 = vmatmul.bf16.gmra.mxu1 %v3870_v17 }
 0x31d   : > { %v2598_v38 = vadd.f32 %v2597_v18, %v2269_v47 }
 0x31e   : > { %v2687_v15 = vpop.f32.mrf.mxu3 }
 0x31f   : > { %vm2800_vm3 = vcmp.ge.f32.partialorder %v2598_v38, 0.0  ;;  %v2928_v57 = vmul.f32 0.25, %v2598_v38  ;;  %v2688_v25 = vadd.f32 %v2687_v15, %v5124_v54 }
 0x320   : > { %v2604_v24 = vpop.f32.mrf.mxu2  ;;  %v1941_v63 = vpop.f32.mrf.mxu0 }
 0x321   : > { %v3056_v13 = vsel %vm2800_vm3, %v2598_v38, %v2928_v57  ;;  %vm2836_vm4 = vcmp.ge.f32.partialorder %v2688_v25, 0.0  ;;  %v2964_v3 = vmul.f32 0.25, %v2688_v25  ;;  %v1942_v11 = vadd.f32 %v5401_v53, %v1941_v63  ;;  %v2270_v51 = vpop.f32.mrf.mxu1 }
 0x322   : > { %3184 = vst [vmem:[%s4654_s9 + $0x270] sm:$0xff] %v3056_v13 }
 0x323   : > { %v3092_v48 = vsel %vm2836_vm4, %v2688_v25, %v2964_v3  ;;  %v2271_v18 = vadd.f32 %v2270_v51, %v1942_v11 }
 0x324   : > { %3220 = vst [vmem:[%s4654_s9 + $0x390] sm:$0xff] %v3092_v48 }
 0x325   : > { %v2600_v44 = vadd.f32 %v2599_v34, %v2271_v18  ;;  %4188 = vmatmul.msk.bf16.gmra.mxu2 %vm1542_vm0, %v3898_v14 }
 0x326   : > { %v2689_v23 = vpop.f32.mrf.mxu3 }
 0x327   : > { %vm2801_vm5 = vcmp.ge.f32.partialorder %v2600_v44, 0.0  ;;  %v2929_v54 = vmul.f32 0.25, %v2600_v44  ;;  %v2690_v12 = vadd.f32 %v2689_v23, %v5137_v28 }
 0x328   : > { %v2607_v16 = vpop.f32.mrf.mxu2  ;;  %v1944_v8 = vpop.f32.mrf.mxu0 }
 0x329   : > { %v3057_v29 = vsel %vm2801_vm5, %v2600_v44, %v2929_v54  ;;  %vm2837_vm6 = vcmp.ge.f32.partialorder %v2690_v12, 0.0  ;;  %v2965_v62 = vmul.f32 0.25, %v2690_v12  ;;  %v1945_v0 = vadd.f32 %v5401_v53, %v1944_v8  ;;  %v2273_v60 = vpop.f32.mrf.mxu1 }
 0x32a   : > { %3185 = vst [vmem:[%s4654_s9 + $0x278] sm:$0xff] %v3057_v29 }
 0x32b   : > { %v3093_v36 = vsel %vm2837_vm6, %v2690_v12, %v2965_v62  ;;  %v2274_v34 = vadd.f32 %v2273_v60, %v1945_v0 }
 0x32c   : > { %3221 = vst [vmem:[%s4654_s9 + $0x398] sm:$0xff] %v3093_v36 }
 0x32d   : > { %v2603_v2 = vadd.f32 %v2602_v49, %v2274_v34 }
 0x32e   : > { %v2692_v31 = vpop.f32.mrf.mxu3 }
 0x32f   : > { %vm2802_vm0 = vcmp.ge.f32.partialorder %v2603_v2, 0.0  ;;  %v2930_v50 = vmul.f32 0.25, %v2603_v2  ;;  %v2693_v28 = vadd.f32 %v2692_v31, %v5151_v61 }
 0x330   : > { %v2609_v21 = vpop.f32.mrf.mxu2  ;;  %v1946_v42 = vpop.f32.mrf.mxu0 }
 0x331   : > { %v3058_v45 = vsel %vm2802_vm0, %v2603_v2, %v2930_v50  ;;  %vm2838_vm7 = vcmp.ge.f32.partialorder %v2693_v28, 0.0  ;;  %v2966_v19 = vmul.f32 0.25, %v2693_v28  ;;  %v1947_v52 = vadd.f32 %v5401_v53, %v1946_v42  ;;  %v2275_v27 = vpop.f32.mrf.mxu1 }
 0x332   : > { %3186 = vst [vmem:[%s4654_s9 + $0x280] sm:$0xff] %v3058_v45 }
 0x333   : > { %v3094_v43 = vsel %vm2838_vm7, %v2693_v28, %v2966_v19  ;;  %v2276_v20 = vadd.f32 %v2275_v27, %v1947_v52 }
 0x334   : > { %3222 = vst [vmem:[%s4654_s9 + $0x3a0] sm:$0xff] %v3094_v43 }
 0x335   : > { %v2605_v49 = vadd.f32 %v2604_v24, %v2276_v20 }
 0x336   : > { %v2694_v17 = vpop.f32.mrf.mxu3 }
 0x337   : > { %vm2803_vm8 = vcmp.ge.f32.partialorder %v2605_v49, 0.0  ;;  %v2931_v5 = vmul.f32 0.25, %v2605_v49  ;;  %v2695_v61 = vadd.f32 %v2694_v17, %v5164_v58 }
 0x338   : > { %v2612_v46 = vpop.f32.mrf.mxu2  ;;  %v1949_v41 = vpop.f32.mrf.mxu0 }
 0x339   : > { %v3059_v4 = vsel %vm2803_vm8, %v2605_v49, %v2931_v5  ;;  %vm2839_vm9 = vcmp.ge.f32.partialorder %v2695_v61, 0.0  ;;  %v2967_v33 = vmul.f32 0.25, %v2695_v61  ;;  %v1950_v47 = vadd.f32 %v5401_v53, %v1949_v41  ;;  %v2278_v38 = vpop.f32.mrf.mxu1 }
 0x33a   : > { %3187 = vst [vmem:[%s4654_s9 + $0x288] sm:$0xff] %v3059_v4 }
 0x33b   : > { %v3095_v22 = vsel %vm2839_vm9, %v2695_v61, %v2967_v33  ;;  %v2279_v6 = vadd.f32 %v2278_v38, %v1950_v47 }
 0x33c   : > { %3223 = vst [vmem:[%s4654_s9 + $0x3a8] sm:$0xff] %v3095_v22 }
 0x33d   : > { %v2608_v15 = vadd.f32 %v2607_v16, %v2279_v6 }
 0x33e   : > { %v2697_v57 = vpop.f32.mrf.mxu3 }
 0x33f   : > { %vm2804_vm10 = vcmp.ge.f32.partialorder %v2608_v15, 0.0  ;;  %v2932_v25 = vmul.f32 0.25, %v2608_v15  ;;  %v2698_v58 = vadd.f32 %v2697_v57, %v5173_v10 }
 0x340   : > { %v2614_v24 = vpop.f32.mrf.mxu2  ;;  %v1951_v63 = vpop.f32.mrf.mxu0 }
 0x341   : > { %v3060_v14 = vsel %vm2804_vm10, %v2608_v15, %v2932_v25  ;;  %vm2840_vm11 = vcmp.ge.f32.partialorder %v2698_v58, 0.0  ;;  %v2968_v13 = vmul.f32 0.25, %v2698_v58  ;;  %v1952_v3 = vadd.f32 %v5401_v53, %v1951_v63  ;;  %v2280_v11 = vpop.f32.mrf.mxu1 }
 0x342   : > { %3188 = vst [vmem:[%s4654_s9 + $0x290] sm:$0xff] %v3060_v14 }
 0x343   : > { %v3096_v51 = vsel %vm2840_vm11, %v2698_v58, %v2968_v13  ;;  %v2281_v48 = vadd.f32 %v2280_v11, %v1952_v3 }
 0x344   : > { %3224 = vst [vmem:[%s4654_s9 + $0x3b0] sm:$0xff] %v3096_v51 }
 0x345   : > { %v2610_v18 = vadd.f32 %v2609_v21, %v2281_v48 }
 0x346   : > { %v2699_v44 = vpop.f32.mrf.mxu3 }
 0x347   : > { %vm2805_vm12 = vcmp.ge.f32.partialorder %v2610_v18, 0.0  ;;  %v2933_v23 = vmul.f32 0.25, %v2610_v18  ;;  %v2700_v10 = vadd.f32 %v2699_v44, %v5186_v26 }
 0x348   : > { %v2617_v54 = vpop.f32.mrf.mxu2  ;;  %v1954_v12 = vpop.f32.mrf.mxu0 }
 0x349   : > { %v3061_v16 = vsel %vm2805_vm12, %v2610_v18, %v2933_v23  ;;  %vm2841_vm13 = vcmp.ge.f32.partialorder %v2700_v10, 0.0  ;;  %v2969_v8 = vmul.f32 0.25, %v2700_v10  ;;  %v1955_v29 = vadd.f32 %v5401_v53, %v1954_v12  ;;  %v2283_v62 = vpop.f32.mrf.mxu1 }
 0x34a   : > { %3189 = vst [vmem:[%s4654_s9 + $0x298] sm:$0xff] %v3061_v16 }
 0x34b   : > { %v3097_v0 = vsel %vm2841_vm13, %v2700_v10, %v2969_v8  ;;  %v2284_v60 = vadd.f32 %v2283_v62, %v1955_v29 }
 0x34c   : > { %3225 = vst [vmem:[%s4654_s9 + $0x3b8] sm:$0xff] %v3097_v0 }
 0x34d   : > { %v2613_v36 = vadd.f32 %v2612_v46, %v2284_v60 }
 0x34e   : > { %v2702_v34 = vpop.f32.mrf.mxu3 }
 0x34f   : > { %vm2806_vm14 = vcmp.ge.f32.partialorder %v2613_v36, 0.0  ;;  %v2934_v2 = vmul.f32 0.25, %v2613_v36  ;;  %v2703_v26 = vadd.f32 %v2702_v34, %v5195_v40 }
 0x350   : > { %v2619_v31 = vpop.f32.mrf.mxu2  ;;  %v1956_v50 = vpop.f32.mrf.mxu0 }
 0x351   : > { %v3062_v28 = vsel %vm2806_vm14, %v2613_v36, %v2934_v2  ;;  %vm2842_vm15 = vcmp.ge.f32.partialorder %v2703_v26, 0.0  ;;  %v2970_v21 = vmul.f32 0.25, %v2703_v26  ;;  %v1957_v42 = vadd.f32 %v5401_v53, %v1956_v50  ;;  %v2285_v45 = vpop.f32.mrf.mxu1 }
 0x352   : > { %3190 = vst [vmem:[%s4654_s9 + $0x2a0] sm:$0xff] %v3062_v28 }
 0x353   : > { %v3098_v19 = vsel %vm2842_vm15, %v2703_v26, %v2970_v21  ;;  %v2286_v52 = vadd.f32 %v2285_v45, %v1957_v42 }
 0x354   : > { %3226 = vst [vmem:[%s4654_s9 + $0x3c0] sm:$0xff] %v3098_v19 }
 0x355   : > { %v2615_v27 = vadd.f32 %v2614_v24, %v2286_v52 }
 0x356   : > { %v2704_v43 = vpop.f32.mrf.mxu3 }
 0x357   : > { %vm2807_vm1 = vcmp.ge.f32.partialorder %v2615_v27, 0.0  ;;  %v2935_v20 = vmul.f32 0.25, %v2615_v27  ;;  %v2705_v40 = vadd.f32 %v2704_v43, %v5208_v59 }
 0x358   : > { %v2622_v49 = vpop.f32.mrf.mxu2  ;;  %v1959_v17 = vpop.f32.mrf.mxu0 }
 0x359   : > { %v3063_v5 = vsel %vm2807_vm1, %v2615_v27, %v2935_v20  ;;  %vm2843_vm2 = vcmp.ge.f32.partialorder %v2705_v40, 0.0  ;;  %v2971_v61 = vmul.f32 0.25, %v2705_v40  ;;  %v1960_v46 = vadd.f32 %v5401_v53, %v1959_v17  ;;  %v2288_v41 = vpop.f32.mrf.mxu1 }
 0x35a   : > { %3191 = vst [vmem:[%s4654_s9 + $0x2a8] sm:$0xff] %v3063_v5 }
 0x35b   : > { %v3099_v4 = vsel %vm2843_vm2, %v2705_v40, %v2971_v61  ;;  %v2289_v33 = vadd.f32 %v2288_v41, %v1960_v46 }
 0x35c   : > { %3227 = vst [vmem:[%s4654_s9 + $0x3c8] sm:$0xff] %v3099_v4 }
 0x35d   : > { %v2618_v47 = vadd.f32 %v2617_v54, %v2289_v33 }
 0x35e   : > { %v2707_v38 = vpop.f32.mrf.mxu3 }
 0x35f   : > { %vm2808_vm3 = vcmp.ge.f32.partialorder %v2618_v47, 0.0  ;;  %v2936_v22 = vmul.f32 0.25, %v2618_v47  ;;  %v2708_v59 = vadd.f32 %v2707_v38, %v5217_v7 }
 0x360   : > { %v2624_v6 = vpop.f32.mrf.mxu2  ;;  %v1961_v15 = vpop.f32.mrf.mxu0 }
 0x361   : > { %v3064_v57 = vsel %vm2808_vm3, %v2618_v47, %v2936_v22  ;;  %vm2844_vm4 = vcmp.ge.f32.partialorder %v2708_v59, 0.0  ;;  %v2972_v25 = vmul.f32 0.25, %v2708_v59  ;;  %v1962_v58 = vadd.f32 %v5401_v53, %v1961_v15  ;;  %v2290_v24 = vpop.f32.mrf.mxu1 }
 0x362   : > { %3192 = vst [vmem:[%s4654_s9 + $0x2b0] sm:$0xff] %v3064_v57 }
 0x363   : > { %v3100_v63 = vsel %vm2844_vm4, %v2708_v59, %v2972_v25  ;;  %v2291_v14 = vadd.f32 %v2290_v24, %v1962_v58 }
 0x364   : > { %3228 = vst [vmem:[%s4654_s9 + $0x3d0] sm:$0xff] %v3100_v63 }
 0x365   : > { %v2620_v13 = vadd.f32 %v2619_v31, %v2291_v14 }
 0x366   : > { %v2709_v3 = vpop.f32.mrf.mxu3 }
 0x367   : > { %vm2809_vm5 = vcmp.ge.f32.partialorder %v2620_v13, 0.0  ;;  %v2937_v11 = vmul.f32 0.25, %v2620_v13  ;;  %v2710_v7 = vadd.f32 %v2709_v3, %v5230_v30 }
 0x368   : > { %v2627_v51 = vpop.f32.mrf.mxu2  ;;  %v1964_v48 = vpop.f32.mrf.mxu0 }
 0x369   : > { %v3065_v18 = vsel %vm2809_vm5, %v2620_v13, %v2937_v11  ;;  %vm2845_vm6 = vcmp.ge.f32.partialorder %v2710_v7, 0.0  ;;  %v2973_v44 = vmul.f32 0.25, %v2710_v7  ;;  %v1965_v23 = vadd.f32 %v5401_v53, %v1964_v48  ;;  %v2293_v10 = vpop.f32.mrf.mxu1 }
 0x36a   : > { %3193 = vst [vmem:[%s4654_s9 + $0x2b8] sm:$0xff] %v3065_v18 }
 0x36b   : > { %v3101_v54 = vsel %vm2845_vm6, %v2710_v7, %v2973_v44  ;;  %v2294_v12 = vadd.f32 %v2293_v10, %v1965_v23 }
 0x36c   : > { %3229 = vst [vmem:[%s4654_s9 + $0x3d8] sm:$0xff] %v3101_v54 }
 0x36d   : > { %v2623_v16 = vadd.f32 %v2622_v49, %v2294_v12 }
 0x36e   : > { %v2712_v8 = vpop.f32.mrf.mxu3 }
 0x36f   : > { %vm2810_vm0 = vcmp.ge.f32.partialorder %v2623_v16, 0.0  ;;  %v2938_v29 = vmul.f32 0.25, %v2623_v16  ;;  %v2713_v30 = vadd.f32 %v2712_v8, %v5239_v39 }
 0x370   : > { %v2629_v62 = vpop.f32.mrf.mxu2  ;;  %v1966_v0 = vpop.f32.mrf.mxu0 }
 0x371   : > { %v3066_v60 = vsel %vm2810_vm0, %v2623_v16, %v2938_v29  ;;  %vm2846_vm7 = vcmp.ge.f32.partialorder %v2713_v30, 0.0  ;;  %v2974_v36 = vmul.f32 0.25, %v2713_v30  ;;  %v1967_v34 = vadd.f32 %v5401_v53, %v1966_v0  ;;  %v2295_v2 = vpop.f32.mrf.mxu1 }
 0x372   : > { %3194 = vst [vmem:[%s4654_s9 + $0x2c0] sm:$0xff] %v3066_v60 }
 0x373   : > { %v3102_v26 = vsel %vm2846_vm7, %v2713_v30, %v2974_v36  ;;  %v2296_v31 = vadd.f32 %v2295_v2, %v1967_v34 }
 0x374   : > { %3230 = vst [vmem:[%s4654_s9 + $0x3e0] sm:$0xff] %v3102_v26 }
 0x375   : > { %v2625_v50 = vadd.f32 %v2624_v6, %v2296_v31 }
 0x376   : > { %v2714_v28 = vpop.f32.mrf.mxu3 }
 0x377   : > { %vm2811_vm8 = vcmp.ge.f32.partialorder %v2625_v50, 0.0  ;;  %v2939_v21 = vmul.f32 0.25, %v2625_v50  ;;  %v2715_v39 = vadd.f32 %v2714_v28, %v5252_v1 }
 0x378   : > { %v2632_v42 = vpop.f32.mrf.mxu2  ;;  %v1969_v45 = vpop.f32.mrf.mxu0 }
 0x379   : > { %v3067_v19 = vsel %vm2811_vm8, %v2625_v50, %v2939_v21  ;;  %vm2847_vm9 = vcmp.ge.f32.partialorder %v2715_v39, 0.0  ;;  %v2975_v52 = vmul.f32 0.25, %v2715_v39  ;;  %v1970_v27 = vadd.f32 %v5401_v53, %v1969_v45  ;;  %v2298_v43 = vpop.f32.mrf.mxu1 }
 0x37a   : > { %3195 = vst [vmem:[%s4654_s9 + $0x2c8] sm:$0xff] %v3067_v19 }
 0x37b   : > { %v3103_v20 = vsel %vm2847_vm9, %v2715_v39, %v2975_v52  ;;  %v2299_v40 = vadd.f32 %v2298_v43, %v1970_v27 }
 0x37c   : > { %3231 = vst [vmem:[%s4654_s9 + $0x3e8] sm:$0xff] %v3103_v20 }
 0x37d   : > { %v2628_v49 = vadd.f32 %v2627_v51, %v2299_v40 }
 0x37e   : > { %v2717_v17 = vpop.f32.mrf.mxu3 }
 0x37f   : > { %vm2812_vm10 = vcmp.ge.f32.partialorder %v2628_v49, 0.0  ;;  %v2940_v5 = vmul.f32 0.25, %v2628_v49  ;;  %v2718_v1 = vadd.f32 %v2717_v17, %v5261_v9 }
 0x380   : > { %v2634_v61 = vpop.f32.mrf.mxu2  ;;  %v1971_v46 = vpop.f32.mrf.mxu0 }
 0x381   : > { %v3068_v41 = vsel %vm2812_vm10, %v2628_v49, %v2940_v5  ;;  %vm2848_vm11 = vcmp.ge.f32.partialorder %v2718_v1, 0.0  ;;  %v2976_v4 = vmul.f32 0.25, %v2718_v1  ;;  %v1972_v33 = vadd.f32 %v5401_v53, %v1971_v46  ;;  %v2300_v47 = vpop.f32.mrf.mxu1 }
 0x382   : > { %3196 = vst [vmem:[%s4654_s9 + $0x2d0] sm:$0xff] %v3068_v41 }
 0x383   : > { %v3104_v38 = vsel %vm2848_vm11, %v2718_v1, %v2976_v4  ;;  %v2301_v22 = vadd.f32 %v2300_v47, %v1972_v33 }
 0x384   : > { %3232 = vst [vmem:[%s4654_s9 + $0x3f0] sm:$0xff] %v3104_v38 }
 0x385   : > { %v2630_v59 = vadd.f32 %v2629_v62, %v2301_v22 }
 0x386   : > { %v2719_v6 = vpop.f32.mrf.mxu3 }
 0x387   : > { %vm2813_vm12 = vcmp.ge.f32.partialorder %v2630_v59, 0.0  ;;  %v2941_v15 = vmul.f32 0.25, %v2630_v59  ;;  %v2720_v9 = vadd.f32 %v2719_v6, %v5274_v37 }
 0x388   : > { %v2637_v57 = vpop.f32.mrf.mxu2  ;;  %v1974_v25 = vpop.f32.mrf.mxu0 }
 0x389   : > { %v3069_v58 = vsel %vm2813_vm12, %v2630_v59, %v2941_v15  ;;  %vm2849_vm13 = vcmp.ge.f32.partialorder %v2720_v9, 0.0  ;;  %v2977_v24 = vmul.f32 0.25, %v2720_v9  ;;  %v1975_v63 = vadd.f32 %v5401_v53, %v1974_v25  ;;  %v2303_v14 = vpop.f32.mrf.mxu1 }
 0x38a   : > { %3197 = vst [vmem:[%s4654_s9 + $0x2d8] sm:$0xff] %v3069_v58 }
 0x38b   : > { %v3105_v13 = vsel %vm2849_vm13, %v2720_v9, %v2977_v24  ;;  %v2304_v3 = vadd.f32 %v2303_v14, %v1975_v63 }
 0x38c   : > { %3233 = vst [vmem:[%s4654_s9 + $0x3f8] sm:$0xff] %v3105_v13 }
 0x38d   : > { %v2633_v11 = vadd.f32 %v2632_v42, %v2304_v3 }
 0x38f   : > { %vm2814_vm14 = vcmp.ge.f32.partialorder %v2633_v11, 0.0  ;;  %v2942_v7 = vmul.f32 0.25, %v2633_v11 }
 0x390   : > { %v2639_v51 = vpop.f32.mrf.mxu2  ;;  %v1976_v48 = vpop.f32.mrf.mxu0 }
 0x391   : > { %v3070_v37 = vsel %vm2814_vm14, %v2633_v11, %v2942_v7  ;;  %v1977_v18 = vadd.f32 %v5401_v53, %v1976_v48  ;;  %v2305_v44 = vpop.f32.mrf.mxu1 }
 0x392   : > { %3198 = vst [vmem:[%s4654_s9 + $0x2e0] sm:$0xff] %v3070_v37 }
 0x393   : > { %v2306_v23 = vadd.f32 %v2305_v44, %v1977_v18 }
 0x395   : > { %v2635_v10 = vadd.f32 %v2634_v61, %v2306_v23 }
 0x397   : > { %vm2815_vm15 = vcmp.ge.f32.partialorder %v2635_v10, 0.0  ;;  %v2943_v54 = vmul.f32 0.25, %v2635_v10 }
 0x398   : > { %v2642_v12 = vpop.f32.mrf.mxu2  ;;  %v1979_v16 = vpop.f32.mrf.mxu0 }
 0x399   : > { %v3071_v8 = vsel %vm2815_vm15, %v2635_v10, %v2943_v54  ;;  %v2643_v29 = vadd.f32 %v2642_v12, %v4933_v55  ;;  %v1980_v30 = vadd.f32 %v5401_v53, %v1979_v16  ;;  %v2308_v62 = vpop.f32.mrf.mxu1 }
 0x39a   : > { %3199 = vst [vmem:[%s4654_s9 + $0x2e8] sm:$0xff] %v3071_v8 }
 0x39b   : > { %vm2818_vm1 = vcmp.ge.f32.partialorder %v2643_v29, 0.0  ;;  %v2946_v0 = vmul.f32 0.25, %v2643_v29  ;;  %v2309_v60 = vadd.f32 %v2308_v62, %v1980_v30 }
 0x39d   : > { %v3074_v36 = vsel %vm2818_vm1, %v2643_v29, %v2946_v0  ;;  %v2638_v34 = vadd.f32 %v2637_v57, %v2309_v60 }
 0x39e   : > { %3202 = vst [vmem:[%s4654_s9 + $0x300] sm:$0xff] %v3074_v36 }
 0x39f   : > { %vm2816_vm2 = vcmp.ge.f32.partialorder %v2638_v34, 0.0  ;;  %v2944_v2 = vmul.f32 0.25, %v2638_v34 }
 0x3a0   : > { %v2644_v26 = vpop.f32.mrf.mxu2  ;;  %v1981_v31 = vpop.f32.mrf.mxu0 }
 0x3a1   : > { %v3072_v50 = vsel %vm2816_vm2, %v2638_v34, %v2944_v2  ;;  %v2645_v55 = vadd.f32 %v2644_v26, %v4946_v32  ;;  %v1982_v28 = vadd.f32 %v5401_v53, %v1981_v31  ;;  %v2310_v21 = vpop.f32.mrf.mxu1 }
 0x3a2   : > { %3200 = vst [vmem:[%s4654_s9 + $0x2f0] sm:$0xff] %v3072_v50 }
 0x3a3   : > { %vm2819_vm3 = vcmp.ge.f32.partialorder %v2645_v55, 0.0  ;;  %v2947_v39 = vmul.f32 0.25, %v2645_v55  ;;  %v2311_v42 = vadd.f32 %v2310_v21, %v1982_v28 }
 0x3a5   : > { %v3075_v45 = vsel %vm2819_vm3, %v2645_v55, %v2947_v39  ;;  %v2640_v19 = vadd.f32 %v2639_v51, %v2311_v42 }
 0x3a6   : > { %3203 = vst [vmem:[%s4654_s9 + $0x308] sm:$0xff] %v3075_v45 }
 0x3a7   : > { %vm2817_vm4 = vcmp.ge.f32.partialorder %v2640_v19, 0.0  ;;  %v2945_v52 = vmul.f32 0.25, %v2640_v19 }
 0x3a8   : > { %v2647_v27 = vpop.f32.mrf.mxu2 }
 0x3a9   : > { %v3073_v43 = vsel %vm2817_vm4, %v2640_v19, %v2945_v52  ;;  %v2648_v20 = vadd.f32 %v2647_v27, %v4954_v56 }
 0x3aa   : > { %3201 = vst [vmem:[%s4654_s9 + $0x2f8] sm:$0xff] %v3073_v43 }
 0x3ab   : > { %vm2820_vm5 = vcmp.ge.f32.partialorder %v2648_v20, 0.0  ;;  %v2948_v32 = vmul.f32 0.25, %v2648_v20 }
 0x3ad   : > { %v3076_v53 = vsel %vm2820_vm5, %v2648_v20, %v2948_v32 }
 0x3ae   : > { %3204 = vst [vmem:[%s4654_s9 + $0x310] sm:$0xff] %v3076_v53 }
 0x3b0   : > { %v2649_v40 = vpop.f32.mrf.mxu2 }
 0x3b1   : > { %v2650_v49 = vadd.f32 %v2649_v40, %v4967_v35 }
 0x3b3   : > { %vm2821_vm6 = vcmp.ge.f32.partialorder %v2650_v49, 0.0  ;;  %v2949_v17 = vmul.f32 0.25, %v2650_v49 }
 0x3b5   : > { %v3077_v5 = vsel %vm2821_vm6, %v2650_v49, %v2949_v17 }
 0x3b6   : > { %3205 = vst [vmem:[%s4654_s9 + $0x318] sm:$0xff] %v3077_v5 }
 0x3b7 PF: > { %s13_s12 = sadd.s32 1, %s4452_s12  }
 0x3b8   : > { %p10_p4 = scmp.ge.s32.totalorder %s13_s12, 4  }
 0x3ba   :  { %12 = sbr.rel (!%p10_p4) target bundleno = 1 (0x1), region = 62 }

// kernel: generator_forward.17
= control target key start
LH: loop header
LB: loop body
LE: loop exit
PB: predicated region body
PF: predicated region fallthrough
CT: control target
= control target key end

     0   :  { %s4475_s12 = smov 0   ;;  %s5610_s0 = inlined_call_operand.vmem [shape: bf16[8192,288], index: 0, kind: input, shape index: {}]   ;;  %s5611_s1 = inlined_call_operand.vmem [shape: bf16[288,3], index: 1, kind: input, shape index: {}]   ;;  %s5612_s2 = inlined_call_operand.vmem [shape: f32[1,3], index: 2, kind: input, shape index: {}]   ;;  %s5613_s3 = inlined_call_operand.vmem [shape: f32[8192,3], index: 3, kind: output, shape index: {}]  }
   0x1 LB: > { %s3035_s13 = sadd.s32 4294967295, %s4453_s12   ;;  %p3039_p0 = scmp.ge.s32.totalorder %s4453_s12, 1  ;;  %s4453_s12 = sphi %s4475_s12, %s13_s12  }
   0x2   : > { %p139_p1 = scmp.lt.s32.totalorder %s4453_s12, 9 }
   0x4   : > { %p140_p2 = pnand %p3039_p0, %p139_p1 }
   0x5   : > { %s3040_s20 = sshll.u32 (!%p140_p2), %s3035_s13, 7 }
   0x6   : > { %143 = sbr.rel (%p140_p2) target bundleno = 955 (0x3bb), region = 32  ;;  %p165_p3 = scmp.lt.s32.totalorder (!%p140_p2), %s3040_s20, 1023 }
   0xb   : > { %v4149_v0 = vld [vmem:[%s5611_s1 + $0x38] sm:$0xff]  ;;  %v4489_v1 = vld [vmem:[%s5611_s1 + $0x88] sm:$0xff]  ;;  %v4148_v3 = vld [vmem:[%s5611_s1 + $0x30] sm:$0xff]  ;;  %s5615_s20 = smov (!%p165_p3, %s3040_s20), 1023  ;;  %vm1542_vm0 = vcmask 261120   ;;  %vm2850_vm1 = vcmask 23552  }
   0xc   : > { %v4494_v2 = vld [vmem:[%s5611_s1 + $0x78] sm:$0xff]  ;;  %1735 = vmatpush.bf16.msra.mxu0 %v4149_v0  ;;  %4160 = vmatpush.bf16.msra.mxu3 %v4149_v0  ;;  %v4504_v4 = vld [vmem:[%s5611_s1 + $0x80] sm:$0xff]  ;;  %v4156_v5 = vld [vmem:[%s5611_s1 + $0x70] sm:$0xff]  ;;  %s4178_s27 = smul.u32 12, %s5615_s20  ;;  %s3043_s6 = sshll.u32 %s5615_s20, 3 }
   0xd   : > { %2399 = vmatpush.bf16.msra.mxu2 %v4489_v1  ;;  %2064 = vmatpush.bf16.msra.mxu1 %v4494_v2  ;;  %v4147_v6 = vld [vmem:[%s5611_s1 + $0x28] sm:$0xff]  ;;  %v4146_v11 = vld [vmem:[%s5611_s1 + $0x20] sm:$0xff]  ;;  %v4145_v13 = vld [vmem:[%s5611_s1 + $0x18] sm:$0xff]  ;;  %s4656_s9 = scalar_lea.vmem %s5613_s3, %s3043_s6 }
   0xe   : > { %s4519_s5 = scalar_lea.vmem %s5610_s0, %s4178_s27  ;;  %v4155_v7 = vld [vmem:[%s5611_s1 + $0x68] sm:$0xff]  ;;  %v4154_v12 = vld [vmem:[%s5611_s1 + $0x60] sm:$0xff]  ;;  %v4153_v14 = vld [vmem:[%s5611_s1 + $0x58] sm:$0xff] }
   0xf   : > { %v3054_v8 = vld [vmem:[%s4519_s5 + $0x8] sm:$0xf]  ;;  %v3952_v9 = vld [vmem:[%s4519_s5 + $0x10] sm:$0xf0]  ;;  %v3066_v17 = vld [vmem:[%s4519_s5 + $0x20] sm:$0xf] }
  0x10   : > { %1736 = vmatpush.bf16.msra.mxu0 %v4148_v3  ;;  %4161 = vmatpush.bf16.msra.mxu3 %v4148_v3  ;;  %v3055_v10 = vor.u32 %v3952_v9, %v3054_v8  ;;  %v4144_v15 = vld [vmem:[%s5611_s1 + $0x10] sm:$0xff]  ;;  %v3955_v18 = vld [vmem:[%s4519_s5 + $0x28] sm:$0xf0]  ;;  %v4142_v22 = vld [vmem:[%s5611_s1] sm:$0xff] }
  0x11   : > { %2400 = vmatpush.bf16.msra.mxu2 %v4504_v4  ;;  %2065 = vmatpush.bf16.msra.mxu1 %v4156_v5  ;;  %v4152_v16 = vld [vmem:[%s5611_s1 + $0x50] sm:$0xff]  ;;  %v4143_v19 = vld [vmem:[%s5611_s1 + $0x8] sm:$0xff]  ;;  %v3067_v20 = vor.u32 %v3955_v18, %v3066_v17  ;;  %v3046_v23 = vld [vmem:[%s4519_s5] sm:$0xf] }
  0x12   : > { %v4151_v21 = vld [vmem:[%s5611_s1 + $0x48] sm:$0xff]  ;;  %v3622_v25 = vld [vmem:[%s4519_s5 + $0x480] sm:$0xf]  ;;  %v3950_v28 = vld [vmem:[%s4519_s5 + $0x4] sm:$0xf] }
  0x13   : > { %v3951_v24 = vld [vmem:[%s4519_s5 + $0x8] sm:$0xf0]  ;;  %v4150_v27 = vld [vmem:[%s5611_s1 + $0x40] sm:$0xff]  ;;  %v3048_v29 = vld [vmem:[%s4519_s5 + $0xc] sm:$0xf0] }
  0x14   : > { %1737 = vmatpush.bf16.msra.mxu0 %v4147_v6  ;;  %4162 = vmatpush.bf16.msra.mxu3 %v4147_v6  ;;  %v4095_v26 = vld [vmem:[%s4519_s5 + $0x488] sm:$0xf0]  ;;  %v3047_v30 = vor.u32 %v3951_v24, %v3046_v23  ;;  %v3051_v32 = vor.u32 %v3950_v28, %v3048_v29  ;;  %v3078_v33 = vld [vmem:[%s4519_s5 + $0x38] sm:$0xf]  ;;  %v3958_v34 = vld [vmem:[%s4519_s5 + $0x40] sm:$0xf0] }
  0x15   : > { %3884 = vmatmul.msk.bf16.vlgmr.msra.gmra.mxu2 %vm1542_vm0, %v3055_v10  ;;  %2066 = vmatpush.bf16.msra.mxu1 %v4155_v7  ;;  %v3623_v31 = vor.u32 %v4095_v26, %v3622_v25  ;;  %v3079_v35 = vor.u32 %v3958_v34, %v3078_v33  ;;  %v3058_v36 = vld [vmem:[%s4519_s5 + $0x18] sm:$0xf]  ;;  %v3954_v37 = vld [vmem:[%s4519_s5 + $0x20] sm:$0xf0]  ;;  %v3953_v40 = vld [vmem:[%s4519_s5 + $0x1c] sm:$0xf] }
  0x16   : > { %v3634_v38 = vld [vmem:[%s4519_s5 + $0x498] sm:$0xf]  ;;  %v4098_v39 = vld [vmem:[%s4519_s5 + $0x4a0] sm:$0xf0]  ;;  %v3060_v41 = vld [vmem:[%s4519_s5 + $0x24] sm:$0xf0]  ;;  %v3059_v42 = vor.u32 %v3954_v37, %v3058_v36 }
  0x17   : > { %v3635_v43 = vor.u32 %v4098_v39, %v3634_v38  ;;  %v3063_v44 = vor.u32 %v3953_v40, %v3060_v41  ;;  %v3090_v45 = vld [vmem:[%s4519_s5 + $0x50] sm:$0xf]  ;;  %v3961_v46 = vld [vmem:[%s4519_s5 + $0x58] sm:$0xf0]  ;;  %v3956_v52 = vld [vmem:[%s4519_s5 + $0x34] sm:$0xf] }
  0x18   : > { %1738 = vmatpush.bf16.msra.mxu0 %v4146_v11  ;;  %4163 = vmatpush.bf16.msra.mxu3 %v4146_v11  ;;  %v3091_v47 = vor.u32 %v3961_v46, %v3090_v45  ;;  %v3070_v48 = vld [vmem:[%s4519_s5 + $0x30] sm:$0xf]  ;;  %v3957_v49 = vld [vmem:[%s4519_s5 + $0x38] sm:$0xf0]  ;;  %v3072_v53 = vld [vmem:[%s4519_s5 + $0x3c] sm:$0xf0] }
  0x19   : > { %2067 = vmatpush.bf16.msra.mxu1 %v4154_v12  ;;  %v3646_v50 = vld [vmem:[%s4519_s5 + $0x4b0] sm:$0xf]  ;;  %v4101_v51 = vld [vmem:[%s4519_s5 + $0x4b8] sm:$0xf0]  ;;  %v3071_v54 = vor.u32 %v3957_v49, %v3070_v48  ;;  %v3075_v56 = vor.u32 %v3956_v52, %v3072_v53  ;;  %v3102_v57 = vld [vmem:[%s4519_s5 + $0x68] sm:$0xf] }
  0x1a   : > { %v3647_v55 = vor.u32 %v4101_v51, %v3646_v50  ;;  %v3964_v58 = vld [vmem:[%s4519_s5 + $0x70] sm:$0xf0]  ;;  %v3082_v60 = vld [vmem:[%s4519_s5 + $0x48] sm:$0xf]  ;;  %v3959_v0 = vld [vmem:[%s4519_s5 + $0x4c] sm:$0xf] }
  0x1b   : > { %v3103_v59 = vor.u32 %v3964_v58, %v3102_v57  ;;  %v3960_v61 = vld [vmem:[%s4519_s5 + $0x50] sm:$0xf0]  ;;  %v3658_v62 = vld [vmem:[%s4519_s5 + $0x4c8] sm:$0xf]  ;;  %v3967_v6 = vld [vmem:[%s4519_s5 + $0x88] sm:$0xf0] }
  0x1c   : > { %1739 = vmatpush.bf16.msra.mxu0 %v4145_v13  ;;  %4164 = vmatpush.bf16.msra.mxu3 %v4145_v13  ;;  %v4104_v63 = vld [vmem:[%s4519_s5 + $0x4d0] sm:$0xf0]  ;;  %v3094_v8 = vld [vmem:[%s4519_s5 + $0x60] sm:$0xf]  ;;  %v3963_v9 = vld [vmem:[%s4519_s5 + $0x68] sm:$0xf0] }
  0x1d   : > { %2068 = vmatpush.bf16.msra.mxu1 %v4153_v14  ;;  %v3659_v3 = vor.u32 %v4104_v63, %v3658_v62  ;;  %v3670_v10 = vld [vmem:[%s4519_s5 + $0x4e0] sm:$0xf]  ;;  %v4107_v11 = vld [vmem:[%s4519_s5 + $0x4e8] sm:$0xf0]  ;;  %v3096_v13 = vld [vmem:[%s4519_s5 + $0x6c] sm:$0xf0] }
  0x1e   : > { %v3126_v17 = vld [vmem:[%s4519_s5 + $0x98] sm:$0xf]  ;;  %v3970_v18 = vld [vmem:[%s4519_s5 + $0xa0] sm:$0xf0]  ;;  %v3965_v24 = vld [vmem:[%s4519_s5 + $0x7c] sm:$0xf] }
  0x1f   : > { %v4110_v23 = vld [vmem:[%s4519_s5 + $0x500] sm:$0xf0]  ;;  %v3108_v25 = vld [vmem:[%s4519_s5 + $0x84] sm:$0xf0]  ;;  %v3138_v29 = vld [vmem:[%s4519_s5 + $0xb0] sm:$0xf] }
  0x20   : > { %1740 = vmatpush.bf16.msra.mxu0 %v4144_v15  ;;  %4165 = vmatpush.bf16.msra.mxu3 %v4144_v15  ;;  %v3671_v15 = vor.u32 %v4107_v11, %v3670_v10  ;;  %v3111_v28 = vor.u32 %v3965_v24, %v3108_v25  ;;  %v3969_v33 = vld [vmem:[%s4519_s5 + $0x98] sm:$0xf0]  ;;  %v3694_v34 = vld [vmem:[%s4519_s5 + $0x510] sm:$0xf]  ;;  %v3968_v36 = vld [vmem:[%s4519_s5 + $0x94] sm:$0xf] }
  0x21   : > { %2069 = vmatpush.bf16.msra.mxu1 %v4152_v16  ;;  %v3120_v37 = vld [vmem:[%s4519_s5 + $0x9c] sm:$0xf0]  ;;  %v3150_v41 = vld [vmem:[%s4519_s5 + $0xc8] sm:$0xf]  ;;  %v3972_v45 = vld [vmem:[%s4519_s5 + $0xb0] sm:$0xf0] }
  0x22   : > { %v3123_v40 = vor.u32 %v3968_v36, %v3120_v37  ;;  %v3706_v46 = vld [vmem:[%s4519_s5 + $0x528] sm:$0xf]  ;;  %v3971_v48 = vld [vmem:[%s4519_s5 + $0xac] sm:$0xf]  ;;  %v3132_v49 = vld [vmem:[%s4519_s5 + $0xb4] sm:$0xf0] }
  0x23   : > { %v3135_v53 = vor.u32 %v3971_v48, %v3132_v49  ;;  %v3142_v58 = vld [vmem:[%s4519_s5 + $0xc0] sm:$0xf]  ;;  %v3974_v63 = vld [vmem:[%s4519_s5 + $0xc4] sm:$0xf]  ;;  %v3174_v11 = vld [vmem:[%s4519_s5 + $0xf8] sm:$0xf] }
  0x24   : > { %1741 = vmatpush.bf16.msra.mxu0 %v4143_v19  ;;  %4166 = vmatpush.bf16.msra.mxu3 %v4143_v19  ;;  %v3127_v19 = vor.u32 %v3970_v18, %v3126_v17  ;;  %v4642_v62 = vld [vmem:[%s5612_s2] ss:$0 sm:$0xff]  ;;  %v3977_v25 = vld [vmem:[%s4519_s5 + $0xdc] sm:$0xf]  ;;  %v3742_v49 = vld [vmem:[%s4519_s5 + $0x570] sm:$0xf] }
  0x25   : > { %3885 = vmatmul.msk.bf16.gmra.mxu2 %vm1542_vm0, %v3067_v20  ;;  %2070 = vmatpush.bf16.msra.mxu1 %v4151_v21  ;;  %v3106_v20 = vld [vmem:[%s4519_s5 + $0x78] sm:$0xf]  ;;  %v3981_v48 = vld [vmem:[%s4519_s5 + $0xf8] sm:$0xf0] }
  0x28   : > { %1742 = vmatpush.bf16.msra.mxu0 %v4142_v22  ;;  %4167 = vmatpush.bf16.msra.mxu3 %v4142_v22  ;;  %v3682_v22 = vld [vmem:[%s4519_s5 + $0x4f8] sm:$0xf] }
  0x29   : > { %2071 = vmatpush.bf16.msra.mxu1 %v4150_v27 }
  0x2b   : > { %1743 = vmatmul.bf16.vlgmr.msra.gmra.mxu0 %v3047_v30  ;;  %1983 = vmatmul.bf16.vlgmr.msra.gmra.mxu3 %v3623_v31  ;;  %v3973_v30 = vld [vmem:[%s4519_s5 + $0xb8] sm:$0xf0] }
  0x2c   : > { %4168 = vmatpush.bf16.msrb.mxu3 %v4494_v2  ;;  %2072 = vmatmul.bf16.vlgmr.msra.gmra.mxu1 %v3051_v32  ;;  %v3083_v2 = vor.u32 %v3960_v61, %v3082_v60  ;;  %v3139_v31 = vor.u32 %v3973_v30, %v3138_v29  ;;  %v3118_v32 = vld [vmem:[%s4519_s5 + $0x90] sm:$0xf]  ;;  %v3718_v60 = vld [vmem:[%s4519_s5 + $0x540] sm:$0xf]  ;;  %v4119_v61 = vld [vmem:[%s4519_s5 + $0x548] sm:$0xf0] }
  0x2d   : > { %v3119_v38 = vor.u32 %v3969_v33, %v3118_v32 }
  0x30   : > { %4169 = vmatpush.bf16.msrb.mxu3 %v4156_v5  ;;  %v3114_v5 = vld [vmem:[%s4519_s5 + $0x80] sm:$0xf] }
  0x34   : > { %4170 = vmatpush.bf16.msrb.mxu3 %v4155_v7  ;;  %v3115_v7 = vor.u32 %v3967_v6, %v3114_v5 }
  0x35   : > { %3886 = vmatmul.msk.bf16.gmra.mxu2 %vm1542_vm0, %v3079_v35  ;;  %v4113_v35 = vld [vmem:[%s4519_s5 + $0x518] sm:$0xf0] }
  0x36   : > { %v3695_v39 = vor.u32 %v4113_v35, %v3694_v34 }
  0x38   : > { %4171 = vmatpush.bf16.msrb.mxu3 %v4154_v12  ;;  %v3962_v12 = vld [vmem:[%s4519_s5 + $0x64] sm:$0xf] }
  0x3b   : > { %1748 = vmatmul.bf16.gmra.mxu0 %v3059_v42  ;;  %1988 = vmatmul.bf16.gmra.mxu3 %v3635_v43  ;;  %v3976_v42 = vld [vmem:[%s4519_s5 + $0xd0] sm:$0xf0] }
  0x3c   : > { %4172 = vmatpush.bf16.msrb.mxu3 %v4153_v14  ;;  %2077 = vmatmul.bf16.gmra.mxu1 %v3063_v44  ;;  %v3095_v14 = vor.u32 %v3963_v9, %v3094_v8  ;;  %v3151_v43 = vor.u32 %v3976_v42, %v3150_v41  ;;  %v3130_v44 = vld [vmem:[%s4519_s5 + $0xa8] sm:$0xf] }
  0x3d   : > { %v3131_v50 = vor.u32 %v3972_v45, %v3130_v44 }
  0x40   : > { %4173 = vmatpush.bf16.msrb.mxu3 %v4152_v16  ;;  %v3099_v16 = vor.u32 %v3962_v12, %v3096_v13  ;;  %v3982_v12 = vld [vmem:[%s4519_s5 + $0x100] sm:$0xf0] }
  0x41   : > { %v3175_v17 = vor.u32 %v3982_v12, %v3174_v11 }
  0x44   : > { %4174 = vmatpush.bf16.msrb.mxu3 %v4151_v21  ;;  %v3966_v21 = vld [vmem:[%s4519_s5 + $0x80] sm:$0xf0] }
  0x45   : > { %3887 = vmatmul.msk.bf16.gmra.mxu2 %vm1542_vm0, %v3091_v47  ;;  %v3107_v26 = vor.u32 %v3966_v21, %v3106_v20  ;;  %v4116_v47 = vld [vmem:[%s4519_s5 + $0x530] sm:$0xf0]  ;;  %v3978_v20 = vld [vmem:[%s4519_s5 + $0xe0] sm:$0xf0]  ;;  %v3730_v21 = vld [vmem:[%s4519_s5 + $0x558] sm:$0xf] }
  0x46   : > { %v3707_v51 = vor.u32 %v4116_v47, %v3706_v46  ;;  %v3166_v47 = vld [vmem:[%s4519_s5 + $0xf0] sm:$0xf] }
  0x48   : > { %4175 = vmatpush.bf16.msrb.mxu3 %v4150_v27  ;;  %v3683_v27 = vor.u32 %v4110_v23, %v3682_v22  ;;  %v4122_v22 = vld [vmem:[%s4519_s5 + $0x560] sm:$0xf0] }
  0x49   : > { %v3731_v29 = vor.u32 %v4122_v22, %v3730_v21 }
  0x4b   : > { %1753 = vmatmul.bf16.gmra.mxu0 %v3071_v54  ;;  %1993 = vmatmul.bf16.gmra.mxu3 %v3647_v55  ;;  %v3162_v54 = vld [vmem:[%s4519_s5 + $0xe0] sm:$0xf]  ;;  %v3979_v55 = vld [vmem:[%s4519_s5 + $0xe8] sm:$0xf0] }
  0x4c   : > { %4176 = vmatpush.bf16.msra.mxu3 %v4489_v1  ;;  %2082 = vmatmul.bf16.gmra.mxu1 %v3075_v56  ;;  %v3084_v1 = vld [vmem:[%s4519_s5 + $0x54] sm:$0xf0]  ;;  %v3163_v57 = vor.u32 %v3979_v55, %v3162_v54  ;;  %v3168_v54 = vld [vmem:[%s4519_s5 + $0xfc] sm:$0xf0] }
  0x50   : > { %4177 = vmatpush.bf16.msra.mxu3 %v4504_v4  ;;  %v3087_v4 = vor.u32 %v3959_v0, %v3084_v1  ;;  %v3144_v0 = vld [vmem:[%s4519_s5 + $0xcc] sm:$0xf0] }
  0x51   : > { %v3147_v5 = vor.u32 %v3974_v63, %v3144_v0 }
  0x55   : > { %3888 = vmatmul.msk.bf16.gmra.mxu2 %vm1542_vm0, %v3103_v59  ;;  %v3975_v59 = vld [vmem:[%s4519_s5 + $0xc8] sm:$0xf0] }
  0x56   : > { %v3143_v1 = vor.u32 %v3975_v59, %v3142_v58 }
  0x5b   : > { %1758 = vmatmul.bf16.gmra.mxu0 %v3083_v2  ;;  %1998 = vmatmul.bf16.gmra.mxu3 %v3659_v3  ;;  %v3719_v2 = vor.u32 %v4119_v61, %v3718_v60 }
  0x5c   : > { %2087 = vmatmul.bf16.gmra.mxu1 %v3087_v4 }
  0x65   : > { %3889 = vmatmul.msk.bf16.gmra.mxu2 %vm1542_vm0, %v3115_v7 }
  0x6b   : > { %1763 = vmatmul.bf16.gmra.mxu0 %v3095_v14  ;;  %2003 = vmatmul.bf16.gmra.mxu3 %v3671_v15 }
  0x6c   : > { %2092 = vmatmul.bf16.gmra.mxu1 %v3099_v16 }
  0x75   : > { %3890 = vmatmul.msk.bf16.gmra.mxu2 %vm1542_vm0, %v3127_v19  ;;  %v3154_v19 = vld [vmem:[%s4519_s5 + $0xd8] sm:$0xf] }
  0x7b   : > { %1768 = vmatmul.bf16.gmra.mxu0 %v3107_v26  ;;  %2008 = vmatmul.bf16.gmra.mxu3 %v3683_v27  ;;  %v3156_v26 = vld [vmem:[%s4519_s5 + $0xe4] sm:$0xf0] }
  0x7c   : > { %2097 = vmatmul.bf16.gmra.mxu1 %v3111_v28  ;;  %v3155_v28 = vor.u32 %v3978_v20, %v3154_v19  ;;  %v3159_v32 = vor.u32 %v3977_v25, %v3156_v26  ;;  %v3983_v19 = vld [vmem:[%s4519_s5 + $0x10c] sm:$0xf]  ;;  %v3180_v20 = vld [vmem:[%s4519_s5 + $0x114] sm:$0xf0] }
  0x7d   : > { %v3183_v26 = vor.u32 %v3983_v19, %v3180_v20 }
  0x85   : > { %3891 = vmatmul.msk.bf16.gmra.mxu2 %vm1542_vm0, %v3139_v31 }
  0x8b   : > { %1773 = vmatmul.bf16.gmra.mxu0 %v3119_v38  ;;  %2013 = vmatmul.bf16.gmra.mxu3 %v3695_v39  ;;  %v3186_v39 = vld [vmem:[%s4519_s5 + $0x110] sm:$0xf] }
  0x8c   : > { %2102 = vmatmul.bf16.gmra.mxu1 %v3123_v40  ;;  %v3985_v40 = vld [vmem:[%s4519_s5 + $0x118] sm:$0xf0] }
  0x8d   : > { %v3187_v45 = vor.u32 %v3985_v40, %v3186_v39 }
  0x95   : > { %3892 = vmatmul.msk.bf16.gmra.mxu2 %vm1542_vm0, %v3151_v43 }
  0x98   : > { %v2402_v52 = vpop.f32.mrf.mxu2 }
  0x9b   : > { %1778 = vmatmul.bf16.gmra.mxu0 %v3131_v50  ;;  %2018 = vmatmul.bf16.gmra.mxu3 %v3707_v51  ;;  %v4125_v50 = vld [vmem:[%s4519_s5 + $0x578] sm:$0xf0] }
  0x9c   : > { %2107 = vmatmul.bf16.gmra.mxu1 %v3135_v53  ;;  %v3980_v53 = vld [vmem:[%s4519_s5 + $0xf4] sm:$0xf] }
  0x9d   : > { %v3171_v60 = vor.u32 %v3980_v53, %v3168_v54 }
  0xa0   : > { %v2404_v56 = vpop.f32.mrf.mxu2 }
  0xa5   : > { %3893 = vmatmul.msk.bf16.gmra.mxu2 %vm1542_vm0, %v3163_v57  ;;  %v3743_v57 = vor.u32 %v4125_v50, %v3742_v49  ;;  %v3986_v49 = vld [vmem:[%s4519_s5 + $0x124] sm:$0xf]  ;;  %v3192_v50 = vld [vmem:[%s4519_s5 + $0x12c] sm:$0xf0] }
  0xa8   : > { %v2407_v3 = vpop.f32.mrf.mxu2  ;;  %v1744_v4 = vpop.f32.mrf.mxu0 }
  0xa9   : > { %v1745_v6 = vadd.f32 %v4642_v62, %v1744_v4  ;;  %v2073_v7 = vpop.f32.mrf.mxu1  ;;  %v3198_v4 = vld [vmem:[%s4519_s5 + $0x128] sm:$0xf] }
  0xab   : > { %v2074_v8 = vadd.f32 %v2073_v7, %v1745_v6  ;;  %1783 = vmatmul.bf16.gmra.mxu0 %v3143_v1  ;;  %2023 = vmatmul.bf16.gmra.mxu3 %v3719_v2 }
  0xac   : > { %2112 = vmatmul.bf16.gmra.mxu1 %v3147_v5  ;;  %v3988_v5 = vld [vmem:[%s4519_s5 + $0x130] sm:$0xf0] }
  0xad   : > { %v2403_v9 = vadd.f32 %v2402_v52, %v2074_v8  ;;  %v3199_v11 = vor.u32 %v3988_v5, %v3198_v4 }
  0xae   : > { %v4647_v10 = vpop.f32.mrf.mxu3 }
  0xaf   : > { %4188 = vtanh.f32 %v2403_v9 }
  0xb0   : > { %v2409_v13 = vpop.f32.mrf.mxu2  ;;  %v1746_v14 = vpop.f32.mrf.mxu0 }
  0xb1   : > { %v1747_v15 = vadd.f32 %v4642_v62, %v1746_v14  ;;  %v2075_v16 = vpop.f32.mrf.mxu1  ;;  %v3984_v14 = vld [vmem:[%s4519_s5 + $0x110] sm:$0xf0] }
  0xb3   : > { %v2076_v18 = vadd.f32 %v2075_v16, %v1747_v15  ;;  %v3754_v15 = vld [vmem:[%s4519_s5 + $0x588] sm:$0xf]  ;;  %v4128_v16 = vld [vmem:[%s4519_s5 + $0x590] sm:$0xf0] }
  0xb5   : > { %v4189_v23 = vpop.eup %4188  ;;  %v2405_v24 = vadd.f32 %v2404_v56, %v2076_v18  ;;  %3894 = vmatmul.msk.bf16.gmra.mxu2 %vm1542_vm0, %v3175_v17  ;;  %v3167_v56 = vor.u32 %v3981_v48, %v3166_v47 }
  0xb6   : > { %2851 = vst.msk [vmem:[%s4656_s9] sm:$0xff] %vm2850_vm1, %v4189_v23  ;;  %v4667_v27 = vpop.f32.mrf.mxu3  ;;  %v3755_v23 = vor.u32 %v4128_v16, %v3754_v15 }
  0xb7   : > { %4190 = vtanh.f32 %v2405_v24 }
  0xb8   : > { %v2412_v30 = vpop.f32.mrf.mxu2  ;;  %v1749_v31 = vpop.f32.mrf.mxu0 }
  0xb9   : > { %v1750_v33 = vadd.f32 %v4642_v62, %v1749_v31  ;;  %v2078_v34 = vpop.f32.mrf.mxu1 }
  0xbb   : > { %v2079_v35 = vadd.f32 %v2078_v34, %v1750_v33  ;;  %1788 = vmatmul.bf16.gmra.mxu0 %v3155_v28  ;;  %2028 = vmatmul.bf16.gmra.mxu3 %v3731_v29  ;;  %v3210_v34 = vld [vmem:[%s4519_s5 + $0x140] sm:$0xf] }
  0xbc   : > { %2117 = vmatmul.bf16.gmra.mxu1 %v3159_v32 }
  0xbd   : > { %v4191_v36 = vpop.eup %4190  ;;  %v2408_v37 = vadd.f32 %v2407_v3, %v2079_v35  ;;  %v3991_v35 = vld [vmem:[%s4519_s5 + $0x148] sm:$0xf0] }
  0xbe   : > { %2852 = vst.msk [vmem:[%s4656_s9 + $0x8] sm:$0xff] %vm2850_vm1, %v4191_v36  ;;  %v4672_v38 = vpop.f32.mrf.mxu3 }
  0xbf   : > { %4192 = vtanh.f32 %v2408_v37 }
  0xc0   : > { %v2414_v41 = vpop.f32.mrf.mxu2  ;;  %v1751_v42 = vpop.f32.mrf.mxu0 }
  0xc1   : > { %v1752_v43 = vadd.f32 %v4642_v62, %v1751_v42  ;;  %v2080_v44 = vpop.f32.mrf.mxu1 }
  0xc3   : > { %v2081_v46 = vadd.f32 %v2080_v44, %v1752_v43  ;;  %v3190_v43 = vld [vmem:[%s4519_s5 + $0x120] sm:$0xf]  ;;  %v3987_v44 = vld [vmem:[%s4519_s5 + $0x128] sm:$0xf0] }
  0xc5   : > { %v4193_v51 = vpop.eup %4192  ;;  %v2410_v52 = vadd.f32 %v2409_v13, %v2081_v46  ;;  %3895 = vmatmul.msk.bf16.gmra.mxu2 %vm1542_vm0, %v3187_v45  ;;  %v3178_v13 = vld [vmem:[%s4519_s5 + $0x108] sm:$0xf]  ;;  %v3766_v45 = vld [vmem:[%s4519_s5 + $0x5a0] sm:$0xf]  ;;  %v4131_v46 = vld [vmem:[%s4519_s5 + $0x5a8] sm:$0xf0] }
  0xc6   : > { %2853 = vst.msk [vmem:[%s4656_s9 + $0x10] sm:$0xff] %vm2850_vm1, %v4193_v51  ;;  %v4686_v55 = vpop.f32.mrf.mxu3  ;;  %v3179_v22 = vor.u32 %v3984_v14, %v3178_v13  ;;  %v3767_v53 = vor.u32 %v4131_v46, %v3766_v45  ;;  %v3778_v13 = vld [vmem:[%s4519_s5 + $0x5b8] sm:$0xf]  ;;  %v4134_v14 = vld [vmem:[%s4519_s5 + $0x5c0] sm:$0xf0] }
  0xc7   : > { %4194 = vtanh.f32 %v2410_v52  ;;  %v3191_v52 = vor.u32 %v3987_v44, %v3190_v43  ;;  %v3214_v43 = vld [vmem:[%s4519_s5 + $0x150] sm:$0xf]  ;;  %v3993_v44 = vld [vmem:[%s4519_s5 + $0x158] sm:$0xf0] }
  0xc8   : > { %v2417_v58 = vpop.f32.mrf.mxu2  ;;  %v1754_v59 = vpop.f32.mrf.mxu0  ;;  %v3790_v45 = vld [vmem:[%s4519_s5 + $0x5d0] sm:$0xf]  ;;  %v4137_v46 = vld [vmem:[%s4519_s5 + $0x5d8] sm:$0xf0] }
  0xc9   : > { %v1755_v61 = vadd.f32 %v4642_v62, %v1754_v59  ;;  %v2083_v63 = vpop.f32.mrf.mxu1 }
  0xcb   : > { %v2084_v0 = vadd.f32 %v2083_v63, %v1755_v61  ;;  %1793 = vmatmul.bf16.gmra.mxu0 %v3167_v56  ;;  %2033 = vmatmul.bf16.gmra.mxu3 %v3743_v57  ;;  %v3195_v57 = vor.u32 %v3986_v49, %v3192_v50  ;;  %v3992_v49 = vld [vmem:[%s4519_s5 + $0x154] sm:$0xf]  ;;  %v3216_v50 = vld [vmem:[%s4519_s5 + $0x15c] sm:$0xf0] }
  0xcc   : > { %2122 = vmatmul.bf16.gmra.mxu1 %v3171_v60 }
  0xcd   : > { %v4195_v1 = vpop.eup %4194  ;;  %v2413_v2 = vadd.f32 %v2412_v30, %v2084_v0 }
  0xce   : > { %2854 = vst.msk [vmem:[%s4656_s9 + $0x18] sm:$0xff] %vm2850_vm1, %v4195_v1  ;;  %v4691_v3 = vpop.f32.mrf.mxu3  ;;  %v3222_v1 = vld [vmem:[%s4519_s5 + $0x158] sm:$0xf] }
  0xcf   : > { %4196 = vtanh.f32 %v2413_v2  ;;  %v3994_v2 = vld [vmem:[%s4519_s5 + $0x160] sm:$0xf0] }
  0xd0   : > { %v2419_v6 = vpop.f32.mrf.mxu2  ;;  %v1756_v7 = vpop.f32.mrf.mxu0 }
  0xd1   : > { %v1757_v8 = vadd.f32 %v4642_v62, %v1756_v7  ;;  %v2085_v9 = vpop.f32.mrf.mxu1 }
  0xd3   : > { %v2086_v12 = vadd.f32 %v2085_v9, %v1757_v8  ;;  %v3223_v8 = vor.u32 %v3994_v2, %v3222_v1 }
  0xd5   : > { %v4197_v17 = vpop.eup %4196  ;;  %v2415_v18 = vadd.f32 %v2414_v41, %v2086_v12  ;;  %3896 = vmatmul.msk.bf16.gmra.mxu2 %vm1542_vm0, %v3199_v11  ;;  %v3211_v41 = vor.u32 %v3991_v35, %v3210_v34  ;;  %v3202_v11 = vld [vmem:[%s4519_s5 + $0x138] sm:$0xf]  ;;  %v3990_v12 = vld [vmem:[%s4519_s5 + $0x140] sm:$0xf0]  ;;  %v3234_v34 = vld [vmem:[%s4519_s5 + $0x170] sm:$0xf] }
  0xd6   : > { %2855 = vst.msk [vmem:[%s4656_s9 + $0x20] sm:$0xff] %vm2850_vm1, %v4197_v17  ;;  %v4705_v21 = vpop.f32.mrf.mxu3  ;;  %v3989_v17 = vld [vmem:[%s4519_s5 + $0x13c] sm:$0xf]  ;;  %v3203_v20 = vor.u32 %v3990_v12, %v3202_v11 }
  0xd7   : > { %4198 = vtanh.f32 %v2415_v18  ;;  %v3204_v18 = vld [vmem:[%s4519_s5 + $0x144] sm:$0xf0]  ;;  %v3997_v35 = vld [vmem:[%s4519_s5 + $0x178] sm:$0xf0] }
  0xd8   : > { %v2422_v24 = vpop.f32.mrf.mxu2  ;;  %v1759_v25 = vpop.f32.mrf.mxu0 }
  0xd9   : > { %v1760_v28 = vadd.f32 %v4642_v62, %v1759_v25  ;;  %v2088_v29 = vpop.f32.mrf.mxu1  ;;  %v3207_v25 = vor.u32 %v3989_v17, %v3204_v18 }
  0xdb   : > { %v2089_v30 = vadd.f32 %v2088_v29, %v1760_v28  ;;  %1798 = vmatmul.bf16.gmra.mxu0 %v3179_v22  ;;  %2038 = vmatmul.bf16.gmra.mxu3 %v3755_v23  ;;  %v3779_v22 = vor.u32 %v4134_v14, %v3778_v13  ;;  %v3226_v13 = vld [vmem:[%s4519_s5 + $0x168] sm:$0xf]  ;;  %v3996_v14 = vld [vmem:[%s4519_s5 + $0x170] sm:$0xf0] }
  0xdc   : > { %2127 = vmatmul.bf16.gmra.mxu1 %v3183_v26 }
  0xdd   : > { %v4199_v31 = vpop.eup %4198  ;;  %v2418_v32 = vadd.f32 %v2417_v58, %v2089_v30 }
  0xde   : > { %2856 = vst.msk [vmem:[%s4656_s9 + $0x28] sm:$0xff] %vm2850_vm1, %v4199_v31  ;;  %v4710_v33 = vpop.f32.mrf.mxu3 }
  0xdf   : > { %4200 = vtanh.f32 %v2418_v32 }
  0xe0   : > { %v2424_v36 = vpop.f32.mrf.mxu2  ;;  %v1761_v37 = vpop.f32.mrf.mxu0 }
  0xe1   : > { %v1762_v39 = vadd.f32 %v4642_v62, %v1761_v37  ;;  %v2090_v40 = vpop.f32.mrf.mxu1 }
  0xe3   : > { %v2091_v42 = vadd.f32 %v2090_v40, %v1762_v39 }
  0xe5   : > { %v4201_v47 = vpop.eup %4200  ;;  %v2420_v48 = vadd.f32 %v2419_v6, %v2091_v42  ;;  %3897 = vmatmul.msk.bf16.gmra.mxu2 %vm1542_vm0, %v3211_v41  ;;  %v3235_v41 = vor.u32 %v3997_v35, %v3234_v34 }
  0xe6   : > { %2857 = vst.msk [vmem:[%s4656_s9 + $0x30] sm:$0xff] %vm2850_vm1, %v4201_v47  ;;  %v4724_v51 = vpop.f32.mrf.mxu3 }
  0xe7   : > { %4202 = vtanh.f32 %v2420_v48 }
  0xe8   : > { %v2427_v54 = vpop.f32.mrf.mxu2  ;;  %v1764_v56 = vpop.f32.mrf.mxu0 }
  0xe9   : > { %v1765_v58 = vadd.f32 %v4642_v62, %v1764_v56  ;;  %v2093_v59 = vpop.f32.mrf.mxu1 }
  0xeb   : > { %v2094_v60 = vadd.f32 %v2093_v59, %v1765_v58  ;;  %1803 = vmatmul.bf16.gmra.mxu0 %v3191_v52  ;;  %2043 = vmatmul.bf16.gmra.mxu3 %v3767_v53  ;;  %v3215_v53 = vor.u32 %v3993_v44, %v3214_v43  ;;  %v3219_v58 = vor.u32 %v3992_v49, %v3216_v50  ;;  %v4094_v49 = vld [vmem:[%s4519_s5 + $0x484] sm:$0xf]  ;;  %v3624_v50 = vld [vmem:[%s4519_s5 + $0x48c] sm:$0xf0] }
  0xec   : > { %2132 = vmatmul.bf16.gmra.mxu1 %v3195_v57 }
  0xed   : > { %v4203_v61 = vpop.eup %4202  ;;  %v2423_v63 = vadd.f32 %v2422_v24, %v2094_v60 }
  0xee   : > { %2858 = vst.msk [vmem:[%s4656_s9 + $0x38] sm:$0xff] %vm2850_vm1, %v4203_v61  ;;  %v4729_v0 = vpop.f32.mrf.mxu3 }
  0xef   : > { %4204 = vtanh.f32 %v2423_v63 }
  0xf0   : > { %v2429_v4 = vpop.f32.mrf.mxu2  ;;  %v1766_v5 = vpop.f32.mrf.mxu0 }
  0xf1   : > { %v1767_v6 = vadd.f32 %v4642_v62, %v1766_v5  ;;  %v2095_v7 = vpop.f32.mrf.mxu1  ;;  %v4000_v5 = vld [vmem:[%s4519_s5 + $0x190] sm:$0xf0] }
  0xf3   : > { %v2096_v9 = vadd.f32 %v2095_v7, %v1767_v6 }
  0xf5   : > { %v4205_v15 = vpop.eup %4204  ;;  %v2425_v16 = vadd.f32 %v2424_v36, %v2096_v9  ;;  %3898 = vmatmul.msk.bf16.gmra.mxu2 %vm1542_vm0, %v3223_v8 }
  0xf6   : > { %2859 = vst.msk [vmem:[%s4656_s9 + $0x40] sm:$0xff] %vm2850_vm1, %v4205_v15  ;;  %v4743_v19 = vpop.f32.mrf.mxu3  ;;  %v3802_v15 = vld [vmem:[%s4519_s5 + $0x5e8] sm:$0xf] }
  0xf7   : > { %4206 = vtanh.f32 %v2425_v16  ;;  %v4140_v16 = vld [vmem:[%s4519_s5 + $0x5f0] sm:$0xf0] }
  0xf8   : > { %v2432_v23 = vpop.f32.mrf.mxu2  ;;  %v1769_v24 = vpop.f32.mrf.mxu0 }
  0xf9   : > { %v1770_v26 = vadd.f32 %v4642_v62, %v1769_v24  ;;  %v2098_v28 = vpop.f32.mrf.mxu1  ;;  %v3227_v24 = vor.u32 %v3996_v14, %v3226_v13 }
  0xfb   : > { %v2099_v29 = vadd.f32 %v2098_v28, %v1770_v26  ;;  %1808 = vmatmul.bf16.gmra.mxu0 %v3203_v20  ;;  %2048 = vmatmul.bf16.gmra.mxu3 %v3779_v22  ;;  %v3995_v20 = vld [vmem:[%s4519_s5 + $0x16c] sm:$0xf]  ;;  %v3228_v22 = vld [vmem:[%s4519_s5 + $0x174] sm:$0xf0] }
  0xfc   : > { %2137 = vmatmul.bf16.gmra.mxu1 %v3207_v25  ;;  %v3803_v25 = vor.u32 %v4140_v16, %v3802_v15 }
  0xfd   : > { %v4207_v30 = vpop.eup %4206  ;;  %v2428_v31 = vadd.f32 %v2427_v54, %v2099_v29  ;;  %v3791_v54 = vor.u32 %v4137_v46, %v3790_v45  ;;  %v3231_v29 = vor.u32 %v3995_v20, %v3228_v22  ;;  %v3250_v20 = vld [vmem:[%s4519_s5 + $0x198] sm:$0xf]  ;;  %v4002_v22 = vld [vmem:[%s4519_s5 + $0x1a0] sm:$0xf0] }
  0xfe   : > { %2860 = vst.msk [vmem:[%s4656_s9 + $0x48] sm:$0xff] %vm2850_vm1, %v4207_v30  ;;  %v4748_v32 = vpop.f32.mrf.mxu3 }
  0xff   : > { %4208 = vtanh.f32 %v2428_v31 }
 0x100   : > { %v2434_v36 = vpop.f32.mrf.mxu2  ;;  %v1771_v37 = vpop.f32.mrf.mxu0 }
 0x101   : > { %v1772_v39 = vadd.f32 %v4642_v62, %v1771_v37  ;;  %v2100_v40 = vpop.f32.mrf.mxu1 }
 0x103   : > { %v2101_v42 = vadd.f32 %v2100_v40, %v1772_v39  ;;  %v3258_v39 = vld [vmem:[%s4519_s5 + $0x1a0] sm:$0xf]  ;;  %v4003_v40 = vld [vmem:[%s4519_s5 + $0x1a8] sm:$0xf0] }
 0x104   : > { %v3259_v45 = vor.u32 %v4003_v40, %v3258_v39 }
 0x105   : > { %v4209_v47 = vpop.eup %4208  ;;  %v2430_v48 = vadd.f32 %v2429_v4, %v2101_v42  ;;  %3899 = vmatmul.msk.bf16.gmra.mxu2 %vm1542_vm0, %v3235_v41  ;;  %v3246_v4 = vld [vmem:[%s4519_s5 + $0x188] sm:$0xf] }
 0x106   : > { %2861 = vst.msk [vmem:[%s4656_s9 + $0x50] sm:$0xff] %vm2850_vm1, %v4209_v47  ;;  %v4762_v52 = vpop.f32.mrf.mxu3  ;;  %v3247_v11 = vor.u32 %v4000_v5, %v3246_v4  ;;  %v3238_v47 = vld [vmem:[%s4519_s5 + $0x180] sm:$0xf] }
 0x107   : > { %4210 = vtanh.f32 %v2430_v48  ;;  %v3999_v48 = vld [vmem:[%s4519_s5 + $0x188] sm:$0xf0] }
 0x108   : > { %v2437_v56 = vpop.f32.mrf.mxu2  ;;  %v1774_v57 = vpop.f32.mrf.mxu0 }
 0x109   : > { %v1775_v59 = vadd.f32 %v4642_v62, %v1774_v57  ;;  %v2103_v60 = vpop.f32.mrf.mxu1  ;;  %v3240_v57 = vld [vmem:[%s4519_s5 + $0x18c] sm:$0xf0] }
 0x10b   : > { %v2104_v61 = vadd.f32 %v2103_v60, %v1775_v59  ;;  %1813 = vmatmul.bf16.gmra.mxu0 %v3215_v53  ;;  %2053 = vmatmul.bf16.gmra.mxu3 %v3791_v54  ;;  %v3239_v59 = vor.u32 %v3999_v48, %v3238_v47  ;;  %v3627_v60 = vor.u32 %v4094_v49, %v3624_v50  ;;  %v3282_v47 = vld [vmem:[%s4519_s5 + $0x1d0] sm:$0xf]  ;;  %v4009_v48 = vld [vmem:[%s4519_s5 + $0x1d8] sm:$0xf0] }
 0x10c   : > { %2142 = vmatmul.bf16.gmra.mxu1 %v3219_v58 }
 0x10d   : > { %v4211_v63 = vpop.eup %4210  ;;  %v2433_v1 = vadd.f32 %v2432_v23, %v2104_v61 }
 0x10e   : > { %2862 = vst.msk [vmem:[%s4656_s9 + $0x58] sm:$0xff] %vm2850_vm1, %v4211_v63  ;;  %v4767_v2 = vpop.f32.mrf.mxu3 }
 0x10f   : > { %4212 = vtanh.f32 %v2433_v1 }
 0x110   : > { %v2439_v6 = vpop.f32.mrf.mxu2  ;;  %v1776_v7 = vpop.f32.mrf.mxu0 }
 0x111   : > { %v1777_v8 = vadd.f32 %v4642_v62, %v1776_v7  ;;  %v2105_v9 = vpop.f32.mrf.mxu1 }
 0x113   : > { %v2106_v12 = vadd.f32 %v2105_v9, %v1777_v8 }
 0x115   : > { %v4213_v17 = vpop.eup %4212  ;;  %v2435_v18 = vadd.f32 %v2434_v36, %v2106_v12  ;;  %3900 = vmatmul.msk.bf16.gmra.mxu2 %vm1542_vm0, %v3247_v11  ;;  %v3270_v11 = vld [vmem:[%s4519_s5 + $0x1b8] sm:$0xf]  ;;  %v4006_v12 = vld [vmem:[%s4519_s5 + $0x1c0] sm:$0xf0] }
 0x116   : > { %2863 = vst.msk [vmem:[%s4656_s9 + $0x60] sm:$0xff] %vm2850_vm1, %v4213_v17  ;;  %v4781_v23 = vpop.f32.mrf.mxu3  ;;  %v3271_v17 = vor.u32 %v4006_v12, %v3270_v11 }
 0x117   : > { %4214 = vtanh.f32 %v2435_v18 }
 0x118   : > { %v2442_v26 = vpop.f32.mrf.mxu2  ;;  %v1779_v28 = vpop.f32.mrf.mxu0 }
 0x119   : > { %v1780_v30 = vadd.f32 %v4642_v62, %v1779_v28  ;;  %v2108_v31 = vpop.f32.mrf.mxu1 }
 0x11b   : > { %v2109_v34 = vadd.f32 %v2108_v31, %v1780_v30  ;;  %1818 = vmatmul.bf16.gmra.mxu0 %v3227_v24  ;;  %2058 = vmatmul.bf16.gmra.mxu3 %v3803_v25  ;;  %v4097_v24 = vld [vmem:[%s4519_s5 + $0x49c] sm:$0xf]  ;;  %v3636_v25 = vld [vmem:[%s4519_s5 + $0x4a4] sm:$0xf0] }
 0x11c   : > { %2147 = vmatmul.bf16.gmra.mxu1 %v3231_v29  ;;  %v4001_v29 = vld [vmem:[%s4519_s5 + $0x19c] sm:$0xf]  ;;  %v3252_v30 = vld [vmem:[%s4519_s5 + $0x1a4] sm:$0xf0] }
 0x11d   : > { %v4215_v35 = vpop.eup %4214  ;;  %v2438_v36 = vadd.f32 %v2437_v56, %v2109_v34  ;;  %v3998_v56 = vld [vmem:[%s4519_s5 + $0x184] sm:$0xf]  ;;  %v3251_v34 = vor.u32 %v4002_v22, %v3250_v20  ;;  %v3255_v40 = vor.u32 %v4001_v29, %v3252_v30 }
 0x11e   : > { %2864 = vst.msk [vmem:[%s4656_s9 + $0x68] sm:$0xff] %vm2850_vm1, %v4215_v35  ;;  %v4786_v37 = vpop.f32.mrf.mxu3  ;;  %v3243_v1 = vor.u32 %v3998_v56, %v3240_v57  ;;  %v3639_v35 = vor.u32 %v4097_v24, %v3636_v25  ;;  %v3283_v56 = vor.u32 %v4009_v48, %v3282_v47  ;;  %v3294_v24 = vld [vmem:[%s4519_s5 + $0x1e8] sm:$0xf]  ;;  %v4012_v25 = vld [vmem:[%s4519_s5 + $0x1f0] sm:$0xf0] }
 0x11f   : > { %4216 = vtanh.f32 %v2438_v36 }
 0x120   : > { %v2444_v41 = vpop.f32.mrf.mxu2  ;;  %v1781_v42 = vpop.f32.mrf.mxu0 }
 0x121   : > { %v1782_v43 = vadd.f32 %v4642_v62, %v1781_v42  ;;  %v2110_v44 = vpop.f32.mrf.mxu1 }
 0x123   : > { %v2111_v46 = vadd.f32 %v2110_v44, %v1782_v43 }
 0x125   : > { %v4217_v53 = vpop.eup %4216  ;;  %v2440_v54 = vadd.f32 %v2439_v6, %v2111_v46  ;;  %3901 = vmatmul.msk.bf16.gmra.mxu2 %vm1542_vm0, %v3259_v45 }
 0x126   : > { %2865 = vst.msk [vmem:[%s4656_s9 + $0x70] sm:$0xff] %vm2850_vm1, %v4217_v53  ;;  %v4800_v58 = vpop.f32.mrf.mxu3 }
 0x127   : > { %4218 = vtanh.f32 %v2440_v54 }
 0x128   : > { %v2447_v61 = vpop.f32.mrf.mxu2  ;;  %v1784_v63 = vpop.f32.mrf.mxu0 }
 0x129   : > { %v1785_v4 = vadd.f32 %v4642_v62, %v1784_v63  ;;  %v2113_v5 = vpop.f32.mrf.mxu1  ;;  %v3648_v63 = vld [vmem:[%s4519_s5 + $0x4bc] sm:$0xf0] }
 0x12b   : > { %v2114_v6 = vadd.f32 %v2113_v5, %v1785_v4  ;;  %1823 = vmatmul.bf16.gmra.mxu0 %v3239_v59  ;;  %2312 = vmatmul.bf16.vlgmr.msrb.gmra.mxu3 %v3627_v60  ;;  %v3262_v59 = vld [vmem:[%s4519_s5 + $0x1b0] sm:$0xf]  ;;  %v4005_v60 = vld [vmem:[%s4519_s5 + $0x1b8] sm:$0xf0]  ;;  %v4004_v5 = vld [vmem:[%s4519_s5 + $0x1b4] sm:$0xf] }
 0x12c   : > { %2152 = vmatmul.bf16.gmra.mxu1 %v3243_v1 }
 0x12d   : > { %v4219_v7 = vpop.eup %4218  ;;  %v2443_v8 = vadd.f32 %v2442_v26, %v2114_v6  ;;  %v3264_v6 = vld [vmem:[%s4519_s5 + $0x1bc] sm:$0xf0] }
 0x12e   : > { %2866 = vst.msk [vmem:[%s4656_s9 + $0x78] sm:$0xff] %vm2850_vm1, %v4219_v7  ;;  %v4805_v9 = vpop.f32.mrf.mxu3 }
 0x12f   : > { %4220 = vtanh.f32 %v2443_v8  ;;  %v3263_v8 = vor.u32 %v4005_v60, %v3262_v59 }
 0x130   : > { %v2449_v13 = vpop.f32.mrf.mxu2  ;;  %v1786_v14 = vpop.f32.mrf.mxu0 }
 0x131   : > { %v1787_v15 = vadd.f32 %v4642_v62, %v1786_v14  ;;  %v2115_v16 = vpop.f32.mrf.mxu1 }
 0x133   : > { %v2116_v18 = vadd.f32 %v2115_v16, %v1787_v15  ;;  %v3267_v15 = vor.u32 %v4004_v5, %v3264_v6 }
 0x135   : > { %v4221_v26 = vpop.eup %4220  ;;  %v2445_v28 = vadd.f32 %v2444_v41, %v2116_v18  ;;  %3902 = vmatmul.msk.bf16.gmra.mxu2 %vm1542_vm0, %v3271_v17 }
 0x136   : > { %2867 = vst.msk [vmem:[%s4656_s9 + $0x80] sm:$0xff] %vm2850_vm1, %v4221_v26  ;;  %v4819_v31 = vpop.f32.mrf.mxu3 }
 0x137   : > { %4222 = vtanh.f32 %v2445_v28 }
 0x138   : > { %v2452_v36 = vpop.f32.mrf.mxu2  ;;  %v1789_v39 = vpop.f32.mrf.mxu0 }
 0x139   : > { %v1790_v42 = vadd.f32 %v4642_v62, %v1789_v39  ;;  %v2118_v41 = vpop.f32.mrf.mxu1  ;;  %v3274_v39 = vld [vmem:[%s4519_s5 + $0x1c8] sm:$0xf] }
 0x13b   : > { %v2119_v43 = vadd.f32 %v2118_v41, %v1790_v42  ;;  %1828 = vmatmul.bf16.gmra.mxu0 %v3251_v34  ;;  %2317 = vmatmul.bf16.gmra.mxu3 %v3639_v35  ;;  %v3295_v34 = vor.u32 %v4012_v25, %v3294_v24  ;;  %v3660_v42 = vld [vmem:[%s4519_s5 + $0x4d4] sm:$0xf0]  ;;  %v4010_v24 = vld [vmem:[%s4519_s5 + $0x1e4] sm:$0xf]  ;;  %v3288_v25 = vld [vmem:[%s4519_s5 + $0x1ec] sm:$0xf0] }
 0x13c   : > { %2157 = vmatmul.bf16.gmra.mxu1 %v3255_v40  ;;  %v4008_v40 = vld [vmem:[%s4519_s5 + $0x1d0] sm:$0xf0] }
 0x13d   : > { %v4223_v44 = vpop.eup %4222  ;;  %v2448_v45 = vadd.f32 %v2447_v61, %v2119_v43  ;;  %v4100_v61 = vld [vmem:[%s4519_s5 + $0x4b4] sm:$0xf]  ;;  %v3275_v48 = vor.u32 %v4008_v40, %v3274_v39  ;;  %v3291_v39 = vor.u32 %v4010_v24, %v3288_v25 }
 0x13e   : > { %2868 = vst.msk [vmem:[%s4656_s9 + $0x88] sm:$0xff] %vm2850_vm1, %v4223_v44  ;;  %v4824_v46 = vpop.f32.mrf.mxu3  ;;  %v3651_v11 = vor.u32 %v4100_v61, %v3648_v63  ;;  %v4007_v44 = vld [vmem:[%s4519_s5 + $0x1cc] sm:$0xf] }
 0x13f   : > { %4224 = vtanh.f32 %v2448_v45  ;;  %v3276_v45 = vld [vmem:[%s4519_s5 + $0x1d4] sm:$0xf0] }
 0x140   : > { %v2454_v49 = vpop.f32.mrf.mxu2  ;;  %v1791_v50 = vpop.f32.mrf.mxu0 }
 0x141   : > { %v1792_v53 = vadd.f32 %v4642_v62, %v1791_v50  ;;  %v2120_v54 = vpop.f32.mrf.mxu1 }
 0x143   : > { %v2121_v57 = vadd.f32 %v2120_v54, %v1792_v53 }
 0x145   : > { %v4225_v1 = vpop.eup %4224  ;;  %v2450_v4 = vadd.f32 %v2449_v13, %v2121_v57  ;;  %3903 = vmatmul.msk.bf16.gmra.mxu2 %vm1542_vm0, %v3283_v56  ;;  %v3279_v56 = vor.u32 %v4007_v44, %v3276_v45  ;;  %v3318_v44 = vld [vmem:[%s4519_s5 + $0x218] sm:$0xf]  ;;  %v4018_v45 = vld [vmem:[%s4519_s5 + $0x220] sm:$0xf0] }
 0x146   : > { %2869 = vst.msk [vmem:[%s4656_s9 + $0x90] sm:$0xff] %vm2850_vm1, %v4225_v1  ;;  %v4838_v7 = vpop.f32.mrf.mxu3  ;;  %v3306_v1 = vld [vmem:[%s4519_s5 + $0x200] sm:$0xf] }
 0x147   : > { %4226 = vtanh.f32 %v2450_v4  ;;  %v4015_v4 = vld [vmem:[%s4519_s5 + $0x208] sm:$0xf0] }
 0x148   : > { %v2457_v12 = vpop.f32.mrf.mxu2  ;;  %v1794_v14 = vpop.f32.mrf.mxu0 }
 0x149   : > { %v1795_v16 = vadd.f32 %v4642_v62, %v1794_v14  ;;  %v2123_v13 = vpop.f32.mrf.mxu1  ;;  %v3307_v14 = vor.u32 %v4015_v4, %v3306_v1 }
 0x14b   : > { %v2124_v17 = vadd.f32 %v2123_v13, %v1795_v16  ;;  %1833 = vmatmul.bf16.gmra.mxu0 %v3263_v8  ;;  %2322 = vmatmul.bf16.gmra.mxu3 %v3651_v11  ;;  %v3286_v16 = vld [vmem:[%s4519_s5 + $0x1e0] sm:$0xf]  ;;  %v4011_v13 = vld [vmem:[%s4519_s5 + $0x1e8] sm:$0xf0] }
 0x14c   : > { %2162 = vmatmul.bf16.gmra.mxu1 %v3267_v15 }
 0x14d   : > { %v4227_v18 = vpop.eup %4226  ;;  %v2453_v20 = vadd.f32 %v2452_v36, %v2124_v17  ;;  %v4103_v36 = vld [vmem:[%s4519_s5 + $0x4cc] sm:$0xf]  ;;  %v3672_v17 = vld [vmem:[%s4519_s5 + $0x4ec] sm:$0xf0] }
 0x14e   : > { %2870 = vst.msk [vmem:[%s4656_s9 + $0x98] sm:$0xff] %vm2850_vm1, %v4227_v18  ;;  %v4843_v22 = vpop.f32.mrf.mxu3  ;;  %v3663_v50 = vor.u32 %v4103_v36, %v3660_v42 }
 0x14f   : > { %4228 = vtanh.f32 %v2453_v20 }
 0x150   : > { %v2459_v26 = vpop.f32.mrf.mxu2  ;;  %v1796_v28 = vpop.f32.mrf.mxu0 }
 0x151   : > { %v1797_v29 = vadd.f32 %v4642_v62, %v1796_v28  ;;  %v2125_v30 = vpop.f32.mrf.mxu1 }
 0x153   : > { %v2126_v35 = vadd.f32 %v2125_v30, %v1797_v29  ;;  %v3287_v29 = vor.u32 %v4011_v13, %v3286_v16 }
 0x155   : > { %v4229_v41 = vpop.eup %4228  ;;  %v2455_v43 = vadd.f32 %v2454_v49, %v2126_v35  ;;  %3904 = vmatmul.msk.bf16.gmra.mxu2 %vm1542_vm0, %v3295_v34 }
 0x156   : > { %2871 = vst.msk [vmem:[%s4656_s9 + $0xa0] sm:$0xff] %vm2850_vm1, %v4229_v41  ;;  %v4857_v47 = vpop.f32.mrf.mxu3 }
 0x157   : > { %4230 = vtanh.f32 %v2455_v43 }
 0x158   : > { %v2462_v53 = vpop.f32.mrf.mxu2  ;;  %v1799_v54 = vpop.f32.mrf.mxu0 }
 0x159   : > { %v1800_v57 = vadd.f32 %v4642_v62, %v1799_v54  ;;  %v2128_v49 = vpop.f32.mrf.mxu1 }
 0x15b   : > { %v2129_v59 = vadd.f32 %v2128_v49, %v1800_v57  ;;  %1838 = vmatmul.bf16.gmra.mxu0 %v3275_v48  ;;  %2327 = vmatmul.bf16.gmra.mxu3 %v3663_v50  ;;  %v3319_v57 = vor.u32 %v4018_v45, %v3318_v44  ;;  %v4017_v44 = vld [vmem:[%s4519_s5 + $0x218] sm:$0xf0]  ;;  %v3696_v45 = vld [vmem:[%s4519_s5 + $0x51c] sm:$0xf0] }
 0x15c   : > { %2167 = vmatmul.bf16.gmra.mxu1 %v3279_v56 }
 0x15d   : > { %v4231_v60 = vpop.eup %4230  ;;  %v2458_v61 = vadd.f32 %v2457_v12, %v2129_v59  ;;  %v4106_v12 = vld [vmem:[%s4519_s5 + $0x4e4] sm:$0xf]  ;;  %v3298_v59 = vld [vmem:[%s4519_s5 + $0x1f8] sm:$0xf] }
 0x15e   : > { %2872 = vst.msk [vmem:[%s4656_s9 + $0xa8] sm:$0xff] %vm2850_vm1, %v4231_v60  ;;  %v4862_v63 = vpop.f32.mrf.mxu3  ;;  %v3675_v30 = vor.u32 %v4106_v12, %v3672_v17  ;;  %v4014_v60 = vld [vmem:[%s4519_s5 + $0x200] sm:$0xf0] }
 0x15f   : > { %4232 = vtanh.f32 %v2458_v61  ;;  %v3684_v61 = vld [vmem:[%s4519_s5 + $0x504] sm:$0xf0] }
 0x160   : > { %v2464_v5 = vpop.f32.mrf.mxu2  ;;  %v1801_v6 = vpop.f32.mrf.mxu0 }
 0x161   : > { %v1802_v8 = vadd.f32 %v4642_v62, %v1801_v6  ;;  %v2130_v11 = vpop.f32.mrf.mxu1  ;;  %v4013_v6 = vld [vmem:[%s4519_s5 + $0x1fc] sm:$0xf] }
 0x163   : > { %v2131_v15 = vadd.f32 %v2130_v11, %v1802_v8  ;;  %v3300_v8 = vld [vmem:[%s4519_s5 + $0x204] sm:$0xf0] }
 0x164   : > { %v3303_v12 = vor.u32 %v4013_v6, %v3300_v8 }
 0x165   : > { %v4233_v18 = vpop.eup %4232  ;;  %v2460_v20 = vadd.f32 %v2459_v26, %v2131_v15  ;;  %3905 = vmatmul.msk.bf16.gmra.mxu2 %vm1542_vm0, %v3307_v14  ;;  %v3299_v14 = vor.u32 %v4014_v60, %v3298_v59 }
 0x166   : > { %2873 = vst.msk [vmem:[%s4656_s9 + $0xb0] sm:$0xff] %vm2850_vm1, %v4233_v18  ;;  %v4876_v28 = vpop.f32.mrf.mxu3 }
 0x167   : > { %4234 = vtanh.f32 %v2460_v20 }
 0x168   : > { %v2467_v34 = vpop.f32.mrf.mxu2  ;;  %v1804_v35 = vpop.f32.mrf.mxu0 }
 0x169   : > { %v1805_v40 = vadd.f32 %v4642_v62, %v1804_v35  ;;  %v2133_v26 = vpop.f32.mrf.mxu1 }
 0x16b   : > { %v2134_v36 = vadd.f32 %v2133_v26, %v1805_v40  ;;  %1843 = vmatmul.bf16.gmra.mxu0 %v3287_v29  ;;  %2332 = vmatmul.bf16.gmra.mxu3 %v3675_v30  ;;  %v3330_v29 = vld [vmem:[%s4519_s5 + $0x230] sm:$0xf]  ;;  %v4021_v30 = vld [vmem:[%s4519_s5 + $0x238] sm:$0xf0] }
 0x16c   : > { %2172 = vmatmul.bf16.gmra.mxu1 %v3291_v39 }
 0x16d   : > { %v4235_v42 = vpop.eup %4234  ;;  %v2463_v41 = vadd.f32 %v2462_v53, %v2134_v36  ;;  %v4109_v53 = vld [vmem:[%s4519_s5 + $0x4fc] sm:$0xf]  ;;  %v3331_v36 = vor.u32 %v4021_v30, %v3330_v29  ;;  %v3322_v30 = vld [vmem:[%s4519_s5 + $0x228] sm:$0xf] }
 0x16e   : > { %2874 = vst.msk [vmem:[%s4656_s9 + $0xb8] sm:$0xff] %vm2850_vm1, %v4235_v42  ;;  %v4881_v43 = vpop.f32.mrf.mxu3  ;;  %v3687_v15 = vor.u32 %v4109_v53, %v3684_v61 }
 0x16f   : > { %4236 = vtanh.f32 %v2463_v41  ;;  %v3310_v41 = vld [vmem:[%s4519_s5 + $0x210] sm:$0xf] }
 0x170   : > { %v2469_v48 = vpop.f32.mrf.mxu2  ;;  %v1806_v50 = vpop.f32.mrf.mxu0 }
 0x171   : > { %v1807_v54 = vadd.f32 %v4642_v62, %v1806_v50  ;;  %v2135_v56 = vpop.f32.mrf.mxu1 }
 0x173   : > { %v2136_v49 = vadd.f32 %v2135_v56, %v1807_v54  ;;  %v4016_v56 = vld [vmem:[%s4519_s5 + $0x214] sm:$0xf] }
 0x175   : > { %v4237_v1 = vpop.eup %4236  ;;  %v2465_v4 = vadd.f32 %v2464_v5, %v2136_v49  ;;  %3906 = vmatmul.msk.bf16.gmra.mxu2 %vm1542_vm0, %v3319_v57  ;;  %v3312_v57 = vld [vmem:[%s4519_s5 + $0x21c] sm:$0xf0] }
 0x176   : > { %2875 = vst.msk [vmem:[%s4656_s9 + $0xc0] sm:$0xff] %vm2850_vm1, %v4237_v1  ;;  %v4895_v11 = vpop.f32.mrf.mxu3  ;;  %v3315_v61 = vor.u32 %v4016_v56, %v3312_v57 }
 0x177   : > { %4238 = vtanh.f32 %v2465_v4 }
 0x178   : > { %v2472_v16 = vpop.f32.mrf.mxu2  ;;  %v1809_v13 = vpop.f32.mrf.mxu0 }
 0x179   : > { %v1810_v17 = vadd.f32 %v4642_v62, %v1809_v13  ;;  %v2138_v5 = vpop.f32.mrf.mxu1  ;;  %v3342_v13 = vld [vmem:[%s4519_s5 + $0x248] sm:$0xf] }
 0x17b   : > { %v2139_v18 = vadd.f32 %v2138_v5, %v1810_v17  ;;  %1848 = vmatmul.bf16.gmra.mxu0 %v3299_v14  ;;  %2337 = vmatmul.bf16.gmra.mxu3 %v3687_v15 }
 0x17c   : > { %2177 = vmatmul.bf16.gmra.mxu1 %v3303_v12  ;;  %v4024_v12 = vld [vmem:[%s4519_s5 + $0x250] sm:$0xf0] }
 0x17d   : > { %v4239_v20 = vpop.eup %4238  ;;  %v2468_v24 = vadd.f32 %v2467_v34, %v2139_v18  ;;  %v4112_v34 = vld [vmem:[%s4519_s5 + $0x514] sm:$0xf] }
 0x17e   : > { %2876 = vst.msk [vmem:[%s4656_s9 + $0xc8] sm:$0xff] %vm2850_vm1, %v4239_v20  ;;  %v4900_v25 = vpop.f32.mrf.mxu3  ;;  %v3699_v59 = vor.u32 %v4112_v34, %v3696_v45 }
 0x17f   : > { %4240 = vtanh.f32 %v2468_v24  ;;  %v3343_v24 = vor.u32 %v4024_v12, %v3342_v13 }
 0x180   : > { %v2474_v35 = vpop.f32.mrf.mxu2  ;;  %v1811_v39 = vpop.f32.mrf.mxu0 }
 0x181   : > { %v1812_v40 = vadd.f32 %v4642_v62, %v1811_v39  ;;  %v2140_v26 = vpop.f32.mrf.mxu1  ;;  %v3311_v62 = vor.u32 %v4017_v44, %v3310_v41  ;;  %v4020_v39 = vld [vmem:[%s4519_s5 + $0x230] sm:$0xf0]  ;;  %v3324_v41 = vld [vmem:[%s4519_s5 + $0x234] sm:$0xf0] }
 0x182   : > { %v3323_v34 = vor.u32 %v4020_v39, %v3322_v30  ;;  %v4022_v39 = vld [vmem:[%s4519_s5 + $0x244] sm:$0xf] }
 0x183   : > { %v2141_v42 = vadd.f32 %v2140_v26, %v1812_v40  ;;  %v3708_v40 = vld [vmem:[%s4519_s5 + $0x534] sm:$0xf0] }
 0x185   : > { %v4241_v50 = vpop.eup %4240  ;;  %v2470_v54 = vadd.f32 %v2469_v48, %v2141_v42  ;;  %3907 = vmatmul.msk.bf16.gmra.mxu2 %vm1542_vm0, %v3331_v36  ;;  %v4919_v48 = vld [vmem:[%s5612_s2] ss:$0 sm:$0xff]  ;;  %v4019_v42 = vld [vmem:[%s4519_s5 + $0x22c] sm:$0xf] }
 0x186   : > { %2877 = vst.msk [vmem:[%s4656_s9 + $0xd0] sm:$0xff] %vm2850_vm1, %v4241_v50  ;;  %v4914_v49 = vpop.f32.mrf.mxu3  ;;  %v3327_v56 = vor.u32 %v4019_v42, %v3324_v41 }
 0x187   : > { %4242 = vtanh.f32 %v2470_v54 }
 0x188   : > { %v2477_v60 = vpop.f32.mrf.mxu2  ;;  %v1814_v53 = vpop.f32.mrf.mxu0 }
 0x189   : > { %v1815_v1 = vadd.f32 %v4919_v48, %v1814_v53  ;;  %v2143_v4 = vpop.f32.mrf.mxu1 }
 0x18b   : > { %v2144_v6 = vadd.f32 %v2143_v4, %v1815_v1  ;;  %1853 = vmatmul.bf16.gmra.mxu0 %v3311_v62  ;;  %2342 = vmatmul.bf16.gmra.mxu3 %v3699_v59  ;;  %v3354_v1 = vld [vmem:[%s4519_s5 + $0x260] sm:$0xf]  ;;  %v4027_v4 = vld [vmem:[%s4519_s5 + $0x268] sm:$0xf0] }
 0x18c   : > { %2182 = vmatmul.bf16.gmra.mxu1 %v3315_v61  ;;  %v3355_v12 = vor.u32 %v4027_v4, %v3354_v1 }
 0x18d   : > { %v4243_v8 = vpop.eup %4242  ;;  %v2473_v14 = vadd.f32 %v2472_v16, %v2144_v6  ;;  %v4115_v16 = vld [vmem:[%s4519_s5 + $0x52c] sm:$0xf] }
 0x18e   : > { %2878 = vst.msk [vmem:[%s4656_s9 + $0xd8] sm:$0xff] %vm2850_vm1, %v4243_v8  ;;  %v4924_v15 = vpop.f32.mrf.mxu3  ;;  %v3711_v45 = vor.u32 %v4115_v16, %v3708_v40  ;;  %v3336_v16 = vld [vmem:[%s4519_s5 + $0x24c] sm:$0xf0] }
 0x18f   : > { %4244 = vtanh.f32 %v2473_v14 }
 0x190   : > { %v2479_v17 = vpop.f32.mrf.mxu2  ;;  %v1816_v5 = vpop.f32.mrf.mxu0 }
 0x191   : > { %v1817_v18 = vadd.f32 %v4919_v48, %v1816_v5  ;;  %v2145_v20 = vpop.f32.mrf.mxu1 }
 0x193   : > { %v2146_v29 = vadd.f32 %v2145_v20, %v1817_v18  ;;  %v3334_v18 = vld [vmem:[%s4519_s5 + $0x240] sm:$0xf]  ;;  %v4023_v20 = vld [vmem:[%s4519_s5 + $0x248] sm:$0xf0] }
 0x195   : > { %v4245_v26 = vpop.eup %4244  ;;  %v2475_v36 = vadd.f32 %v2474_v35, %v2146_v29  ;;  %3908 = vmatmul.msk.bf16.gmra.mxu2 %vm1542_vm0, %v3343_v24  ;;  %v3720_v24 = vld [vmem:[%s4519_s5 + $0x54c] sm:$0xf0] }
 0x196   : > { %2879 = vst.msk [vmem:[%s4656_s9 + $0xe0] sm:$0xff] %vm2850_vm1, %v4245_v26  ;;  %v4938_v44 = vpop.f32.mrf.mxu3  ;;  %v3335_v26 = vor.u32 %v4023_v20, %v3334_v18  ;;  %v4121_v18 = vld [vmem:[%s4519_s5 + $0x55c] sm:$0xf]  ;;  %v3732_v20 = vld [vmem:[%s4519_s5 + $0x564] sm:$0xf0] }
 0x197   : > { %4246 = vtanh.f32 %v2475_v36 }
 0x198   : > { %v2482_v50 = vpop.f32.mrf.mxu2  ;;  %v1819_v54 = vpop.f32.mrf.mxu0 }
 0x199   : > { %v1820_v57 = vadd.f32 %v4919_v48, %v1819_v54  ;;  %v2148_v35 = vpop.f32.mrf.mxu1 }
 0x19b   : > { %v2149_v62 = vadd.f32 %v2148_v35, %v1820_v57  ;;  %1858 = vmatmul.bf16.gmra.mxu0 %v3323_v34  ;;  %2347 = vmatmul.bf16.gmra.mxu3 %v3711_v45  ;;  %v3339_v34 = vor.u32 %v4022_v39, %v3336_v16  ;;  %v1985_v57 = vadd.f32 %v4919_v48, %v4647_v10  ;;  %v3348_v39 = vld [vmem:[%s4519_s5 + $0x264] sm:$0xf0] }
 0x19c   : > { %2187 = vmatmul.bf16.gmra.mxu1 %v3327_v56 }
 0x19d   : > { %v4247_v59 = vpop.eup %4246  ;;  %v2478_v53 = vadd.f32 %v2477_v60, %v2149_v62  ;;  %v4118_v60 = vld [vmem:[%s4519_s5 + $0x544] sm:$0xf] }
 0x19e   : > { %2880 = vst.msk [vmem:[%s4656_s9 + $0xe8] sm:$0xff] %vm2850_vm1, %v4247_v59  ;;  %v4943_v61 = vpop.f32.mrf.mxu3  ;;  %v3723_v36 = vor.u32 %v4118_v60, %v3720_v24  ;;  %v3366_v59 = vld [vmem:[%s4519_s5 + $0x278] sm:$0xf]  ;;  %v1987_v24 = vadd.f32 %v4919_v48, %v4667_v27 }
 0x19f   : > { %4248 = vtanh.f32 %v2478_v53  ;;  %v4030_v53 = vld [vmem:[%s4519_s5 + $0x280] sm:$0xf0] }
 0x1a0   : > { %v2484_v6 = vpop.f32.mrf.mxu2  ;;  %v1821_v8 = vpop.f32.mrf.mxu0  ;;  %v3367_v10 = vor.u32 %v4030_v53, %v3366_v59  ;;  %v3378_v59 = vld [vmem:[%s4519_s5 + $0x290] sm:$0xf]  ;;  %v4033_v53 = vld [vmem:[%s4519_s5 + $0x298] sm:$0xf0] }
 0x1a1   : > { %v1822_v14 = vadd.f32 %v4919_v48, %v1821_v8  ;;  %v2150_v13 = vpop.f32.mrf.mxu1 }
 0x1a3   : > { %v2151_v5 = vadd.f32 %v2150_v13, %v1822_v14 }
 0x1a5   : > { %v4249_v29 = vpop.eup %4248  ;;  %v2480_v30 = vadd.f32 %v2479_v17, %v2151_v5  ;;  %3909 = vmatmul.msk.bf16.gmra.mxu2 %vm1542_vm0, %v3355_v12  ;;  %v4026_v5 = vld [vmem:[%s4519_s5 + $0x260] sm:$0xf0] }
 0x1a6   : > { %2881 = vst.msk [vmem:[%s4656_s9 + $0xf0] sm:$0xff] %vm2850_vm1, %v4249_v29  ;;  %v4957_v40 = vpop.f32.mrf.mxu3 }
 0x1a7   : > { %4250 = vtanh.f32 %v2480_v30  ;;  %v4025_v30 = vld [vmem:[%s4519_s5 + $0x25c] sm:$0xf] }
 0x1a8   : > { %v2487_v42 = vpop.f32.mrf.mxu2  ;;  %v1824_v41 = vpop.f32.mrf.mxu0 }
 0x1a9   : > { %v1825_v45 = vadd.f32 %v4919_v48, %v1824_v41  ;;  %v2153_v17 = vpop.f32.mrf.mxu1  ;;  %v3735_v41 = vor.u32 %v4121_v18, %v3732_v20  ;;  %v4124_v18 = vld [vmem:[%s4519_s5 + $0x574] sm:$0xf]  ;;  %v3744_v20 = vld [vmem:[%s4519_s5 + $0x57c] sm:$0xf0] }
 0x1ab   : > { %v2154_v54 = vadd.f32 %v2153_v17, %v1825_v45  ;;  %1863 = vmatmul.bf16.gmra.mxu0 %v3335_v26  ;;  %2352 = vmatmul.bf16.gmra.mxu3 %v3723_v36  ;;  %v3351_v17 = vor.u32 %v4025_v30, %v3348_v39  ;;  %v4028_v30 = vld [vmem:[%s4519_s5 + $0x274] sm:$0xf]  ;;  %v3360_v39 = vld [vmem:[%s4519_s5 + $0x27c] sm:$0xf0] }
 0x1ac   : > { %2192 = vmatmul.bf16.gmra.mxu1 %v3339_v34 }
 0x1ad   : > { %v4251_v56 = vpop.eup %4250  ;;  %v2483_v35 = vadd.f32 %v2482_v50, %v2154_v54  ;;  %v3346_v50 = vld [vmem:[%s4519_s5 + $0x258] sm:$0xf] }
 0x1ae   : > { %2882 = vst.msk [vmem:[%s4656_s9 + $0xf8] sm:$0xff] %vm2850_vm1, %v4251_v56  ;;  %v2313_v62 = vpop.f32.mrf.mxu3  ;;  %v3347_v36 = vor.u32 %v4026_v5, %v3346_v50  ;;  %v4029_v5 = vld [vmem:[%s4519_s5 + $0x278] sm:$0xf0] }
 0x1af   : > { %4252 = vtanh.f32 %v2483_v35  ;;  %v4966_v1 = vadd.f32 %v2313_v62, %v1985_v57  ;;  %v1990_v57 = vadd.f32 %v4919_v48, %v4672_v38  ;;  %v3379_v38 = vor.u32 %v4033_v53, %v3378_v59  ;;  %v3390_v59 = vld [vmem:[%s4519_s5 + $0x2a8] sm:$0xf]  ;;  %v4036_v53 = vld [vmem:[%s4519_s5 + $0x2b0] sm:$0xf0] }
 0x1b0   : > { %v2489_v4 = vpop.f32.mrf.mxu2  ;;  %v1826_v8 = vpop.f32.mrf.mxu0 }
 0x1b1   : > { %v1827_v14 = vadd.f32 %v4919_v48, %v1826_v8  ;;  %v2155_v13 = vpop.f32.mrf.mxu1 }
 0x1b3   : > { %v2156_v12 = vadd.f32 %v2155_v13, %v1827_v14 }
 0x1b5   : > { %v4253_v60 = vpop.eup %4252  ;;  %v2485_v29 = vadd.f32 %v2484_v6, %v2156_v12  ;;  %3910 = vmatmul.msk.bf16.gmra.mxu2 %vm1542_vm0, %v3367_v10 }
 0x1b6   : > { %2883 = vst.msk [vmem:[%s4656_s9 + $0x100] sm:$0xff] %vm2850_vm1, %v4253_v60  ;;  %v2315_v16 = vpop.f32.mrf.mxu3 }
 0x1b7   : > { %4254 = vtanh.f32 %v2485_v29  ;;  %v4980_v26 = vadd.f32 %v2315_v16, %v1987_v24  ;;  %v1992_v24 = vadd.f32 %v4919_v48, %v4686_v55 }
 0x1b8   : > { %v2492_v34 = vpop.f32.mrf.mxu2  ;;  %v1829_v45 = vpop.f32.mrf.mxu0 }
 0x1b9   : > { %v1830_v27 = vadd.f32 %v4919_v48, %v1829_v45  ;;  %v2158_v6 = vpop.f32.mrf.mxu1  ;;  %v3747_v45 = vor.u32 %v4124_v18, %v3744_v20  ;;  %v4127_v18 = vld [vmem:[%s4519_s5 + $0x58c] sm:$0xf]  ;;  %v3756_v20 = vld [vmem:[%s4519_s5 + $0x594] sm:$0xf0] }
 0x1bb   : > { %v2159_v54 = vadd.f32 %v2158_v6, %v1830_v27  ;;  %1868 = vmatmul.bf16.gmra.mxu0 %v3347_v36  ;;  %2357 = vmatmul.bf16.gmra.mxu3 %v3735_v41  ;;  %v3363_v6 = vor.u32 %v4028_v30, %v3360_v39  ;;  %v4031_v30 = vld [vmem:[%s4519_s5 + $0x28c] sm:$0xf]  ;;  %v3372_v39 = vld [vmem:[%s4519_s5 + $0x294] sm:$0xf0] }
 0x1bc   : > { %2197 = vmatmul.bf16.gmra.mxu1 %v3351_v17 }
 0x1bd   : > { %v4255_v56 = vpop.eup %4254  ;;  %v2488_v35 = vadd.f32 %v2487_v42, %v2159_v54  ;;  %v3358_v42 = vld [vmem:[%s4519_s5 + $0x270] sm:$0xf] }
 0x1be   : > { %2884 = vst.msk [vmem:[%s4656_s9 + $0x108] sm:$0xff] %vm2850_vm1, %v4255_v56  ;;  %v2318_v62 = vpop.f32.mrf.mxu3  ;;  %v3359_v41 = vor.u32 %v4029_v5, %v3358_v42  ;;  %v4032_v5 = vld [vmem:[%s4519_s5 + $0x290] sm:$0xf0] }
 0x1bf   : > { %4256 = vtanh.f32 %v2488_v35  ;;  %v4989_v8 = vadd.f32 %v2318_v62, %v1990_v57  ;;  %v1995_v57 = vadd.f32 %v4919_v48, %v4691_v3  ;;  %v3391_v3 = vor.u32 %v4036_v53, %v3390_v59  ;;  %v3402_v59 = vld [vmem:[%s4519_s5 + $0x2c0] sm:$0xf]  ;;  %v4039_v53 = vld [vmem:[%s4519_s5 + $0x2c8] sm:$0xf0] }
 0x1c0   : > { %v2494_v14 = vpop.f32.mrf.mxu2  ;;  %v1831_v13 = vpop.f32.mrf.mxu0 }
 0x1c1   : > { %v1832_v10 = vadd.f32 %v4919_v48, %v1831_v13  ;;  %v2160_v12 = vpop.f32.mrf.mxu1 }
 0x1c3   : > { %v2161_v50 = vadd.f32 %v2160_v12, %v1832_v10 }
 0x1c5   : > { %v4257_v60 = vpop.eup %4256  ;;  %v2490_v29 = vadd.f32 %v2489_v4, %v2161_v50  ;;  %3911 = vmatmul.msk.bf16.gmra.mxu2 %vm1542_vm0, %v3379_v38 }
 0x1c6   : > { %2885 = vst.msk [vmem:[%s4656_s9 + $0x110] sm:$0xff] %vm2850_vm1, %v4257_v60  ;;  %v2320_v16 = vpop.f32.mrf.mxu3 }
 0x1c7   : > { %4258 = vtanh.f32 %v2490_v29  ;;  %v5003_v36 = vadd.f32 %v2320_v16, %v1992_v24  ;;  %v1997_v24 = vadd.f32 %v4919_v48, %v4705_v21 }
 0x1c8   : > { %v2497_v17 = vpop.f32.mrf.mxu2  ;;  %v1834_v27 = vpop.f32.mrf.mxu0 }
 0x1c9   : > { %v1835_v55 = vadd.f32 %v4919_v48, %v1834_v27  ;;  %v2163_v4 = vpop.f32.mrf.mxu1  ;;  %v3759_v27 = vor.u32 %v4127_v18, %v3756_v20  ;;  %v4130_v18 = vld [vmem:[%s4519_s5 + $0x5a4] sm:$0xf]  ;;  %v3768_v20 = vld [vmem:[%s4519_s5 + $0x5ac] sm:$0xf0] }
 0x1cb   : > { %v2164_v54 = vadd.f32 %v2163_v4, %v1835_v55  ;;  %1873 = vmatmul.bf16.gmra.mxu0 %v3359_v41  ;;  %2362 = vmatmul.bf16.gmra.mxu3 %v3747_v45  ;;  %v3375_v4 = vor.u32 %v4031_v30, %v3372_v39  ;;  %v4034_v30 = vld [vmem:[%s4519_s5 + $0x2a4] sm:$0xf]  ;;  %v3384_v39 = vld [vmem:[%s4519_s5 + $0x2ac] sm:$0xf0] }
 0x1cc   : > { %2202 = vmatmul.bf16.gmra.mxu1 %v3363_v6 }
 0x1cd   : > { %v4259_v56 = vpop.eup %4258  ;;  %v2493_v35 = vadd.f32 %v2492_v34, %v2164_v54  ;;  %v3370_v34 = vld [vmem:[%s4519_s5 + $0x288] sm:$0xf] }
 0x1ce   : > { %2886 = vst.msk [vmem:[%s4656_s9 + $0x118] sm:$0xff] %vm2850_vm1, %v4259_v56  ;;  %v2323_v62 = vpop.f32.mrf.mxu3  ;;  %v3371_v45 = vor.u32 %v4032_v5, %v3370_v34  ;;  %v4035_v5 = vld [vmem:[%s4519_s5 + $0x2a8] sm:$0xf0] }
 0x1cf   : > { %4260 = vtanh.f32 %v2493_v35  ;;  %v5012_v13 = vadd.f32 %v2323_v62, %v1995_v57  ;;  %v2000_v57 = vadd.f32 %v4919_v48, %v4710_v33  ;;  %v3403_v33 = vor.u32 %v4039_v53, %v3402_v59  ;;  %v3414_v59 = vld [vmem:[%s4519_s5 + $0x2d8] sm:$0xf]  ;;  %v4042_v53 = vld [vmem:[%s4519_s5 + $0x2e0] sm:$0xf0] }
 0x1d0   : > { %v2499_v10 = vpop.f32.mrf.mxu2  ;;  %v1836_v12 = vpop.f32.mrf.mxu0 }
 0x1d1   : > { %v1837_v38 = vadd.f32 %v4919_v48, %v1836_v12  ;;  %v2165_v50 = vpop.f32.mrf.mxu1 }
 0x1d3   : > { %v2166_v42 = vadd.f32 %v2165_v50, %v1837_v38 }
 0x1d5   : > { %v4261_v60 = vpop.eup %4260  ;;  %v2495_v29 = vadd.f32 %v2494_v14, %v2166_v42  ;;  %3912 = vmatmul.msk.bf16.gmra.mxu2 %vm1542_vm0, %v3391_v3 }
 0x1d6   : > { %2887 = vst.msk [vmem:[%s4656_s9 + $0x120] sm:$0xff] %vm2850_vm1, %v4261_v60  ;;  %v2325_v16 = vpop.f32.mrf.mxu3 }
 0x1d7   : > { %4262 = vtanh.f32 %v2495_v29  ;;  %v5026_v41 = vadd.f32 %v2325_v16, %v1997_v24  ;;  %v2002_v24 = vadd.f32 %v4919_v48, %v4724_v51 }
 0x1d8   : > { %v2502_v6 = vpop.f32.mrf.mxu2  ;;  %v1839_v55 = vpop.f32.mrf.mxu0 }
 0x1d9   : > { %v1840_v21 = vadd.f32 %v4919_v48, %v1839_v55  ;;  %v2168_v14 = vpop.f32.mrf.mxu1  ;;  %v3771_v55 = vor.u32 %v4130_v18, %v3768_v20  ;;  %v4133_v18 = vld [vmem:[%s4519_s5 + $0x5bc] sm:$0xf]  ;;  %v3780_v20 = vld [vmem:[%s4519_s5 + $0x5c4] sm:$0xf0] }
 0x1db   : > { %v2169_v54 = vadd.f32 %v2168_v14, %v1840_v21  ;;  %1878 = vmatmul.bf16.gmra.mxu0 %v3371_v45  ;;  %2367 = vmatmul.bf16.gmra.mxu3 %v3759_v27  ;;  %v3387_v14 = vor.u32 %v4034_v30, %v3384_v39  ;;  %v4037_v30 = vld [vmem:[%s4519_s5 + $0x2bc] sm:$0xf]  ;;  %v3396_v39 = vld [vmem:[%s4519_s5 + $0x2c4] sm:$0xf0] }
 0x1dc   : > { %2207 = vmatmul.bf16.gmra.mxu1 %v3375_v4 }
 0x1dd   : > { %v4263_v56 = vpop.eup %4262  ;;  %v2498_v35 = vadd.f32 %v2497_v17, %v2169_v54  ;;  %v3382_v17 = vld [vmem:[%s4519_s5 + $0x2a0] sm:$0xf] }
 0x1de   : > { %2888 = vst.msk [vmem:[%s4656_s9 + $0x128] sm:$0xff] %vm2850_vm1, %v4263_v56  ;;  %v2328_v62 = vpop.f32.mrf.mxu3  ;;  %v3383_v27 = vor.u32 %v4035_v5, %v3382_v17  ;;  %v4038_v5 = vld [vmem:[%s4519_s5 + $0x2c0] sm:$0xf0] }
 0x1df   : > { %4264 = vtanh.f32 %v2498_v35  ;;  %v5035_v12 = vadd.f32 %v2328_v62, %v2000_v57  ;;  %v2005_v57 = vadd.f32 %v4919_v48, %v4729_v0  ;;  %v3415_v0 = vor.u32 %v4042_v53, %v3414_v59  ;;  %v3426_v59 = vld [vmem:[%s4519_s5 + $0x2f0] sm:$0xf]  ;;  %v4045_v53 = vld [vmem:[%s4519_s5 + $0x2f8] sm:$0xf0] }
 0x1e0   : > { %v2504_v38 = vpop.f32.mrf.mxu2  ;;  %v1841_v50 = vpop.f32.mrf.mxu0 }
 0x1e1   : > { %v1842_v3 = vadd.f32 %v4919_v48, %v1841_v50  ;;  %v2170_v42 = vpop.f32.mrf.mxu1 }
 0x1e3   : > { %v2171_v34 = vadd.f32 %v2170_v42, %v1842_v3 }
 0x1e5   : > { %v4265_v60 = vpop.eup %4264  ;;  %v2500_v29 = vadd.f32 %v2499_v10, %v2171_v34  ;;  %3913 = vmatmul.msk.bf16.gmra.mxu2 %vm1542_vm0, %v3403_v33 }
 0x1e6   : > { %2889 = vst.msk [vmem:[%s4656_s9 + $0x130] sm:$0xff] %vm2850_vm1, %v4265_v60  ;;  %v2330_v16 = vpop.f32.mrf.mxu3 }
 0x1e7   : > { %4266 = vtanh.f32 %v2500_v29  ;;  %v5049_v45 = vadd.f32 %v2330_v16, %v2002_v24  ;;  %v2007_v24 = vadd.f32 %v4919_v48, %v4743_v19 }
 0x1e8   : > { %v2507_v4 = vpop.f32.mrf.mxu2  ;;  %v1844_v21 = vpop.f32.mrf.mxu0 }
 0x1e9   : > { %v1845_v51 = vadd.f32 %v4919_v48, %v1844_v21  ;;  %v2173_v10 = vpop.f32.mrf.mxu1  ;;  %v3783_v21 = vor.u32 %v4133_v18, %v3780_v20  ;;  %v4136_v18 = vld [vmem:[%s4519_s5 + $0x5d4] sm:$0xf]  ;;  %v3792_v20 = vld [vmem:[%s4519_s5 + $0x5dc] sm:$0xf0] }
 0x1eb   : > { %v2174_v54 = vadd.f32 %v2173_v10, %v1845_v51  ;;  %1883 = vmatmul.bf16.gmra.mxu0 %v3383_v27  ;;  %2372 = vmatmul.bf16.gmra.mxu3 %v3771_v55  ;;  %v3399_v10 = vor.u32 %v4037_v30, %v3396_v39  ;;  %v4040_v30 = vld [vmem:[%s4519_s5 + $0x2d4] sm:$0xf]  ;;  %v3408_v39 = vld [vmem:[%s4519_s5 + $0x2dc] sm:$0xf0] }
 0x1ec   : > { %2212 = vmatmul.bf16.gmra.mxu1 %v3387_v14 }
 0x1ed   : > { %v4267_v56 = vpop.eup %4266  ;;  %v2503_v35 = vadd.f32 %v2502_v6, %v2174_v54  ;;  %v3394_v6 = vld [vmem:[%s4519_s5 + $0x2b8] sm:$0xf] }
 0x1ee   : > { %2890 = vst.msk [vmem:[%s4656_s9 + $0x138] sm:$0xff] %vm2850_vm1, %v4267_v56  ;;  %v2333_v62 = vpop.f32.mrf.mxu3  ;;  %v3395_v55 = vor.u32 %v4038_v5, %v3394_v6  ;;  %v4041_v5 = vld [vmem:[%s4519_s5 + $0x2d8] sm:$0xf0] }
 0x1ef   : > { %4268 = vtanh.f32 %v2503_v35  ;;  %v5058_v50 = vadd.f32 %v2333_v62, %v2005_v57  ;;  %v2010_v57 = vadd.f32 %v4919_v48, %v4748_v32  ;;  %v3427_v32 = vor.u32 %v4045_v53, %v3426_v59  ;;  %v3438_v59 = vld [vmem:[%s4519_s5 + $0x308] sm:$0xf]  ;;  %v4048_v53 = vld [vmem:[%s4519_s5 + $0x310] sm:$0xf0] }
 0x1f0   : > { %v2509_v3 = vpop.f32.mrf.mxu2  ;;  %v1846_v42 = vpop.f32.mrf.mxu0 }
 0x1f1   : > { %v1847_v33 = vadd.f32 %v4919_v48, %v1846_v42  ;;  %v2175_v34 = vpop.f32.mrf.mxu1 }
 0x1f3   : > { %v2176_v17 = vadd.f32 %v2175_v34, %v1847_v33 }
 0x1f5   : > { %v4269_v60 = vpop.eup %4268  ;;  %v2505_v29 = vadd.f32 %v2504_v38, %v2176_v17  ;;  %3914 = vmatmul.msk.bf16.gmra.mxu2 %vm1542_vm0, %v3415_v0 }
 0x1f6   : > { %2891 = vst.msk [vmem:[%s4656_s9 + $0x140] sm:$0xff] %vm2850_vm1, %v4269_v60  ;;  %v2335_v16 = vpop.f32.mrf.mxu3 }
 0x1f7   : > { %4270 = vtanh.f32 %v2505_v29  ;;  %v5072_v27 = vadd.f32 %v2335_v16, %v2007_v24  ;;  %v2012_v24 = vadd.f32 %v4919_v48, %v4762_v52 }
 0x1f8   : > { %v2512_v14 = vpop.f32.mrf.mxu2  ;;  %v1849_v51 = vpop.f32.mrf.mxu0 }
 0x1f9   : > { %v1850_v19 = vadd.f32 %v4919_v48, %v1849_v51  ;;  %v2178_v38 = vpop.f32.mrf.mxu1  ;;  %v3795_v51 = vor.u32 %v4136_v18, %v3792_v20  ;;  %v4139_v18 = vld [vmem:[%s4519_s5 + $0x5ec] sm:$0xf]  ;;  %v3804_v20 = vld [vmem:[%s4519_s5 + $0x5f4] sm:$0xf0] }
 0x1fb   : > { %v2179_v54 = vadd.f32 %v2178_v38, %v1850_v19  ;;  %1888 = vmatmul.bf16.gmra.mxu0 %v3395_v55  ;;  %2377 = vmatmul.bf16.gmra.mxu3 %v3783_v21  ;;  %v3411_v38 = vor.u32 %v4040_v30, %v3408_v39  ;;  %v4043_v30 = vld [vmem:[%s4519_s5 + $0x2ec] sm:$0xf]  ;;  %v3420_v39 = vld [vmem:[%s4519_s5 + $0x2f4] sm:$0xf0] }
 0x1fc   : > { %2217 = vmatmul.bf16.gmra.mxu1 %v3399_v10 }
 0x1fd   : > { %v4271_v56 = vpop.eup %4270  ;;  %v2508_v35 = vadd.f32 %v2507_v4, %v2179_v54  ;;  %v3406_v4 = vld [vmem:[%s4519_s5 + $0x2d0] sm:$0xf] }
 0x1fe   : > { %2892 = vst.msk [vmem:[%s4656_s9 + $0x148] sm:$0xff] %vm2850_vm1, %v4271_v56  ;;  %v2338_v62 = vpop.f32.mrf.mxu3  ;;  %v3407_v21 = vor.u32 %v4041_v5, %v3406_v4  ;;  %v4044_v5 = vld [vmem:[%s4519_s5 + $0x2f0] sm:$0xf0] }
 0x1ff   : > { %4272 = vtanh.f32 %v2508_v35  ;;  %v5081_v42 = vadd.f32 %v2338_v62, %v2010_v57  ;;  %v2015_v57 = vadd.f32 %v4919_v48, %v4767_v2  ;;  %v3439_v2 = vor.u32 %v4048_v53, %v3438_v59  ;;  %v3450_v59 = vld [vmem:[%s4519_s5 + $0x320] sm:$0xf]  ;;  %v4051_v53 = vld [vmem:[%s4519_s5 + $0x328] sm:$0xf0] }
 0x200   : > { %v2514_v33 = vpop.f32.mrf.mxu2  ;;  %v1851_v34 = vpop.f32.mrf.mxu0 }
 0x201   : > { %v1852_v0 = vadd.f32 %v4919_v48, %v1851_v34  ;;  %v2180_v17 = vpop.f32.mrf.mxu1 }
 0x203   : > { %v2181_v6 = vadd.f32 %v2180_v17, %v1852_v0 }
 0x205   : > { %v4273_v60 = vpop.eup %4272  ;;  %v2510_v29 = vadd.f32 %v2509_v3, %v2181_v6  ;;  %3915 = vmatmul.msk.bf16.gmra.mxu2 %vm1542_vm0, %v3427_v32 }
 0x206   : > { %2893 = vst.msk [vmem:[%s4656_s9 + $0x150] sm:$0xff] %vm2850_vm1, %v4273_v60  ;;  %v2340_v16 = vpop.f32.mrf.mxu3 }
 0x207   : > { %4274 = vtanh.f32 %v2510_v29  ;;  %v5095_v55 = vadd.f32 %v2340_v16, %v2012_v24  ;;  %v2017_v24 = vadd.f32 %v4919_v48, %v4781_v23 }
 0x208   : > { %v2517_v10 = vpop.f32.mrf.mxu2  ;;  %v1854_v19 = vpop.f32.mrf.mxu0 }
 0x209   : > { %v1855_v52 = vadd.f32 %v4919_v48, %v1854_v19  ;;  %v2183_v3 = vpop.f32.mrf.mxu1  ;;  %v3807_v19 = vor.u32 %v4139_v18, %v3804_v20  ;;  %v3654_v18 = vld [vmem:[%s4519_s5 + $0x4b8] sm:$0xf]  ;;  %v4102_v20 = vld [vmem:[%s4519_s5 + $0x4c0] sm:$0xf0] }
 0x20b   : > { %v2184_v54 = vadd.f32 %v2183_v3, %v1855_v52  ;;  %1893 = vmatmul.bf16.gmra.mxu0 %v3407_v21  ;;  %2382 = vmatmul.bf16.gmra.mxu3 %v3795_v51  ;;  %v3423_v3 = vor.u32 %v4043_v30, %v3420_v39  ;;  %v4046_v30 = vld [vmem:[%s4519_s5 + $0x304] sm:$0xf]  ;;  %v3432_v39 = vld [vmem:[%s4519_s5 + $0x30c] sm:$0xf0] }
 0x20c   : > { %2222 = vmatmul.bf16.gmra.mxu1 %v3411_v38 }
 0x20d   : > { %v4275_v56 = vpop.eup %4274  ;;  %v2513_v35 = vadd.f32 %v2512_v14, %v2184_v54  ;;  %v3418_v14 = vld [vmem:[%s4519_s5 + $0x2e8] sm:$0xf] }
 0x20e   : > { %2894 = vst.msk [vmem:[%s4656_s9 + $0x158] sm:$0xff] %vm2850_vm1, %v4275_v56  ;;  %v2343_v62 = vpop.f32.mrf.mxu3  ;;  %v3419_v51 = vor.u32 %v4044_v5, %v3418_v14  ;;  %v4047_v5 = vld [vmem:[%s4519_s5 + $0x308] sm:$0xf0] }
 0x20f   : > { %4276 = vtanh.f32 %v2513_v35  ;;  %v5104_v34 = vadd.f32 %v2343_v62, %v2015_v57  ;;  %v2020_v57 = vadd.f32 %v4919_v48, %v4786_v37  ;;  %v3451_v37 = vor.u32 %v4051_v53, %v3450_v59  ;;  %v3462_v59 = vld [vmem:[%s4519_s5 + $0x338] sm:$0xf]  ;;  %v4054_v53 = vld [vmem:[%s4519_s5 + $0x340] sm:$0xf0] }
 0x210   : > { %v2519_v0 = vpop.f32.mrf.mxu2  ;;  %v1856_v17 = vpop.f32.mrf.mxu0 }
 0x211   : > { %v1857_v32 = vadd.f32 %v4919_v48, %v1856_v17  ;;  %v2185_v6 = vpop.f32.mrf.mxu1 }
 0x213   : > { %v2186_v4 = vadd.f32 %v2185_v6, %v1857_v32 }
 0x215   : > { %v4277_v60 = vpop.eup %4276  ;;  %v2515_v29 = vadd.f32 %v2514_v33, %v2186_v4  ;;  %3916 = vmatmul.msk.bf16.gmra.mxu2 %vm1542_vm0, %v3439_v2 }
 0x216   : > { %2895 = vst.msk [vmem:[%s4656_s9 + $0x160] sm:$0xff] %vm2850_vm1, %v4277_v60  ;;  %v2345_v16 = vpop.f32.mrf.mxu3 }
 0x217   : > { %4278 = vtanh.f32 %v2515_v29  ;;  %v5118_v21 = vadd.f32 %v2345_v16, %v2017_v24  ;;  %v2022_v24 = vadd.f32 %v4919_v48, %v4800_v58 }
 0x218   : > { %v2522_v38 = vpop.f32.mrf.mxu2  ;;  %v1859_v52 = vpop.f32.mrf.mxu0 }
 0x219   : > { %v1860_v23 = vadd.f32 %v4919_v48, %v1859_v52  ;;  %v2188_v33 = vpop.f32.mrf.mxu1  ;;  %v3655_v52 = vor.u32 %v4102_v20, %v3654_v18  ;;  %v3666_v18 = vld [vmem:[%s4519_s5 + $0x4d0] sm:$0xf]  ;;  %v4105_v20 = vld [vmem:[%s4519_s5 + $0x4d8] sm:$0xf0] }
 0x21b   : > { %v2189_v54 = vadd.f32 %v2188_v33, %v1860_v23  ;;  %1898 = vmatmul.bf16.gmra.mxu0 %v3419_v51  ;;  %2387 = vmatmul.bf16.gmra.mxu3 %v3807_v19  ;;  %v3435_v33 = vor.u32 %v4046_v30, %v3432_v39  ;;  %v4049_v30 = vld [vmem:[%s4519_s5 + $0x31c] sm:$0xf]  ;;  %v3444_v39 = vld [vmem:[%s4519_s5 + $0x324] sm:$0xf0] }
 0x21c   : > { %2227 = vmatmul.bf16.gmra.mxu1 %v3423_v3 }
 0x21d   : > { %v4279_v56 = vpop.eup %4278  ;;  %v2518_v35 = vadd.f32 %v2517_v10, %v2189_v54  ;;  %v3430_v10 = vld [vmem:[%s4519_s5 + $0x300] sm:$0xf] }
 0x21e   : > { %2896 = vst.msk [vmem:[%s4656_s9 + $0x168] sm:$0xff] %vm2850_vm1, %v4279_v56  ;;  %v2348_v62 = vpop.f32.mrf.mxu3  ;;  %v3431_v19 = vor.u32 %v4047_v5, %v3430_v10  ;;  %v4050_v5 = vld [vmem:[%s4519_s5 + $0x320] sm:$0xf0] }
 0x21f   : > { %4280 = vtanh.f32 %v2518_v35  ;;  %v5127_v17 = vadd.f32 %v2348_v62, %v2020_v57  ;;  %v2025_v57 = vadd.f32 %v4919_v48, %v4805_v9  ;;  %v3463_v9 = vor.u32 %v4054_v53, %v3462_v59  ;;  %v3474_v59 = vld [vmem:[%s4519_s5 + $0x350] sm:$0xf]  ;;  %v4057_v53 = vld [vmem:[%s4519_s5 + $0x358] sm:$0xf0] }
 0x220   : > { %v2524_v32 = vpop.f32.mrf.mxu2  ;;  %v1861_v6 = vpop.f32.mrf.mxu0 }
 0x221   : > { %v1862_v2 = vadd.f32 %v4919_v48, %v1861_v6  ;;  %v2190_v4 = vpop.f32.mrf.mxu1 }
 0x223   : > { %v2191_v14 = vadd.f32 %v2190_v4, %v1862_v2 }
 0x225   : > { %v4281_v60 = vpop.eup %4280  ;;  %v2520_v29 = vadd.f32 %v2519_v0, %v2191_v14  ;;  %3917 = vmatmul.msk.bf16.gmra.mxu2 %vm1542_vm0, %v3451_v37 }
 0x226   : > { %2897 = vst.msk [vmem:[%s4656_s9 + $0x170] sm:$0xff] %vm2850_vm1, %v4281_v60  ;;  %v2350_v16 = vpop.f32.mrf.mxu3 }
 0x227   : > { %4282 = vtanh.f32 %v2520_v29  ;;  %v5141_v51 = vadd.f32 %v2350_v16, %v2022_v24  ;;  %v2027_v24 = vadd.f32 %v4919_v48, %v4819_v31 }
 0x228   : > { %v2527_v3 = vpop.f32.mrf.mxu2  ;;  %v1864_v23 = vpop.f32.mrf.mxu0 }
 0x229   : > { %v1865_v58 = vadd.f32 %v4919_v48, %v1864_v23  ;;  %v2193_v0 = vpop.f32.mrf.mxu1  ;;  %v3667_v23 = vor.u32 %v4105_v20, %v3666_v18  ;;  %v3678_v18 = vld [vmem:[%s4519_s5 + $0x4e8] sm:$0xf]  ;;  %v4108_v20 = vld [vmem:[%s4519_s5 + $0x4f0] sm:$0xf0] }
 0x22b   : > { %v2194_v54 = vadd.f32 %v2193_v0, %v1865_v58  ;;  %1903 = vmatmul.bf16.gmra.mxu0 %v3431_v19  ;;  %3934 = vmatmul.msk.bf16.vlgmr.msra.gmra.mxu3 %vm1542_vm0, %v3655_v52  ;;  %v3447_v0 = vor.u32 %v4049_v30, %v3444_v39  ;;  %v4052_v30 = vld [vmem:[%s4519_s5 + $0x334] sm:$0xf]  ;;  %v3456_v39 = vld [vmem:[%s4519_s5 + $0x33c] sm:$0xf0] }
 0x22c   : > { %2232 = vmatmul.bf16.gmra.mxu1 %v3435_v33 }
 0x22d   : > { %v4283_v56 = vpop.eup %4282  ;;  %v2523_v35 = vadd.f32 %v2522_v38, %v2194_v54  ;;  %v3442_v38 = vld [vmem:[%s4519_s5 + $0x318] sm:$0xf] }
 0x22e   : > { %2898 = vst.msk [vmem:[%s4656_s9 + $0x178] sm:$0xff] %vm2850_vm1, %v4283_v56  ;;  %v2353_v62 = vpop.f32.mrf.mxu3  ;;  %v3443_v52 = vor.u32 %v4050_v5, %v3442_v38  ;;  %v4053_v5 = vld [vmem:[%s4519_s5 + $0x338] sm:$0xf0] }
 0x22f   : > { %4284 = vtanh.f32 %v2523_v35  ;;  %v5151_v6 = vadd.f32 %v2353_v62, %v2025_v57  ;;  %v2030_v57 = vadd.f32 %v4919_v48, %v4824_v46  ;;  %v3475_v46 = vor.u32 %v4057_v53, %v3474_v59  ;;  %v3486_v59 = vld [vmem:[%s4519_s5 + $0x368] sm:$0xf]  ;;  %v4060_v53 = vld [vmem:[%s4519_s5 + $0x370] sm:$0xf0] }
 0x230   : > { %v2529_v2 = vpop.f32.mrf.mxu2  ;;  %v1866_v4 = vpop.f32.mrf.mxu0 }
 0x231   : > { %v1867_v37 = vadd.f32 %v4919_v48, %v1866_v4  ;;  %v2195_v14 = vpop.f32.mrf.mxu1 }
 0x233   : > { %v2196_v10 = vadd.f32 %v2195_v14, %v1867_v37 }
 0x235   : > { %v4285_v60 = vpop.eup %4284  ;;  %v2525_v29 = vadd.f32 %v2524_v32, %v2196_v10  ;;  %3918 = vmatmul.msk.bf16.gmra.mxu2 %vm1542_vm0, %v3463_v9 }
 0x236   : > { %2899 = vst.msk [vmem:[%s4656_s9 + $0x180] sm:$0xff] %vm2850_vm1, %v4285_v60  ;;  %v2355_v16 = vpop.f32.mrf.mxu3 }
 0x237   : > { %4286 = vtanh.f32 %v2525_v29  ;;  %v5165_v19 = vadd.f32 %v2355_v16, %v2027_v24  ;;  %v2032_v24 = vadd.f32 %v4919_v48, %v4838_v7 }
 0x238   : > { %v2532_v33 = vpop.f32.mrf.mxu2  ;;  %v1869_v58 = vpop.f32.mrf.mxu0 }
 0x239   : > { %v1870_v31 = vadd.f32 %v4919_v48, %v1869_v58  ;;  %v2198_v32 = vpop.f32.mrf.mxu1  ;;  %v3679_v58 = vor.u32 %v4108_v20, %v3678_v18  ;;  %v3690_v18 = vld [vmem:[%s4519_s5 + $0x500] sm:$0xf]  ;;  %v4111_v20 = vld [vmem:[%s4519_s5 + $0x508] sm:$0xf0] }
 0x23b   : > { %v2199_v54 = vadd.f32 %v2198_v32, %v1870_v31  ;;  %1908 = vmatmul.bf16.gmra.mxu0 %v3443_v52  ;;  %3935 = vmatmul.msk.bf16.gmra.mxu3 %vm1542_vm0, %v3667_v23  ;;  %v3459_v32 = vor.u32 %v4052_v30, %v3456_v39  ;;  %v4055_v30 = vld [vmem:[%s4519_s5 + $0x34c] sm:$0xf]  ;;  %v3468_v39 = vld [vmem:[%s4519_s5 + $0x354] sm:$0xf0] }
 0x23c   : > { %2237 = vmatmul.bf16.gmra.mxu1 %v3447_v0 }
 0x23d   : > { %v4287_v56 = vpop.eup %4286  ;;  %v2528_v35 = vadd.f32 %v2527_v3, %v2199_v54  ;;  %v3454_v3 = vld [vmem:[%s4519_s5 + $0x330] sm:$0xf] }
 0x23e   : > { %2900 = vst.msk [vmem:[%s4656_s9 + $0x188] sm:$0xff] %vm2850_vm1, %v4287_v56  ;;  %v2358_v62 = vpop.f32.mrf.mxu3  ;;  %v3455_v23 = vor.u32 %v4053_v5, %v3454_v3  ;;  %v4056_v5 = vld [vmem:[%s4519_s5 + $0x350] sm:$0xf0] }
 0x23f   : > { %4288 = vtanh.f32 %v2528_v35  ;;  %v5175_v4 = vadd.f32 %v2358_v62, %v2030_v57  ;;  %v2035_v57 = vadd.f32 %v4919_v48, %v4843_v22  ;;  %v3487_v22 = vor.u32 %v4060_v53, %v3486_v59  ;;  %v3498_v59 = vld [vmem:[%s4519_s5 + $0x380] sm:$0xf]  ;;  %v4063_v53 = vld [vmem:[%s4519_s5 + $0x388] sm:$0xf0] }
 0x240   : > { %v2534_v37 = vpop.f32.mrf.mxu2  ;;  %v1871_v14 = vpop.f32.mrf.mxu0 }
 0x241   : > { %v1872_v9 = vadd.f32 %v4919_v48, %v1871_v14  ;;  %v2200_v10 = vpop.f32.mrf.mxu1 }
 0x243   : > { %v2201_v38 = vadd.f32 %v2200_v10, %v1872_v9 }
 0x245   : > { %v4289_v60 = vpop.eup %4288  ;;  %v2530_v29 = vadd.f32 %v2529_v2, %v2201_v38  ;;  %3919 = vmatmul.msk.bf16.gmra.mxu2 %vm1542_vm0, %v3475_v46 }
 0x246   : > { %2901 = vst.msk [vmem:[%s4656_s9 + $0x190] sm:$0xff] %vm2850_vm1, %v4289_v60  ;;  %v2360_v16 = vpop.f32.mrf.mxu3 }
 0x247   : > { %4290 = vtanh.f32 %v2530_v29  ;;  %v5189_v52 = vadd.f32 %v2360_v16, %v2032_v24  ;;  %v2037_v24 = vadd.f32 %v4919_v48, %v4857_v47  ;;  %v5218_v47 = vld [vmem:[%s5612_s2] ss:$0 sm:$0xff] }
 0x248   : > { %v2537_v0 = vpop.f32.mrf.mxu2  ;;  %v1874_v31 = vpop.f32.mrf.mxu0 }
 0x249   : > { %v1875_v7 = vadd.f32 %v4919_v48, %v1874_v31  ;;  %v2203_v2 = vpop.f32.mrf.mxu1  ;;  %v3691_v31 = vor.u32 %v4111_v20, %v3690_v18  ;;  %v3702_v18 = vld [vmem:[%s4519_s5 + $0x518] sm:$0xf]  ;;  %v4114_v20 = vld [vmem:[%s4519_s5 + $0x520] sm:$0xf0] }
 0x24b   : > { %v2204_v54 = vadd.f32 %v2203_v2, %v1875_v7  ;;  %1913 = vmatmul.bf16.gmra.mxu0 %v3455_v23  ;;  %3936 = vmatmul.msk.bf16.gmra.mxu3 %vm1542_vm0, %v3679_v58  ;;  %v3471_v2 = vor.u32 %v4055_v30, %v3468_v39  ;;  %v4058_v30 = vld [vmem:[%s4519_s5 + $0x364] sm:$0xf]  ;;  %v3480_v39 = vld [vmem:[%s4519_s5 + $0x36c] sm:$0xf0] }
 0x24c   : > { %2242 = vmatmul.bf16.gmra.mxu1 %v3459_v32 }
 0x24d   : > { %v4291_v56 = vpop.eup %4290  ;;  %v2533_v35 = vadd.f32 %v2532_v33, %v2204_v54  ;;  %v3466_v33 = vld [vmem:[%s4519_s5 + $0x348] sm:$0xf] }
 0x24e   : > { %2902 = vst.msk [vmem:[%s4656_s9 + $0x198] sm:$0xff] %vm2850_vm1, %v4291_v56  ;;  %v2363_v62 = vpop.f32.mrf.mxu3  ;;  %v3467_v58 = vor.u32 %v4056_v5, %v3466_v33  ;;  %v4059_v5 = vld [vmem:[%s4519_s5 + $0x368] sm:$0xf0] }
 0x24f   : > { %4292 = vtanh.f32 %v2533_v35  ;;  %v5199_v14 = vadd.f32 %v2363_v62, %v2035_v57  ;;  %v2040_v57 = vadd.f32 %v5218_v47, %v4862_v63  ;;  %v3499_v63 = vor.u32 %v4063_v53, %v3498_v59  ;;  %v3510_v59 = vld [vmem:[%s4519_s5 + $0x398] sm:$0xf]  ;;  %v4066_v53 = vld [vmem:[%s4519_s5 + $0x3a0] sm:$0xf0] }
 0x250   : > { %v2539_v9 = vpop.f32.mrf.mxu2  ;;  %v1876_v10 = vpop.f32.mrf.mxu0 }
 0x251   : > { %v1877_v46 = vadd.f32 %v4919_v48, %v1876_v10  ;;  %v2205_v38 = vpop.f32.mrf.mxu1 }
 0x253   : > { %v2206_v3 = vadd.f32 %v2205_v38, %v1877_v46 }
 0x255   : > { %v4293_v60 = vpop.eup %4292  ;;  %v2535_v29 = vadd.f32 %v2534_v37, %v2206_v3  ;;  %3920 = vmatmul.msk.bf16.gmra.mxu2 %vm1542_vm0, %v3487_v22 }
 0x256   : > { %2903 = vst.msk [vmem:[%s4656_s9 + $0x1a0] sm:$0xff] %vm2850_vm1, %v4293_v60  ;;  %v2365_v16 = vpop.f32.mrf.mxu3 }
 0x257   : > { %4294 = vtanh.f32 %v2535_v29  ;;  %v5213_v23 = vadd.f32 %v2365_v16, %v2037_v24  ;;  %v2042_v24 = vadd.f32 %v5218_v47, %v4876_v28 }
 0x258   : > { %v2542_v32 = vpop.f32.mrf.mxu2  ;;  %v1879_v7 = vpop.f32.mrf.mxu0 }
 0x259   : > { %v1880_v48 = vadd.f32 %v5218_v47, %v1879_v7  ;;  %v2208_v37 = vpop.f32.mrf.mxu1  ;;  %v3703_v7 = vor.u32 %v4114_v20, %v3702_v18  ;;  %v3714_v18 = vld [vmem:[%s4519_s5 + $0x530] sm:$0xf]  ;;  %v4117_v20 = vld [vmem:[%s4519_s5 + $0x538] sm:$0xf0] }
 0x25b   : > { %v2209_v54 = vadd.f32 %v2208_v37, %v1880_v48  ;;  %1918 = vmatmul.bf16.gmra.mxu0 %v3467_v58  ;;  %3937 = vmatmul.msk.bf16.gmra.mxu3 %vm1542_vm0, %v3691_v31  ;;  %v3483_v37 = vor.u32 %v4058_v30, %v3480_v39  ;;  %v4061_v30 = vld [vmem:[%s4519_s5 + $0x37c] sm:$0xf]  ;;  %v3492_v39 = vld [vmem:[%s4519_s5 + $0x384] sm:$0xf0] }
 0x25c   : > { %2247 = vmatmul.bf16.gmra.mxu1 %v3471_v2 }
 0x25d   : > { %v4295_v56 = vpop.eup %4294  ;;  %v2538_v35 = vadd.f32 %v2537_v0, %v2209_v54  ;;  %v3478_v0 = vld [vmem:[%s4519_s5 + $0x360] sm:$0xf] }
 0x25e   : > { %2904 = vst.msk [vmem:[%s4656_s9 + $0x1a8] sm:$0xff] %vm2850_vm1, %v4295_v56  ;;  %v2368_v62 = vpop.f32.mrf.mxu3  ;;  %v3479_v31 = vor.u32 %v4059_v5, %v3478_v0  ;;  %v4062_v5 = vld [vmem:[%s4519_s5 + $0x380] sm:$0xf0] }
 0x25f   : > { %4296 = vtanh.f32 %v2538_v35  ;;  %v5228_v10 = vadd.f32 %v2368_v62, %v2040_v57  ;;  %v2045_v57 = vadd.f32 %v5218_v47, %v4881_v43  ;;  %v3511_v43 = vor.u32 %v4066_v53, %v3510_v59  ;;  %v3522_v59 = vld [vmem:[%s4519_s5 + $0x3b0] sm:$0xf]  ;;  %v4069_v53 = vld [vmem:[%s4519_s5 + $0x3b8] sm:$0xf0] }
 0x260   : > { %v2544_v46 = vpop.f32.mrf.mxu2  ;;  %v1881_v38 = vpop.f32.mrf.mxu0 }
 0x261   : > { %v1882_v22 = vadd.f32 %v5218_v47, %v1881_v38  ;;  %v2210_v3 = vpop.f32.mrf.mxu1 }
 0x263   : > { %v2211_v33 = vadd.f32 %v2210_v3, %v1882_v22 }
 0x265   : > { %v4297_v60 = vpop.eup %4296  ;;  %v2540_v29 = vadd.f32 %v2539_v9, %v2211_v33  ;;  %3921 = vmatmul.msk.bf16.gmra.mxu2 %vm1542_vm0, %v3499_v63 }
 0x266   : > { %2905 = vst.msk [vmem:[%s4656_s9 + $0x1b0] sm:$0xff] %vm2850_vm1, %v4297_v60  ;;  %v2370_v16 = vpop.f32.mrf.mxu3 }
 0x267   : > { %4298 = vtanh.f32 %v2540_v29  ;;  %v5242_v58 = vadd.f32 %v2370_v16, %v2042_v24  ;;  %v2047_v24 = vadd.f32 %v5218_v47, %v4895_v11 }
 0x268   : > { %v2547_v2 = vpop.f32.mrf.mxu2  ;;  %v1884_v48 = vpop.f32.mrf.mxu0 }
 0x269   : > { %v1885_v28 = vadd.f32 %v5218_v47, %v1884_v48  ;;  %v2213_v9 = vpop.f32.mrf.mxu1  ;;  %v3715_v48 = vor.u32 %v4117_v20, %v3714_v18  ;;  %v3726_v18 = vld [vmem:[%s4519_s5 + $0x548] sm:$0xf]  ;;  %v4120_v20 = vld [vmem:[%s4519_s5 + $0x550] sm:$0xf0] }
 0x26b   : > { %v2214_v54 = vadd.f32 %v2213_v9, %v1885_v28  ;;  %1923 = vmatmul.bf16.gmra.mxu0 %v3479_v31  ;;  %3938 = vmatmul.msk.bf16.gmra.mxu3 %vm1542_vm0, %v3703_v7  ;;  %v3495_v9 = vor.u32 %v4061_v30, %v3492_v39  ;;  %v4064_v30 = vld [vmem:[%s4519_s5 + $0x394] sm:$0xf]  ;;  %v3504_v39 = vld [vmem:[%s4519_s5 + $0x39c] sm:$0xf0] }
 0x26c   : > { %2252 = vmatmul.bf16.gmra.mxu1 %v3483_v37 }
 0x26d   : > { %v4299_v56 = vpop.eup %4298  ;;  %v2543_v35 = vadd.f32 %v2542_v32, %v2214_v54  ;;  %v3490_v32 = vld [vmem:[%s4519_s5 + $0x378] sm:$0xf] }
 0x26e   : > { %2906 = vst.msk [vmem:[%s4656_s9 + $0x1b8] sm:$0xff] %vm2850_vm1, %v4299_v56  ;;  %v2373_v62 = vpop.f32.mrf.mxu3  ;;  %v3491_v7 = vor.u32 %v4062_v5, %v3490_v32  ;;  %v4065_v5 = vld [vmem:[%s4519_s5 + $0x398] sm:$0xf0] }
 0x26f   : > { %4300 = vtanh.f32 %v2543_v35  ;;  %v5252_v38 = vadd.f32 %v2373_v62, %v2045_v57  ;;  %v2050_v57 = vadd.f32 %v5218_v47, %v4900_v25  ;;  %v3523_v25 = vor.u32 %v4069_v53, %v3522_v59  ;;  %v3534_v59 = vld [vmem:[%s4519_s5 + $0x3c8] sm:$0xf]  ;;  %v4072_v53 = vld [vmem:[%s4519_s5 + $0x3d0] sm:$0xf0] }
 0x270   : > { %v2549_v22 = vpop.f32.mrf.mxu2  ;;  %v1886_v3 = vpop.f32.mrf.mxu0 }
 0x271   : > { %v1887_v63 = vadd.f32 %v5218_v47, %v1886_v3  ;;  %v2215_v33 = vpop.f32.mrf.mxu1 }
 0x273   : > { %v2216_v0 = vadd.f32 %v2215_v33, %v1887_v63 }
 0x275   : > { %v4301_v60 = vpop.eup %4300  ;;  %v2545_v29 = vadd.f32 %v2544_v46, %v2216_v0  ;;  %3922 = vmatmul.msk.bf16.gmra.mxu2 %vm1542_vm0, %v3511_v43 }
 0x276   : > { %2907 = vst.msk [vmem:[%s4656_s9 + $0x1c0] sm:$0xff] %vm2850_vm1, %v4301_v60  ;;  %v2375_v16 = vpop.f32.mrf.mxu3 }
 0x277   : > { %4302 = vtanh.f32 %v2545_v29  ;;  %v5266_v31 = vadd.f32 %v2375_v16, %v2047_v24  ;;  %v2052_v24 = vadd.f32 %v5218_v47, %v4914_v49 }
 0x278   : > { %v2552_v37 = vpop.f32.mrf.mxu2  ;;  %v1889_v28 = vpop.f32.mrf.mxu0 }
 0x279   : > { %v1890_v11 = vadd.f32 %v5218_v47, %v1889_v28  ;;  %v2218_v46 = vpop.f32.mrf.mxu1  ;;  %v3727_v28 = vor.u32 %v4120_v20, %v3726_v18  ;;  %v3738_v18 = vld [vmem:[%s4519_s5 + $0x560] sm:$0xf]  ;;  %v4123_v20 = vld [vmem:[%s4519_s5 + $0x568] sm:$0xf0] }
 0x27b   : > { %v2219_v54 = vadd.f32 %v2218_v46, %v1890_v11  ;;  %1928 = vmatmul.bf16.gmra.mxu0 %v3491_v7  ;;  %3939 = vmatmul.msk.bf16.gmra.mxu3 %vm1542_vm0, %v3715_v48  ;;  %v3507_v46 = vor.u32 %v4064_v30, %v3504_v39  ;;  %v4067_v30 = vld [vmem:[%s4519_s5 + $0x3ac] sm:$0xf]  ;;  %v3516_v39 = vld [vmem:[%s4519_s5 + $0x3b4] sm:$0xf0] }
 0x27c   : > { %2257 = vmatmul.bf16.gmra.mxu1 %v3495_v9 }
 0x27d   : > { %v4303_v56 = vpop.eup %4302  ;;  %v2548_v35 = vadd.f32 %v2547_v2, %v2219_v54  ;;  %v3502_v2 = vld [vmem:[%s4519_s5 + $0x390] sm:$0xf] }
 0x27e   : > { %2908 = vst.msk [vmem:[%s4656_s9 + $0x1c8] sm:$0xff] %vm2850_vm1, %v4303_v56  ;;  %v2378_v62 = vpop.f32.mrf.mxu3  ;;  %v3503_v48 = vor.u32 %v4065_v5, %v3502_v2  ;;  %v4068_v5 = vld [vmem:[%s4519_s5 + $0x3b0] sm:$0xf0] }
 0x27f   : > { %4304 = vtanh.f32 %v2548_v35  ;;  %v5276_v3 = vadd.f32 %v2378_v62, %v2050_v57  ;;  %v2055_v57 = vadd.f32 %v5218_v47, %v4924_v15  ;;  %v3535_v15 = vor.u32 %v4072_v53, %v3534_v59  ;;  %v3546_v59 = vld [vmem:[%s4519_s5 + $0x3e0] sm:$0xf]  ;;  %v4075_v53 = vld [vmem:[%s4519_s5 + $0x3e8] sm:$0xf0] }
 0x280   : > { %v2554_v63 = vpop.f32.mrf.mxu2  ;;  %v1891_v33 = vpop.f32.mrf.mxu0 }
 0x281   : > { %v1892_v43 = vadd.f32 %v5218_v47, %v1891_v33  ;;  %v2220_v0 = vpop.f32.mrf.mxu1 }
 0x283   : > { %v2221_v32 = vadd.f32 %v2220_v0, %v1892_v43 }
 0x285   : > { %v4305_v60 = vpop.eup %4304  ;;  %v2550_v29 = vadd.f32 %v2549_v22, %v2221_v32  ;;  %3923 = vmatmul.msk.bf16.gmra.mxu2 %vm1542_vm0, %v3523_v25 }
 0x286   : > { %2909 = vst.msk [vmem:[%s4656_s9 + $0x1d0] sm:$0xff] %vm2850_vm1, %v4305_v60  ;;  %v2380_v16 = vpop.f32.mrf.mxu3 }
 0x287   : > { %4306 = vtanh.f32 %v2550_v29  ;;  %v5290_v7 = vadd.f32 %v2380_v16, %v2052_v24  ;;  %v2057_v24 = vadd.f32 %v5218_v47, %v4938_v44 }
 0x288   : > { %v2557_v9 = vpop.f32.mrf.mxu2  ;;  %v1894_v11 = vpop.f32.mrf.mxu0 }
 0x289   : > { %v1895_v49 = vadd.f32 %v5218_v47, %v1894_v11  ;;  %v2223_v22 = vpop.f32.mrf.mxu1  ;;  %v3739_v11 = vor.u32 %v4123_v20, %v3738_v18  ;;  %v3750_v18 = vld [vmem:[%s4519_s5 + $0x578] sm:$0xf]  ;;  %v4126_v20 = vld [vmem:[%s4519_s5 + $0x580] sm:$0xf0] }
 0x28b   : > { %v2224_v54 = vadd.f32 %v2223_v22, %v1895_v49  ;;  %1933 = vmatmul.bf16.gmra.mxu0 %v3503_v48  ;;  %3940 = vmatmul.msk.bf16.gmra.mxu3 %vm1542_vm0, %v3727_v28  ;;  %v3519_v22 = vor.u32 %v4067_v30, %v3516_v39  ;;  %v4070_v30 = vld [vmem:[%s4519_s5 + $0x3c4] sm:$0xf]  ;;  %v3528_v39 = vld [vmem:[%s4519_s5 + $0x3cc] sm:$0xf0] }
 0x28c   : > { %2262 = vmatmul.bf16.gmra.mxu1 %v3507_v46 }
 0x28d   : > { %v4307_v56 = vpop.eup %4306  ;;  %v2553_v35 = vadd.f32 %v2552_v37, %v2224_v54  ;;  %v3514_v37 = vld [vmem:[%s4519_s5 + $0x3a8] sm:$0xf] }
 0x28e   : > { %2910 = vst.msk [vmem:[%s4656_s9 + $0x1d8] sm:$0xff] %vm2850_vm1, %v4307_v56  ;;  %v2383_v62 = vpop.f32.mrf.mxu3  ;;  %v3515_v28 = vor.u32 %v4068_v5, %v3514_v37  ;;  %v4071_v5 = vld [vmem:[%s4519_s5 + $0x3c8] sm:$0xf0] }
 0x28f   : > { %4308 = vtanh.f32 %v2553_v35  ;;  %v5300_v33 = vadd.f32 %v2383_v62, %v2055_v57  ;;  %v2060_v57 = vadd.f32 %v5218_v47, %v4943_v61  ;;  %v3547_v61 = vor.u32 %v4075_v53, %v3546_v59  ;;  %v4078_v59 = vld [vmem:[%s4519_s5 + $0x400] sm:$0xf0] }
 0x290   : > { %v2559_v43 = vpop.f32.mrf.mxu2  ;;  %v1896_v0 = vpop.f32.mrf.mxu0 }
 0x291   : > { %v1897_v25 = vadd.f32 %v5218_v47, %v1896_v0  ;;  %v2225_v32 = vpop.f32.mrf.mxu1 }
 0x293   : > { %v2226_v2 = vadd.f32 %v2225_v32, %v1897_v25 }
 0x295   : > { %v4309_v60 = vpop.eup %4308  ;;  %v2555_v29 = vadd.f32 %v2554_v63, %v2226_v2  ;;  %3924 = vmatmul.msk.bf16.gmra.mxu2 %vm1542_vm0, %v3535_v15 }
 0x296   : > { %2911 = vst.msk [vmem:[%s4656_s9 + $0x1e0] sm:$0xff] %vm2850_vm1, %v4309_v60  ;;  %v2385_v16 = vpop.f32.mrf.mxu3 }
 0x297   : > { %4310 = vtanh.f32 %v2555_v29  ;;  %v5314_v48 = vadd.f32 %v2385_v16, %v2057_v24  ;;  %v2062_v24 = vadd.f32 %v5218_v47, %v4957_v40 }
 0x298   : > { %v2562_v46 = vpop.f32.mrf.mxu2  ;;  %v1899_v49 = vpop.f32.mrf.mxu0 }
 0x299   : > { %v1900_v44 = vadd.f32 %v5218_v47, %v1899_v49  ;;  %v2228_v63 = vpop.f32.mrf.mxu1  ;;  %v3751_v49 = vor.u32 %v4126_v20, %v3750_v18  ;;  %v3762_v18 = vld [vmem:[%s4519_s5 + $0x590] sm:$0xf]  ;;  %v4129_v20 = vld [vmem:[%s4519_s5 + $0x598] sm:$0xf0] }
 0x29b   : > { %v2229_v54 = vadd.f32 %v2228_v63, %v1900_v44  ;;  %1938 = vmatmul.bf16.gmra.mxu0 %v3515_v28  ;;  %3941 = vmatmul.msk.bf16.gmra.mxu3 %vm1542_vm0, %v3739_v11  ;;  %v3531_v63 = vor.u32 %v4070_v30, %v3528_v39 }
 0x29c   : > { %2267 = vmatmul.bf16.gmra.mxu1 %v3519_v22 }
 0x29d   : > { %v4311_v56 = vpop.eup %4310  ;;  %v2558_v35 = vadd.f32 %v2557_v9, %v2229_v54  ;;  %v3526_v9 = vld [vmem:[%s4519_s5 + $0x3c0] sm:$0xf] }
 0x29e   : > { %2912 = vst.msk [vmem:[%s4656_s9 + $0x1e8] sm:$0xff] %vm2850_vm1, %v4311_v56  ;;  %v2388_v62 = vpop.f32.mrf.mxu3  ;;  %v3527_v11 = vor.u32 %v4071_v5, %v3526_v9  ;;  %v3538_v9 = vld [vmem:[%s4519_s5 + $0x3d8] sm:$0xf]  ;;  %v4074_v5 = vld [vmem:[%s4519_s5 + $0x3e0] sm:$0xf0] }
 0x29f   : > { %4312 = vtanh.f32 %v2558_v35  ;;  %v5324_v0 = vadd.f32 %v2388_v62, %v2060_v57  ;;  %v3558_v62 = vld [vmem:[%s4519_s5 + $0x3f8] sm:$0xf] }
 0x2a0   : > { %v2564_v25 = vpop.f32.mrf.mxu2  ;;  %v1901_v32 = vpop.f32.mrf.mxu0 }
 0x2a1   : > { %v1902_v15 = vadd.f32 %v5218_v47, %v1901_v32  ;;  %v2230_v2 = vpop.f32.mrf.mxu1 }
 0x2a3   : > { %v2231_v37 = vadd.f32 %v2230_v2, %v1902_v15 }
 0x2a5   : > { %v4313_v60 = vpop.eup %4312  ;;  %v2560_v29 = vadd.f32 %v2559_v43, %v2231_v37  ;;  %3925 = vmatmul.msk.bf16.gmra.mxu2 %vm1542_vm0, %v3547_v61 }
 0x2a6   : > { %2913 = vst.msk [vmem:[%s4656_s9 + $0x1f0] sm:$0xff] %vm2850_vm1, %v4313_v60  ;;  %v2390_v16 = vpop.f32.mrf.mxu3 }
 0x2a7   : > { %4314 = vtanh.f32 %v2560_v29  ;;  %v5338_v28 = vadd.f32 %v2390_v16, %v2062_v24  ;;  %v3540_v29 = vld [vmem:[%s4519_s5 + $0x3e4] sm:$0xf0] }
 0x2a8   : > { %v2567_v22 = vpop.f32.mrf.mxu2  ;;  %v1904_v44 = vpop.f32.mrf.mxu0 }
 0x2a9   : > { %v1905_v40 = vadd.f32 %v5218_v47, %v1904_v44  ;;  %v2233_v43 = vpop.f32.mrf.mxu1 }
 0x2ab   : > { %v2234_v54 = vadd.f32 %v2233_v43, %v1905_v40  ;;  %1943 = vmatmul.bf16.gmra.mxu0 %v3527_v11  ;;  %3942 = vmatmul.msk.bf16.gmra.mxu3 %vm1542_vm0, %v3751_v49  ;;  %v3539_v11 = vor.u32 %v4074_v5, %v3538_v9  ;;  %v3763_v49 = vor.u32 %v4129_v20, %v3762_v18  ;;  %v3550_v9 = vld [vmem:[%s4519_s5 + $0x3f0] sm:$0xf]  ;;  %v4077_v5 = vld [vmem:[%s4519_s5 + $0x3f8] sm:$0xf0]  ;;  %v3774_v18 = vld [vmem:[%s4519_s5 + $0x5a8] sm:$0xf] }
 0x2ac   : > { %2272 = vmatmul.bf16.gmra.mxu1 %v3531_v63  ;;  %v4132_v20 = vld [vmem:[%s4519_s5 + $0x5b0] sm:$0xf0] }
 0x2ad   : > { %v4315_v56 = vpop.eup %4314  ;;  %v2563_v57 = vadd.f32 %v2562_v46, %v2234_v54  ;;  %v3559_v46 = vor.u32 %v4078_v59, %v3558_v62  ;;  %v4081_v62 = vld [vmem:[%s4519_s5 + $0x418] sm:$0xf0] }
 0x2ae   : > { %2914 = vst.msk [vmem:[%s4656_s9 + $0x1f8] sm:$0xff] %vm2850_vm1, %v4315_v56  ;;  %v2652_v35 = vpop.f32.mrf.mxu3 }
 0x2af   : > { %4316 = vtanh.f32 %v2563_v57  ;;  %v2653_v53 = vadd.f32 %v2652_v35, %v5012_v13  ;;  %v4073_v13 = vld [vmem:[%s4519_s5 + $0x3dc] sm:$0xf]  ;;  %v3570_v35 = vld [vmem:[%s4519_s5 + $0x410] sm:$0xf] }
 0x2b0   : > { %v2569_v32 = vpop.f32.mrf.mxu2  ;;  %v1906_v15 = vpop.f32.mrf.mxu0  ;;  %v3543_v63 = vor.u32 %v4073_v13, %v3540_v29  ;;  %v3552_v13 = vld [vmem:[%s4519_s5 + $0x3fc] sm:$0xf0] }
 0x2b1   : > { %4318 = vtanh.f32 %v2653_v53  ;;  %v1907_v2 = vadd.f32 %v5218_v47, %v1906_v15  ;;  %v2235_v61 = vpop.f32.mrf.mxu1 }
 0x2b3   : > { %v2236_v37 = vadd.f32 %v2235_v61, %v1907_v2 }
 0x2b5   : > { %v4317_v60 = vpop.eup %4316  ;;  %v2565_v24 = vadd.f32 %v2564_v25, %v2236_v37  ;;  %3926 = vmatmul.msk.bf16.gmra.mxu2 %vm1542_vm0, %v3559_v46  ;;  %v3571_v46 = vor.u32 %v4081_v62, %v3570_v35 }
 0x2b6   : > { %2915 = vst.msk [vmem:[%s4656_s9 + $0x200] sm:$0xff] %vm2850_vm1, %v4317_v60  ;;  %v2654_v30 = vpop.f32.mrf.mxu3 }
 0x2b7   : > { %v4319_v39 = vpop.eup %4318  ;;  %4320 = vtanh.f32 %v2565_v24  ;;  %v2655_v16 = vadd.f32 %v2654_v30, %v5026_v41  ;;  %v4076_v24 = vld [vmem:[%s4519_s5 + $0x3f4] sm:$0xf] }
 0x2b8   : > { %2951 = vst.msk [vmem:[%s4656_s9 + $0x320] sm:$0xff] %vm2850_vm1, %v4319_v39  ;;  %v2572_v44 = vpop.f32.mrf.mxu2  ;;  %v1909_v25 = vpop.f32.mrf.mxu0 }
 0x2b9   : > { %4322 = vtanh.f32 %v2655_v16  ;;  %v1910_v40 = vadd.f32 %v5218_v47, %v1909_v25  ;;  %v2238_v43 = vpop.f32.mrf.mxu1  ;;  %v3551_v16 = vor.u32 %v4077_v5, %v3550_v9  ;;  %v3555_v25 = vor.u32 %v4076_v24, %v3552_v13  ;;  %v3786_v9 = vld [vmem:[%s4519_s5 + $0x5c0] sm:$0xf]  ;;  %v4135_v5 = vld [vmem:[%s4519_s5 + $0x5c8] sm:$0xf0] }
 0x2bb   : > { %v2239_v54 = vadd.f32 %v2238_v43, %v1910_v40  ;;  %1948 = vmatmul.bf16.gmra.mxu0 %v3539_v11  ;;  %3943 = vmatmul.msk.bf16.gmra.mxu3 %vm1542_vm0, %v3763_v49  ;;  %v3775_v11 = vor.u32 %v4132_v20, %v3774_v18  ;;  %v4079_v20 = vld [vmem:[%s4519_s5 + $0x40c] sm:$0xf] }
 0x2bc   : > { %2277 = vmatmul.bf16.gmra.mxu1 %v3543_v63 }
 0x2bd   : > { %v4321_v41 = vpop.eup %4320  ;;  %v2568_v56 = vadd.f32 %v2567_v22, %v2239_v54 }
 0x2be   : > { %2916 = vst.msk [vmem:[%s4656_s9 + $0x208] sm:$0xff] %vm2850_vm1, %v4321_v41  ;;  %v2657_v57 = vpop.f32.mrf.mxu3 }
 0x2bf   : > { %v4323_v59 = vpop.eup %4322  ;;  %4324 = vtanh.f32 %v2568_v56  ;;  %v2658_v53 = vadd.f32 %v2657_v57, %v5035_v12  ;;  %v3582_v56 = vld [vmem:[%s4519_s5 + $0x428] sm:$0xf]  ;;  %v4084_v57 = vld [vmem:[%s4519_s5 + $0x430] sm:$0xf0] }
 0x2c0   : > { %2952 = vst.msk [vmem:[%s4656_s9 + $0x328] sm:$0xff] %vm2850_vm1, %v4323_v59  ;;  %v2574_v15 = vpop.f32.mrf.mxu2  ;;  %v1911_v22 = vpop.f32.mrf.mxu0 }
 0x2c1   : > { %4326 = vtanh.f32 %v2658_v53  ;;  %v1912_v2 = vadd.f32 %v5218_v47, %v1911_v22  ;;  %v2240_v61 = vpop.f32.mrf.mxu1 }
 0x2c3   : > { %v2241_v37 = vadd.f32 %v2240_v61, %v1912_v2  ;;  %v3583_v2 = vor.u32 %v4084_v57, %v3582_v56 }
 0x2c5   : > { %v4325_v60 = vpop.eup %4324  ;;  %v2570_v12 = vadd.f32 %v2569_v32, %v2241_v37  ;;  %3927 = vmatmul.msk.bf16.gmra.mxu2 %vm1542_vm0, %v3571_v46  ;;  %v3562_v46 = vld [vmem:[%s4519_s5 + $0x408] sm:$0xf]  ;;  %v4080_v37 = vld [vmem:[%s4519_s5 + $0x410] sm:$0xf0] }
 0x2c6   : > { %2917 = vst.msk [vmem:[%s4656_s9 + $0x210] sm:$0xff] %vm2850_vm1, %v4325_v60  ;;  %v2659_v29 = vpop.f32.mrf.mxu3  ;;  %v3564_v60 = vld [vmem:[%s4519_s5 + $0x414] sm:$0xf0] }
 0x2c7   : > { %v4327_v30 = vpop.eup %4326  ;;  %4328 = vtanh.f32 %v2570_v12  ;;  %v2660_v39 = vadd.f32 %v2659_v29, %v5049_v45  ;;  %v3563_v29 = vor.u32 %v4080_v37, %v3562_v46  ;;  %v4082_v37 = vld [vmem:[%s4519_s5 + $0x424] sm:$0xf] }
 0x2c8   : > { %2953 = vst.msk [vmem:[%s4656_s9 + $0x330] sm:$0xff] %vm2850_vm1, %v4327_v30  ;;  %v2577_v49 = vpop.f32.mrf.mxu2  ;;  %v1914_v32 = vpop.f32.mrf.mxu0  ;;  %v3787_v30 = vor.u32 %v4135_v5, %v3786_v9  ;;  %v3576_v9 = vld [vmem:[%s4519_s5 + $0x42c] sm:$0xf0] }
 0x2c9   : > { %4330 = vtanh.f32 %v2660_v39  ;;  %v1915_v63 = vadd.f32 %v5218_v47, %v1914_v32  ;;  %v2243_v40 = vpop.f32.mrf.mxu1 }
 0x2cb   : > { %v2244_v43 = vadd.f32 %v2243_v40, %v1915_v63  ;;  %1953 = vmatmul.bf16.gmra.mxu0 %v3551_v16  ;;  %3944 = vmatmul.msk.bf16.gmra.mxu3 %vm1542_vm0, %v3775_v11  ;;  %v3567_v16 = vor.u32 %v4079_v20, %v3564_v60 }
 0x2cc   : > { %2282 = vmatmul.bf16.gmra.mxu1 %v3555_v25 }
 0x2cd   : > { %v4329_v45 = vpop.eup %4328  ;;  %v2573_v54 = vadd.f32 %v2572_v44, %v2244_v43  ;;  %v3594_v43 = vld [vmem:[%s4519_s5 + $0x440] sm:$0xf] }
 0x2ce   : > { %2918 = vst.msk [vmem:[%s4656_s9 + $0x218] sm:$0xff] %vm2850_vm1, %v4329_v45  ;;  %v2662_v41 = vpop.f32.mrf.mxu3  ;;  %v4087_v45 = vld [vmem:[%s4519_s5 + $0x448] sm:$0xf0] }
 0x2cf   : > { %v4331_v35 = vpop.eup %4330  ;;  %4332 = vtanh.f32 %v2573_v54  ;;  %v2663_v62 = vadd.f32 %v2662_v41, %v5058_v50 }
 0x2d0   : > { %2954 = vst.msk [vmem:[%s4656_s9 + $0x338] sm:$0xff] %vm2850_vm1, %v4331_v35  ;;  %v2579_v59 = vpop.f32.mrf.mxu2  ;;  %v1916_v44 = vpop.f32.mrf.mxu0 }
 0x2d1   : > { %4334 = vtanh.f32 %v2663_v62  ;;  %v1917_v53 = vadd.f32 %v5218_v47, %v1916_v44  ;;  %v2245_v22 = vpop.f32.mrf.mxu1  ;;  %v3595_v62 = vor.u32 %v4087_v45, %v3594_v43 }
 0x2d3   : > { %v2246_v61 = vadd.f32 %v2245_v22, %v1917_v53  ;;  %v3574_v53 = vld [vmem:[%s4519_s5 + $0x420] sm:$0xf]  ;;  %v4083_v22 = vld [vmem:[%s4519_s5 + $0x428] sm:$0xf0] }
 0x2d4   : > { %v3575_v20 = vor.u32 %v4083_v22, %v3574_v53  ;;  %v3588_v53 = vld [vmem:[%s4519_s5 + $0x444] sm:$0xf0] }
 0x2d5   : > { %v4333_v18 = vpop.eup %4332  ;;  %v2575_v50 = vadd.f32 %v2574_v15, %v2246_v61  ;;  %3928 = vmatmul.msk.bf16.gmra.mxu2 %vm1542_vm0, %v3583_v2  ;;  %v3798_v2 = vld [vmem:[%s4519_s5 + $0x5d8] sm:$0xf]  ;;  %v4138_v61 = vld [vmem:[%s4519_s5 + $0x5e0] sm:$0xf0] }
 0x2d6   : > { %2919 = vst.msk [vmem:[%s4656_s9 + $0x220] sm:$0xff] %vm2850_vm1, %v4333_v18  ;;  %v2664_v12 = vpop.f32.mrf.mxu3  ;;  %v3799_v60 = vor.u32 %v4138_v61, %v3798_v2 }
 0x2d7   : > { %v4335_v24 = vpop.eup %4334  ;;  %4336 = vtanh.f32 %v2575_v50  ;;  %v2665_v13 = vadd.f32 %v2664_v12, %v5072_v27 }
 0x2d8   : > { %2955 = vst.msk [vmem:[%s4656_s9 + $0x340] sm:$0xff] %vm2850_vm1, %v4335_v24  ;;  %v2582_v39 = vpop.f32.mrf.mxu2  ;;  %v1919_v15 = vpop.f32.mrf.mxu0  ;;  %v3579_v24 = vor.u32 %v4082_v37, %v3576_v9 }
 0x2d9   : > { %4338 = vtanh.f32 %v2665_v13  ;;  %v1920_v11 = vadd.f32 %v5218_v47, %v1919_v15  ;;  %v2248_v32 = vpop.f32.mrf.mxu1 }
 0x2db   : > { %v2249_v25 = vadd.f32 %v2248_v32, %v1920_v11  ;;  %1958 = vmatmul.bf16.gmra.mxu0 %v3563_v29  ;;  %3945 = vmatmul.msk.bf16.gmra.mxu3 %vm1542_vm0, %v3787_v30  ;;  %v3606_v11 = vld [vmem:[%s4519_s5 + $0x458] sm:$0xf]  ;;  %v4090_v32 = vld [vmem:[%s4519_s5 + $0x460] sm:$0xf0] }
 0x2dc   : > { %2287 = vmatmul.bf16.gmra.mxu1 %v3567_v16  ;;  %v3607_v45 = vor.u32 %v4090_v32, %v3606_v11  ;;  %v3598_v32 = vld [vmem:[%s4519_s5 + $0x450] sm:$0xf] }
 0x2dd   : > { %v4337_v27 = vpop.eup %4336  ;;  %v2578_v63 = vadd.f32 %v2577_v49, %v2249_v25 }
 0x2de   : > { %2920 = vst.msk [vmem:[%s4656_s9 + $0x228] sm:$0xff] %vm2850_vm1, %v4337_v27  ;;  %v2667_v40 = vpop.f32.mrf.mxu3 }
 0x2df   : > { %v4339_v54 = vpop.eup %4338  ;;  %4340 = vtanh.f32 %v2578_v63  ;;  %v2668_v41 = vadd.f32 %v2667_v40, %v5081_v42 }
 0x2e0   : > { %2956 = vst.msk [vmem:[%s4656_s9 + $0x348] sm:$0xff] %vm2850_vm1, %v4339_v54  ;;  %v2584_v56 = vpop.f32.mrf.mxu2  ;;  %v1921_v49 = vpop.f32.mrf.mxu0 }
 0x2e1   : > { %4342 = vtanh.f32 %v2668_v41  ;;  %v1922_v57 = vadd.f32 %v5218_v47, %v1921_v49  ;;  %v2250_v35 = vpop.f32.mrf.mxu1  ;;  %v3586_v41 = vld [vmem:[%s4519_s5 + $0x438] sm:$0xf]  ;;  %v4086_v49 = vld [vmem:[%s4519_s5 + $0x440] sm:$0xf0] }
 0x2e3   : > { %v2251_v44 = vadd.f32 %v2250_v35, %v1922_v57  ;;  %v3810_v57 = vld [vmem:[%s4519_s5 + $0x5f0] sm:$0xf]  ;;  %v4141_v35 = vld [vmem:[%s4519_s5 + $0x5f8] sm:$0xf0] }
 0x2e5   : > { %v4341_v46 = vpop.eup %4340  ;;  %v2580_v42 = vadd.f32 %v2579_v59, %v2251_v44  ;;  %3929 = vmatmul.msk.bf16.gmra.mxu2 %vm1542_vm0, %v3595_v62  ;;  %v4085_v44 = vld [vmem:[%s4519_s5 + $0x43c] sm:$0xf] }
 0x2e6   : > { %2921 = vst.msk [vmem:[%s4656_s9 + $0x230] sm:$0xff] %vm2850_vm1, %v4341_v46  ;;  %v2669_v5 = vpop.f32.mrf.mxu3  ;;  %v3587_v46 = vor.u32 %v4086_v49, %v3586_v41  ;;  %v3591_v9 = vor.u32 %v4085_v44, %v3588_v53 }
 0x2e7   : > { %v4343_v18 = vpop.eup %4342  ;;  %4344 = vtanh.f32 %v2580_v42  ;;  %v2670_v50 = vadd.f32 %v2669_v5, %v5095_v55  ;;  %v3811_v42 = vor.u32 %v4141_v35, %v3810_v57 }
 0x2e8   : > { %2957 = vst.msk [vmem:[%s4656_s9 + $0x350] sm:$0xff] %vm2850_vm1, %v4343_v18  ;;  %v2587_v12 = vpop.f32.mrf.mxu2  ;;  %v1924_v59 = vpop.f32.mrf.mxu0 }
 0x2e9   : > { %4346 = vtanh.f32 %v2670_v50  ;;  %v1925_v13 = vadd.f32 %v5218_v47, %v1924_v59  ;;  %v2253_v29 = vpop.f32.mrf.mxu1  ;;  %v3618_v59 = vld [vmem:[%s4519_s5 + $0x470] sm:$0xf] }
 0x2eb   : > { %v2254_v30 = vadd.f32 %v2253_v29, %v1925_v13  ;;  %1963 = vmatmul.bf16.gmra.mxu0 %v3575_v20  ;;  %3946 = vmatmul.msk.bf16.gmra.mxu3 %vm1542_vm0, %v3799_v60 }
 0x2ec   : > { %2292 = vmatmul.bf16.gmra.mxu1 %v3579_v24  ;;  %v4093_v24 = vld [vmem:[%s4519_s5 + $0x478] sm:$0xf0] }
 0x2ed   : > { %v4345_v55 = vpop.eup %4344  ;;  %v2583_v15 = vadd.f32 %v2582_v39, %v2254_v30 }
 0x2ee   : > { %2922 = vst.msk [vmem:[%s4656_s9 + $0x238] sm:$0xff] %vm2850_vm1, %v4345_v55  ;;  %v2672_v16 = vpop.f32.mrf.mxu3 }
 0x2ef   : > { %v4347_v25 = vpop.eup %4346  ;;  %4348 = vtanh.f32 %v2583_v15  ;;  %v2673_v27 = vadd.f32 %v2672_v16, %v5104_v34  ;;  %v3619_v16 = vor.u32 %v4093_v24, %v3618_v59  ;;  %v4091_v59 = vld [vmem:[%s4519_s5 + $0x46c] sm:$0xf] }
 0x2f0   : > { %2958 = vst.msk [vmem:[%s4656_s9 + $0x358] sm:$0xff] %vm2850_vm1, %v4347_v25  ;;  %v2589_v63 = vpop.f32.mrf.mxu2  ;;  %v1926_v39 = vpop.f32.mrf.mxu0  ;;  %v4089_v25 = vld [vmem:[%s4519_s5 + $0x458] sm:$0xf0] }
 0x2f1   : > { %4350 = vtanh.f32 %v2673_v27  ;;  %v1927_v40 = vadd.f32 %v5218_v47, %v1926_v39  ;;  %v2255_v43 = vpop.f32.mrf.mxu1  ;;  %v3599_v41 = vor.u32 %v4089_v25, %v3598_v32 }
 0x2f3   : > { %v2256_v54 = vadd.f32 %v2255_v43, %v1927_v40  ;;  %v4088_v40 = vld [vmem:[%s4519_s5 + $0x454] sm:$0xf] }
 0x2f5   : > { %v4349_v62 = vpop.eup %4348  ;;  %v2585_v34 = vadd.f32 %v2584_v56, %v2256_v54  ;;  %3930 = vmatmul.msk.bf16.gmra.mxu2 %vm1542_vm0, %v3607_v45 }
 0x2f6   : > { %2923 = vst.msk [vmem:[%s4656_s9 + $0x240] sm:$0xff] %vm2850_vm1, %v4349_v62  ;;  %v2674_v22 = vpop.f32.mrf.mxu3 }
 0x2f7   : > { %v4351_v2 = vpop.eup %4350  ;;  %4352 = vtanh.f32 %v2585_v34  ;;  %v2675_v61 = vadd.f32 %v2674_v22, %v5118_v21  ;;  %v3630_v22 = vld [vmem:[%s4519_s5 + $0x488] sm:$0xf] }
 0x2f8   : > { %2959 = vst.msk [vmem:[%s4656_s9 + $0x360] sm:$0xff] %vm2850_vm1, %v4351_v2  ;;  %v2592_v37 = vpop.f32.mrf.mxu2  ;;  %v1929_v56 = vpop.f32.mrf.mxu0  ;;  %v4096_v2 = vld [vmem:[%s4519_s5 + $0x490] sm:$0xf0] }
 0x2f9   : > { %4354 = vtanh.f32 %v2675_v61  ;;  %v1930_v5 = vadd.f32 %v5218_v47, %v1929_v56  ;;  %v2258_v18 = vpop.f32.mrf.mxu1 }
 0x2fb   : > { %v2259_v50 = vadd.f32 %v2258_v18, %v1930_v5  ;;  %1968 = vmatmul.bf16.gmra.mxu0 %v3587_v46  ;;  %3947 = vmatmul.msk.bf16.gmra.mxu3 %vm1542_vm0, %v3811_v42  ;;  %v3631_v5 = vor.u32 %v4096_v2, %v3630_v22 }
 0x2fc   : > { %2297 = vmatmul.bf16.gmra.mxu1 %v3591_v9 }
 0x2fd   : > { %v4353_v21 = vpop.eup %4352  ;;  %v2588_v20 = vadd.f32 %v2587_v12, %v2259_v50  ;;  %v3610_v50 = vld [vmem:[%s4519_s5 + $0x468] sm:$0xf] }
 0x2fe   : > { %2924 = vst.msk [vmem:[%s4656_s9 + $0x248] sm:$0xff] %vm2850_vm1, %v4353_v21  ;;  %v2677_v60 = vpop.f32.mrf.mxu3  ;;  %v4092_v21 = vld [vmem:[%s4519_s5 + $0x470] sm:$0xf0] }
 0x2ff   : > { %v4355_v13 = vpop.eup %4354  ;;  %4356 = vtanh.f32 %v2588_v20  ;;  %v2678_v29 = vadd.f32 %v2677_v60, %v5127_v17  ;;  %v3600_v17 = vld [vmem:[%s4519_s5 + $0x45c] sm:$0xf0] }
 0x300   : > { %2960 = vst.msk [vmem:[%s4656_s9 + $0x368] sm:$0xff] %vm2850_vm1, %v4355_v13  ;;  %v2594_v30 = vpop.f32.mrf.mxu2  ;;  %v1931_v55 = vpop.f32.mrf.mxu0 }
 0x301   : > { %4358 = vtanh.f32 %v2678_v29  ;;  %v1932_v12 = vadd.f32 %v5218_v47, %v1931_v55  ;;  %v2260_v15 = vpop.f32.mrf.mxu1  ;;  %v3611_v55 = vor.u32 %v4092_v21, %v3610_v50 }
 0x303   : > { %v2261_v11 = vadd.f32 %v2260_v15, %v1932_v12 }
 0x305   : > { %v4357_v27 = vpop.eup %4356  ;;  %v2590_v39 = vadd.f32 %v2589_v63, %v2261_v11  ;;  %3931 = vmatmul.msk.bf16.gmra.mxu2 %vm1542_vm0, %v3619_v16  ;;  %v3603_v63 = vor.u32 %v4088_v40, %v3600_v17  ;;  %v4099_v40 = vld [vmem:[%s4519_s5 + $0x4a8] sm:$0xf0] }
 0x306   : > { %2925 = vst.msk [vmem:[%s4656_s9 + $0x250] sm:$0xff] %vm2850_vm1, %v4357_v27  ;;  %v2679_v43 = vpop.f32.mrf.mxu3 }
 0x307   : > { %v4359_v45 = vpop.eup %4358  ;;  %4360 = vtanh.f32 %v2590_v39  ;;  %v2680_v54 = vadd.f32 %v2679_v43, %v5141_v51  ;;  %v3642_v39 = vld [vmem:[%s4519_s5 + $0x4a0] sm:$0xf] }
 0x308   : > { %2961 = vst.msk [vmem:[%s4656_s9 + $0x370] sm:$0xff] %vm2850_vm1, %v4359_v45  ;;  %v2597_v49 = vpop.f32.mrf.mxu2  ;;  %v1934_v57 = vpop.f32.mrf.mxu0 }
 0x309   : > { %4362 = vtanh.f32 %v2680_v54  ;;  %v1935_v35 = vadd.f32 %v5218_v47, %v1934_v57  ;;  %v2263_v62 = vpop.f32.mrf.mxu1  ;;  %v5498_v54 = vld [vmem:[%s5612_s2] ss:$0 sm:$0xff]  ;;  %v3643_v57 = vor.u32 %v4099_v40, %v3642_v39 }
 0x30b   : > { %v2264_v34 = vadd.f32 %v2263_v62, %v1935_v35  ;;  %1973 = vmatmul.bf16.gmra.mxu0 %v3599_v41 }
 0x30c   : > { %2302 = vmatmul.bf16.gmra.mxu1 %v3603_v63 }
 0x30d   : > { %v4361_v44 = vpop.eup %4360  ;;  %v2593_v53 = vadd.f32 %v2592_v37, %v2264_v34 }
 0x30e   : > { %2926 = vst.msk [vmem:[%s4656_s9 + $0x258] sm:$0xff] %vm2850_vm1, %v4361_v44  ;;  %v2682_v51 = vpop.f32.mrf.mxu3 }
 0x30f   : > { %v4363_v61 = vpop.eup %4362  ;;  %4364 = vtanh.f32 %v2593_v53  ;;  %v2683_v46 = vadd.f32 %v2682_v51, %v5151_v6  ;;  %v3612_v6 = vld [vmem:[%s4519_s5 + $0x474] sm:$0xf0] }
 0x310   : > { %2962 = vst.msk [vmem:[%s4656_s9 + $0x378] sm:$0xff] %vm2850_vm1, %v4363_v61  ;;  %v2599_v42 = vpop.f32.mrf.mxu2  ;;  %v1936_v56 = vpop.f32.mrf.mxu0 }
 0x311   : > { %4366 = vtanh.f32 %v2683_v46  ;;  %v1937_v37 = vadd.f32 %v5218_v47, %v1936_v56  ;;  %v2265_v9 = vpop.f32.mrf.mxu1 }
 0x313   : > { %v2266_v18 = vadd.f32 %v2265_v9, %v1937_v37 }
 0x315   : > { %v4365_v20 = vpop.eup %4364  ;;  %v2595_v60 = vadd.f32 %v2594_v30, %v2266_v18  ;;  %3932 = vmatmul.msk.bf16.gmra.mxu2 %vm1542_vm0, %v3631_v5  ;;  %v3615_v30 = vor.u32 %v4091_v59, %v3612_v6 }
 0x316   : > { %2927 = vst.msk [vmem:[%s4656_s9 + $0x260] sm:$0xff] %vm2850_vm1, %v4365_v20  ;;  %v2684_v24 = vpop.f32.mrf.mxu3 }
 0x317   : > { %v4367_v13 = vpop.eup %4366  ;;  %4368 = vtanh.f32 %v2595_v60  ;;  %v2685_v29 = vadd.f32 %v2684_v24, %v5165_v19 }
 0x318   : > { %2963 = vst.msk [vmem:[%s4656_s9 + $0x380] sm:$0xff] %vm2850_vm1, %v4367_v13  ;;  %v2602_v12 = vpop.f32.mrf.mxu2  ;;  %v1939_v15 = vpop.f32.mrf.mxu0 }
 0x319   : > { %4370 = vtanh.f32 %v2685_v29  ;;  %v1940_v16 = vadd.f32 %v5218_v47, %v1939_v15  ;;  %v2268_v11 = vpop.f32.mrf.mxu1 }
 0x31b   : > { %v2269_v32 = vadd.f32 %v2268_v11, %v1940_v16  ;;  %1978 = vmatmul.bf16.gmra.mxu0 %v3611_v55 }
 0x31c   : > { %2307 = vmatmul.bf16.gmra.mxu1 %v3615_v30 }
 0x31d   : > { %v4369_v25 = vpop.eup %4368  ;;  %v2598_v27 = vadd.f32 %v2597_v49, %v2269_v32 }
 0x31e   : > { %2928 = vst.msk [vmem:[%s4656_s9 + $0x268] sm:$0xff] %vm2850_vm1, %v4369_v25  ;;  %v2687_v19 = vpop.f32.mrf.mxu3 }
 0x31f   : > { %v4371_v17 = vpop.eup %4370  ;;  %4372 = vtanh.f32 %v2598_v27  ;;  %v2688_v43 = vadd.f32 %v2687_v19, %v5175_v4 }
 0x320   : > { %2964 = vst.msk [vmem:[%s4656_s9 + $0x388] sm:$0xff] %vm2850_vm1, %v4371_v17  ;;  %v2604_v45 = vpop.f32.mrf.mxu2  ;;  %v1941_v47 = vpop.f32.mrf.mxu0 }
 0x321   : > { %4374 = vtanh.f32 %v2688_v43  ;;  %v1942_v41 = vadd.f32 %v5498_v54, %v1941_v47  ;;  %v2270_v49 = vpop.f32.mrf.mxu1 }
 0x323   : > { %v2271_v63 = vadd.f32 %v2270_v49, %v1942_v41 }
 0x325   : > { %v4373_v35 = vpop.eup %4372  ;;  %v2600_v62 = vadd.f32 %v2599_v42, %v2271_v63  ;;  %3933 = vmatmul.msk.bf16.gmra.mxu2 %vm1542_vm0, %v3643_v57 }
 0x326   : > { %2929 = vst.msk [vmem:[%s4656_s9 + $0x270] sm:$0xff] %vm2850_vm1, %v4373_v35  ;;  %v2689_v4 = vpop.f32.mrf.mxu3 }
 0x327   : > { %v4375_v34 = vpop.eup %4374  ;;  %4376 = vtanh.f32 %v2600_v62  ;;  %v2690_v44 = vadd.f32 %v2689_v4, %v5189_v52 }
 0x328   : > { %2965 = vst.msk [vmem:[%s4656_s9 + $0x390] sm:$0xff] %vm2850_vm1, %v4375_v34  ;;  %v2607_v53 = vpop.f32.mrf.mxu2  ;;  %v1944_v51 = vpop.f32.mrf.mxu0 }
 0x329   : > { %4378 = vtanh.f32 %v2690_v44  ;;  %v1945_v22 = vadd.f32 %v5498_v54, %v1944_v51  ;;  %v2273_v2 = vpop.f32.mrf.mxu1 }
 0x32b   : > { %v2274_v61 = vadd.f32 %v2273_v2, %v1945_v22 }
 0x32d   : > { %v4377_v46 = vpop.eup %4376  ;;  %v2603_v42 = vadd.f32 %v2602_v12, %v2274_v61 }
 0x32e   : > { %2930 = vst.msk [vmem:[%s4656_s9 + $0x278] sm:$0xff] %vm2850_vm1, %v4377_v46  ;;  %v2692_v56 = vpop.f32.mrf.mxu3 }
 0x32f   : > { %v4379_v37 = vpop.eup %4378  ;;  %4380 = vtanh.f32 %v2603_v42  ;;  %v2693_v52 = vadd.f32 %v2692_v56, %v5199_v14 }
 0x330   : > { %2966 = vst.msk [vmem:[%s4656_s9 + $0x398] sm:$0xff] %vm2850_vm1, %v4379_v37  ;;  %v2609_v9 = vpop.f32.mrf.mxu2  ;;  %v1946_v5 = vpop.f32.mrf.mxu0 }
 0x331   : > { %4382 = vtanh.f32 %v2693_v52  ;;  %v1947_v18 = vadd.f32 %v5498_v54, %v1946_v5  ;;  %v2275_v50 = vpop.f32.mrf.mxu1 }
 0x333   : > { %v2276_v21 = vadd.f32 %v2275_v50, %v1947_v18 }
 0x335   : > { %v4381_v20 = vpop.eup %4380  ;;  %v2605_v60 = vadd.f32 %v2604_v45, %v2276_v21 }
 0x336   : > { %2931 = vst.msk [vmem:[%s4656_s9 + $0x280] sm:$0xff] %vm2850_vm1, %v4381_v20  ;;  %v2694_v59 = vpop.f32.mrf.mxu3 }
 0x337   : > { %v4383_v6 = vpop.eup %4382  ;;  %4384 = vtanh.f32 %v2605_v60  ;;  %v2695_v14 = vadd.f32 %v2694_v59, %v5213_v23 }
 0x338   : > { %2967 = vst.msk [vmem:[%s4656_s9 + $0x3a0] sm:$0xff] %vm2850_vm1, %v4383_v6  ;;  %v2612_v24 = vpop.f32.mrf.mxu2  ;;  %v1949_v13 = vpop.f32.mrf.mxu0 }
 0x339   : > { %4386 = vtanh.f32 %v2695_v14  ;;  %v1950_v29 = vadd.f32 %v5498_v54, %v1949_v13  ;;  %v2278_v55 = vpop.f32.mrf.mxu1 }
 0x33b   : > { %v2279_v12 = vadd.f32 %v2278_v55, %v1950_v29 }
 0x33d   : > { %v4385_v15 = vpop.eup %4384  ;;  %v2608_v30 = vadd.f32 %v2607_v53, %v2279_v12 }
 0x33e   : > { %2932 = vst.msk [vmem:[%s4656_s9 + $0x288] sm:$0xff] %vm2850_vm1, %v4385_v15  ;;  %v2697_v16 = vpop.f32.mrf.mxu3 }
 0x33f   : > { %v4387_v11 = vpop.eup %4386  ;;  %4388 = vtanh.f32 %v2608_v30  ;;  %v2698_v23 = vadd.f32 %v2697_v16, %v5228_v10 }
 0x340   : > { %2968 = vst.msk [vmem:[%s4656_s9 + $0x3a8] sm:$0xff] %vm2850_vm1, %v4387_v11  ;;  %v2614_v32 = vpop.f32.mrf.mxu2  ;;  %v1951_v25 = vpop.f32.mrf.mxu0 }
 0x341   : > { %4390 = vtanh.f32 %v2698_v23  ;;  %v1952_v27 = vadd.f32 %v5498_v54, %v1951_v25  ;;  %v2280_v19 = vpop.f32.mrf.mxu1 }
 0x343   : > { %v2281_v39 = vadd.f32 %v2280_v19, %v1952_v27 }
 0x345   : > { %v4389_v40 = vpop.eup %4388  ;;  %v2610_v17 = vadd.f32 %v2609_v9, %v2281_v39 }
 0x346   : > { %2933 = vst.msk [vmem:[%s4656_s9 + $0x290] sm:$0xff] %vm2850_vm1, %v4389_v40  ;;  %v2699_v43 = vpop.f32.mrf.mxu3 }
 0x347   : > { %v4391_v45 = vpop.eup %4390  ;;  %4392 = vtanh.f32 %v2610_v17  ;;  %v2700_v10 = vadd.f32 %v2699_v43, %v5242_v58 }
 0x348   : > { %2969 = vst.msk [vmem:[%s4656_s9 + $0x3b0] sm:$0xff] %vm2850_vm1, %v4391_v45  ;;  %v2617_v47 = vpop.f32.mrf.mxu2  ;;  %v1954_v41 = vpop.f32.mrf.mxu0 }
 0x349   : > { %4394 = vtanh.f32 %v2700_v10  ;;  %v1955_v49 = vadd.f32 %v5498_v54, %v1954_v41  ;;  %v2283_v57 = vpop.f32.mrf.mxu1 }
 0x34b   : > { %v2284_v63 = vadd.f32 %v2283_v57, %v1955_v49 }
 0x34d   : > { %v4393_v35 = vpop.eup %4392  ;;  %v2613_v62 = vadd.f32 %v2612_v24, %v2284_v63 }
 0x34e   : > { %2934 = vst.msk [vmem:[%s4656_s9 + $0x298] sm:$0xff] %vm2850_vm1, %v4393_v35  ;;  %v2702_v4 = vpop.f32.mrf.mxu3 }
 0x34f   : > { %v4395_v34 = vpop.eup %4394  ;;  %4396 = vtanh.f32 %v2613_v62  ;;  %v2703_v58 = vadd.f32 %v2702_v4, %v5252_v38 }
 0x350   : > { %2970 = vst.msk [vmem:[%s4656_s9 + $0x3b8] sm:$0xff] %vm2850_vm1, %v4395_v34  ;;  %v2619_v44 = vpop.f32.mrf.mxu2  ;;  %v1956_v53 = vpop.f32.mrf.mxu0 }
 0x351   : > { %4398 = vtanh.f32 %v2703_v58  ;;  %v1957_v51 = vadd.f32 %v5498_v54, %v1956_v53  ;;  %v2285_v22 = vpop.f32.mrf.mxu1 }
 0x353   : > { %v2286_v2 = vadd.f32 %v2285_v22, %v1957_v51 }
 0x355   : > { %v4397_v61 = vpop.eup %4396  ;;  %v2615_v46 = vadd.f32 %v2614_v32, %v2286_v2 }
 0x356   : > { %2935 = vst.msk [vmem:[%s4656_s9 + $0x2a0] sm:$0xff] %vm2850_vm1, %v4397_v61  ;;  %v2704_v42 = vpop.f32.mrf.mxu3 }
 0x357   : > { %v4399_v56 = vpop.eup %4398  ;;  %4400 = vtanh.f32 %v2615_v46  ;;  %v2705_v38 = vadd.f32 %v2704_v42, %v5266_v31 }
 0x358   : > { %2971 = vst.msk [vmem:[%s4656_s9 + $0x3c0] sm:$0xff] %vm2850_vm1, %v4399_v56  ;;  %v2622_v37 = vpop.f32.mrf.mxu2  ;;  %v1959_v52 = vpop.f32.mrf.mxu0 }
 0x359   : > { %4402 = vtanh.f32 %v2705_v38  ;;  %v1960_v9 = vadd.f32 %v5498_v54, %v1959_v52  ;;  %v2288_v5 = vpop.f32.mrf.mxu1 }
 0x35b   : > { %v2289_v18 = vadd.f32 %v2288_v5, %v1960_v9 }
 0x35d   : > { %v4401_v50 = vpop.eup %4400  ;;  %v2618_v21 = vadd.f32 %v2617_v47, %v2289_v18 }
 0x35e   : > { %2936 = vst.msk [vmem:[%s4656_s9 + $0x2a8] sm:$0xff] %vm2850_vm1, %v4401_v50  ;;  %v2707_v20 = vpop.f32.mrf.mxu3 }
 0x35f   : > { %v4403_v60 = vpop.eup %4402  ;;  %4404 = vtanh.f32 %v2618_v21  ;;  %v2708_v31 = vadd.f32 %v2707_v20, %v5276_v3 }
 0x360   : > { %2972 = vst.msk [vmem:[%s4656_s9 + $0x3c8] sm:$0xff] %vm2850_vm1, %v4403_v60  ;;  %v2624_v59 = vpop.f32.mrf.mxu2  ;;  %v1961_v6 = vpop.f32.mrf.mxu0 }
 0x361   : > { %4406 = vtanh.f32 %v2708_v31  ;;  %v1962_v14 = vadd.f32 %v5498_v54, %v1961_v6  ;;  %v2290_v24 = vpop.f32.mrf.mxu1 }
 0x363   : > { %v2291_v13 = vadd.f32 %v2290_v24, %v1962_v14 }
 0x365   : > { %v4405_v29 = vpop.eup %4404  ;;  %v2620_v55 = vadd.f32 %v2619_v44, %v2291_v13 }
 0x366   : > { %2937 = vst.msk [vmem:[%s4656_s9 + $0x2b0] sm:$0xff] %vm2850_vm1, %v4405_v29  ;;  %v2709_v12 = vpop.f32.mrf.mxu3 }
 0x367   : > { %v4407_v15 = vpop.eup %4406  ;;  %4408 = vtanh.f32 %v2620_v55  ;;  %v2710_v3 = vadd.f32 %v2709_v12, %v5290_v7 }
 0x368   : > { %2973 = vst.msk [vmem:[%s4656_s9 + $0x3d0] sm:$0xff] %vm2850_vm1, %v4407_v15  ;;  %v2627_v30 = vpop.f32.mrf.mxu2  ;;  %v1964_v16 = vpop.f32.mrf.mxu0 }
 0x369   : > { %4410 = vtanh.f32 %v2710_v3  ;;  %v1965_v11 = vadd.f32 %v5498_v54, %v1964_v16  ;;  %v2293_v23 = vpop.f32.mrf.mxu1 }
 0x36b   : > { %v2294_v32 = vadd.f32 %v2293_v23, %v1965_v11 }
 0x36d   : > { %v4409_v25 = vpop.eup %4408  ;;  %v2623_v27 = vadd.f32 %v2622_v37, %v2294_v32 }
 0x36e   : > { %2938 = vst.msk [vmem:[%s4656_s9 + $0x2b8] sm:$0xff] %vm2850_vm1, %v4409_v25  ;;  %v2712_v19 = vpop.f32.mrf.mxu3 }
 0x36f   : > { %v4411_v39 = vpop.eup %4410  ;;  %4412 = vtanh.f32 %v2623_v27  ;;  %v2713_v7 = vadd.f32 %v2712_v19, %v5300_v33 }
 0x370   : > { %2974 = vst.msk [vmem:[%s4656_s9 + $0x3d8] sm:$0xff] %vm2850_vm1, %v4411_v39  ;;  %v2629_v40 = vpop.f32.mrf.mxu2  ;;  %v1966_v17 = vpop.f32.mrf.mxu0 }
 0x371   : > { %4414 = vtanh.f32 %v2713_v7  ;;  %v1967_v43 = vadd.f32 %v5498_v54, %v1966_v17  ;;  %v2295_v45 = vpop.f32.mrf.mxu1 }
 0x373   : > { %v2296_v10 = vadd.f32 %v2295_v45, %v1967_v43 }
 0x375   : > { %v4413_v47 = vpop.eup %4412  ;;  %v2625_v41 = vadd.f32 %v2624_v59, %v2296_v10 }
 0x376   : > { %2939 = vst.msk [vmem:[%s4656_s9 + $0x2c0] sm:$0xff] %vm2850_vm1, %v4413_v47  ;;  %v2714_v49 = vpop.f32.mrf.mxu3 }
 0x377   : > { %v4415_v57 = vpop.eup %4414  ;;  %4416 = vtanh.f32 %v2625_v41  ;;  %v2715_v33 = vadd.f32 %v2714_v49, %v5314_v48 }
 0x378   : > { %2975 = vst.msk [vmem:[%s4656_s9 + $0x3e0] sm:$0xff] %vm2850_vm1, %v4415_v57  ;;  %v2632_v63 = vpop.f32.mrf.mxu2  ;;  %v1969_v35 = vpop.f32.mrf.mxu0 }
 0x379   : > { %4418 = vtanh.f32 %v2715_v33  ;;  %v1970_v62 = vadd.f32 %v5498_v54, %v1969_v35  ;;  %v2298_v4 = vpop.f32.mrf.mxu1 }
 0x37b   : > { %v2299_v34 = vadd.f32 %v2298_v4, %v1970_v62 }
 0x37d   : > { %v4417_v58 = vpop.eup %4416  ;;  %v2628_v44 = vadd.f32 %v2627_v30, %v2299_v34 }
 0x37e   : > { %2940 = vst.msk [vmem:[%s4656_s9 + $0x2c8] sm:$0xff] %vm2850_vm1, %v4417_v58  ;;  %v2717_v53 = vpop.f32.mrf.mxu3 }
 0x37f   : > { %v4419_v51 = vpop.eup %4418  ;;  %4420 = vtanh.f32 %v2628_v44  ;;  %v2718_v48 = vadd.f32 %v2717_v53, %v5324_v0 }
 0x380   : > { %2976 = vst.msk [vmem:[%s4656_s9 + $0x3e8] sm:$0xff] %vm2850_vm1, %v4419_v51  ;;  %v2634_v22 = vpop.f32.mrf.mxu2  ;;  %v1971_v2 = vpop.f32.mrf.mxu0 }
 0x381   : > { %4422 = vtanh.f32 %v2718_v48  ;;  %v1972_v61 = vadd.f32 %v5498_v54, %v1971_v2  ;;  %v2300_v46 = vpop.f32.mrf.mxu1 }
 0x383   : > { %v2301_v42 = vadd.f32 %v2300_v46, %v1972_v61 }
 0x385   : > { %v4421_v56 = vpop.eup %4420  ;;  %v2630_v38 = vadd.f32 %v2629_v40, %v2301_v42 }
 0x386   : > { %2941 = vst.msk [vmem:[%s4656_s9 + $0x2d0] sm:$0xff] %vm2850_vm1, %v4421_v56  ;;  %v2719_v37 = vpop.f32.mrf.mxu3 }
 0x387   : > { %v4423_v52 = vpop.eup %4422  ;;  %4424 = vtanh.f32 %v2630_v38  ;;  %v2720_v0 = vadd.f32 %v2719_v37, %v5338_v28 }
 0x388   : > { %2977 = vst.msk [vmem:[%s4656_s9 + $0x3f0] sm:$0xff] %vm2850_vm1, %v4423_v52  ;;  %v2637_v9 = vpop.f32.mrf.mxu2  ;;  %v1974_v5 = vpop.f32.mrf.mxu0 }
 0x389   : > { %4426 = vtanh.f32 %v2720_v0  ;;  %v1975_v18 = vadd.f32 %v5498_v54, %v1974_v5  ;;  %v2303_v50 = vpop.f32.mrf.mxu1 }
 0x38b   : > { %v2304_v21 = vadd.f32 %v2303_v50, %v1975_v18 }
 0x38d   : > { %v4425_v20 = vpop.eup %4424  ;;  %v2633_v60 = vadd.f32 %v2632_v63, %v2304_v21 }
 0x38e   : > { %2942 = vst.msk [vmem:[%s4656_s9 + $0x2d8] sm:$0xff] %vm2850_vm1, %v4425_v20 }
 0x38f   : > { %v4427_v31 = vpop.eup %4426  ;;  %4428 = vtanh.f32 %v2633_v60 }
 0x390   : > { %2978 = vst.msk [vmem:[%s4656_s9 + $0x3f8] sm:$0xff] %vm2850_vm1, %v4427_v31  ;;  %v2639_v59 = vpop.f32.mrf.mxu2  ;;  %v1976_v28 = vpop.f32.mrf.mxu0 }
 0x391   : > { %v1977_v6 = vadd.f32 %v5498_v54, %v1976_v28  ;;  %v2305_v14 = vpop.f32.mrf.mxu1 }
 0x393   : > { %v2306_v24 = vadd.f32 %v2305_v14, %v1977_v6 }
 0x395   : > { %v4429_v13 = vpop.eup %4428  ;;  %v2635_v29 = vadd.f32 %v2634_v22, %v2306_v24 }
 0x396   : > { %2943 = vst.msk [vmem:[%s4656_s9 + $0x2e0] sm:$0xff] %vm2850_vm1, %v4429_v13 }
 0x397   : > { %4430 = vtanh.f32 %v2635_v29 }
 0x398   : > { %v2642_v55 = vpop.f32.mrf.mxu2  ;;  %v1979_v12 = vpop.f32.mrf.mxu0 }
 0x399   : > { %v2643_v15 = vadd.f32 %v2642_v55, %v4966_v1  ;;  %v1980_v3 = vadd.f32 %v5498_v54, %v1979_v12  ;;  %v2308_v30 = vpop.f32.mrf.mxu1 }
 0x39b   : > { %4432 = vtanh.f32 %v2643_v15  ;;  %v2309_v16 = vadd.f32 %v2308_v30, %v1980_v3 }
 0x39d   : > { %v4431_v11 = vpop.eup %4430  ;;  %v2638_v23 = vadd.f32 %v2637_v9, %v2309_v16 }
 0x39e   : > { %2944 = vst.msk [vmem:[%s4656_s9 + $0x2e8] sm:$0xff] %vm2850_vm1, %v4431_v11 }
 0x39f   : > { %4434 = vtanh.f32 %v2638_v23 }
 0x3a0   : > { %v2644_v32 = vpop.f32.mrf.mxu2  ;;  %v1981_v25 = vpop.f32.mrf.mxu0 }
 0x3a1   : > { %v4433_v27 = vpop.eup %4432  ;;  %v2645_v19 = vadd.f32 %v2644_v32, %v4980_v26  ;;  %v1982_v1 = vadd.f32 %v5498_v54, %v1981_v25  ;;  %v2310_v39 = vpop.f32.mrf.mxu1 }
 0x3a2   : > { %2947 = vst.msk [vmem:[%s4656_s9 + $0x300] sm:$0xff] %vm2850_vm1, %v4433_v27 }
 0x3a3   : > { %4436 = vtanh.f32 %v2645_v19  ;;  %v2311_v7 = vadd.f32 %v2310_v39, %v1982_v1 }
 0x3a5   : > { %v4435_v40 = vpop.eup %4434  ;;  %v2640_v17 = vadd.f32 %v2639_v59, %v2311_v7 }
 0x3a6   : > { %2945 = vst.msk [vmem:[%s4656_s9 + $0x2f0] sm:$0xff] %vm2850_vm1, %v4435_v40 }
 0x3a7   : > { %4438 = vtanh.f32 %v2640_v17 }
 0x3a8   : > { %v2647_v43 = vpop.f32.mrf.mxu2 }
 0x3a9   : > { %v4437_v45 = vpop.eup %4436  ;;  %v2648_v10 = vadd.f32 %v2647_v43, %v4989_v8 }
 0x3aa   : > { %2948 = vst.msk [vmem:[%s4656_s9 + $0x308] sm:$0xff] %vm2850_vm1, %v4437_v45 }
 0x3ab   : > { %4440 = vtanh.f32 %v2648_v10 }
 0x3ad   : > { %v4439_v26 = vpop.eup %4438 }
 0x3ae   : > { %2946 = vst.msk [vmem:[%s4656_s9 + $0x2f8] sm:$0xff] %vm2850_vm1, %v4439_v26 }
 0x3b0   : > { %v2649_v54 = vpop.f32.mrf.mxu2 }
 0x3b1   : > { %v4441_v47 = vpop.eup %4440  ;;  %v2650_v41 = vadd.f32 %v2649_v54, %v5003_v36 }
 0x3b2   : > { %2949 = vst.msk [vmem:[%s4656_s9 + $0x310] sm:$0xff] %vm2850_vm1, %v4441_v47 }
 0x3b3   : > { %4442 = vtanh.f32 %v2650_v41 }
 0x3b9   : > { %v4443_v49 = vpop.eup %4442 }
 0x3ba   : > { %2950 = vst.msk [vmem:[%s4656_s9 + $0x318] sm:$0xff] %vm2850_vm1, %v4443_v49 }
 0x3bb PF: > { %s13_s12 = sadd.s32 1, %s4453_s12  }
 0x3bc   : > { %p10_p4 = scmp.ge.s32.totalorder %s13_s12, 10  }
 0x3be   :  { %12 = sbr.rel (!%p10_p4) target bundleno = 1 (0x1), region = 62 }

</bundles_post_ra>
